<compile_context>
chip_gen: v7x
topology: tpu7x:2x2x1
jax: 0.10.0
libtpu: 0.0.40
codegen_flags: <defaults>
</compile_context>

<pallas_src>
import numpy as np

import jax
import jax.numpy as jnp
from jax.experimental import pallas as pl
from jax.experimental.pallas import tpu as pltpu

EPS = 1e-5          # nn.BatchNorm2d default eps
KH = KW = 6
IN_H = IN_W = 80    # spatial size implied by Linear(128, 256): 80x80 -> (32, 2, 2)
C_PAD = 32          # per-channel vectors padded to 32 lanes (max Cout)

CONV_CFG = [        # (cin, cout, stride); kernel is 6x6 everywhere
    (2, 4, 2),
    (4, 8, 2),
    (8, 16, 1),
    (16, 32, 1),
    (32, 32, 1),
]
N_CONV = len(CONV_CFG)


def _round_up(v, m):
    return ((v + m - 1) // m) * m


# Static per-layer geometry (all Python ints, known at trace time).
_GEOM = []
_h = IN_H
for _cin, _cout, _s in CONV_CFG:
    _ho = (_h - KH) // _s + 1
    _GEOM.append(dict(cin=_cin, cout=_cout, s=_s, hin=_h, ho=_ho, wo=_ho,
                      n_out=_cout * _ho, n_pad=_round_up(_cout * _ho, 128)))
    _h = _ho

_A_OFF = [0]
for _g in _GEOM:
    _A_OFF.append(_A_OFF[-1] + _g["n_pad"])
_A_ROWS = _A_OFF[-1]                                   # 1152

# lane width of each layer's LHS slab: layer 0 reads the raw image packing (Cin*H),
# layers 1..4 read the previous layer's 128-padded output.
_SLAB = [_GEOM[0]["cin"] * _GEOM[0]["hin"]] + [_GEOM[l - 1]["n_pad"] for l in range(1, N_CONV)]
_SCR_LANES = KW * 256                                  # slab slots for layers 1..4
_SCR_ROWS = _round_up(max(g["wo"] for g in _GEOM[1:]), 8)

# Layer-0 LHS row gather (host/XLA side): output rows are permuted to
# [even width positions, then odd] so layer 1 (stride 2) can use contiguous slices.
_PWORDER = np.concatenate([np.arange(0, _GEOM[0]["wo"], 2),
                           np.arange(1, _GEOM[0]["wo"], 2)])
_LHS1_ROWS = (_GEOM[0]["s"] * _PWORDER[:, None] + np.arange(KW)[None, :]).astype(np.int32)


# ---------------------------------------------------------------------------
# The single fused Pallas kernel
# ---------------------------------------------------------------------------
def _classifier_kernel(lhs1_ref, lt1_ref, lt2_ref, lt3_ref, lt4_ref, lt5_ref,
                       a_ref, bb_ref, gb_ref, w1_ref, b1_ref, w2_ref, b2_ref,
                       hf_ref, out_ref, lhs_scr):
    lt_refs = (lt1_ref, lt2_ref, lt3_ref, lt4_ref, lt5_ref)

    f = None
    for l, g in enumerate(_GEOM):
        wo, ho, n_pad, slab = g["wo"], g["ho"], g["n_pad"], _SLAB[l]

        # ---- build this layer's LHS (wo, KW*slab): 6 shifted row-slices of f -------
        if l == 0:
            lhs = lhs1_ref[...]                                  # built host-side
        else:
            # layer-0 output rows are stored even-then-odd, so the stride-2 layer's
            # selection (rows 2*pw + j) is also a contiguous slice.
            half = (_GEOM[l - 1]["wo"] + 1) // 2
            for j in range(KW):
                r0 = (j // 2 + (j % 2) * half) if g["s"] == 2 else j
                lhs_scr[0:wo, slab * j: slab * (j + 1)] = f[r0:r0 + wo, :]
            lhs = lhs_scr[0:wo, 0:slab * KW]

        # ---- conv: ONE MXU matmul per layer ----------------------------------------
        # acc[pw, co*Ho + ph] = conv(X)[co, ph, pw]   (lane axis zero-padded to n_pad)
        acc = jnp.dot(lhs, lt_refs[l][...], preferred_element_type=jnp.float32)

        # ---- BatchNorm2d (training-mode batch stats, biased var) + ReLU ------------
        colsum = jnp.sum(acc, axis=0, keepdims=True)             # (1, n_pad)
        colsq = jnp.sum(acc * acc, axis=0, keepdims=True)        # (1, n_pad)
        row2 = jax.lax.broadcasted_iota(jnp.int32, (2, n_pad), 0)
        stats = jnp.where(row2 == 0, colsum, colsq)              # (2, n_pad)
        ch = jnp.dot(stats, a_ref[_A_OFF[l]:_A_OFF[l] + n_pad, :],
                     preferred_element_type=jnp.float32)         # (2, 32): [mean; E[x^2]]
        mean, ex2 = ch[0:1, :], ch[1:2, :]
        var = ex2 - mean * mean        # single-pass var; fine at these scales (f32)
        gamma = gb_ref[8 * l: 8 * l + 1, :]
        beta = gb_ref[8 * l + 1: 8 * l + 2, :]
        scale_c = gamma * jax.lax.rsqrt(var + EPS)               # (1, 32)
        shift_c = beta - mean * scale_c
        rowc = jax.lax.broadcasted_iota(jnp.int32, (2, C_PAD), 0)
        ss = jnp.where(rowc == 0, scale_c, shift_c)              # (2, 32)
        bc = jnp.dot(ss, bb_ref[C_PAD * l: C_PAD * (l + 1), 0:n_pad],
                     preferred_element_type=jnp.float32)         # (2, n_pad)
        f = jnp.maximum(acc * bc[0:1, :] + bc[1:2, :], 0.0)      # next layer's input

    # ---- head: flatten(NCHW) -> Linear(128,256) -> ReLU -> Linear(256,8) -----------
    # final f is (2, 128) with f[w, c*2 + h]; torch.flatten order is baked into w1_ref.
    h1 = (b1_ref[...]
          + jnp.dot(f[0:1, :], w1_ref[0], preferred_element_type=jnp.float32)
          + jnp.dot(f[1:2, :], w1_ref[1], preferred_element_type=jnp.float32))
    h1 = jnp.maximum(h1, 0.0)
    hf_ref[...] = h1
    out_ref[...] = jnp.dot(h1, w2_ref[...], preferred_element_type=jnp.float32) + b2_ref[...]


def classifier_forward(x, kparams):
    """x: (2, 80, 80) f32.  Returns (high_feature (256,), output (8,))."""
    c0, h0, w0 = x.shape
    xt = x.reshape(c0 * h0, w0).T                                # (W, Cin*H)
    # layer-0 LHS: lhs1[r, j*(Cin*H) + k] = xt[2*pworder[r] + j, k]
    lhs1 = xt[_LHS1_ROWS, :].reshape(_GEOM[0]["wo"], KW * c0 * h0)

    inputs = ([lhs1] + list(kparams["lt"])
              + [kparams["a"], kparams["b"], kparams["gb"]] + list(kparams["head"]))
    hf, out = pl.pallas_call(
        _classifier_kernel,
        out_shape=(jax.ShapeDtypeStruct((1, 256), jnp.float32),
                   jax.ShapeDtypeStruct((1, 8), jnp.float32)),
        in_specs=[pl.BlockSpec(memory_space=pltpu.MemorySpace.VMEM) for _ in inputs],
        out_specs=(pl.BlockSpec(memory_space=pltpu.MemorySpace.VMEM),
                   pl.BlockSpec(memory_space=pltpu.MemorySpace.VMEM)),
        scratch_shapes=[pltpu.VMEM((_SCR_ROWS, _SCR_LANES), jnp.float32)],
        compiler_params=pltpu.CompilerParams(vmem_limit_bytes=32 * 1024 * 1024),
    )(*inputs)
    return hf[0], out[0]


# ---------------------------------------------------------------------------
# Host-side, one-time preparation of the constant matrices the kernel consumes
# ---------------------------------------------------------------------------
def build_kernel_params(params):
    lt_list = []
    a_all = np.zeros((_A_ROWS, C_PAD), np.float32)               # per-channel averaging
    b_all = np.zeros((C_PAD * N_CONV, 256), np.float32)          # per-channel broadcast
    gb_all = np.zeros((8 * N_CONV, C_PAD), np.float32)           # gamma / beta rows

    for l, ((wt, b, gamma, beta, stride), g) in enumerate(zip(params["convs"], _GEOM)):
        wt = np.asarray(wt, np.float32)                          # (Cout, Cin, 6, 6)
        cin, cout, s, hin, ho, wo, n_pad = (g["cin"], g["cout"], g["s"], g["hin"],
                                            g["ho"], g["wo"], g["n_pad"])
        slab = _SLAB[l]
        # Lt[j*slab + c*Hin + s*ph + i, co*Ho + ph] = wt[co, c, i, j]
        lt = np.zeros((KW * slab, n_pad), np.float32)
        ph = np.arange(ho)
        for j in range(KW):
            for i in range(KH):
                for c in range(cin):
                    rows = j * slab + c * hin + s * ph + i
                    for co in range(cout):
                        lt[rows, co * ho + ph] = wt[co, c, i, j]
        lt_list.append(jnp.asarray(lt))

        for co in range(cout):
            a_all[_A_OFF[l] + co * ho + ph, co] = 1.0 / float(ho * wo)
            b_all[C_PAD * l + co, co * ho + ph] = 1.0
        gb_all[8 * l, :cout] = np.asarray(gamma, np.float32)
        gb_all[8 * l + 1, :cout] = np.asarray(beta, np.float32)
        # NOTE: conv bias `b` intentionally unused -- a per-channel constant added
        # right before training-mode BatchNorm cancels exactly.

    w1, b1, w2, b2 = params["head"]
    w1t = np.asarray(w1, np.float32).T                           # (128, 256): row = c*4+h*2+w
    C5, H5, W5 = _GEOM[-1]["cout"], _GEOM[-1]["ho"], _GEOM[-1]["wo"]
    w1pack = np.zeros((W5, _GEOM[-1]["n_pad"], 256), np.float32)
    for w_ in range(W5):
        for c in range(C5):
            for h_ in range(H5):
                w1pack[w_, c * H5 + h_, :] = w1t[(c * H5 + h_) * W5 + w_, :]
    head = [jnp.asarray(w1pack),
            jnp.asarray(np.asarray(b1, np.float32)[None, :]),    # (1, 256)
            jnp.asarray(np.asarray(w2, np.float32).T),           # (256, 8)
            jnp.asarray(np.asarray(b2, np.float32)[None, :])]    # (1, 8)
    return {"lt": lt_list, "a": jnp.asarray(a_all), "b": jnp.asarray(b_all),
            "gb": jnp.asarray(gb_all), "head": head}


def init_params(key):
    keys = jax.random.split(key, 4 * N_CONV + 4)
    ki = 0
    convs = []
    for cin, cout, stride in CONV_CFG:
        wt = jax.random.normal(keys[ki], (cout, cin, KH, KW), jnp.float32) * 0.1; ki += 1
        b = jax.random.normal(keys[ki], (cout,), jnp.float32) * 0.01; ki += 1
        gamma = 1.0 + 0.1 * jax.random.normal(keys[ki], (cout,), jnp.float32); ki += 1
        beta = 0.1 * jax.random.normal(keys[ki], (cout,), jnp.float32); ki += 1
        convs.append((wt, b, gamma, beta, stride))
    w1 = jax.random.normal(keys[ki], (256, 128), jnp.float32) * 0.05; ki += 1
    b1 = jax.random.normal(keys[ki], (256,), jnp.float32) * 0.01; ki += 1
    w2 = jax.random.normal(keys[ki], (8, 256), jnp.float32) * 0.05; ki += 1
    b2 = jax.random.normal(keys[ki], (8,), jnp.float32) * 0.01; ki += 1
    return {"convs": convs, "head": (w1, b1, w2, b2)}


# ---------------------------------------------------------------------------
# Pure-JAX reference of the PyTorch forward (includes the conv bias).
# Run EAGERLY so the Python stride ints stay static (jitting the whole param
# pytree was what broke the previous version).
# ---------------------------------------------------------------------------
def reference_forward(x, params):
    feat = x[None]                                               # (1, C, H, W)
    for wt, b, gamma, beta, stride in params["convs"]:
        feat = jax.lax.conv_general_dilated(
            feat, wt, window_strides=(stride, stride), padding="VALID",
            dimension_numbers=("NCHW", "OIHW", "NCHW"),
            precision=jax.lax.Precision.HIGHEST)
        feat = feat + b[None, :, None, None]
        mean = jnp.mean(feat, axis=(0, 2, 3), keepdims=True)
        var = jnp.mean(jnp.square(feat - mean), axis=(0, 2, 3), keepdims=True)
        feat = (feat - mean) * jax.lax.rsqrt(var + EPS)
        feat = feat * gamma[None, :, None, None] + beta[None, :, None, None]
        feat = jnp.maximum(feat, 0.0)
    flat = feat.reshape(-1)                                      # torch.flatten order
    w1, b1, w2, b2 = params["head"]
    hf = jnp.maximum(jnp.dot(w1, flat, precision=jax.lax.Precision.HIGHEST) + b1, 0.0)
    out = jnp.dot(w2, hf, precision=jax.lax.Precision.HIGHEST) + b2
    return hf, out


if __name__ == "__main__":
    key = jax.random.PRNGKey(0)
    pkey, xkey = jax.random.split(key)
    params = init_params(pkey)
    kparams = build_kernel_params(params)                        # host-side, one time

    x = jax.random.normal(xkey, (2, IN_H, IN_W), jnp.float32)

    fwd = jax.jit(classifier_forward)
    high_feature, output = fwd(x, kparams)
    jax.block_until_ready((high_feature, output))

    assert high_feature.shape == (256,), high_feature.shape
    assert output.shape == (8,), output.shape
    assert bool(jnp.isfinite(high_feature).all()) and bool(jnp.isfinite(output).all())

    # correctness vs. pure-JAX reference of the PyTorch forward (eager; no jit)
    hf_r, out_r = reference_forward(x, params)
    np.testing.assert_allclose(np.asarray(high_feature), np.asarray(hf_r),
                               rtol=5e-3, atol=5e-3)
    np.testing.assert_allclose(np.asarray(output), np.asarray(out_r),
                               rtol=5e-3, atol=5e-3)

    print("KERNEL_OK")
</pallas_src>

<mosaic_0001>
module attributes {stable_mosaic.version = 11 : i64} {
  func.func @_classifier_kernel(%arg0: memref<38x960xf32, #tpu.memory_space<vmem>>, %arg1: memref<960x256xf32, #tpu.memory_space<vmem>>, %arg2: memref<1536x256xf32, #tpu.memory_space<vmem>>, %arg3: memref<1536x256xf32, #tpu.memory_space<vmem>>, %arg4: memref<1536x256xf32, #tpu.memory_space<vmem>>, %arg5: memref<1536x128xf32, #tpu.memory_space<vmem>>, %arg6: memref<1152x32xf32, #tpu.memory_space<vmem>>, %arg7: memref<160x256xf32, #tpu.memory_space<vmem>>, %arg8: memref<40x32xf32, #tpu.memory_space<vmem>>, %arg9: memref<2x128x256xf32, #tpu.memory_space<vmem>>, %arg10: memref<1x256xf32, #tpu.memory_space<vmem>>, %arg11: memref<256x8xf32, #tpu.memory_space<vmem>>, %arg12: memref<1x8xf32, #tpu.memory_space<vmem>>, %arg13: memref<1x256xf32, #tpu.memory_space<vmem>>, %arg14: memref<1x8xf32, #tpu.memory_space<vmem>>, %arg15: memref<24x1536xf32, #tpu.memory_space<vmem>>) attributes {dimension_semantics = [], scalar_prefetch = 0 : i64, scratch_operands = 1 : i64, tpu.core_type = #tpu.core_type<tc>} {
    %c0 = arith.constant 0 : index
    %c0_0 = arith.constant 0 : index
    %0 = vector.load %arg0[%c0, %c0_0] : memref<38x960xf32, #tpu.memory_space<vmem>>, vector<38x960xf32>
    %c0_1 = arith.constant 0 : index
    %c0_2 = arith.constant 0 : index
    %1 = vector.load %arg1[%c0_1, %c0_2] : memref<960x256xf32, #tpu.memory_space<vmem>>, vector<960x256xf32>
    %cst = arith.constant dense<0.000000e+00> : vector<38x256xf32>
    %2 = tpu.matmul %0, %1, %cst {dimension_numbers = #tpu.dot_dimension_numbers<[1], [0], [0], [1], [0, 0, 1, 1], [], []>} : vector<38x960xf32>, vector<960x256xf32>, vector<38x256xf32> -> vector<38x256xf32>
    %cst_3 = arith.constant dense<0.000000e+00> : vector<256xf32>
    %3 = vector.multi_reduction <add>, %2, %cst_3 [0] : vector<38x256xf32> to vector<256xf32>
    %4 = vector.shape_cast %3 : vector<256xf32> to vector<1x256xf32>
    %5 = arith.mulf %2, %2 : vector<38x256xf32>
    %cst_4 = arith.constant dense<0.000000e+00> : vector<256xf32>
    %6 = vector.multi_reduction <add>, %5, %cst_4 [0] : vector<38x256xf32> to vector<256xf32>
    %7 = vector.shape_cast %6 : vector<256xf32> to vector<1x256xf32>
    %8 = tpu.iota {dimensions = array<i32: 0>} : vector<2x256xi32>
    %c0_i32 = arith.constant 0 : i32
    %9 = vector.broadcast %c0_i32 : i32 to vector<2x256xi32>
    %10 = arith.cmpi eq, %8, %9 : vector<2x256xi32>
    %11 = vector.shape_cast %4 : vector<1x256xf32> to vector<1x256xf32>
    %12 = vector.broadcast %11 : vector<1x256xf32> to vector<2x256xf32>
    %13 = vector.shape_cast %7 : vector<1x256xf32> to vector<1x256xf32>
    %14 = vector.broadcast %13 : vector<1x256xf32> to vector<2x256xf32>
    %15 = arith.select %10, %12, %14 : vector<2x256xi1>, vector<2x256xf32>
    %c0_5 = arith.constant 0 : index
    %c0_6 = arith.constant 0 : index
    %16 = vector.load %arg6[%c0_5, %c0_6] : memref<1152x32xf32, #tpu.memory_space<vmem>>, vector<256x32xf32>
    %cst_7 = arith.constant dense<0.000000e+00> : vector<2x32xf32>
    %17 = tpu.matmul %15, %16, %cst_7 {dimension_numbers = #tpu.dot_dimension_numbers<[1], [0], [0], [1], [0, 0, 1, 1], [], []>} : vector<2x256xf32>, vector<256x32xf32>, vector<2x32xf32> -> vector<2x32xf32>
    %18 = vector.extract_strided_slice %17 {offsets = [0, 0], sizes = [1, 32], strides = [1, 1]} : vector<2x32xf32> to vector<1x32xf32>
    %19 = vector.extract_strided_slice %17 {offsets = [1, 0], sizes = [1, 32], strides = [1, 1]} : vector<2x32xf32> to vector<1x32xf32>
    %20 = arith.mulf %18, %18 : vector<1x32xf32>
    %21 = arith.subf %19, %20 : vector<1x32xf32>
    %c0_8 = arith.constant 0 : index
    %c0_9 = arith.constant 0 : index
    %22 = vector.load %arg8[%c0_8, %c0_9] : memref<40x32xf32, #tpu.memory_space<vmem>>, vector<1x32xf32>
    %c1 = arith.constant 1 : index
    %c0_10 = arith.constant 0 : index
    %23 = vector.load %arg8[%c1, %c0_10] : memref<40x32xf32, #tpu.memory_space<vmem>>, vector<1x32xf32>
    %cst_11 = arith.constant 9.99999974E-6 : f32
    %24 = vector.broadcast %cst_11 : f32 to vector<1x32xf32>
    %25 = arith.addf %21, %24 : vector<1x32xf32>
    %26 = math.rsqrt %25 : vector<1x32xf32>
    %27 = arith.mulf %22, %26 : vector<1x32xf32>
    %28 = arith.mulf %18, %27 : vector<1x32xf32>
    %29 = arith.subf %23, %28 : vector<1x32xf32>
    %30 = tpu.iota {dimensions = array<i32: 0>} : vector<2x32xi32>
    %c0_i32_12 = arith.constant 0 : i32
    %31 = vector.broadcast %c0_i32_12 : i32 to vector<2x32xi32>
    %32 = arith.cmpi eq, %30, %31 : vector<2x32xi32>
    %33 = vector.shape_cast %27 : vector<1x32xf32> to vector<1x32xf32>
    %34 = vector.broadcast %33 : vector<1x32xf32> to vector<2x32xf32>
    %35 = vector.shape_cast %29 : vector<1x32xf32> to vector<1x32xf32>
    %36 = vector.broadcast %35 : vector<1x32xf32> to vector<2x32xf32>
    %37 = arith.select %32, %34, %36 : vector<2x32xi1>, vector<2x32xf32>
    %c0_13 = arith.constant 0 : index
    %c0_14 = arith.constant 0 : index
    %38 = vector.load %arg7[%c0_13, %c0_14] : memref<160x256xf32, #tpu.memory_space<vmem>>, vector<32x256xf32>
    %cst_15 = arith.constant dense<0.000000e+00> : vector<2x256xf32>
    %39 = tpu.matmul %37, %38, %cst_15 {dimension_numbers = #tpu.dot_dimension_numbers<[1], [0], [0], [1], [0, 0, 1, 1], [], []>} : vector<2x32xf32>, vector<32x256xf32>, vector<2x256xf32> -> vector<2x256xf32>
    %40 = vector.extract_strided_slice %39 {offsets = [0, 0], sizes = [1, 256], strides = [1, 1]} : vector<2x256xf32> to vector<1x256xf32>
    %41 = vector.broadcast %40 : vector<1x256xf32> to vector<38x256xf32>
    %42 = arith.mulf %2, %41 : vector<38x256xf32>
    %43 = vector.extract_strided_slice %39 {offsets = [1, 0], sizes = [1, 256], strides = [1, 1]} : vector<2x256xf32> to vector<1x256xf32>
    %44 = vector.broadcast %43 : vector<1x256xf32> to vector<38x256xf32>
    %45 = arith.addf %42, %44 : vector<38x256xf32>
    %cst_16 = arith.constant 0.000000e+00 : f32
    %46 = vector.broadcast %cst_16 : f32 to vector<38x256xf32>
    %47 = arith.maximumf %45, %46 : vector<38x256xf32>
    %48 = vector.extract_strided_slice %47 {offsets = [0, 0], sizes = [17, 256], strides = [1, 1]} : vector<38x256xf32> to vector<17x256xf32>
    %c0_17 = arith.constant 0 : index
    %c0_18 = arith.constant 0 : index
    %49 = vector.load %arg15[%c0_17, %c0_18] : memref<24x1536xf32, #tpu.memory_space<vmem>>, vector<17x256xf32>
    tpu.vector_store %arg15[%c0_17, %c0_18], %48 {strides = array<i32>} : memref<24x1536xf32, #tpu.memory_space<vmem>>, vector<17x256xf32>,
    %50 = vector.extract_strided_slice %47 {offsets = [19, 0], sizes = [17, 256], strides = [1, 1]} : vector<38x256xf32> to vector<17x256xf32>
    %c0_19 = arith.constant 0 : index
    %c256 = arith.constant 256 : index
    %51 = vector.load %arg15[%c0_19, %c256] : memref<24x1536xf32, #tpu.memory_space<vmem>>, vector<17x256xf32>
    tpu.vector_store %arg15[%c0_19, %c256], %50 {strides = array<i32>} : memref<24x1536xf32, #tpu.memory_space<vmem>>, vector<17x256xf32>,
    %52 = vector.extract_strided_slice %47 {offsets = [1, 0], sizes = [17, 256], strides = [1, 1]} : vector<38x256xf32> to vector<17x256xf32>
    %c0_20 = arith.constant 0 : index
    %c512 = arith.constant 512 : index
    %53 = vector.load %arg15[%c0_20, %c512] : memref<24x1536xf32, #tpu.memory_space<vmem>>, vector<17x256xf32>
    tpu.vector_store %arg15[%c0_20, %c512], %52 {strides = array<i32>} : memref<24x1536xf32, #tpu.memory_space<vmem>>, vector<17x256xf32>,
    %54 = vector.extract_strided_slice %47 {offsets = [20, 0], sizes = [17, 256], strides = [1, 1]} : vector<38x256xf32> to vector<17x256xf32>
    %c0_21 = arith.constant 0 : index
    %c768 = arith.constant 768 : index
    %55 = vector.load %arg15[%c0_21, %c768] : memref<24x1536xf32, #tpu.memory_space<vmem>>, vector<17x256xf32>
    tpu.vector_store %arg15[%c0_21, %c768], %54 {strides = array<i32>} : memref<24x1536xf32, #tpu.memory_space<vmem>>, vector<17x256xf32>,
    %56 = vector.extract_strided_slice %47 {offsets = [2, 0], sizes = [17, 256], strides = [1, 1]} : vector<38x256xf32> to vector<17x256xf32>
    %c0_22 = arith.constant 0 : index
    %c1024 = arith.constant 1024 : index
    %57 = vector.load %arg15[%c0_22, %c1024] : memref<24x1536xf32, #tpu.memory_space<vmem>>, vector<17x256xf32>
    tpu.vector_store %arg15[%c0_22, %c1024], %56 {strides = array<i32>} : memref<24x1536xf32, #tpu.memory_space<vmem>>, vector<17x256xf32>,
    %58 = vector.extract_strided_slice %47 {offsets = [21, 0], sizes = [17, 256], strides = [1, 1]} : vector<38x256xf32> to vector<17x256xf32>
    %c0_23 = arith.constant 0 : index
    %c1280 = arith.constant 1280 : index
    %59 = vector.load %arg15[%c0_23, %c1280] : memref<24x1536xf32, #tpu.memory_space<vmem>>, vector<17x256xf32>
    tpu.vector_store %arg15[%c0_23, %c1280], %58 {strides = array<i32>} : memref<24x1536xf32, #tpu.memory_space<vmem>>, vector<17x256xf32>,
    %c0_24 = arith.constant 0 : index
    %c0_25 = arith.constant 0 : index
    %60 = vector.load %arg15[%c0_24, %c0_25] : memref<24x1536xf32, #tpu.memory_space<vmem>>, vector<17x1536xf32>
    %c0_26 = arith.constant 0 : index
    %c0_27 = arith.constant 0 : index
    %61 = vector.load %arg2[%c0_26, %c0_27] : memref<1536x256xf32, #tpu.memory_space<vmem>>, vector<1536x256xf32>
    %cst_28 = arith.constant dense<0.000000e+00> : vector<17x256xf32>
    %62 = tpu.matmul %60, %61, %cst_28 {dimension_numbers = #tpu.dot_dimension_numbers<[1], [0], [0], [1], [0, 0, 1, 1], [], []>} : vector<17x1536xf32>, vector<1536x256xf32>, vector<17x256xf32> -> vector<17x256xf32>
    %cst_29 = arith.constant dense<0.000000e+00> : vector<256xf32>
    %63 = vector.multi_reduction <add>, %62, %cst_29 [0] : vector<17x256xf32> to vector<256xf32>
    %64 = vector.shape_cast %63 : vector<256xf32> to vector<1x256xf32>
    %65 = arith.mulf %62, %62 : vector<17x256xf32>
    %cst_30 = arith.constant dense<0.000000e+00> : vector<256xf32>
    %66 = vector.multi_reduction <add>, %65, %cst_30 [0] : vector<17x256xf32> to vector<256xf32>
    %67 = vector.shape_cast %66 : vector<256xf32> to vector<1x256xf32>
    %68 = tpu.iota {dimensions = array<i32: 0>} : vector<2x256xi32>
    %c0_i32_31 = arith.constant 0 : i32
    %69 = vector.broadcast %c0_i32_31 : i32 to vector<2x256xi32>
    %70 = arith.cmpi eq, %68, %69 : vector<2x256xi32>
    %71 = vector.shape_cast %64 : vector<1x256xf32> to vector<1x256xf32>
    %72 = vector.broadcast %71 : vector<1x256xf32> to vector<2x256xf32>
    %73 = vector.shape_cast %67 : vector<1x256xf32> to vector<1x256xf32>
    %74 = vector.broadcast %73 : vector<1x256xf32> to vector<2x256xf32>
    %75 = arith.select %70, %72, %74 : vector<2x256xi1>, vector<2x256xf32>
    %c256_32 = arith.constant 256 : index
    %c0_33 = arith.constant 0 : index
    %76 = vector.load %arg6[%c256_32, %c0_33] : memref<1152x32xf32, #tpu.memory_space<vmem>>, vector<256x32xf32>
    %cst_34 = arith.constant dense<0.000000e+00> : vector<2x32xf32>
    %77 = tpu.matmul %75, %76, %cst_34 {dimension_numbers = #tpu.dot_dimension_numbers<[1], [0], [0], [1], [0, 0, 1, 1], [], []>} : vector<2x256xf32>, vector<256x32xf32>, vector<2x32xf32> -> vector<2x32xf32>
    %78 = vector.extract_strided_slice %77 {offsets = [0, 0], sizes = [1, 32], strides = [1, 1]} : vector<2x32xf32> to vector<1x32xf32>
    %79 = vector.extract_strided_slice %77 {offsets = [1, 0], sizes = [1, 32], strides = [1, 1]} : vector<2x32xf32> to vector<1x32xf32>
    %80 = arith.mulf %78, %78 : vector<1x32xf32>
    %81 = arith.subf %79, %80 : vector<1x32xf32>
    %c8 = arith.constant 8 : index
    %c0_35 = arith.constant 0 : index
    %82 = vector.load %arg8[%c8, %c0_35] : memref<40x32xf32, #tpu.memory_space<vmem>>, vector<1x32xf32>
    %c9 = arith.constant 9 : index
    %c0_36 = arith.constant 0 : index
    %83 = vector.load %arg8[%c9, %c0_36] : memref<40x32xf32, #tpu.memory_space<vmem>>, vector<1x32xf32>
    %cst_37 = arith.constant 9.99999974E-6 : f32
    %84 = vector.broadcast %cst_37 : f32 to vector<1x32xf32>
    %85 = arith.addf %81, %84 : vector<1x32xf32>
    %86 = math.rsqrt %85 : vector<1x32xf32>
    %87 = arith.mulf %82, %86 : vector<1x32xf32>
    %88 = arith.mulf %78, %87 : vector<1x32xf32>
    %89 = arith.subf %83, %88 : vector<1x32xf32>
    %90 = tpu.iota {dimensions = array<i32: 0>} : vector<2x32xi32>
    %c0_i32_38 = arith.constant 0 : i32
    %91 = vector.broadcast %c0_i32_38 : i32 to vector<2x32xi32>
    %92 = arith.cmpi eq, %90, %91 : vector<2x32xi32>
    %93 = vector.shape_cast %87 : vector<1x32xf32> to vector<1x32xf32>
    %94 = vector.broadcast %93 : vector<1x32xf32> to vector<2x32xf32>
    %95 = vector.shape_cast %89 : vector<1x32xf32> to vector<1x32xf32>
    %96 = vector.broadcast %95 : vector<1x32xf32> to vector<2x32xf32>
    %97 = arith.select %92, %94, %96 : vector<2x32xi1>, vector<2x32xf32>
    %c32 = arith.constant 32 : index
    %c0_39 = arith.constant 0 : index
    %98 = vector.load %arg7[%c32, %c0_39] : memref<160x256xf32, #tpu.memory_space<vmem>>, vector<32x256xf32>
    %cst_40 = arith.constant dense<0.000000e+00> : vector<2x256xf32>
    %99 = tpu.matmul %97, %98, %cst_40 {dimension_numbers = #tpu.dot_dimension_numbers<[1], [0], [0], [1], [0, 0, 1, 1], [], []>} : vector<2x32xf32>, vector<32x256xf32>, vector<2x256xf32> -> vector<2x256xf32>
    %100 = vector.extract_strided_slice %99 {offsets = [0, 0], sizes = [1, 256], strides = [1, 1]} : vector<2x256xf32> to vector<1x256xf32>
    %101 = vector.broadcast %100 : vector<1x256xf32> to vector<17x256xf32>
    %102 = arith.mulf %62, %101 : vector<17x256xf32>
    %103 = vector.extract_strided_slice %99 {offsets = [1, 0], sizes = [1, 256], strides = [1, 1]} : vector<2x256xf32> to vector<1x256xf32>
    %104 = vector.broadcast %103 : vector<1x256xf32> to vector<17x256xf32>
    %105 = arith.addf %102, %104 : vector<17x256xf32>
    %cst_41 = arith.constant 0.000000e+00 : f32
    %106 = vector.broadcast %cst_41 : f32 to vector<17x256xf32>
    %107 = arith.maximumf %105, %106 : vector<17x256xf32>
    %108 = vector.extract_strided_slice %107 {offsets = [0, 0], sizes = [12, 256], strides = [1, 1]} : vector<17x256xf32> to vector<12x256xf32>
    %c0_42 = arith.constant 0 : index
    %c0_43 = arith.constant 0 : index
    %109 = vector.load %arg15[%c0_42, %c0_43] : memref<24x1536xf32, #tpu.memory_space<vmem>>, vector<12x256xf32>
    tpu.vector_store %arg15[%c0_42, %c0_43], %108 {strides = array<i32>} : memref<24x1536xf32, #tpu.memory_space<vmem>>, vector<12x256xf32>,
    %110 = vector.extract_strided_slice %107 {offsets = [1, 0], sizes = [12, 256], strides = [1, 1]} : vector<17x256xf32> to vector<12x256xf32>
    %c0_44 = arith.constant 0 : index
    %c256_45 = arith.constant 256 : index
    %111 = vector.load %arg15[%c0_44, %c256_45] : memref<24x1536xf32, #tpu.memory_space<vmem>>, vector<12x256xf32>
    tpu.vector_store %arg15[%c0_44, %c256_45], %110 {strides = array<i32>} : memref<24x1536xf32, #tpu.memory_space<vmem>>, vector<12x256xf32>,
    %112 = vector.extract_strided_slice %107 {offsets = [2, 0], sizes = [12, 256], strides = [1, 1]} : vector<17x256xf32> to vector<12x256xf32>
    %c0_46 = arith.constant 0 : index
    %c512_47 = arith.constant 512 : index
    %113 = vector.load %arg15[%c0_46, %c512_47] : memref<24x1536xf32, #tpu.memory_space<vmem>>, vector<12x256xf32>
    tpu.vector_store %arg15[%c0_46, %c512_47], %112 {strides = array<i32>} : memref<24x1536xf32, #tpu.memory_space<vmem>>, vector<12x256xf32>,
    %114 = vector.extract_strided_slice %107 {offsets = [3, 0], sizes = [12, 256], strides = [1, 1]} : vector<17x256xf32> to vector<12x256xf32>
    %c0_48 = arith.constant 0 : index
    %c768_49 = arith.constant 768 : index
    %115 = vector.load %arg15[%c0_48, %c768_49] : memref<24x1536xf32, #tpu.memory_space<vmem>>, vector<12x256xf32>
    tpu.vector_store %arg15[%c0_48, %c768_49], %114 {strides = array<i32>} : memref<24x1536xf32, #tpu.memory_space<vmem>>, vector<12x256xf32>,
    %116 = vector.extract_strided_slice %107 {offsets = [4, 0], sizes = [12, 256], strides = [1, 1]} : vector<17x256xf32> to vector<12x256xf32>
    %c0_50 = arith.constant 0 : index
    %c1024_51 = arith.constant 1024 : index
    %117 = vector.load %arg15[%c0_50, %c1024_51] : memref<24x1536xf32, #tpu.memory_space<vmem>>, vector<12x256xf32>
    tpu.vector_store %arg15[%c0_50, %c1024_51], %116 {strides = array<i32>} : memref<24x1536xf32, #tpu.memory_space<vmem>>, vector<12x256xf32>,
    %118 = vector.extract_strided_slice %107 {offsets = [5, 0], sizes = [12, 256], strides = [1, 1]} : vector<17x256xf32> to vector<12x256xf32>
    %c0_52 = arith.constant 0 : index
    %c1280_53 = arith.constant 1280 : index
    %119 = vector.load %arg15[%c0_52, %c1280_53] : memref<24x1536xf32, #tpu.memory_space<vmem>>, vector<12x256xf32>
    tpu.vector_store %arg15[%c0_52, %c1280_53], %118 {strides = array<i32>} : memref<24x1536xf32, #tpu.memory_space<vmem>>, vector<12x256xf32>,
    %c0_54 = arith.constant 0 : index
    %c0_55 = arith.constant 0 : index
    %120 = vector.load %arg15[%c0_54, %c0_55] : memref<24x1536xf32, #tpu.memory_space<vmem>>, vector<12x1536xf32>
    %c0_56 = arith.constant 0 : index
    %c0_57 = arith.constant 0 : index
    %121 = vector.load %arg3[%c0_56, %c0_57] : memref<1536x256xf32, #tpu.memory_space<vmem>>, vector<1536x256xf32>
    %cst_58 = arith.constant dense<0.000000e+00> : vector<12x256xf32>
    %122 = tpu.matmul %120, %121, %cst_58 {dimension_numbers = #tpu.dot_dimension_numbers<[1], [0], [0], [1], [0, 0, 1, 1], [], []>} : vector<12x1536xf32>, vector<1536x256xf32>, vector<12x256xf32> -> vector<12x256xf32>
    %cst_59 = arith.constant dense<0.000000e+00> : vector<256xf32>
    %123 = vector.multi_reduction <add>, %122, %cst_59 [0] : vector<12x256xf32> to vector<256xf32>
    %124 = vector.shape_cast %123 : vector<256xf32> to vector<1x256xf32>
    %125 = arith.mulf %122, %122 : vector<12x256xf32>
    %cst_60 = arith.constant dense<0.000000e+00> : vector<256xf32>
    %126 = vector.multi_reduction <add>, %125, %cst_60 [0] : vector<12x256xf32> to vector<256xf32>
    %127 = vector.shape_cast %126 : vector<256xf32> to vector<1x256xf32>
    %128 = tpu.iota {dimensions = array<i32: 0>} : vector<2x256xi32>
    %c0_i32_61 = arith.constant 0 : i32
    %129 = vector.broadcast %c0_i32_61 : i32 to vector<2x256xi32>
    %130 = arith.cmpi eq, %128, %129 : vector<2x256xi32>
    %131 = vector.shape_cast %124 : vector<1x256xf32> to vector<1x256xf32>
    %132 = vector.broadcast %131 : vector<1x256xf32> to vector<2x256xf32>
    %133 = vector.shape_cast %127 : vector<1x256xf32> to vector<1x256xf32>
    %134 = vector.broadcast %133 : vector<1x256xf32> to vector<2x256xf32>
    %135 = arith.select %130, %132, %134 : vector<2x256xi1>, vector<2x256xf32>
    %c512_62 = arith.constant 512 : index
    %c0_63 = arith.constant 0 : index
    %136 = vector.load %arg6[%c512_62, %c0_63] : memref<1152x32xf32, #tpu.memory_space<vmem>>, vector<256x32xf32>
    %cst_64 = arith.constant dense<0.000000e+00> : vector<2x32xf32>
    %137 = tpu.matmul %135, %136, %cst_64 {dimension_numbers = #tpu.dot_dimension_numbers<[1], [0], [0], [1], [0, 0, 1, 1], [], []>} : vector<2x256xf32>, vector<256x32xf32>, vector<2x32xf32> -> vector<2x32xf32>
    %138 = vector.extract_strided_slice %137 {offsets = [0, 0], sizes = [1, 32], strides = [1, 1]} : vector<2x32xf32> to vector<1x32xf32>
    %139 = vector.extract_strided_slice %137 {offsets = [1, 0], sizes = [1, 32], strides = [1, 1]} : vector<2x32xf32> to vector<1x32xf32>
    %140 = arith.mulf %138, %138 : vector<1x32xf32>
    %141 = arith.subf %139, %140 : vector<1x32xf32>
    %c16 = arith.constant 16 : index
    %c0_65 = arith.constant 0 : index
    %142 = vector.load %arg8[%c16, %c0_65] : memref<40x32xf32, #tpu.memory_space<vmem>>, vector<1x32xf32>
    %c17 = arith.constant 17 : index
    %c0_66 = arith.constant 0 : index
    %143 = vector.load %arg8[%c17, %c0_66] : memref<40x32xf32, #tpu.memory_space<vmem>>, vector<1x32xf32>
    %cst_67 = arith.constant 9.99999974E-6 : f32
    %144 = vector.broadcast %cst_67 : f32 to vector<1x32xf32>
    %145 = arith.addf %141, %144 : vector<1x32xf32>
    %146 = math.rsqrt %145 : vector<1x32xf32>
    %147 = arith.mulf %142, %146 : vector<1x32xf32>
    %148 = arith.mulf %138, %147 : vector<1x32xf32>
    %149 = arith.subf %143, %148 : vector<1x32xf32>
    %150 = tpu.iota {dimensions = array<i32: 0>} : vector<2x32xi32>
    %c0_i32_68 = arith.constant 0 : i32
    %151 = vector.broadcast %c0_i32_68 : i32 to vector<2x32xi32>
    %152 = arith.cmpi eq, %150, %151 : vector<2x32xi32>
    %153 = vector.shape_cast %147 : vector<1x32xf32> to vector<1x32xf32>
    %154 = vector.broadcast %153 : vector<1x32xf32> to vector<2x32xf32>
    %155 = vector.shape_cast %149 : vector<1x32xf32> to vector<1x32xf32>
    %156 = vector.broadcast %155 : vector<1x32xf32> to vector<2x32xf32>
    %157 = arith.select %152, %154, %156 : vector<2x32xi1>, vector<2x32xf32>
    %c64 = arith.constant 64 : index
    %c0_69 = arith.constant 0 : index
    %158 = vector.load %arg7[%c64, %c0_69] : memref<160x256xf32, #tpu.memory_space<vmem>>, vector<32x256xf32>
    %cst_70 = arith.constant dense<0.000000e+00> : vector<2x256xf32>
    %159 = tpu.matmul %157, %158, %cst_70 {dimension_numbers = #tpu.dot_dimension_numbers<[1], [0], [0], [1], [0, 0, 1, 1], [], []>} : vector<2x32xf32>, vector<32x256xf32>, vector<2x256xf32> -> vector<2x256xf32>
    %160 = vector.extract_strided_slice %159 {offsets = [0, 0], sizes = [1, 256], strides = [1, 1]} : vector<2x256xf32> to vector<1x256xf32>
    %161 = vector.broadcast %160 : vector<1x256xf32> to vector<12x256xf32>
    %162 = arith.mulf %122, %161 : vector<12x256xf32>
    %163 = vector.extract_strided_slice %159 {offsets = [1, 0], sizes = [1, 256], strides = [1, 1]} : vector<2x256xf32> to vector<1x256xf32>
    %164 = vector.broadcast %163 : vector<1x256xf32> to vector<12x256xf32>
    %165 = arith.addf %162, %164 : vector<12x256xf32>
    %cst_71 = arith.constant 0.000000e+00 : f32
    %166 = vector.broadcast %cst_71 : f32 to vector<12x256xf32>
    %167 = arith.maximumf %165, %166 : vector<12x256xf32>
    %168 = vector.extract_strided_slice %167 {offsets = [0, 0], sizes = [7, 256], strides = [1, 1]} : vector<12x256xf32> to vector<7x256xf32>
    %c0_72 = arith.constant 0 : index
    %c0_73 = arith.constant 0 : index
    %169 = vector.load %arg15[%c0_72, %c0_73] : memref<24x1536xf32, #tpu.memory_space<vmem>>, vector<7x256xf32>
    tpu.vector_store %arg15[%c0_72, %c0_73], %168 {strides = array<i32>} : memref<24x1536xf32, #tpu.memory_space<vmem>>, vector<7x256xf32>,
    %170 = vector.extract_strided_slice %167 {offsets = [1, 0], sizes = [7, 256], strides = [1, 1]} : vector<12x256xf32> to vector<7x256xf32>
    %c0_74 = arith.constant 0 : index
    %c256_75 = arith.constant 256 : index
    %171 = vector.load %arg15[%c0_74, %c256_75] : memref<24x1536xf32, #tpu.memory_space<vmem>>, vector<7x256xf32>
    tpu.vector_store %arg15[%c0_74, %c256_75], %170 {strides = array<i32>} : memref<24x1536xf32, #tpu.memory_space<vmem>>, vector<7x256xf32>,
    %172 = vector.extract_strided_slice %167 {offsets = [2, 0], sizes = [7, 256], strides = [1, 1]} : vector<12x256xf32> to vector<7x256xf32>
    %c0_76 = arith.constant 0 : index
    %c512_77 = arith.constant 512 : index
    %173 = vector.load %arg15[%c0_76, %c512_77] : memref<24x1536xf32, #tpu.memory_space<vmem>>, vector<7x256xf32>
    tpu.vector_store %arg15[%c0_76, %c512_77], %172 {strides = array<i32>} : memref<24x1536xf32, #tpu.memory_space<vmem>>, vector<7x256xf32>,
    %174 = vector.extract_strided_slice %167 {offsets = [3, 0], sizes = [7, 256], strides = [1, 1]} : vector<12x256xf32> to vector<7x256xf32>
    %c0_78 = arith.constant 0 : index
    %c768_79 = arith.constant 768 : index
    %175 = vector.load %arg15[%c0_78, %c768_79] : memref<24x1536xf32, #tpu.memory_space<vmem>>, vector<7x256xf32>
    tpu.vector_store %arg15[%c0_78, %c768_79], %174 {strides = array<i32>} : memref<24x1536xf32, #tpu.memory_space<vmem>>, vector<7x256xf32>,
    %176 = vector.extract_strided_slice %167 {offsets = [4, 0], sizes = [7, 256], strides = [1, 1]} : vector<12x256xf32> to vector<7x256xf32>
    %c0_80 = arith.constant 0 : index
    %c1024_81 = arith.constant 1024 : index
    %177 = vector.load %arg15[%c0_80, %c1024_81] : memref<24x1536xf32, #tpu.memory_space<vmem>>, vector<7x256xf32>
    tpu.vector_store %arg15[%c0_80, %c1024_81], %176 {strides = array<i32>} : memref<24x1536xf32, #tpu.memory_space<vmem>>, vector<7x256xf32>,
    %178 = vector.extract_strided_slice %167 {offsets = [5, 0], sizes = [7, 256], strides = [1, 1]} : vector<12x256xf32> to vector<7x256xf32>
    %c0_82 = arith.constant 0 : index
    %c1280_83 = arith.constant 1280 : index
    %179 = vector.load %arg15[%c0_82, %c1280_83] : memref<24x1536xf32, #tpu.memory_space<vmem>>, vector<7x256xf32>
    tpu.vector_store %arg15[%c0_82, %c1280_83], %178 {strides = array<i32>} : memref<24x1536xf32, #tpu.memory_space<vmem>>, vector<7x256xf32>,
    %c0_84 = arith.constant 0 : index
    %c0_85 = arith.constant 0 : index
    %180 = vector.load %arg15[%c0_84, %c0_85] : memref<24x1536xf32, #tpu.memory_space<vmem>>, vector<7x1536xf32>
    %c0_86 = arith.constant 0 : index
    %c0_87 = arith.constant 0 : index
    %181 = vector.load %arg4[%c0_86, %c0_87] : memref<1536x256xf32, #tpu.memory_space<vmem>>, vector<1536x256xf32>
    %cst_88 = arith.constant dense<0.000000e+00> : vector<7x256xf32>
    %182 = tpu.matmul %180, %181, %cst_88 {dimension_numbers = #tpu.dot_dimension_numbers<[1], [0], [0], [1], [0, 0, 1, 1], [], []>} : vector<7x1536xf32>, vector<1536x256xf32>, vector<7x256xf32> -> vector<7x256xf32>
    %cst_89 = arith.constant dense<0.000000e+00> : vector<256xf32>
    %183 = vector.multi_reduction <add>, %182, %cst_89 [0] : vector<7x256xf32> to vector<256xf32>
    %184 = vector.shape_cast %183 : vector<256xf32> to vector<1x256xf32>
    %185 = arith.mulf %182, %182 : vector<7x256xf32>
    %cst_90 = arith.constant dense<0.000000e+00> : vector<256xf32>
    %186 = vector.multi_reduction <add>, %185, %cst_90 [0] : vector<7x256xf32> to vector<256xf32>
    %187 = vector.shape_cast %186 : vector<256xf32> to vector<1x256xf32>
    %188 = tpu.iota {dimensions = array<i32: 0>} : vector<2x256xi32>
    %c0_i32_91 = arith.constant 0 : i32
    %189 = vector.broadcast %c0_i32_91 : i32 to vector<2x256xi32>
    %190 = arith.cmpi eq, %188, %189 : vector<2x256xi32>
    %191 = vector.shape_cast %184 : vector<1x256xf32> to vector<1x256xf32>
    %192 = vector.broadcast %191 : vector<1x256xf32> to vector<2x256xf32>
    %193 = vector.shape_cast %187 : vector<1x256xf32> to vector<1x256xf32>
    %194 = vector.broadcast %193 : vector<1x256xf32> to vector<2x256xf32>
    %195 = arith.select %190, %192, %194 : vector<2x256xi1>, vector<2x256xf32>
    %c768_92 = arith.constant 768 : index
    %c0_93 = arith.constant 0 : index
    %196 = vector.load %arg6[%c768_92, %c0_93] : memref<1152x32xf32, #tpu.memory_space<vmem>>, vector<256x32xf32>
    %cst_94 = arith.constant dense<0.000000e+00> : vector<2x32xf32>
    %197 = tpu.matmul %195, %196, %cst_94 {dimension_numbers = #tpu.dot_dimension_numbers<[1], [0], [0], [1], [0, 0, 1, 1], [], []>} : vector<2x256xf32>, vector<256x32xf32>, vector<2x32xf32> -> vector<2x32xf32>
    %198 = vector.extract_strided_slice %197 {offsets = [0, 0], sizes = [1, 32], strides = [1, 1]} : vector<2x32xf32> to vector<1x32xf32>
    %199 = vector.extract_strided_slice %197 {offsets = [1, 0], sizes = [1, 32], strides = [1, 1]} : vector<2x32xf32> to vector<1x32xf32>
    %200 = arith.mulf %198, %198 : vector<1x32xf32>
    %201 = arith.subf %199, %200 : vector<1x32xf32>
    %c24 = arith.constant 24 : index
    %c0_95 = arith.constant 0 : index
    %202 = vector.load %arg8[%c24, %c0_95] : memref<40x32xf32, #tpu.memory_space<vmem>>, vector<1x32xf32>
    %c25 = arith.constant 25 : index
    %c0_96 = arith.constant 0 : index
    %203 = vector.load %arg8[%c25, %c0_96] : memref<40x32xf32, #tpu.memory_space<vmem>>, vector<1x32xf32>
    %cst_97 = arith.constant 9.99999974E-6 : f32
    %204 = vector.broadcast %cst_97 : f32 to vector<1x32xf32>
    %205 = arith.addf %201, %204 : vector<1x32xf32>
    %206 = math.rsqrt %205 : vector<1x32xf32>
    %207 = arith.mulf %202, %206 : vector<1x32xf32>
    %208 = arith.mulf %198, %207 : vector<1x32xf32>
    %209 = arith.subf %203, %208 : vector<1x32xf32>
    %210 = tpu.iota {dimensions = array<i32: 0>} : vector<2x32xi32>
    %c0_i32_98 = arith.constant 0 : i32
    %211 = vector.broadcast %c0_i32_98 : i32 to vector<2x32xi32>
    %212 = arith.cmpi eq, %210, %211 : vector<2x32xi32>
    %213 = vector.shape_cast %207 : vector<1x32xf32> to vector<1x32xf32>
    %214 = vector.broadcast %213 : vector<1x32xf32> to vector<2x32xf32>
    %215 = vector.shape_cast %209 : vector<1x32xf32> to vector<1x32xf32>
    %216 = vector.broadcast %215 : vector<1x32xf32> to vector<2x32xf32>
    %217 = arith.select %212, %214, %216 : vector<2x32xi1>, vector<2x32xf32>
    %c96 = arith.constant 96 : index
    %c0_99 = arith.constant 0 : index
    %218 = vector.load %arg7[%c96, %c0_99] : memref<160x256xf32, #tpu.memory_space<vmem>>, vector<32x256xf32>
    %cst_100 = arith.constant dense<0.000000e+00> : vector<2x256xf32>
    %219 = tpu.matmul %217, %218, %cst_100 {dimension_numbers = #tpu.dot_dimension_numbers<[1], [0], [0], [1], [0, 0, 1, 1], [], []>} : vector<2x32xf32>, vector<32x256xf32>, vector<2x256xf32> -> vector<2x256xf32>
    %220 = vector.extract_strided_slice %219 {offsets = [0, 0], sizes = [1, 256], strides = [1, 1]} : vector<2x256xf32> to vector<1x256xf32>
    %221 = vector.broadcast %220 : vector<1x256xf32> to vector<7x256xf32>
    %222 = arith.mulf %182, %221 : vector<7x256xf32>
    %223 = vector.extract_strided_slice %219 {offsets = [1, 0], sizes = [1, 256], strides = [1, 1]} : vector<2x256xf32> to vector<1x256xf32>
    %224 = vector.broadcast %223 : vector<1x256xf32> to vector<7x256xf32>
    %225 = arith.addf %222, %224 : vector<7x256xf32>
    %cst_101 = arith.constant 0.000000e+00 : f32
    %226 = vector.broadcast %cst_101 : f32 to vector<7x256xf32>
    %227 = arith.maximumf %225, %226 : vector<7x256xf32>
    %228 = vector.extract_strided_slice %227 {offsets = [0, 0], sizes = [2, 256], strides = [1, 1]} : vector<7x256xf32> to vector<2x256xf32>
    %c0_102 = arith.constant 0 : index
    %c0_103 = arith.constant 0 : index
    %229 = vector.load %arg15[%c0_102, %c0_103] : memref<24x1536xf32, #tpu.memory_space<vmem>>, vector<2x256xf32>
    tpu.vector_store %arg15[%c0_102, %c0_103], %228 {strides = array<i32>} : memref<24x1536xf32, #tpu.memory_space<vmem>>, vector<2x256xf32>,
    %230 = vector.extract_strided_slice %227 {offsets = [1, 0], sizes = [2, 256], strides = [1, 1]} : vector<7x256xf32> to vector<2x256xf32>
    %c0_104 = arith.constant 0 : index
    %c256_105 = arith.constant 256 : index
    %231 = vector.load %arg15[%c0_104, %c256_105] : memref<24x1536xf32, #tpu.memory_space<vmem>>, vector<2x256xf32>
    tpu.vector_store %arg15[%c0_104, %c256_105], %230 {strides = array<i32>} : memref<24x1536xf32, #tpu.memory_space<vmem>>, vector<2x256xf32>,
    %232 = vector.extract_strided_slice %227 {offsets = [2, 0], sizes = [2, 256], strides = [1, 1]} : vector<7x256xf32> to vector<2x256xf32>
    %c0_106 = arith.constant 0 : index
    %c512_107 = arith.constant 512 : index
    %233 = vector.load %arg15[%c0_106, %c512_107] : memref<24x1536xf32, #tpu.memory_space<vmem>>, vector<2x256xf32>
    tpu.vector_store %arg15[%c0_106, %c512_107], %232 {strides = array<i32>} : memref<24x1536xf32, #tpu.memory_space<vmem>>, vector<2x256xf32>,
    %234 = vector.extract_strided_slice %227 {offsets = [3, 0], sizes = [2, 256], strides = [1, 1]} : vector<7x256xf32> to vector<2x256xf32>
    %c0_108 = arith.constant 0 : index
    %c768_109 = arith.constant 768 : index
    %235 = vector.load %arg15[%c0_108, %c768_109] : memref<24x1536xf32, #tpu.memory_space<vmem>>, vector<2x256xf32>
    tpu.vector_store %arg15[%c0_108, %c768_109], %234 {strides = array<i32>} : memref<24x1536xf32, #tpu.memory_space<vmem>>, vector<2x256xf32>,
    %236 = vector.extract_strided_slice %227 {offsets = [4, 0], sizes = [2, 256], strides = [1, 1]} : vector<7x256xf32> to vector<2x256xf32>
    %c0_110 = arith.constant 0 : index
    %c1024_111 = arith.constant 1024 : index
    %237 = vector.load %arg15[%c0_110, %c1024_111] : memref<24x1536xf32, #tpu.memory_space<vmem>>, vector<2x256xf32>
    tpu.vector_store %arg15[%c0_110, %c1024_111], %236 {strides = array<i32>} : memref<24x1536xf32, #tpu.memory_space<vmem>>, vector<2x256xf32>,
    %238 = vector.extract_strided_slice %227 {offsets = [5, 0], sizes = [2, 256], strides = [1, 1]} : vector<7x256xf32> to vector<2x256xf32>
    %c0_112 = arith.constant 0 : index
    %c1280_113 = arith.constant 1280 : index
    %239 = vector.load %arg15[%c0_112, %c1280_113] : memref<24x1536xf32, #tpu.memory_space<vmem>>, vector<2x256xf32>
    tpu.vector_store %arg15[%c0_112, %c1280_113], %238 {strides = array<i32>} : memref<24x1536xf32, #tpu.memory_space<vmem>>, vector<2x256xf32>,
    %c0_114 = arith.constant 0 : index
    %c0_115 = arith.constant 0 : index
    %240 = vector.load %arg15[%c0_114, %c0_115] : memref<24x1536xf32, #tpu.memory_space<vmem>>, vector<2x1536xf32>
    %c0_116 = arith.constant 0 : index
    %c0_117 = arith.constant 0 : index
    %241 = vector.load %arg5[%c0_116, %c0_117] : memref<1536x128xf32, #tpu.memory_space<vmem>>, vector<1536x128xf32>
    %cst_118 = arith.constant dense<0.000000e+00> : vector<2x128xf32>
    %242 = tpu.matmul %240, %241, %cst_118 {dimension_numbers = #tpu.dot_dimension_numbers<[1], [0], [0], [1], [0, 0, 1, 1], [], []>} : vector<2x1536xf32>, vector<1536x128xf32>, vector<2x128xf32> -> vector<2x128xf32>
    %cst_119 = arith.constant dense<0.000000e+00> : vector<128xf32>
    %243 = vector.multi_reduction <add>, %242, %cst_119 [0] : vector<2x128xf32> to vector<128xf32>
    %244 = vector.shape_cast %243 : vector<128xf32> to vector<1x128xf32>
    %245 = arith.mulf %242, %242 : vector<2x128xf32>
    %cst_120 = arith.constant dense<0.000000e+00> : vector<128xf32>
    %246 = vector.multi_reduction <add>, %245, %cst_120 [0] : vector<2x128xf32> to vector<128xf32>
    %247 = vector.shape_cast %246 : vector<128xf32> to vector<1x128xf32>
    %248 = tpu.iota {dimensions = array<i32: 0>} : vector<2x128xi32>
    %c0_i32_121 = arith.constant 0 : i32
    %249 = vector.broadcast %c0_i32_121 : i32 to vector<2x128xi32>
    %250 = arith.cmpi eq, %248, %249 : vector<2x128xi32>
    %251 = vector.shape_cast %244 : vector<1x128xf32> to vector<1x128xf32>
    %252 = vector.broadcast %251 : vector<1x128xf32> to vector<2x128xf32>
    %253 = vector.shape_cast %247 : vector<1x128xf32> to vector<1x128xf32>
    %254 = vector.broadcast %253 : vector<1x128xf32> to vector<2x128xf32>
    %255 = arith.select %250, %252, %254 : vector<2x128xi1>, vector<2x128xf32>
    %c1024_122 = arith.constant 1024 : index
    %c0_123 = arith.constant 0 : index
    %256 = vector.load %arg6[%c1024_122, %c0_123] : memref<1152x32xf32, #tpu.memory_space<vmem>>, vector<128x32xf32>
    %cst_124 = arith.constant dense<0.000000e+00> : vector<2x32xf32>
    %257 = tpu.matmul %255, %256, %cst_124 {dimension_numbers = #tpu.dot_dimension_numbers<[1], [0], [0], [1], [0, 0, 1, 1], [], []>} : vector<2x128xf32>, vector<128x32xf32>, vector<2x32xf32> -> vector<2x32xf32>
    %258 = vector.extract_strided_slice %257 {offsets = [0, 0], sizes = [1, 32], strides = [1, 1]} : vector<2x32xf32> to vector<1x32xf32>
    %259 = vector.extract_strided_slice %257 {offsets = [1, 0], sizes = [1, 32], strides = [1, 1]} : vector<2x32xf32> to vector<1x32xf32>
    %260 = arith.mulf %258, %258 : vector<1x32xf32>
    %261 = arith.subf %259, %260 : vector<1x32xf32>
    %c32_125 = arith.constant 32 : index
    %c0_126 = arith.constant 0 : index
    %262 = vector.load %arg8[%c32_125, %c0_126] : memref<40x32xf32, #tpu.memory_space<vmem>>, vector<1x32xf32>
    %c33 = arith.constant 33 : index
    %c0_127 = arith.constant 0 : index
    %263 = vector.load %arg8[%c33, %c0_127] : memref<40x32xf32, #tpu.memory_space<vmem>>, vector<1x32xf32>
    %cst_128 = arith.constant 9.99999974E-6 : f32
    %264 = vector.broadcast %cst_128 : f32 to vector<1x32xf32>
    %265 = arith.addf %261, %264 : vector<1x32xf32>
    %266 = math.rsqrt %265 : vector<1x32xf32>
    %267 = arith.mulf %262, %266 : vector<1x32xf32>
    %268 = arith.mulf %258, %267 : vector<1x32xf32>
    %269 = arith.subf %263, %268 : vector<1x32xf32>
    %270 = tpu.iota {dimensions = array<i32: 0>} : vector<2x32xi32>
    %c0_i32_129 = arith.constant 0 : i32
    %271 = vector.broadcast %c0_i32_129 : i32 to vector<2x32xi32>
    %272 = arith.cmpi eq, %270, %271 : vector<2x32xi32>
    %273 = vector.shape_cast %267 : vector<1x32xf32> to vector<1x32xf32>
    %274 = vector.broadcast %273 : vector<1x32xf32> to vector<2x32xf32>
    %275 = vector.shape_cast %269 : vector<1x32xf32> to vector<1x32xf32>
    %276 = vector.broadcast %275 : vector<1x32xf32> to vector<2x32xf32>
    %277 = arith.select %272, %274, %276 : vector<2x32xi1>, vector<2x32xf32>
    %c128 = arith.constant 128 : index
    %c0_130 = arith.constant 0 : index
    %278 = vector.load %arg7[%c128, %c0_130] : memref<160x256xf32, #tpu.memory_space<vmem>>, vector<32x128xf32>
    %cst_131 = arith.constant dense<0.000000e+00> : vector<2x128xf32>
    %279 = tpu.matmul %277, %278, %cst_131 {dimension_numbers = #tpu.dot_dimension_numbers<[1], [0], [0], [1], [0, 0, 1, 1], [], []>} : vector<2x32xf32>, vector<32x128xf32>, vector<2x128xf32> -> vector<2x128xf32>
    %280 = vector.extract_strided_slice %279 {offsets = [0, 0], sizes = [1, 128], strides = [1, 1]} : vector<2x128xf32> to vector<1x128xf32>
    %281 = vector.broadcast %280 : vector<1x128xf32> to vector<2x128xf32>
    %282 = arith.mulf %242, %281 : vector<2x128xf32>
    %283 = vector.extract_strided_slice %279 {offsets = [1, 0], sizes = [1, 128], strides = [1, 1]} : vector<2x128xf32> to vector<1x128xf32>
    %284 = vector.broadcast %283 : vector<1x128xf32> to vector<2x128xf32>
    %285 = arith.addf %282, %284 : vector<2x128xf32>
    %cst_132 = arith.constant 0.000000e+00 : f32
    %286 = vector.broadcast %cst_132 : f32 to vector<2x128xf32>
    %287 = arith.maximumf %285, %286 : vector<2x128xf32>
    %c0_133 = arith.constant 0 : index
    %c0_134 = arith.constant 0 : index
    %288 = vector.load %arg10[%c0_133, %c0_134] : memref<1x256xf32, #tpu.memory_space<vmem>>, vector<1x256xf32>
    %289 = vector.extract_strided_slice %287 {offsets = [0, 0], sizes = [1, 128], strides = [1, 1]} : vector<2x128xf32> to vector<1x128xf32>
    %c0_135 = arith.constant 0 : index
    %c0_136 = arith.constant 0 : index
    %c0_137 = arith.constant 0 : index
    %290 = vector.load %arg9[%c0_135, %c0_136, %c0_137] : memref<2x128x256xf32, #tpu.memory_space<vmem>>, vector<1x128x256xf32>
    %291 = vector.shape_cast %290 : vector<1x128x256xf32> to vector<128x256xf32>
    %cst_138 = arith.constant dense<0.000000e+00> : vector<1x256xf32>
    %292 = tpu.matmul %289, %291, %cst_138 {dimension_numbers = #tpu.dot_dimension_numbers<[1], [0], [0], [1], [0, 0, 1, 1], [], []>} : vector<1x128xf32>, vector<128x256xf32>, vector<1x256xf32> -> vector<1x256xf32>
    %293 = arith.addf %288, %292 : vector<1x256xf32>
    %294 = vector.extract_strided_slice %287 {offsets = [1, 0], sizes = [1, 128], strides = [1, 1]} : vector<2x128xf32> to vector<1x128xf32>
    %c1_139 = arith.constant 1 : index
    %c0_140 = arith.constant 0 : index
    %c0_141 = arith.constant 0 : index
    %295 = vector.load %arg9[%c1_139, %c0_140, %c0_141] : memref<2x128x256xf32, #tpu.memory_space<vmem>>, vector<1x128x256xf32>
    %296 = vector.shape_cast %295 : vector<1x128x256xf32> to vector<128x256xf32>
    %cst_142 = arith.constant dense<0.000000e+00> : vector<1x256xf32>
    %297 = tpu.matmul %294, %296, %cst_142 {dimension_numbers = #tpu.dot_dimension_numbers<[1], [0], [0], [1], [0, 0, 1, 1], [], []>} : vector<1x128xf32>, vector<128x256xf32>, vector<1x256xf32> -> vector<1x256xf32>
    %298 = arith.addf %293, %297 : vector<1x256xf32>
    %cst_143 = arith.constant 0.000000e+00 : f32
    %299 = vector.broadcast %cst_143 : f32 to vector<1x256xf32>
    %300 = arith.maximumf %298, %299 : vector<1x256xf32>
    %c0_144 = arith.constant 0 : index
    %c0_145 = arith.constant 0 : index
    %301 = vector.load %arg13[%c0_144, %c0_145] : memref<1x256xf32, #tpu.memory_space<vmem>>, vector<1x256xf32>
    tpu.vector_store %arg13[%c0_144, %c0_145], %300 {strides = array<i32>} : memref<1x256xf32, #tpu.memory_space<vmem>>, vector<1x256xf32>,
    %c0_146 = arith.constant 0 : index
    %c0_147 = arith.constant 0 : index
    %302 = vector.load %arg11[%c0_146, %c0_147] : memref<256x8xf32, #tpu.memory_space<vmem>>, vector<256x8xf32>
    %cst_148 = arith.constant dense<0.000000e+00> : vector<1x8xf32>
    %303 = tpu.matmul %300, %302, %cst_148 {dimension_numbers = #tpu.dot_dimension_numbers<[1], [0], [0], [1], [0, 0, 1, 1], [], []>} : vector<1x256xf32>, vector<256x8xf32>, vector<1x8xf32> -> vector<1x8xf32>
    %c0_149 = arith.constant 0 : index
    %c0_150 = arith.constant 0 : index
    %304 = vector.load %arg12[%c0_149, %c0_150] : memref<1x8xf32, #tpu.memory_space<vmem>>, vector<1x8xf32>
    %305 = arith.addf %303, %304 : vector<1x8xf32>
    %c0_151 = arith.constant 0 : index
    %c0_152 = arith.constant 0 : index
    %306 = vector.load %arg14[%c0_151, %c0_152] : memref<1x8xf32, #tpu.memory_space<vmem>>, vector<1x8xf32>
    tpu.vector_store %arg14[%c0_151, %c0_152], %305 {strides = array<i32>} : memref<1x8xf32, #tpu.memory_space<vmem>>, vector<1x8xf32>,
    return
  }
}

</mosaic_0001>

<bundles_post_ra>
// kernel: classifier_forward.1
= control target key start
LH: loop header
LB: loop body
LE: loop exit
PB: predicated region body
PF: predicated region fallthrough
CT: control target
= control target key end

     0   :  { %20 = vsyncpa [#allocation4], 0  ;;  %s13008_s0 = inlined_call_operand.vmem [shape: f32[38,960], index: 0, kind: input, shape index: {}]   ;;  %s13009_s1 = inlined_call_operand.vmem [shape: f32[960,256], index: 1, kind: input, shape index: {}]   ;;  %s13010_s2 = inlined_call_operand.vmem [shape: f32[1536,256], index: 2, kind: input, shape index: {}]   ;;  %s13011_s3 = inlined_call_operand.vmem [shape: f32[1536,256], index: 3, kind: input, shape index: {}]   ;;  %s13012_s4 = inlined_call_operand.hbm [shape: f32[1536,256], index: 4, kind: input, shape index: {}]   ;;  %s13013_s5 = inlined_call_operand.hbm [shape: f32[1536,128], index: 5, kind: input, shape index: {}]   ;;  %s13014_s6 = inlined_call_operand.vmem [shape: f32[1152,32], index: 6, kind: input, shape index: {}]   ;;  %s13015_s7 = inlined_call_operand.vmem [shape: f32[160,256], index: 7, kind: input, shape index: {}]   ;;  %s13016_s8 = inlined_call_operand.vmem [shape: f32[40,32], index: 8, kind: input, shape index: {}]   ;;  %s13017_s9 = inlined_call_operand.hbm [shape: f32[2,128,256], index: 9, kind: input, shape index: {}]   ;;  %s13018_s10 = inlined_call_operand.vmem [shape: f32[1,256], index: 10, kind: input, shape index: {}]   ;;  %s13019_s11 = inlined_call_operand.vmem [shape: f32[256,8], index: 11, kind: input, shape index: {}]   ;;  %s13020_s12 = inlined_call_operand.vmem [shape: f32[1,8], index: 12, kind: input, shape index: {}]   ;;  %s13021_s13 = inlined_call_operand.hbm [shape: f32[1,256], index: 13, kind: output, shape index: {0}]   ;;  %s13022_s14 = inlined_call_operand.hbm [shape: f32[1,8], index: 14, kind: output, shape index: {1}]  }
   0x1   :  { %21 = vsyncpa [#allocation7], 0 }
   0x2   :  { %22 = vsyncpa [#allocation5], 0 }
   0x3   :  { %23 = vsyncpa [#allocation11], 0  ;;  %s8617_s29 = smov [#allocation6]   ;;  %s8499_s17 = scalar_lea.hbm %s13013_s5, 24576 }
   0x4   :  { %s49_s30 = sshll.u32 %s8617_s29, 4  ;;  %p8500_p0 = scmp.ne.s32.totalorder %s13013_s5, %s8499_s17  ;;  %s50_s30 = int_to_ptr.vmem [resolvable:$true] %s49_s30 }
   0x5   :  { %p8503_p1 = scmp.lt.u32.totalorder %s8499_s17, %s13013_s5 }
   0x7   :  { %p8505_p2 = pnand %p8503_p1, %p8500_p0 }
   0x9   :  { %8508 = shalt.err (!%p8505_p2)
}
   0xa   :  { %s8509_s22 = scalar_lea.vmem %s50_s30, 24576  ;;  %p8514_p4 = scmp.lt.s32.totalorder %s50_s30, %s50_s30 }
   0xb   :  { %p8510_p3 = scmp.ne.s32.totalorder %s50_s30, %s8509_s22  ;;  %p8515_p5 = scmp.lt.s32.totalorder %s8509_s22, %s8509_s22 }
   0xd   :  { %p8516_p6 = por %p8515_p5, %p8514_p4 }
   0xf   :  { %p8517_p7 = pnand %p8516_p6, %p8510_p3 }
  0x11   :  { %8520 = shalt.err (!%p8517_p7)
}
  0x12   :  { %s8618_s23 = smov 128   ;;  %s8619_s24 = smov 8  }
  0x13   :  { %55 = dma.hbm_to_vmem [thread:$0]  %s13013_s5, 24576, %s50_s30, [#allocation7], %s8618_s23, %s8618_s23, %s8619_s24  }
  0x14   :  { %s8620_s27 = smov [#allocation3]   ;;  %s8521_s16 = scalar_lea.hbm %s13012_s4, 49152 }
  0x15   :  { %s37_s28 = sshll.u32 %s8620_s27, 4  ;;  %p8522_p8 = scmp.ne.s32.totalorder %s13012_s4, %s8521_s16  ;;  %s38_s28 = int_to_ptr.vmem [resolvable:$true] %s37_s28 }
  0x16   :  { %p8525_p9 = scmp.lt.u32.totalorder %s8521_s16, %s13012_s4 }
  0x18   :  { %p8527_p10 = pnand %p8525_p9, %p8522_p8 }
  0x1a   :  { %8530 = shalt.err (!%p8527_p10)
}
  0x1b   :  { %s8531_s21 = scalar_lea.vmem %s38_s28, 49152  ;;  %p8536_p12 = scmp.lt.s32.totalorder %s38_s28, %s38_s28 }
  0x1c   :  { %p8532_p11 = scmp.ne.s32.totalorder %s38_s28, %s8531_s21  ;;  %p8537_p13 = scmp.lt.s32.totalorder %s8531_s21, %s8531_s21 }
  0x1e   :  { %p8538_p0 = por %p8537_p13, %p8536_p12 }
  0x20   :  { %p8539_p1 = pnand %p8538_p0, %p8532_p11 }
  0x22   :  { %8542 = shalt.err (!%p8539_p1)
}
  0x23   :  { %s8621_s5 = smov 256   ;;  %s8622_s30 = smov 16  }
  0x24   :  { %43 = dma.hbm_to_vmem [thread:$0]  %s13012_s4, 49152, %s38_s28, [#allocation4], %s8621_s5, %s8621_s5, %s8622_s30  }
  0x25   :  { %s8623_s24 = smov [#allocation8]   ;;  %s8543_s29 = scalar_lea.hbm %s13017_s9, 8192 }
  0x26   :  { %s67_s25 = sshll.u32 %s8623_s24, 4  ;;  %p8544_p2 = scmp.ne.s32.totalorder %s13017_s9, %s8543_s29  ;;  %s68_s25 = int_to_ptr.vmem [resolvable:$true] %s67_s25 }
  0x27   :  { %p8547_p3 = scmp.lt.u32.totalorder %s8543_s29, %s13017_s9 }
  0x29   :  { %p8549_p4 = pnand %p8547_p3, %p8544_p2 }
  0x2b   :  { %8552 = shalt.err (!%p8549_p4)
}
  0x2c   :  { %s8553_s19 = scalar_lea.vmem %s68_s25, 8192  ;;  %p8558_p6 = scmp.lt.s32.totalorder %s68_s25, %s68_s25 }
  0x2d   :  { %p8554_p5 = scmp.ne.s32.totalorder %s68_s25, %s8553_s19  ;;  %p8559_p7 = scmp.lt.s32.totalorder %s8553_s19, %s8553_s19 }
  0x2f   :  { %p8560_p8 = por %p8559_p7, %p8558_p6 }
  0x31   :  { %p8561_p9 = pnand %p8560_p8, %p8554_p5 }
  0x33   :  { %8564 = shalt.err (!%p8561_p9)
}
  0x34   :  { %73 = dma.hbm_to_vmem [thread:$0]  %s13017_s9, 8192, %s68_s25, [#allocation7], %s8621_s5, %s8621_s5, %s8622_s30  }
  0x35   :  { %8609 = dma.done.wait [#allocation4], 49152  }
  0x36   :  { %8610 = vsyncadd [#allocation4], 4294918144 }
  0x37   :  { %8611 = dma.done.wait [#allocation7], 32768  }
  0x38   :  { %8612 = vsyncadd [#allocation7], 4294934528  ;;  %v130_v0 = vld [vmem:[%s13009_s1 + $0x8] sm:$0xff]  ;;  %v132_v1 = vld [vmem:[%s13009_s1 + $0x18] sm:$0xff]  ;;  %vm369_vm0 = vcmask 523264   ;;  %vm768_vm1 = vcmask 1045504  }
  0x39   :  { %v129_v2 = vld [vmem:[%s13009_s1] sm:$0xff]  ;;  %v6516_v3 = vpack.c.bf16 %v132_v1, %v130_v0  ;;  %v131_v4 = vld [vmem:[%s13009_s1 + $0x10] sm:$0xff]  ;;  %v134_v5 = vld [vmem:[%s13009_s1 + $0x28] sm:$0xff]  ;;  %vm959_vm3 = vcmask 261120   ;;  %vm1092_vm4 = vcmask 1044480   ;;  %vm1119_vm5 = vcmask 1046528  }
  0x3a   :  { %v136_v6 = vld [vmem:[%s13009_s1 + $0x38] sm:$0xff]  ;;  %v6518_v7 = vpack.c.bf16 %v131_v4, %v129_v2  ;;  %v133_v9 = vld [vmem:[%s13009_s1 + $0x20] sm:$0xff]  ;;  %v135_v10 = vld [vmem:[%s13009_s1 + $0x30] sm:$0xff]  ;;  %vm1142_vm6 = vcmask 1043456   ;;  %vm1187_vm7 = vcmask 1042432   ;;  %vm2129_vm8 = vcmask 1040384  }
  0x3b   :  { %v6520_v8 = vpack.c.bf16 %v136_v6, %v134_v5  ;;  %v138_v11 = vld [vmem:[%s13009_s1 + $0x48] sm:$0xff]  ;;  %6517 = vmatprep.subr.bf16.mxu0 %v6516_v3  ;;  %v140_v12 = vld [vmem:[%s13009_s1 + $0x58] sm:$0xff]  ;;  %v6522_v13 = vpack.c.bf16 %v135_v10, %v133_v9  ;;  %v137_v15 = vld [vmem:[%s13009_s1 + $0x40] sm:$0xff]  ;;  %vm8626_vm9 = vmmov 0   ;;  %vm5437_vm10 = vcmask 1041408  }
  0x3c   :  { %6519 = vmatpush1.bf16.msra.mxu0 %v6518_v7  ;;  %v6524_v14 = vpack.c.bf16 %v140_v12, %v138_v11  ;;  %v139_v16 = vld [vmem:[%s13009_s1 + $0x50] sm:$0xff]  ;;  %v142_v17 = vld [vmem:[%s13009_s1 + $0x68] sm:$0xff]  ;;  %v144_v18 = vld [vmem:[%s13009_s1 + $0x78] sm:$0xff] }
  0x3d   :  { %6521 = vmatprep.subr.bf16.mxu0 %v6520_v8  ;;  %v6526_v19 = vpack.c.bf16 %v139_v16, %v137_v15  ;;  %v6528_v20 = vpack.c.bf16 %v144_v18, %v142_v17  ;;  %v141_v21 = vld [vmem:[%s13009_s1 + $0x60] sm:$0xff]  ;;  %v143_v22 = vld [vmem:[%s13009_s1 + $0x70] sm:$0xff]  ;;  %v146_v23 = vld [vmem:[%s13009_s1 + $0x88] sm:$0xff] }
  0x3e   :  { %v148_v24 = vld [vmem:[%s13009_s1 + $0x98] sm:$0xff]  ;;  %v6530_v25 = vpack.c.bf16 %v143_v22, %v141_v21  ;;  %v145_v27 = vld [vmem:[%s13009_s1 + $0x80] sm:$0xff]  ;;  %v147_v28 = vld [vmem:[%s13009_s1 + $0x90] sm:$0xff] }
  0x3f   :  { %v6532_v26 = vpack.c.bf16 %v148_v24, %v146_v23  ;;  %v150_v29 = vld [vmem:[%s13009_s1 + $0xa8] sm:$0xff]  ;;  %v152_v30 = vld [vmem:[%s13009_s1 + $0xb8] sm:$0xff]  ;;  %v6534_v31 = vpack.c.bf16 %v147_v28, %v145_v27  ;;  %v149_v33 = vld [vmem:[%s13009_s1 + $0xa0] sm:$0xff] }
  0x40   :  { %6523 = vmatpush1.bf16.msra.mxu0 %v6522_v13  ;;  %v6536_v32 = vpack.c.bf16 %v152_v30, %v150_v29  ;;  %v151_v34 = vld [vmem:[%s13009_s1 + $0xb0] sm:$0xff]  ;;  %v154_v35 = vld [vmem:[%s13009_s1 + $0xc8] sm:$0xff]  ;;  %v156_v36 = vld [vmem:[%s13009_s1 + $0xd8] sm:$0xff] }
  0x41   :  { %6525 = vmatprep.subr.bf16.mxu0 %v6524_v14  ;;  %v6538_v37 = vpack.c.bf16 %v151_v34, %v149_v33  ;;  %v6540_v38 = vpack.c.bf16 %v156_v36, %v154_v35  ;;  %v153_v39 = vld [vmem:[%s13009_s1 + $0xc0] sm:$0xff]  ;;  %v155_v40 = vld [vmem:[%s13009_s1 + $0xd0] sm:$0xff]  ;;  %v90_v41 = vld [vmem:[%s13008_s0 + $0x8] sm:$0xff] }
  0x42   :  { %v158_v42 = vld [vmem:[%s13009_s1 + $0xe8] sm:$0xff]  ;;  %v160_v43 = vld [vmem:[%s13009_s1 + $0xf8] sm:$0xff]  ;;  %449 = vmatprep.mubr.f32.mxu0 %v90_v41  ;;  %v6542_v44 = vpack.c.bf16 %v155_v40, %v153_v39  ;;  %v157_v46 = vld [vmem:[%s13009_s1 + $0xe0] sm:$0xff] }
  0x43   :  { %v6544_v45 = vpack.c.bf16 %v160_v43, %v158_v42  ;;  %v159_v47 = vld [vmem:[%s13009_s1 + $0xf0] sm:$0xff]  ;;  %v162_v48 = vld [vmem:[%s13009_s1 + $0x108] sm:$0xff]  ;;  %v164_v49 = vld [vmem:[%s13009_s1 + $0x118] sm:$0xff] }
  0x44   :  { %6527 = vmatpush1.bf16.msra.mxu0 %v6526_v19  ;;  %v6546_v50 = vpack.c.bf16 %v159_v47, %v157_v46  ;;  %v6548_v51 = vpack.c.bf16 %v164_v49, %v162_v48  ;;  %v161_v52 = vld [vmem:[%s13009_s1 + $0x100] sm:$0xff]  ;;  %v163_v53 = vld [vmem:[%s13009_s1 + $0x110] sm:$0xff]  ;;  %v166_v54 = vld [vmem:[%s13009_s1 + $0x128] sm:$0xff] }
  0x45   :  { %6529 = vmatprep.subr.bf16.mxu0 %v6528_v20  ;;  %v168_v55 = vld [vmem:[%s13009_s1 + $0x138] sm:$0xff]  ;;  %v6550_v56 = vpack.c.bf16 %v163_v53, %v161_v52  ;;  %v165_v58 = vld [vmem:[%s13009_s1 + $0x120] sm:$0xff]  ;;  %v167_v59 = vld [vmem:[%s13009_s1 + $0x130] sm:$0xff] }
  0x46   :  { %v6552_v57 = vpack.c.bf16 %v168_v55, %v166_v54  ;;  %v170_v60 = vld [vmem:[%s13009_s1 + $0x148] sm:$0xff]  ;;  %v172_v61 = vld [vmem:[%s13009_s1 + $0x158] sm:$0xff]  ;;  %v6554_v62 = vpack.c.bf16 %v167_v59, %v165_v58  ;;  %v169_v0 = vld [vmem:[%s13009_s1 + $0x140] sm:$0xff] }
  0x47   :  { %v6556_v63 = vpack.c.bf16 %v172_v61, %v170_v60  ;;  %v171_v1 = vld [vmem:[%s13009_s1 + $0x150] sm:$0xff]  ;;  %v174_v2 = vld [vmem:[%s13009_s1 + $0x168] sm:$0xff]  ;;  %v176_v3 = vld [vmem:[%s13009_s1 + $0x178] sm:$0xff] }
  0x48   :  { %6531 = vmatpush1.bf16.msra.mxu0 %v6530_v25  ;;  %v6558_v4 = vpack.c.bf16 %v171_v1, %v169_v0  ;;  %v6560_v5 = vpack.c.bf16 %v176_v3, %v174_v2  ;;  %v173_v6 = vld [vmem:[%s13009_s1 + $0x160] sm:$0xff]  ;;  %v175_v7 = vld [vmem:[%s13009_s1 + $0x170] sm:$0xff]  ;;  %v178_v8 = vld [vmem:[%s13009_s1 + $0x188] sm:$0xff] }
  0x49   :  { %6533 = vmatprep.subr.bf16.mxu0 %v6532_v26  ;;  %v180_v9 = vld [vmem:[%s13009_s1 + $0x198] sm:$0xff]  ;;  %v6562_v10 = vpack.c.bf16 %v175_v7, %v173_v6  ;;  %v177_v12 = vld [vmem:[%s13009_s1 + $0x180] sm:$0xff]  ;;  %v179_v13 = vld [vmem:[%s13009_s1 + $0x190] sm:$0xff] }
  0x4a   :  { %v6564_v11 = vpack.c.bf16 %v180_v9, %v178_v8  ;;  %v182_v14 = vld [vmem:[%s13009_s1 + $0x1a8] sm:$0xff]  ;;  %v184_v15 = vld [vmem:[%s13009_s1 + $0x1b8] sm:$0xff]  ;;  %v6566_v16 = vpack.c.bf16 %v179_v13, %v177_v12  ;;  %v181_v18 = vld [vmem:[%s13009_s1 + $0x1a0] sm:$0xff] }
  0x4b   :  { %v6568_v17 = vpack.c.bf16 %v184_v15, %v182_v14  ;;  %v183_v19 = vld [vmem:[%s13009_s1 + $0x1b0] sm:$0xff]  ;;  %v186_v20 = vld [vmem:[%s13009_s1 + $0x1c8] sm:$0xff]  ;;  %v188_v21 = vld [vmem:[%s13009_s1 + $0x1d8] sm:$0xff] }
  0x4c   :  { %6535 = vmatpush1.bf16.msra.mxu0 %v6534_v31  ;;  %v6570_v22 = vpack.c.bf16 %v183_v19, %v181_v18  ;;  %v6572_v23 = vpack.c.bf16 %v188_v21, %v186_v20  ;;  %v185_v24 = vld [vmem:[%s13009_s1 + $0x1c0] sm:$0xff]  ;;  %v187_v25 = vld [vmem:[%s13009_s1 + $0x1d0] sm:$0xff]  ;;  %v190_v26 = vld [vmem:[%s13009_s1 + $0x1e8] sm:$0xff] }
  0x4d   :  { %6537 = vmatprep.subr.bf16.mxu0 %v6536_v32  ;;  %v192_v27 = vld [vmem:[%s13009_s1 + $0x1f8] sm:$0xff]  ;;  %v6574_v28 = vpack.c.bf16 %v187_v25, %v185_v24  ;;  %v189_v30 = vld [vmem:[%s13009_s1 + $0x1e0] sm:$0xff]  ;;  %v191_v31 = vld [vmem:[%s13009_s1 + $0x1f0] sm:$0xff] }
  0x4e   :  { %v6576_v29 = vpack.c.bf16 %v192_v27, %v190_v26  ;;  %v194_v32 = vld [vmem:[%s13009_s1 + $0x208] sm:$0xff]  ;;  %v196_v33 = vld [vmem:[%s13009_s1 + $0x218] sm:$0xff]  ;;  %v6578_v34 = vpack.c.bf16 %v191_v31, %v189_v30  ;;  %v193_v36 = vld [vmem:[%s13009_s1 + $0x200] sm:$0xff] }
  0x4f   :  { %v6580_v35 = vpack.c.bf16 %v196_v33, %v194_v32  ;;  %v200_v39 = vld [vmem:[%s13009_s1 + $0x238] sm:$0xff]  ;;  %v89_v40 = vld [vmem:[%s13008_s0] sm:$0xff]  ;;  %v202_v46 = vld [vmem:[%s13009_s1 + $0x248] sm:$0xff] }
  0x50   :  { %6539 = vmatpush1.bf16.msra.mxu0 %v6538_v37  ;;  %v195_v37 = vld [vmem:[%s13009_s1 + $0x210] sm:$0xff]  ;;  %v197_v43 = vld [vmem:[%s13009_s1 + $0x220] sm:$0xff]  ;;  %v204_v47 = vld [vmem:[%s13009_s1 + $0x258] sm:$0xff] }
  0x51   :  { %6541 = vmatprep.subr.bf16.mxu0 %v6540_v38  ;;  %v198_v38 = vld [vmem:[%s13009_s1 + $0x228] sm:$0xff]  ;;  %v6582_v41 = vpack.c.bf16 %v195_v37, %v193_v36  ;;  %v97_v49 = vld [vmem:[%s13008_s0 + $0x40] sm:$0xff]  ;;  %v203_v52 = vld [vmem:[%s13009_s1 + $0x250] sm:$0xff] }
  0x52   :  { %v6584_v42 = vpack.c.bf16 %v200_v39, %v198_v38  ;;  %v106_v53 = vld [vmem:[%s13008_s0 + $0x88] sm:$0xff]  ;;  %v208_v55 = vld [vmem:[%s13009_s1 + $0x278] sm:$0xff]  ;;  %v205_v59 = vld [vmem:[%s13009_s1 + $0x260] sm:$0xff] }
  0x53   :  { %v206_v54 = vld [vmem:[%s13009_s1 + $0x268] sm:$0xff]  ;;  %v207_v60 = vld [vmem:[%s13009_s1 + $0x270] sm:$0xff]  ;;  %v113_v1 = vld [vmem:[%s13008_s0 + $0xc0] sm:$0xff] }
  0x54   :  { %6543 = vmatpush1.bf16.msra.mxu0 %v6542_v44  ;;  %v199_v44 = vld [vmem:[%s13009_s1 + $0x230] sm:$0xff]  ;;  %v6592_v58 = vpack.c.bf16 %v208_v55, %v206_v54  ;;  %v114_v61 = vld [vmem:[%s13008_s0 + $0xc8] sm:$0xff]  ;;  %v6594_v0 = vpack.c.bf16 %v207_v60, %v205_v59  ;;  %v209_v3 = vld [vmem:[%s13009_s1 + $0x280] sm:$0xff] }
  0x55   :  { %6545 = vmatprep.subr.bf16.mxu0 %v6544_v45  ;;  %v98_v45 = vld [vmem:[%s13008_s0 + $0x48] sm:$0xff]  ;;  %v6586_v48 = vpack.c.bf16 %v199_v44, %v197_v43  ;;  %v216_v7 = vld [vmem:[%s13009_s1 + $0x2b8] sm:$0xff]  ;;  %v121_v9 = vld [vmem:[%s13008_s0 + $0x100] sm:$0x3f] }
  0x56   :  { %v214_v6 = vld [vmem:[%s13009_s1 + $0x2a8] sm:$0xff]  ;;  %v215_v12 = vld [vmem:[%s13009_s1 + $0x2b0] sm:$0xff]  ;;  %v92_v13 = vld [vmem:[%s13008_s0 + $0x18] sm:$0xff] }
  0x57   :  { %v218_v14 = vld [vmem:[%s13009_s1 + $0x2c8] sm:$0xff]  ;;  %v220_v15 = vld [vmem:[%s13009_s1 + $0x2d8] sm:$0xff]  ;;  %v217_v18 = vld [vmem:[%s13009_s1 + $0x2c0] sm:$0xff] }
  0x58   :  { %6547 = vmatpush1.bf16.msra.mxu0 %v6546_v50  ;;  %v6588_v50 = vpack.c.bf16 %v204_v47, %v202_v46  ;;  %v219_v19 = vld [vmem:[%s13009_s1 + $0x2d0] sm:$0xff]  ;;  %v222_v20 = vld [vmem:[%s13009_s1 + $0x2e8] sm:$0xff]  ;;  %v224_v21 = vld [vmem:[%s13009_s1 + $0x2f8] sm:$0xff] }
  0x59   :  { %6549 = vmatprep.subr.bf16.mxu0 %v6548_v51  ;;  %v201_v51 = vld [vmem:[%s13009_s1 + $0x240] sm:$0xff]  ;;  %v223_v25 = vld [vmem:[%s13009_s1 + $0x2f0] sm:$0xff]  ;;  %v226_v26 = vld [vmem:[%s13009_s1 + $0x308] sm:$0xff] }
  0x5a   :  { %v221_v24 = vld [vmem:[%s13009_s1 + $0x2e0] sm:$0xff]  ;;  %v228_v27 = vld [vmem:[%s13009_s1 + $0x318] sm:$0xff]  ;;  %v227_v31 = vld [vmem:[%s13009_s1 + $0x310] sm:$0xff] }
  0x5b   :  { %v225_v30 = vld [vmem:[%s13009_s1 + $0x300] sm:$0xff]  ;;  %v230_v32 = vld [vmem:[%s13009_s1 + $0x328] sm:$0xff]  ;;  %v232_v33 = vld [vmem:[%s13009_s1 + $0x338] sm:$0xff] }
  0x5c   :  { %6551 = vmatpush1.bf16.msra.mxu0 %v6550_v56  ;;  %v6590_v56 = vpack.c.bf16 %v203_v52, %v201_v51  ;;  %v229_v36 = vld [vmem:[%s13009_s1 + $0x320] sm:$0xff]  ;;  %v231_v37 = vld [vmem:[%s13009_s1 + $0x330] sm:$0xff]  ;;  %v234_v38 = vld [vmem:[%s13009_s1 + $0x348] sm:$0xff] }
  0x5d   :  { %6553 = vmatprep.subr.bf16.mxu0 %v6552_v57  ;;  %v105_v57 = vld [vmem:[%s13008_s0 + $0x80] sm:$0xff]  ;;  %v236_v39 = vld [vmem:[%s13009_s1 + $0x358] sm:$0xff]  ;;  %v235_v43 = vld [vmem:[%s13009_s1 + $0x350] sm:$0xff] }
  0x5e   :  { %v238_v44 = vld [vmem:[%s13009_s1 + $0x368] sm:$0xff]  ;;  %v244_v51 = vld [vmem:[%s13009_s1 + $0x398] sm:$0xff]  ;;  %v241_v54 = vld [vmem:[%s13009_s1 + $0x380] sm:$0xff] }
  0x5f   :  { %v243_v55 = vld [vmem:[%s13009_s1 + $0x390] sm:$0xff]  ;;  %v245_v60 = vld [vmem:[%s13009_s1 + $0x3a0] sm:$0xff] }
  0x60   :  { %6555 = vmatpush1.bf16.msra.mxu0 %v6554_v62  ;;  %v210_v62 = vld [vmem:[%s13009_s1 + $0x288] sm:$0xff] }
  0x61   :  { %6557 = vmatprep.subr.bf16.mxu0 %v6556_v63  ;;  %v212_v63 = vld [vmem:[%s13009_s1 + $0x298] sm:$0xff] }
  0x62   :  { %v6596_v2 = vpack.c.bf16 %v212_v63, %v210_v62  ;;  %v250_v62 = vld [vmem:[%s13009_s1 + $0x3c8] sm:$0xff]  ;;  %v252_v63 = vld [vmem:[%s13009_s1 + $0x3d8] sm:$0xff] }
  0x64   :  { %6559 = vmatpush1.bf16.msra.mxu0 %v6558_v4  ;;  %v211_v4 = vld [vmem:[%s13009_s1 + $0x290] sm:$0xff] }
  0x65   :  { %6561 = vmatprep.subr.bf16.mxu0 %v6560_v5  ;;  %v122_v5 = vld [vmem:[%s13008_s0 + $0x108] sm:$0x3f]  ;;  %v6598_v8 = vpack.c.bf16 %v211_v4, %v209_v3  ;;  %v251_v3 = vld [vmem:[%s13009_s1 + $0x3d0] sm:$0xff] }
  0x66   :  { %v254_v4 = vld [vmem:[%s13009_s1 + $0x3e8] sm:$0xff] }
  0x68   :  { %6563 = vmatpush1.bf16.msra.mxu0 %v6562_v10  ;;  %v6600_v10 = vpack.c.bf16 %v216_v7, %v214_v6 }
  0x69   :  { %6565 = vmatprep.subr.bf16.mxu0 %v6564_v11  ;;  %v213_v11 = vld [vmem:[%s13009_s1 + $0x2a0] sm:$0xff] }
  0x6c   :  { %6567 = vmatpush1.bf16.msra.mxu0 %v6566_v16  ;;  %v6602_v16 = vpack.c.bf16 %v215_v12, %v213_v11  ;;  %v260_v11 = vld [vmem:[%s13009_s1 + $0x418] sm:$0xff] }
  0x6d   :  { %6569 = vmatprep.subr.bf16.mxu0 %v6568_v17  ;;  %v6604_v17 = vpack.c.bf16 %v220_v15, %v218_v14  ;;  %v257_v14 = vld [vmem:[%s13009_s1 + $0x400] sm:$0xff]  ;;  %v259_v15 = vld [vmem:[%s13009_s1 + $0x410] sm:$0xff] }
  0x70   :  { %6571 = vmatpush1.bf16.msra.mxu0 %v6570_v22  ;;  %v6606_v22 = vpack.c.bf16 %v219_v19, %v217_v18  ;;  %v91_v18 = vld [vmem:[%s13008_s0 + $0x10] sm:$0xff]  ;;  %v6646_v19 = vpack.c.bf16 %v259_v15, %v257_v14  ;;  %v293_v14 = vld [vmem:[%s13009_s1 + $0x520] sm:$0xff] }
  0x71   :  { %6573 = vmatprep.subr.bf16.mxu0 %v6572_v23  ;;  %v6608_v23 = vpack.c.bf16 %v224_v21, %v222_v20  ;;  %v261_v21 = vld [vmem:[%s13009_s1 + $0x420] sm:$0xff]  ;;  %v295_v15 = vld [vmem:[%s13009_s1 + $0x530] sm:$0xff] }
  0x74   :  { %6575 = vmatpush1.bf16.msra.mxu0 %v6574_v28  ;;  %v6610_v28 = vpack.c.bf16 %v223_v25, %v221_v24  ;;  %v266_v24 = vld [vmem:[%s13009_s1 + $0x448] sm:$0xff]  ;;  %v268_v25 = vld [vmem:[%s13009_s1 + $0x458] sm:$0xff] }
  0x75   :  { %6577 = vmatprep.subr.bf16.mxu0 %v6576_v29  ;;  %v6612_v29 = vpack.c.bf16 %v228_v27, %v226_v26  ;;  %v99_v27 = vld [vmem:[%s13008_s0 + $0x50] sm:$0xff] }
  0x78   :  { %6579 = vmatpush1.bf16.msra.mxu0 %v6578_v34  ;;  %v6614_v34 = vpack.c.bf16 %v227_v31, %v225_v30  ;;  %v267_v30 = vld [vmem:[%s13009_s1 + $0x450] sm:$0xff]  ;;  %v108_v31 = vld [vmem:[%s13008_s0 + $0x98] sm:$0xff] }
  0x79   :  { %6581 = vmatprep.subr.bf16.mxu0 %v6580_v35  ;;  %v6616_v35 = vpack.c.bf16 %v232_v33, %v230_v32  ;;  %v270_v32 = vld [vmem:[%s13009_s1 + $0x468] sm:$0xff]  ;;  %v272_v33 = vld [vmem:[%s13009_s1 + $0x478] sm:$0xff] }
  0x7b   :  { %450 = vmatmul.mubr.f32.vlgmr.msra.gmra.mrb[0].mxu0 %v89_v40  ;;  %v6618_v40 = vpack.c.bf16 %v231_v37, %v229_v36  ;;  %v6656_v36 = vpack.c.bf16 %v272_v33, %v270_v32  ;;  %v269_v37 = vld [vmem:[%s13009_s1 + $0x460] sm:$0xff]  ;;  %v307_v33 = vld [vmem:[%s13009_s1 + $0x590] sm:$0xff] }
  0x7c   :  { %6583 = vmatpush1.bf16.msra.mxu0 %v6582_v41  ;;  %455 = vmatprep.mubr.f32.mxu0 %v98_v45  ;;  %v6620_v41 = vpack.c.bf16 %v236_v39, %v234_v38  ;;  %v240_v45 = vld [vmem:[%s13009_s1 + $0x378] sm:$0xff]  ;;  %v271_v38 = vld [vmem:[%s13009_s1 + $0x470] sm:$0xff]  ;;  %v305_v32 = vld [vmem:[%s13009_s1 + $0x580] sm:$0xff] }
  0x7d   :  { %6585 = vmatprep.subr.bf16.mxu0 %v6584_v42  ;;  %v233_v42 = vld [vmem:[%s13009_s1 + $0x340] sm:$0xff]  ;;  %v6624_v47 = vpack.c.bf16 %v240_v45, %v238_v44  ;;  %v116_v39 = vld [vmem:[%s13008_s0 + $0xd8] sm:$0xff] }
  0x7e   :  { %v6622_v46 = vpack.c.bf16 %v235_v43, %v233_v42  ;;  %v6658_v42 = vpack.c.bf16 %v271_v38, %v269_v37  ;;  %v115_v43 = vld [vmem:[%s13008_s0 + $0xd0] sm:$0xff]  ;;  %v273_v45 = vld [vmem:[%s13009_s1 + $0x480] sm:$0xff] }
  0x7f   :  { %456 = vmatmul.mubr.f32.gmra.mrb[2].mxu0 %v97_v49  ;;  %v239_v49 = vld [vmem:[%s13009_s1 + $0x370] sm:$0xff]  ;;  %v309_v38 = vld [vmem:[%s13009_s1 + $0x5a0] sm:$0xff] }
  0x80   :  { %6587 = vmatpush1.bf16.msra.mxu0 %v6586_v48  ;;  %461 = vmatprep.mubr.f32.mxu0 %v106_v53  ;;  %v237_v48 = vld [vmem:[%s13009_s1 + $0x360] sm:$0xff] }
  0x81   :  { %6589 = vmatprep.subr.bf16.mxu0 %v6588_v50  ;;  %v242_v50 = vld [vmem:[%s13009_s1 + $0x388] sm:$0xff]  ;;  %v6626_v52 = vpack.c.bf16 %v239_v49, %v237_v48  ;;  %v280_v49 = vld [vmem:[%s13009_s1 + $0x4b8] sm:$0xff] }
  0x82   :  { %v6628_v53 = vpack.c.bf16 %v244_v51, %v242_v50  ;;  %v278_v48 = vld [vmem:[%s13009_s1 + $0x4a8] sm:$0xff]  ;;  %v123_v51 = vld [vmem:[%s13008_s0 + $0x110] sm:$0x3f] }
  0x83   :  { %462 = vmatmul.mubr.f32.gmra.mrb[4].mxu0 %v105_v57  ;;  %v248_v57 = vld [vmem:[%s13009_s1 + $0x3b8] sm:$0xff] }
  0x84   :  { %6591 = vmatpush1.bf16.msra.mxu0 %v6590_v56  ;;  %467 = vmatprep.mubr.f32.mxu0 %v114_v61  ;;  %v246_v56 = vld [vmem:[%s13009_s1 + $0x3a8] sm:$0xff]  ;;  %v247_v61 = vld [vmem:[%s13009_s1 + $0x3b0] sm:$0xff] }
  0x85   :  { %6593 = vmatprep.subr.bf16.mxu0 %v6592_v58  ;;  %v6630_v58 = vpack.c.bf16 %v243_v55, %v241_v54  ;;  %v6632_v59 = vpack.c.bf16 %v248_v57, %v246_v56  ;;  %v279_v54 = vld [vmem:[%s13009_s1 + $0x4b0] sm:$0xff]  ;;  %v94_v55 = vld [vmem:[%s13008_s0 + $0x28] sm:$0xff]  ;;  %v284_v57 = vld [vmem:[%s13009_s1 + $0x4d8] sm:$0xff] }
  0x86   :  { %v282_v56 = vld [vmem:[%s13009_s1 + $0x4c8] sm:$0xff] }
  0x87   :  { %468 = vmatmul.mubr.f32.gmra.mrb[6].mxu0 %v113_v1  ;;  %v6636_v1 = vpack.c.bf16 %v252_v63, %v250_v62  ;;  %v286_v62 = vld [vmem:[%s13009_s1 + $0x4e8] sm:$0xff]  ;;  %v288_v63 = vld [vmem:[%s13009_s1 + $0x4f8] sm:$0xff] }
  0x88   :  { %6595 = vmatpush1.bf16.msra.mxu0 %v6594_v0  ;;  %473 = vmatprep.mubr.f32.mxu0 %v122_v5  ;;  %v6634_v0 = vpack.c.bf16 %v247_v61, %v245_v60  ;;  %v256_v5 = vld [vmem:[%s13009_s1 + $0x3f8] sm:$0xff]  ;;  %v281_v60 = vld [vmem:[%s13009_s1 + $0x4c0] sm:$0xff]  ;;  %v283_v61 = vld [vmem:[%s13009_s1 + $0x4d0] sm:$0xff] }
  0x89   :  { %6597 = vmatprep.subr.bf16.mxu0 %v6596_v2  ;;  %v249_v2 = vld [vmem:[%s13009_s1 + $0x3c0] sm:$0xff]  ;;  %v6640_v7 = vpack.c.bf16 %v256_v5, %v254_v4  ;;  %v290_v4 = vld [vmem:[%s13009_s1 + $0x508] sm:$0xff]  ;;  %v292_v5 = vld [vmem:[%s13009_s1 + $0x518] sm:$0xff] }
  0x8a   :  { %v6638_v6 = vpack.c.bf16 %v251_v3, %v249_v2  ;;  %v285_v2 = vld [vmem:[%s13009_s1 + $0x4e0] sm:$0xff]  ;;  %v287_v3 = vld [vmem:[%s13009_s1 + $0x4f0] sm:$0xff] }
  0x8b   :  { %474 = vmatmul.mubr.f32.gmra.mrb[8].mxu0 %v121_v9  ;;  %v255_v9 = vld [vmem:[%s13009_s1 + $0x3f0] sm:$0xff] }
  0x8c   :  { %6599 = vmatpush1.bf16.msra.mxu0 %v6598_v8  ;;  %544 = vmatprep.mubr.f32.mxu0 %v92_v13  ;;  %v253_v8 = vld [vmem:[%s13009_s1 + $0x3e0] sm:$0xff] }
  0x8d   :  { %6601 = vmatprep.subr.bf16.mxu0 %v6600_v10  ;;  %v258_v10 = vld [vmem:[%s13009_s1 + $0x408] sm:$0xff]  ;;  %v6642_v12 = vpack.c.bf16 %v255_v9, %v253_v8  ;;  %v289_v8 = vld [vmem:[%s13009_s1 + $0x500] sm:$0xff]  ;;  %v291_v9 = vld [vmem:[%s13009_s1 + $0x510] sm:$0xff] }
  0x8e   :  { %v6644_v13 = vpack.c.bf16 %v260_v11, %v258_v10  ;;  %v294_v10 = vld [vmem:[%s13009_s1 + $0x528] sm:$0xff]  ;;  %v296_v11 = vld [vmem:[%s13009_s1 + $0x538] sm:$0xff] }
  0x90   :  { %6603 = vmatpush1.bf16.msra.mxu0 %v6602_v16  ;;  %v262_v16 = vld [vmem:[%s13009_s1 + $0x428] sm:$0xff] }
  0x91   :  { %6605 = vmatprep.subr.bf16.mxu0 %v6604_v17  ;;  %v264_v17 = vld [vmem:[%s13009_s1 + $0x438] sm:$0xff] }
  0x92   :  { %v6648_v20 = vpack.c.bf16 %v264_v17, %v262_v16  ;;  %v298_v16 = vld [vmem:[%s13009_s1 + $0x548] sm:$0xff]  ;;  %v300_v17 = vld [vmem:[%s13009_s1 + $0x558] sm:$0xff] }
  0x94   :  { %6607 = vmatpush1.bf16.msra.mxu0 %v6606_v22  ;;  %v263_v22 = vld [vmem:[%s13009_s1 + $0x430] sm:$0xff] }
  0x95   :  { %6609 = vmatprep.subr.bf16.mxu0 %v6608_v23  ;;  %v100_v23 = vld [vmem:[%s13008_s0 + $0x58] sm:$0xff]  ;;  %v6650_v26 = vpack.c.bf16 %v263_v22, %v261_v21  ;;  %v299_v21 = vld [vmem:[%s13009_s1 + $0x550] sm:$0xff]  ;;  %v302_v22 = vld [vmem:[%s13009_s1 + $0x568] sm:$0xff] }
  0x98   :  { %6611 = vmatpush1.bf16.msra.mxu0 %v6610_v28  ;;  %v6652_v28 = vpack.c.bf16 %v268_v25, %v266_v24 }
  0x99   :  { %6613 = vmatprep.subr.bf16.mxu0 %v6612_v29  ;;  %v265_v29 = vld [vmem:[%s13009_s1 + $0x440] sm:$0xff] }
  0x9c   :  { %6615 = vmatpush1.bf16.msra.mxu0 %v6614_v34  ;;  %v6654_v34 = vpack.c.bf16 %v267_v30, %v265_v29  ;;  %v308_v29 = vld [vmem:[%s13009_s1 + $0x598] sm:$0xff] }
  0x9d   :  { %6617 = vmatprep.subr.bf16.mxu0 %v6616_v35  ;;  %v107_v35 = vld [vmem:[%s13008_s0 + $0x90] sm:$0xff] }
  0xa0   :  { %6619 = vmatpush1.bf16.msra.mxu0 %v6618_v40  ;;  %v274_v40 = vld [vmem:[%s13009_s1 + $0x488] sm:$0xff] }
  0xa1   :  { %6621 = vmatprep.subr.bf16.mxu0 %v6620_v41  ;;  %v276_v41 = vld [vmem:[%s13009_s1 + $0x498] sm:$0xff] }
  0xa2   :  { %v6660_v44 = vpack.c.bf16 %v276_v41, %v274_v40  ;;  %v314_v40 = vld [vmem:[%s13009_s1 + $0x5c8] sm:$0xff]  ;;  %v316_v41 = vld [vmem:[%s13009_s1 + $0x5d8] sm:$0xff] }
  0xa4   :  { %6623 = vmatpush1.bf16.msra.mxu0 %v6622_v46  ;;  %v275_v46 = vld [vmem:[%s13009_s1 + $0x490] sm:$0xff] }
  0xa5   :  { %6625 = vmatprep.subr.bf16.mxu0 %v6624_v47  ;;  %v124_v47 = vld [vmem:[%s13008_s0 + $0x118] sm:$0x3f]  ;;  %v6662_v50 = vpack.c.bf16 %v275_v46, %v273_v45  ;;  %v315_v45 = vld [vmem:[%s13009_s1 + $0x5d0] sm:$0xff]  ;;  %v318_v46 = vld [vmem:[%s13009_s1 + $0x5e8] sm:$0xff] }
  0xa8   :  { %6627 = vmatpush1.bf16.msra.mxu0 %v6626_v52  ;;  %v6664_v52 = vpack.c.bf16 %v280_v49, %v278_v48 }
  0xa9   :  { %6629 = vmatprep.subr.bf16.mxu0 %v6628_v53  ;;  %v277_v53 = vld [vmem:[%s13009_s1 + $0x4a0] sm:$0xff] }
  0xac   :  { %6631 = vmatpush1.bf16.msra.mxu0 %v6630_v58  ;;  %v6666_v58 = vpack.c.bf16 %v279_v54, %v277_v53  ;;  %v324_v53 = vld [vmem:[%s13009_s1 + $0x618] sm:$0xff] }
  0xad   :  { %6633 = vmatprep.subr.bf16.mxu0 %v6632_v59  ;;  %v6668_v59 = vpack.c.bf16 %v284_v57, %v282_v56  ;;  %v321_v56 = vld [vmem:[%s13009_s1 + $0x600] sm:$0xff]  ;;  %v323_v57 = vld [vmem:[%s13009_s1 + $0x610] sm:$0xff] }
  0xb0   :  { %6635 = vmatpush1.bf16.msra.mxu0 %v6634_v0  ;;  %v6670_v0 = vpack.c.bf16 %v283_v61, %v281_v60  ;;  %v93_v60 = vld [vmem:[%s13008_s0 + $0x20] sm:$0xff]  ;;  %v6710_v61 = vpack.c.bf16 %v323_v57, %v321_v56  ;;  %v359_v57 = vld [vmem:[%s13009_s1 + $0x730] sm:$0xff] }
  0xb1   :  { %6637 = vmatprep.subr.bf16.mxu0 %v6636_v1  ;;  %v6672_v1 = vpack.c.bf16 %v288_v63, %v286_v62  ;;  %v325_v63 = vld [vmem:[%s13009_s1 + $0x620] sm:$0xff] }
  0xb2   :  { %v357_v56 = vld [vmem:[%s13009_s1 + $0x720] sm:$0xff] }
  0xb4   :  { %6639 = vmatpush1.bf16.msra.mxu0 %v6638_v6  ;;  %v6674_v6 = vpack.c.bf16 %v287_v3, %v285_v2  ;;  %v330_v2 = vld [vmem:[%s13009_s1 + $0x648] sm:$0xff]  ;;  %v332_v3 = vld [vmem:[%s13009_s1 + $0x658] sm:$0xff] }
  0xb5   :  { %6641 = vmatprep.subr.bf16.mxu0 %v6640_v7  ;;  %v6676_v7 = vpack.c.bf16 %v292_v5, %v290_v4  ;;  %v101_v5 = vld [vmem:[%s13008_s0 + $0x60] sm:$0xff] }
  0xb8   :  { %6643 = vmatpush1.bf16.msra.mxu0 %v6642_v12  ;;  %v6678_v12 = vpack.c.bf16 %v291_v9, %v289_v8  ;;  %v331_v8 = vld [vmem:[%s13009_s1 + $0x650] sm:$0xff]  ;;  %v110_v9 = vld [vmem:[%s13008_s0 + $0xa8] sm:$0xff] }
  0xb9   :  { %6645 = vmatprep.subr.bf16.mxu0 %v6644_v13  ;;  %v6680_v13 = vpack.c.bf16 %v296_v11, %v294_v10  ;;  %v334_v10 = vld [vmem:[%s13009_s1 + $0x668] sm:$0xff]  ;;  %v336_v11 = vld [vmem:[%s13009_s1 + $0x678] sm:$0xff] }
  0xbb   :  { %545 = vmatmul.mubr.f32.vlgmr.msra.gmra.mrb[0].mxu0 %v91_v18  ;;  %v6682_v18 = vpack.c.bf16 %v295_v15, %v293_v14  ;;  %v6720_v14 = vpack.c.bf16 %v336_v11, %v334_v10  ;;  %v333_v15 = vld [vmem:[%s13009_s1 + $0x660] sm:$0xff]  ;;  %v112_v10 = vld [vmem:[%s13008_s0 + $0xb8] sm:$0xff]  ;;  %v111_v11 = vld [vmem:[%s13008_s0 + $0xb0] sm:$0xff] }
  0xbc   :  { %6647 = vmatpush1.bf16.msra.mxu0 %v6646_v19  ;;  %550 = vmatprep.mubr.f32.mxu0 %v100_v23  ;;  %v6684_v19 = vpack.c.bf16 %v300_v17, %v298_v16  ;;  %v304_v23 = vld [vmem:[%s13009_s1 + $0x578] sm:$0xff]  ;;  %v335_v16 = vld [vmem:[%s13009_s1 + $0x670] sm:$0xff]  ;;  %v118_v17 = vld [vmem:[%s13008_s0 + $0xe8] sm:$0xff] }
  0xbd   :  { %6649 = vmatprep.subr.bf16.mxu0 %v6648_v20  ;;  %v297_v20 = vld [vmem:[%s13009_s1 + $0x540] sm:$0xff]  ;;  %v6688_v25 = vpack.c.bf16 %v304_v23, %v302_v22 }
  0xbe   :  { %v6686_v24 = vpack.c.bf16 %v299_v21, %v297_v20  ;;  %v6722_v20 = vpack.c.bf16 %v335_v16, %v333_v15  ;;  %v117_v21 = vld [vmem:[%s13008_s0 + $0xe0] sm:$0xff]  ;;  %v127_v15 = vld [vmem:[%s13008_s0 + $0x130] sm:$0x3f] }
  0xbf   :  { %551 = vmatmul.mubr.f32.gmra.mrb[2].mxu0 %v99_v27  ;;  %v303_v27 = vld [vmem:[%s13009_s1 + $0x570] sm:$0xff]  ;;  %v337_v23 = vld [vmem:[%s13009_s1 + $0x680] sm:$0xff] }
  0xc0   :  { %6651 = vmatpush1.bf16.msra.mxu0 %v6650_v26  ;;  %556 = vmatprep.mubr.f32.mxu0 %v108_v31  ;;  %v301_v26 = vld [vmem:[%s13009_s1 + $0x560] sm:$0xff] }
  0xc1   :  { %6653 = vmatprep.subr.bf16.mxu0 %v6652_v28  ;;  %v306_v28 = vld [vmem:[%s13009_s1 + $0x588] sm:$0xff]  ;;  %v6690_v30 = vpack.c.bf16 %v303_v27, %v301_v26  ;;  %v344_v27 = vld [vmem:[%s13009_s1 + $0x6b8] sm:$0xff]  ;;  %v841_v16 = vld [vmem:[%s13014_s6 + $0x80] sm:$0xff] }
  0xc2   :  { %v6692_v31 = vpack.c.bf16 %v308_v29, %v306_v28  ;;  %v342_v26 = vld [vmem:[%s13009_s1 + $0x6a8] sm:$0xff]  ;;  %v125_v29 = vld [vmem:[%s13008_s0 + $0x120] sm:$0x3f] }
  0xc3   :  { %557 = vmatmul.mubr.f32.gmra.mrb[4].mxu0 %v107_v35  ;;  %v312_v35 = vld [vmem:[%s13009_s1 + $0x5b8] sm:$0xff] }
  0xc4   :  { %6655 = vmatpush1.bf16.msra.mxu0 %v6654_v34  ;;  %562 = vmatprep.mubr.f32.mxu0 %v116_v39  ;;  %v310_v34 = vld [vmem:[%s13009_s1 + $0x5a8] sm:$0xff]  ;;  %v311_v39 = vld [vmem:[%s13009_s1 + $0x5b0] sm:$0xff] }
  0xc5   :  { %6657 = vmatprep.subr.bf16.mxu0 %v6656_v36  ;;  %v6694_v36 = vpack.c.bf16 %v307_v33, %v305_v32  ;;  %v6696_v37 = vpack.c.bf16 %v312_v35, %v310_v34  ;;  %v343_v32 = vld [vmem:[%s13009_s1 + $0x6b0] sm:$0xff]  ;;  %v96_v33 = vld [vmem:[%s13008_s0 + $0x38] sm:$0xff]  ;;  %v346_v34 = vld [vmem:[%s13009_s1 + $0x6c8] sm:$0xff] }
  0xc6   :  { %v348_v35 = vld [vmem:[%s13009_s1 + $0x6d8] sm:$0xff] }
  0xc7   :  { %563 = vmatmul.mubr.f32.gmra.mrb[6].mxu0 %v115_v43  ;;  %v6700_v43 = vpack.c.bf16 %v316_v41, %v314_v40  ;;  %v350_v40 = vld [vmem:[%s13009_s1 + $0x6e8] sm:$0xff]  ;;  %v352_v41 = vld [vmem:[%s13009_s1 + $0x6f8] sm:$0xff] }
  0xc8   :  { %6659 = vmatpush1.bf16.msra.mxu0 %v6658_v42  ;;  %568 = vmatprep.mubr.f32.mxu0 %v124_v47  ;;  %v6698_v42 = vpack.c.bf16 %v311_v39, %v309_v38  ;;  %v320_v47 = vld [vmem:[%s13009_s1 + $0x5f8] sm:$0xff]  ;;  %v345_v38 = vld [vmem:[%s13009_s1 + $0x6c0] sm:$0xff]  ;;  %v347_v39 = vld [vmem:[%s13009_s1 + $0x6d0] sm:$0xff] }
  0xc9   :  { %6661 = vmatprep.subr.bf16.mxu0 %v6660_v44  ;;  %v313_v44 = vld [vmem:[%s13009_s1 + $0x5c0] sm:$0xff]  ;;  %v6704_v49 = vpack.c.bf16 %v320_v47, %v318_v46  ;;  %v354_v46 = vld [vmem:[%s13009_s1 + $0x708] sm:$0xff]  ;;  %v356_v47 = vld [vmem:[%s13009_s1 + $0x718] sm:$0xff] }
  0xca   :  { %v6702_v48 = vpack.c.bf16 %v315_v45, %v313_v44  ;;  %v349_v44 = vld [vmem:[%s13009_s1 + $0x6e0] sm:$0xff]  ;;  %v351_v45 = vld [vmem:[%s13009_s1 + $0x6f0] sm:$0xff] }
  0xcb   :  { %569 = vmatmul.mubr.f32.gmra.mrb[8].mxu0 %v123_v51  ;;  %v319_v51 = vld [vmem:[%s13009_s1 + $0x5f0] sm:$0xff] }
  0xcc   :  { %6663 = vmatpush1.bf16.msra.mxu0 %v6662_v50  ;;  %639 = vmatprep.mubr.f32.mxu0 %v94_v55  ;;  %v317_v50 = vld [vmem:[%s13009_s1 + $0x5e0] sm:$0xff] }
  0xcd   :  { %6665 = vmatprep.subr.bf16.mxu0 %v6664_v52  ;;  %v322_v52 = vld [vmem:[%s13009_s1 + $0x608] sm:$0xff]  ;;  %v6706_v54 = vpack.c.bf16 %v319_v51, %v317_v50  ;;  %v353_v50 = vld [vmem:[%s13009_s1 + $0x700] sm:$0xff]  ;;  %v355_v51 = vld [vmem:[%s13009_s1 + $0x710] sm:$0xff] }
  0xce   :  { %v6708_v55 = vpack.c.bf16 %v324_v53, %v322_v52  ;;  %v358_v52 = vld [vmem:[%s13009_s1 + $0x728] sm:$0xff]  ;;  %v360_v53 = vld [vmem:[%s13009_s1 + $0x738] sm:$0xff] }
  0xd0   :  { %6667 = vmatpush1.bf16.msra.mxu0 %v6666_v58  ;;  %v326_v58 = vld [vmem:[%s13009_s1 + $0x628] sm:$0xff] }
  0xd1   :  { %6669 = vmatprep.subr.bf16.mxu0 %v6668_v59  ;;  %v328_v59 = vld [vmem:[%s13009_s1 + $0x638] sm:$0xff] }
  0xd2   :  { %v6712_v62 = vpack.c.bf16 %v328_v59, %v326_v58  ;;  %v362_v58 = vld [vmem:[%s13009_s1 + $0x748] sm:$0xff]  ;;  %v364_v59 = vld [vmem:[%s13009_s1 + $0x758] sm:$0xff] }
  0xd4   :  { %6671 = vmatpush1.bf16.msra.mxu0 %v6670_v0  ;;  %v327_v0 = vld [vmem:[%s13009_s1 + $0x630] sm:$0xff] }
  0xd5   :  { %6673 = vmatprep.subr.bf16.mxu0 %v6672_v1  ;;  %v102_v1 = vld [vmem:[%s13008_s0 + $0x68] sm:$0xff]  ;;  %v6714_v4 = vpack.c.bf16 %v327_v0, %v325_v63  ;;  %v363_v63 = vld [vmem:[%s13009_s1 + $0x750] sm:$0xff] }
  0xd6   :  { %v366_v0 = vld [vmem:[%s13009_s1 + $0x768] sm:$0xff] }
  0xd8   :  { %6675 = vmatpush1.bf16.msra.mxu0 %v6674_v6  ;;  %v6716_v6 = vpack.c.bf16 %v332_v3, %v330_v2 }
  0xd9   :  { %6677 = vmatprep.subr.bf16.mxu0 %v6676_v7  ;;  %v329_v7 = vld [vmem:[%s13009_s1 + $0x640] sm:$0xff] }
  0xdc   :  { %6679 = vmatpush1.bf16.msra.mxu0 %v6678_v12  ;;  %v6718_v12 = vpack.c.bf16 %v331_v8, %v329_v7  ;;  %v95_v7 = vld [vmem:[%s13008_s0 + $0x30] sm:$0xff]  ;;  %v104_v8 = vld [vmem:[%s13008_s0 + $0x78] sm:$0xff] }
  0xdd   :  { %6681 = vmatprep.subr.bf16.mxu0 %v6680_v13  ;;  %v109_v13 = vld [vmem:[%s13008_s0 + $0xa0] sm:$0xff] }
  0xe0   :  { %6683 = vmatpush1.bf16.msra.mxu0 %v6682_v18  ;;  %v338_v18 = vld [vmem:[%s13009_s1 + $0x688] sm:$0xff] }
  0xe1   :  { %6685 = vmatprep.subr.bf16.mxu0 %v6684_v19  ;;  %v340_v19 = vld [vmem:[%s13009_s1 + $0x698] sm:$0xff] }
  0xe2   :  { %v6724_v22 = vpack.c.bf16 %v340_v19, %v338_v18  ;;  %v825_v19 = vld [vmem:[%s13014_s6] sm:$0xff] }
  0xe4   :  { %6687 = vmatpush1.bf16.msra.mxu0 %v6686_v24  ;;  %v339_v24 = vld [vmem:[%s13009_s1 + $0x690] sm:$0xff] }
  0xe5   :  { %6689 = vmatprep.subr.bf16.mxu0 %v6688_v25  ;;  %v126_v25 = vld [vmem:[%s13008_s0 + $0x128] sm:$0x3f]  ;;  %v6726_v28 = vpack.c.bf16 %v339_v24, %v337_v23  ;;  %v844_v23 = vld [vmem:[%s13014_s6 + $0x98] sm:$0xff] }
  0xe8   :  { %6691 = vmatpush1.bf16.msra.mxu0 %v6690_v30  ;;  %v6728_v30 = vpack.c.bf16 %v344_v27, %v342_v26  ;;  %v828_v26 = vld [vmem:[%s13014_s6 + $0x18] sm:$0xff] }
  0xe9   :  { %6693 = vmatprep.subr.bf16.mxu0 %v6692_v31  ;;  %v341_v31 = vld [vmem:[%s13009_s1 + $0x6a0] sm:$0xff] }
  0xec   :  { %6695 = vmatpush1.bf16.msra.mxu0 %v6694_v36  ;;  %v6730_v36 = vpack.c.bf16 %v343_v32, %v341_v31  ;;  %v829_v31 = vld [vmem:[%s13014_s6 + $0x20] sm:$0xff]  ;;  %v830_v32 = vld [vmem:[%s13014_s6 + $0x28] sm:$0xff] }
  0xed   :  { %6697 = vmatprep.subr.bf16.mxu0 %v6696_v37  ;;  %v6732_v37 = vpack.c.bf16 %v348_v35, %v346_v34  ;;  %v847_v34 = vld [vmem:[%s13014_s6 + $0xb0] sm:$0xff]  ;;  %v848_v35 = vld [vmem:[%s13014_s6 + $0xb8] sm:$0xff] }
  0xf0   :  { %6699 = vmatpush1.bf16.msra.mxu0 %v6698_v42  ;;  %v6734_v42 = vpack.c.bf16 %v347_v39, %v345_v38  ;;  %v832_v38 = vld [vmem:[%s13014_s6 + $0x38] sm:$0xff] }
  0xf1   :  { %6701 = vmatprep.subr.bf16.mxu0 %v6700_v43  ;;  %v6736_v43 = vpack.c.bf16 %v352_v41, %v350_v40  ;;  %v849_v40 = vld [vmem:[%s13014_s6 + $0xc0] sm:$0xff]  ;;  %v850_v41 = vld [vmem:[%s13014_s6 + $0xc8] sm:$0xff] }
  0xf4   :  { %6703 = vmatpush1.bf16.msra.mxu0 %v6702_v48  ;;  %v6738_v48 = vpack.c.bf16 %v351_v45, %v349_v44  ;;  %v834_v44 = vld [vmem:[%s13014_s6 + $0x48] sm:$0xff] }
  0xf5   :  { %6705 = vmatprep.subr.bf16.mxu0 %v6704_v49  ;;  %v6740_v49 = vpack.c.bf16 %v356_v47, %v354_v46  ;;  %v851_v46 = vld [vmem:[%s13014_s6 + $0xd0] sm:$0xff]  ;;  %v852_v47 = vld [vmem:[%s13014_s6 + $0xd8] sm:$0xff] }
  0xf8   :  { %6707 = vmatpush1.bf16.msra.mxu0 %v6706_v54  ;;  %v6742_v54 = vpack.c.bf16 %v355_v51, %v353_v50  ;;  %v836_v50 = vld [vmem:[%s13014_s6 + $0x58] sm:$0xff] }
  0xf9   :  { %6709 = vmatprep.subr.bf16.mxu0 %v6708_v55  ;;  %v6744_v55 = vpack.c.bf16 %v360_v53, %v358_v52  ;;  %v853_v52 = vld [vmem:[%s13014_s6 + $0xe0] sm:$0xff]  ;;  %v854_v53 = vld [vmem:[%s13014_s6 + $0xe8] sm:$0xff] }
  0xfb   :  { %640 = vmatmul.mubr.f32.vlgmr.msra.gmra.mrb[0].mxu0 %v93_v60  ;;  %v6746_v60 = vpack.c.bf16 %v359_v57, %v357_v56  ;;  %v838_v56 = vld [vmem:[%s13014_s6 + $0x68] sm:$0xff]  ;;  %v855_v57 = vld [vmem:[%s13014_s6 + $0xf0] sm:$0xff] }
  0xfc   :  { %6711 = vmatpush1.bf16.msra.mxu0 %v6710_v61  ;;  %645 = vmatprep.mubr.f32.mxu0 %v102_v1  ;;  %v6748_v61 = vpack.c.bf16 %v364_v59, %v362_v58  ;;  %v368_v1 = vld [vmem:[%s13009_s1 + $0x778] sm:$0xff] }
  0xfd   :  { %6713 = vmatprep.subr.bf16.mxu0 %v6712_v62  ;;  %v361_v62 = vld [vmem:[%s13009_s1 + $0x740] sm:$0xff]  ;;  %v6752_v3 = vpack.c.bf16 %v368_v1, %v366_v0  ;;  %v856_v58 = vld [vmem:[%s13014_s6 + $0xf8] sm:$0xff] }
  0xfe   :  { %v6750_v2 = vpack.c.bf16 %v363_v63, %v361_v62  ;;  %v840_v62 = vld [vmem:[%s13014_s6 + $0x78] sm:$0xff] }
  0xff   :  { %646 = vmatmul.mubr.f32.gmra.mrb[2].mxu0 %v101_v5  ;;  %v367_v5 = vld [vmem:[%s13009_s1 + $0x770] sm:$0xff] }
 0x100   :  { %6715 = vmatpush1.bf16.msra.mxu0 %v6714_v4  ;;  %651 = vmatprep.mubr.f32.mxu0 %v110_v9  ;;  %v365_v4 = vld [vmem:[%s13009_s1 + $0x760] sm:$0xff]  ;;  %v103_v9 = vld [vmem:[%s13008_s0 + $0x70] sm:$0xff] }
 0x101   :  { %6717 = vmatprep.subr.bf16.mxu0 %v6716_v6  ;;  %v6754_v6 = vpack.c.bf16 %v367_v5, %v365_v4 }
 0x103   :  { %652 = vmatmul.mubr.f32.gmra.mrb[4].mxu0 %v109_v13  ;;  %v119_v13 = vld [vmem:[%s13008_s0 + $0xf0] sm:$0xff] }
 0x104   :  { %6719 = vmatpush1.bf16.msra.mxu0 %v6718_v12  ;;  %657 = vmatprep.mubr.f32.mxu0 %v118_v17  ;;  %v120_v12 = vld [vmem:[%s13008_s0 + $0xf8] sm:$0xff]  ;;  %v842_v17 = vld [vmem:[%s13014_s6 + $0x88] sm:$0xff] }
 0x105   :  { %6721 = vmatprep.subr.bf16.mxu0 %v6720_v14  ;;  %v128_v14 = vld [vmem:[%s13008_s0 + $0x138] sm:$0x3f]  ;;  %v6756_v18 = vpack.c.bf16 %v842_v17, %v841_v16 }
 0x107   :  { %658 = vmatmul.mubr.f32.gmra.mrb[6].mxu0 %v117_v21  ;;  %6757 = vmatprep.subr.bf16.mxu1 %v6756_v18 }
 0x108   :  { %6723 = vmatpush1.bf16.msra.mxu0 %v6722_v20  ;;  %663 = vmatprep.mubr.f32.mxu0 %v126_v25  ;;  %v826_v20 = vld [vmem:[%s13014_s6 + $0x8] sm:$0xff]  ;;  %v827_v25 = vld [vmem:[%s13014_s6 + $0x10] sm:$0xff] }
 0x109   :  { %6725 = vmatprep.subr.bf16.mxu0 %v6724_v22  ;;  %v6758_v21 = vpack.c.bf16 %v826_v20, %v825_v19  ;;  %v843_v22 = vld [vmem:[%s13014_s6 + $0x90] sm:$0xff]  ;;  %v6762_v27 = vpack.c.bf16 %v828_v26, %v827_v25 }
 0x10a   :  { %v6760_v24 = vpack.c.bf16 %v844_v23, %v843_v22 }
 0x10b   :  { %664 = vmatmul.mubr.f32.gmra.mrb[8].mxu0 %v125_v29  ;;  %6759 = vmatpush3.bf16.msra.mxu1 %v6758_v21  ;;  %v846_v29 = vld [vmem:[%s13014_s6 + $0xa8] sm:$0xff] }
 0x10c   :  { %6727 = vmatpush1.bf16.msra.mxu0 %v6726_v28  ;;  %6053 = vmatprep.mubr.msk.f32.mxu0 %vm369_vm0, %v96_v33  ;;  %v845_v28 = vld [vmem:[%s13014_s6 + $0xa0] sm:$0xff]  ;;  %v6766_v33 = vpack.c.bf16 %v830_v32, %v829_v31 }
 0x10d   :  { %6729 = vmatprep.subr.bf16.mxu0 %v6728_v30  ;;  %6761 = vmatprep.subr.bf16.mxu1 %v6760_v24  ;;  %v6764_v30 = vpack.c.bf16 %v846_v29, %v845_v28 }
 0x10f   :  { %6763 = vmatpush3.bf16.msra.mxu1 %v6762_v27 }
 0x110   :  { %6731 = vmatpush1.bf16.msra.mxu0 %v6730_v36  ;;  %6765 = vmatprep.subr.bf16.mxu1 %v6764_v30  ;;  %v6768_v36 = vpack.c.bf16 %v848_v35, %v847_v34 }
 0x111   :  { %6733 = vmatprep.subr.bf16.mxu0 %v6732_v37  ;;  %v831_v37 = vld [vmem:[%s13014_s6 + $0x30] sm:$0xff] }
 0x112   :  { %v6770_v39 = vpack.c.bf16 %v832_v38, %v831_v37 }
 0x113   :  { %6767 = vmatpush3.bf16.msra.mxu1 %v6766_v33 }
 0x114   :  { %6735 = vmatpush1.bf16.msra.mxu0 %v6734_v42  ;;  %6769 = vmatprep.subr.bf16.mxu1 %v6768_v36  ;;  %v6772_v42 = vpack.c.bf16 %v850_v41, %v849_v40 }
 0x115   :  { %6737 = vmatprep.subr.bf16.mxu0 %v6736_v43  ;;  %v833_v43 = vld [vmem:[%s13014_s6 + $0x40] sm:$0xff] }
 0x116   :  { %v6774_v45 = vpack.c.bf16 %v834_v44, %v833_v43 }
 0x117   :  { %6771 = vmatpush3.bf16.msra.mxu1 %v6770_v39 }
 0x118   :  { %6739 = vmatpush1.bf16.msra.mxu0 %v6738_v48  ;;  %6773 = vmatprep.subr.bf16.mxu1 %v6772_v42  ;;  %v6776_v48 = vpack.c.bf16 %v852_v47, %v851_v46  ;;  %v820_v46 = vlaneseq }
 0x119   :  { %6741 = vmatprep.subr.bf16.mxu0 %v6740_v49  ;;  %v835_v49 = vld [vmem:[%s13014_s6 + $0x50] sm:$0xff] }
 0x11a   :  { %v6778_v51 = vpack.c.bf16 %v836_v50, %v835_v49  ;;  %vm5904_vm11 = vcmp.lt.s32.totalorder %v820_v46, 256 }
 0x11b   :  { %6775 = vmatpush3.bf16.msra.mxu1 %v6774_v45 }
 0x11c   :  { %6743 = vmatpush1.bf16.msra.mxu0 %v6742_v54  ;;  %v837_v54 = vld [vmem:[%s13014_s6 + $0x60] sm:$0xff]  ;;  %6777 = vmatprep.subr.bf16.mxu1 %v6776_v48 }
 0x11d   :  { %6745 = vmatprep.subr.bf16.mxu0 %v6744_v55  ;;  %v6780_v55 = vpack.c.bf16 %v854_v53, %v853_v52  ;;  %v6782_v59 = vpack.c.bf16 %v838_v56, %v837_v54 }
 0x11f   :  { %6779 = vmatpush3.bf16.msra.mxu1 %v6778_v51 }
 0x120   :  { %6747 = vmatpush1.bf16.msra.mxu0 %v6746_v60  ;;  %6781 = vmatprep.subr.bf16.mxu1 %v6780_v55  ;;  %v6784_v60 = vpack.c.bf16 %v856_v58, %v855_v57  ;;  %v9737_v55 = vshrl.u32 %v820_v46, 7 }
 0x121   :  { %6749 = vmatprep.subr.bf16.mxu0 %v6748_v61  ;;  %v839_v61 = vld [vmem:[%s13014_s6 + $0x70] sm:$0xff] }
 0x122   :  { %v6786_v63 = vpack.c.bf16 %v840_v62, %v839_v61  ;;  %vm822_vm2 = vcmp.eq.s32.totalorder %v9737_v55, 0 }
 0x123   :  { %6783 = vmatpush3.bf16.msra.mxu1 %v6782_v59 }
 0x124   :  { %6751 = vmatpush1.bf16.msra.mxu0 %v6750_v2  ;;  %6785 = vmatprep.subr.bf16.mxu1 %v6784_v60 }
 0x125   :  { %6753 = vmatprep.subr.bf16.mxu0 %v6752_v3 }
 0x127   :  { %6787 = vmatpush3.bf16.msra.mxu1 %v6786_v63 }
 0x128   :  { %6755 = vmatpush1.bf16.msra.mxu0 %v6754_v6 }
 0x12b   :  { %735 = vmatmul.mubr.f32.vlgmr.msra.gmra.mrb[0].mxu0 %v95_v7 }
 0x12c   :  { %6054 = vmatprep.mubr.msk.f32.mxu0 %vm369_vm0, %v104_v8 }
 0x12f   :  { %741 = vmatmul.mubr.f32.gmra.mrb[2].mxu0 %v103_v9 }
 0x130   :  { %6055 = vmatprep.mubr.msk.f32.mxu0 %vm369_vm0, %v112_v10 }
 0x133   :  { %747 = vmatmul.mubr.f32.gmra.mrb[4].mxu0 %v111_v11 }
 0x134   :  { %6056 = vmatprep.mubr.msk.f32.mxu0 %vm369_vm0, %v120_v12 }
 0x137   :  { %753 = vmatmul.mubr.f32.gmra.mrb[6].mxu0 %v119_v13 }
 0x138   :  { %6057 = vmatprep.mubr.msk.f32.mxu0 %vm369_vm0, %v128_v14 }
 0x13b   :  { %759 = vmatmul.mubr.f32.gmra.mrb[8].mxu0 %v127_v15 }
 0x1fe   :  { %v9682_v0 = vpop.f32.mrb[0].mxu0 }
 0x1ff   :  { %v9684_v1 = vpop.f32.mrb[1].mxu0  ;;  %v788_v3 = vmul.f32 %v9682_v0, %v9682_v0 }
 0x200   :  { %v789_v7 = vmul.f32 %v9684_v1, %v9684_v1 }
 0x202   :  { %v9686_v2 = vpop.f32.mrb[2].mxu0 }
 0x203   :  { %v765_v4 = vadd.f32 %v9686_v2, %v9682_v0  ;;  %v790_v5 = vmul.f32 %v9686_v2, %v9686_v2  ;;  %v9694_v6 = vpop.f32.mrb[3].mxu0 }
 0x204   :  { %v777_v8 = vadd.f32 %v9694_v6, %v9684_v1  ;;  %v791_v9 = vmul.f32 %v9694_v6, %v9694_v6 }
 0x205   :  { %v798_v10 = vadd.f32 %v790_v5, %v788_v3 }
 0x206   :  { %v809_v11 = vadd.f32 %v791_v9, %v789_v7  ;;  %v9702_v12 = vpop.f32.mrb[4].mxu0  ;;  %v954_v9 = vld [vmem:[%s13015_s7 + $0x18] sm:$0xff] }
 0x207   :  { %v766_v13 = vadd.f32 %v765_v4, %v9702_v12  ;;  %v792_v14 = vmul.f32 %v9702_v12, %v9702_v12  ;;  %v9707_v15 = vpop.f32.mrb[5].mxu0 }
 0x208   :  { %v778_v16 = vadd.f32 %v777_v8, %v9707_v15  ;;  %v793_v17 = vmul.f32 %v9707_v15, %v9707_v15  ;;  %v952_v8 = vld [vmem:[%s13015_s7 + $0x8] sm:$0xff] }
 0x209   :  { %v799_v18 = vadd.f32 %v798_v10, %v792_v14  ;;  %v6788_v10 = vpack.c.bf16 %v954_v9, %v952_v8  ;;  %v1258_v8 = vld [vmem:[%s13010_s2 + $0x60] sm:$0xff]  ;;  %v1260_v9 = vld [vmem:[%s13010_s2 + $0x70] sm:$0xff] }
 0x20a   :  { %v810_v19 = vadd.f32 %v809_v11, %v793_v17  ;;  %v9712_v20 = vpop.f32.mrb[6].mxu0  ;;  %v951_v11 = vld [vmem:[%s13015_s7] sm:$0xff]  ;;  %v958_v17 = vld [vmem:[%s13015_s7 + $0x38] sm:$0xff] }
 0x20b   :  { %v767_v21 = vadd.f32 %v766_v13, %v9712_v20  ;;  %v794_v22 = vmul.f32 %v9712_v20, %v9712_v20  ;;  %v9717_v23 = vpop.f32.mrb[7].mxu0  ;;  %v953_v13 = vld [vmem:[%s13015_s7 + $0x10] sm:$0xff]  ;;  %6789 = vmatprep.subr.bf16.mxu1 %v6788_v10  ;;  %v1263_v10 = vld [vmem:[%s13010_s2 + $0x88] sm:$0xff] }
 0x20c   :  { %v779_v24 = vadd.f32 %v778_v16, %v9717_v23  ;;  %v795_v25 = vmul.f32 %v9717_v23, %v9717_v23  ;;  %v6790_v14 = vpack.c.bf16 %v953_v13, %v951_v11  ;;  %v956_v16 = vld [vmem:[%s13015_s7 + $0x28] sm:$0xff]  ;;  %v1265_v11 = vld [vmem:[%s13010_s2 + $0x98] sm:$0xff]  ;;  %v6810_v13 = vpack.c.bf16 %v1260_v9, %v1258_v8 }
 0x20d   :  { %v800_v26 = vadd.f32 %v799_v18, %v794_v22  ;;  %v6792_v18 = vpack.c.bf16 %v958_v17, %v956_v16  ;;  %v1262_v16 = vld [vmem:[%s13010_s2 + $0x80] sm:$0xff]  ;;  %v1264_v17 = vld [vmem:[%s13010_s2 + $0x90] sm:$0xff]  ;;  %v1295_v9 = vld [vmem:[%s13010_s2 + $0x188] sm:$0xff] }
 0x20e   :  { %v811_v27 = vadd.f32 %v810_v19, %v795_v25  ;;  %v9722_v28 = vpop.f32.mrb[8].mxu0  ;;  %v955_v19 = vld [vmem:[%s13015_s7 + $0x20] sm:$0xff]  ;;  %v1247_v25 = vld [vmem:[%s13010_s2 + $0x8] sm:$0xff] }
 0x20f   :  { %v769_v29 = vsel %vm768_vm1, %v9722_v28, 0.0  ;;  %v796_v30 = vmul.f32 %v9722_v28, %v9722_v28  ;;  %v9728_v31 = vpop.f32.mrb[9].mxu0 }
 0x210   :  { %v770_v32 = vadd.f32 %v769_v29, %v767_v21  ;;  %v780_v33 = vsel %vm768_vm1, %v9728_v31, 0.0  ;;  %v797_v34 = vmul.f32 %v9728_v31, %v9728_v31  ;;  %v957_v21 = vld [vmem:[%s13015_s7 + $0x30] sm:$0xff] }
 0x211   :  { %v801_v35 = vsel %vm768_vm1, %v796_v30, 0.0  ;;  %v781_v36 = vadd.f32 %v780_v33, %v779_v24  ;;  %v6794_v22 = vpack.c.bf16 %v957_v21, %v955_v19  ;;  %v8624_v24 = vmov 0.0   ;;  %v1269_v19 = vld [vmem:[%s13010_s2 + $0xb8] sm:$0xff] }
 0x212   :  { %v771_v37 = vrot.slane %v770_v32, 4  ;;  %v802_v38 = vadd.f32 %v801_v35, %v800_v26  ;;  %v812_v39 = vsel %vm768_vm1, %v797_v34, 0.0  ;;  %v1249_v26 = vld [vmem:[%s13010_s2 + $0x18] sm:$0xff]  ;;  %v6814_v21 = vpack.c.bf16 %v1264_v17, %v1262_v16  ;;  %v1299_v17 = vld [vmem:[%s13010_s2 + $0x1a8] sm:$0xff] }
 0x213   :  { %v782_v40 = vrot.slane %v781_v36, 4  ;;  %v813_v41 = vadd.f32 %v812_v39, %v811_v27  ;;  %v6796_v27 = vpack.c.bf16 %v1249_v26, %v1247_v25  ;;  %v1266_v25 = vld [vmem:[%s13010_s2 + $0xa0] sm:$0xff]  ;;  %v1268_v26 = vld [vmem:[%s13010_s2 + $0xb0] sm:$0xff] }
 0x214   :  { %v772_v42 = vadd.f32 %v771_v37, %v770_v32  ;;  %v803_v43 = vrot.slane %v802_v38, 4 }
 0x215   :  { %v783_v44 = vadd.f32 %v782_v40, %v781_v36  ;;  %v814_v45 = vrot.slane %v813_v41, 4 }
 0x216   :  { %v773_v47 = vrot.slane %v772_v42, 2  ;;  %v804_v48 = vadd.f32 %v803_v43, %v802_v38  ;;  %v932_v38 = vld [vmem:[%s13016_s8] sm:$0x1] }
 0x217   :  { %v784_v49 = vrot.slane %v783_v44, 2  ;;  %v815_v50 = vadd.f32 %v814_v45, %v813_v41  ;;  %v933_v41 = vld [vmem:[%s13016_s8 + $0x1] sm:$0x1]  ;;  %v1248_v45 = vld [vmem:[%s13010_s2 + $0x10] sm:$0xff] }
 0x218   :  { %v774_v51 = vadd.f32 %v773_v47, %v772_v42  ;;  %v805_v52 = vrot.slane %v804_v48, 2  ;;  %v9782_v42 = vsub.s32 0, %v9737_v55 }
 0x219   :  { %v785_v53 = vadd.f32 %v784_v49, %v783_v44  ;;  %v816_v54 = vrot.slane %v815_v50, 2  ;;  %v1246_v44 = vld [vmem:[%s13010_s2] sm:$0xff]  ;;  %v1253_v49 = vld [vmem:[%s13010_s2 + $0x38] sm:$0xff] }
 0x21a   :  { %v775_v56 = vrot.slane %v774_v51, 1  ;;  %v806_v57 = vadd.f32 %v805_v52, %v804_v48  ;;  %v1251_v48 = vld [vmem:[%s13010_s2 + $0x28] sm:$0xff]  ;;  %v6798_v52 = vpack.c.bf16 %v1248_v45, %v1246_v44 }
 0x21b   :  { %v786_v58 = vrot.slane %v785_v53, 1  ;;  %v817_v59 = vadd.f32 %v816_v54, %v815_v50  ;;  %v1250_v54 = vld [vmem:[%s13010_s2 + $0x20] sm:$0xff] }
 0x21c   :  { %v807_v60 = vrot.slane %v806_v57, 1  ;;  %v776_v62 = vadd.f32 %v775_v56, %v774_v51  ;;  %v1252_v56 = vld [vmem:[%s13010_s2 + $0x30] sm:$0xff] }
 0x21d   :  { %v818_v61 = vrot.slane %v817_v59, 1  ;;  %v787_v3 = vadd.f32 %v786_v58, %v785_v53  ;;  %v6800_v53 = vpack.c.bf16 %v1253_v49, %v1251_v48  ;;  %v1255_v58 = vld [vmem:[%s13010_s2 + $0x48] sm:$0xff]  ;;  %v1280_v48 = vld [vmem:[%s13010_s2 + $0x110] sm:$0xff] }
 0x21e   :  { %v808_v63 = vadd.f32 %v807_v60, %v806_v57  ;;  %v6802_v60 = vpack.c.bf16 %v1252_v56, %v1250_v54  ;;  %v1283_v49 = vld [vmem:[%s13010_s2 + $0x128] sm:$0xff]  ;;  %v1284_v54 = vld [vmem:[%s13010_s2 + $0x130] sm:$0xff] }
 0x21f   :  { %v819_v4 = vadd.f32 %v818_v61, %v817_v59  ;;  %v1257_v59 = vld [vmem:[%s13010_s2 + $0x58] sm:$0xff]  ;;  %v1287_v56 = vld [vmem:[%s13010_s2 + $0x148] sm:$0xff] }
 0x220   :  { %v823_v5 = vsel %vm822_vm2, %v776_v62, %v808_v63  ;;  %v6804_v61 = vpack.c.bf16 %v1257_v59, %v1255_v58  ;;  %v1254_v62 = vld [vmem:[%s13010_s2 + $0x40] sm:$0xff]  ;;  %v1256_v63 = vld [vmem:[%s13010_s2 + $0x50] sm:$0xff] }
 0x221   :  { %v824_v7 = vsel %vm822_vm2, %v787_v3, %v819_v4  ;;  %v1259_v3 = vld [vmem:[%s13010_s2 + $0x68] sm:$0xff]  ;;  %v1261_v4 = vld [vmem:[%s13010_s2 + $0x78] sm:$0xff] }
 0x222   :  { %921 = vmatprep.mubr.f32.mxu1 %v824_v7  ;;  %v6808_v7 = vpack.c.bf16 %v1261_v4, %v1259_v3 }
 0x223   :  { %922 = vmatmul.mubr.f32.vlgmr.msra.gmra.mrb[0].mxu1 %v823_v5  ;;  %v6806_v5 = vpack.c.bf16 %v1256_v63, %v1254_v62  ;;  %v1291_v62 = vld [vmem:[%s13010_s2 + $0x168] sm:$0xff]  ;;  %v1293_v63 = vld [vmem:[%s13010_s2 + $0x178] sm:$0xff] }
 0x224   :  { %6791 = vmatpush1.bf16.msra.mxu1 %v6790_v14  ;;  %1027 = vmatprep.mubr.f32.mxu1 %v8624_v24  ;;  %v6812_v14 = vpack.c.bf16 %v1265_v11, %v1263_v10  ;;  %v6840_v4 = vpack.c.bf16 %v1293_v63, %v1291_v62  ;;  %v1297_v10 = vld [vmem:[%s13010_s2 + $0x198] sm:$0xff] }
 0x225   :  { %6793 = vmatprep.subr.bf16.mxu1 %v6792_v18  ;;  %v1267_v18 = vld [vmem:[%s13010_s2 + $0xa8] sm:$0xff]  ;;  %v6844_v11 = vpack.c.bf16 %v1297_v10, %v1295_v9 }
 0x228   :  { %6795 = vmatpush1.bf16.msra.mxu1 %v6794_v22  ;;  %v6816_v22 = vpack.c.bf16 %v1269_v19, %v1267_v18  ;;  %v1301_v18 = vld [vmem:[%s13010_s2 + $0x1b8] sm:$0xff] }
 0x229   :  { %6797 = vmatprep.subr.bf16.mxu1 %v6796_v27  ;;  %v1271_v27 = vld [vmem:[%s13010_s2 + $0xc8] sm:$0xff]  ;;  %v6848_v19 = vpack.c.bf16 %v1301_v18, %v1299_v17 }
 0x2f6   :  { %v6095_v29 = vpop.f32.mrb[0].mxu1 }
 0x2f7   :  { %v6096_v30 = vpop.f32.mrb[1].mxu1 }
 0x2f8   :  { %v6097_v32 = vadd.f32 %v6096_v30, %v6095_v29  ;;  %v1273_v29 = vld [vmem:[%s13010_s2 + $0xd8] sm:$0xff]  ;;  %v6818_v30 = vpack.c.bf16 %v1268_v26, %v1266_v25  ;;  %v1303_v26 = vld [vmem:[%s13010_s2 + $0x1c8] sm:$0xff] }
 0x2fa   :  { %v927_v33 = vmul.f32 %v6097_v32, %v6097_v32 }
 0x2fc   :  { %v929_v34 = vrot.slane %v927_v33, 7  ;;  %v1270_v33 = vld [vmem:[%s13010_s2 + $0xc0] sm:$0xff] }
 0x2fe   :  { %v931_v35 = vsub.f32 %v6097_v32, %v929_v34  ;;  %v1272_v34 = vld [vmem:[%s13010_s2 + $0xd0] sm:$0xff] }
 0x300   :  { %v934_v36 = vadd.f32 1e-05, %v931_v35  ;;  %v1275_v35 = vld [vmem:[%s13010_s2 + $0xe8] sm:$0xff] }
 0x302   :  { %8489 = vrsqrt.f32 %v934_v36  ;;  %v1277_v36 = vld [vmem:[%s13010_s2 + $0xf8] sm:$0xff] }
 0x30c   :  { %v8490_v37 = vpop.eup %8489 }
 0x30d   :  { %v937_v39 = vrot.slane %v8490_v37, 1  ;;  %v6822_v37 = vpack.c.bf16 %v1272_v34, %v1270_v33  ;;  %v1307_v34 = vld [vmem:[%s13010_s2 + $0x1e8] sm:$0xff] }
 0x30f   :  { %v939_v40 = vmul.f32 %v937_v39, %v932_v38  ;;  %v6824_v38 = vpack.c.bf16 %v1277_v36, %v1275_v35  ;;  %v1274_v39 = vld [vmem:[%s13010_s2 + $0xe0] sm:$0xff]  ;;  %v1309_v35 = vld [vmem:[%s13010_s2 + $0x1f8] sm:$0xff] }
 0x310   :  { %v6856_v36 = vpack.c.bf16 %v1309_v35, %v1307_v34 }
 0x311   :  { %v940_v43 = vmul.f32 %v6097_v32, %v939_v40  ;;  %v945_v50 = vrot.slane %v939_v40, %v9782_v42  ;;  %v6820_v32 = vpack.c.bf16 %v1273_v29, %v1271_v27  ;;  %v1276_v40 = vld [vmem:[%s13010_s2 + $0xf0] sm:$0xff]  ;;  %v1305_v27 = vld [vmem:[%s13010_s2 + $0x1d8] sm:$0xff] }
 0x312   :  { %v6826_v44 = vpack.c.bf16 %v1276_v40, %v1274_v39  ;;  %v6852_v29 = vpack.c.bf16 %v1305_v27, %v1303_v26  ;;  %v1311_v40 = vld [vmem:[%s13010_s2 + $0x208] sm:$0xff] }
 0x313   :  { %v941_v47 = vsub.f32 %v933_v41, %v940_v43  ;;  %v1279_v41 = vld [vmem:[%s13010_s2 + $0x108] sm:$0xff]  ;;  %v1281_v43 = vld [vmem:[%s13010_s2 + $0x118] sm:$0xff] }
 0x314   :  { %v6828_v45 = vpack.c.bf16 %v1281_v43, %v1279_v41  ;;  %v1313_v41 = vld [vmem:[%s13010_s2 + $0x218] sm:$0xff] }
 0x315   :  { %v949_v51 = vrot.slane %v941_v47, %v9782_v42  ;;  %v1278_v47 = vld [vmem:[%s13010_s2 + $0x100] sm:$0xff]  ;;  %v6860_v43 = vpack.c.bf16 %v1313_v41, %v1311_v40 }
 0x317   :  { %v950_v57 = vsel %vm822_vm2, %v945_v50, %v949_v51  ;;  %v1285_v50 = vld [vmem:[%s13010_s2 + $0x138] sm:$0xff]  ;;  %v6830_v51 = vpack.c.bf16 %v1280_v48, %v1278_v47  ;;  %v9994_v47 = vld [vmem:[%s13010_s2 + $0x228] sm:$0xff]  ;;  %v9997_v48 = vsub.s32 1, %v9737_v55 }
 0x318   :  { %6058 = vmatmul.mubr.msk.f32.vlgmr.msra.gmra.mrb[2].mxu1 %vm959_vm3, %v950_v57  ;;  %v1289_v57 = vld [vmem:[%s13010_s2 + $0x158] sm:$0xff] }
 0x319   :  { %6799 = vmatpush1.bf16.msra.mxu1 %v6798_v52  ;;  %v6832_v52 = vpack.c.bf16 %v1285_v50, %v1283_v49  ;;  %v6836_v59 = vpack.c.bf16 %v1289_v57, %v1287_v56  ;;  %v10002_v49 = vld [vmem:[%s13010_s2 + $0x238] sm:$0xff]  ;;  %v10007_v50 = vld [vmem:[%s13010_s2 + $0x220] sm:$0xff] }
 0x31a   :  { %6801 = vmatprep.subr.bf16.mxu1 %v6800_v53  ;;  %v1282_v53 = vld [vmem:[%s13010_s2 + $0x120] sm:$0xff] }
 0x31b   :  { %v6834_v58 = vpack.c.bf16 %v1284_v54, %v1282_v53  ;;  %v10022_v53 = vld [vmem:[%s13010_s2 + $0x258] sm:$0xff] }
 0x31d   :  { %6803 = vmatpush1.bf16.msra.mxu1 %v6802_v60  ;;  %v1286_v60 = vld [vmem:[%s13010_s2 + $0x140] sm:$0xff] }
 0x31e   :  { %6805 = vmatprep.subr.bf16.mxu1 %v6804_v61  ;;  %v1288_v61 = vld [vmem:[%s13010_s2 + $0x150] sm:$0xff] }
 0x31f   :  { %v6838_v3 = vpack.c.bf16 %v1288_v61, %v1286_v60 }
 0x321   :  { %6807 = vmatpush1.bf16.msra.mxu1 %v6806_v5  ;;  %v1290_v5 = vld [vmem:[%s13010_s2 + $0x160] sm:$0xff] }
 0x322   :  { %6809 = vmatprep.subr.bf16.mxu1 %v6808_v7  ;;  %v1292_v7 = vld [vmem:[%s13010_s2 + $0x170] sm:$0xff] }
 0x323   :  { %v6842_v8 = vpack.c.bf16 %v1292_v7, %v1290_v5 }
 0x325   :  { %6811 = vmatpush1.bf16.msra.mxu1 %v6810_v13  ;;  %v1294_v13 = vld [vmem:[%s13010_s2 + $0x180] sm:$0xff] }
 0x326   :  { %6813 = vmatprep.subr.bf16.mxu1 %v6812_v14  ;;  %v1296_v14 = vld [vmem:[%s13010_s2 + $0x190] sm:$0xff] }
 0x327   :  { %v6846_v16 = vpack.c.bf16 %v1296_v14, %v1294_v13 }
 0x329   :  { %6815 = vmatpush1.bf16.msra.mxu1 %v6814_v21  ;;  %v1298_v21 = vld [vmem:[%s13010_s2 + $0x1a0] sm:$0xff] }
 0x32a   :  { %6817 = vmatprep.subr.bf16.mxu1 %v6816_v22  ;;  %v1300_v22 = vld [vmem:[%s13010_s2 + $0x1b0] sm:$0xff] }
 0x32b   :  { %v6850_v25 = vpack.c.bf16 %v1300_v22, %v1298_v21 }
 0x32d   :  { %6819 = vmatpush1.bf16.msra.mxu1 %v6818_v30  ;;  %v1302_v30 = vld [vmem:[%s13010_s2 + $0x1c0] sm:$0xff] }
 0x32e   :  { %6821 = vmatprep.subr.bf16.mxu1 %v6820_v32  ;;  %v1304_v32 = vld [vmem:[%s13010_s2 + $0x1d0] sm:$0xff] }
 0x32f   :  { %v6854_v33 = vpack.c.bf16 %v1304_v32, %v1302_v30 }
 0x331   :  { %6823 = vmatpush1.bf16.msra.mxu1 %v6822_v37  ;;  %v1306_v37 = vld [vmem:[%s13010_s2 + $0x1e0] sm:$0xff] }
 0x332   :  { %6825 = vmatprep.subr.bf16.mxu1 %v6824_v38  ;;  %v1308_v38 = vld [vmem:[%s13010_s2 + $0x1f0] sm:$0xff] }
 0x333   :  { %v6858_v39 = vpack.c.bf16 %v1308_v38, %v1306_v37 }
 0x335   :  { %6827 = vmatpush1.bf16.msra.mxu1 %v6826_v44  ;;  %v9984_v44 = vld [vmem:[%s13010_s2 + $0x200] sm:$0xff] }
 0x336   :  { %6829 = vmatprep.subr.bf16.mxu1 %v6828_v45  ;;  %v9989_v45 = vld [vmem:[%s13010_s2 + $0x210] sm:$0xff] }
 0x339   :  { %6831 = vmatpush1.bf16.msra.mxu1 %v6830_v51  ;;  %v10012_v51 = vld [vmem:[%s13010_s2 + $0x230] sm:$0xff] }
 0x33a   :  { %6833 = vmatprep.subr.bf16.mxu1 %v6832_v52  ;;  %v10017_v52 = vld [vmem:[%s13010_s2 + $0x248] sm:$0xff]  ;;  %v6866_v60 = vpack.c.bf16 %v10012_v51, %v10007_v50  ;;  %v1322_v50 = vld [vmem:[%s13010_s2 + $0x260] sm:$0xff]  ;;  %v1324_v51 = vld [vmem:[%s13010_s2 + $0x270] sm:$0xff] }
 0x33d   :  { %6835 = vmatpush1.bf16.msra.mxu1 %v6834_v58  ;;  %v6862_v58 = vpack.c.bf16 %v9989_v45, %v9984_v44 }
 0x33e   :  { %6837 = vmatprep.subr.bf16.mxu1 %v6836_v59  ;;  %v6864_v59 = vpack.c.bf16 %v10002_v49, %v9994_v47  ;;  %v1318_v47 = vld [vmem:[%s13010_s2 + $0x240] sm:$0xff]  ;;  %v1320_v49 = vld [vmem:[%s13010_s2 + $0x250] sm:$0xff] }
 0x341   :  { %6839 = vmatpush1.bf16.msra.mxu1 %v6838_v3  ;;  %v6868_v3 = vpack.c.bf16 %v10022_v53, %v10017_v52  ;;  %v1327_v53 = vld [vmem:[%s13010_s2 + $0x288] sm:$0xff] }
 0x342   :  { %6841 = vmatprep.subr.bf16.mxu1 %v6840_v4 }
 0x345   :  { %6843 = vmatpush1.bf16.msra.mxu1 %v6842_v8 }
 0x346   :  { %6845 = vmatprep.subr.bf16.mxu1 %v6844_v11 }
 0x349   :  { %6847 = vmatpush1.bf16.msra.mxu1 %v6846_v16 }
 0x34a   :  { %6849 = vmatprep.subr.bf16.mxu1 %v6848_v19 }
 0x34d   :  { %6851 = vmatpush1.bf16.msra.mxu1 %v6850_v25 }
 0x34e   :  { %6853 = vmatprep.subr.bf16.mxu1 %v6852_v29 }
 0x351   :  { %6855 = vmatpush1.bf16.msra.mxu1 %v6854_v33 }
 0x352   :  { %6857 = vmatprep.subr.bf16.mxu1 %v6856_v36 }
 0x355   :  { %6859 = vmatpush1.bf16.msra.mxu1 %v6858_v39 }
 0x356   :  { %6861 = vmatprep.subr.bf16.mxu1 %v6860_v43 }
 0x3eb   :  { %v1029_v54 = vpop.f32.mrb[2].mxu1 }
 0x3ec   :  { %v1037_v56 = vrot.slane %v1029_v54, %v9782_v42  ;;  %v1031_v57 = vpop.f32.mrb[3].mxu1  ;;  %v1055_v61 = vrot.slane %v1029_v54, %v9997_v48 }
 0x3ed   :  { %v1041_v62 = vrot.slane %v1031_v57, %v9782_v42  ;;  %v1059_v63 = vrot.slane %v1031_v57, %v9997_v48 }
 0x3ee   :  { %v1042_v4 = vmul.f32 %v1037_v56, %v9682_v0  ;;  %v1044_v5 = vmul.f32 %v1037_v56, %v9686_v2  ;;  %v1046_v7 = vmul.f32 %v1037_v56, %v9702_v12  ;;  %v1048_v8 = vmul.f32 %v1037_v56, %v9712_v20 }
 0x3ef   :  { %v1050_v9 = vmul.f32 %v1037_v56, %v9722_v28  ;;  %v1043_v10 = vmul.f32 %v1041_v62, %v9684_v1  ;;  %v1045_v11 = vmul.f32 %v1041_v62, %v9694_v6  ;;  %v1047_v13 = vmul.f32 %v1041_v62, %v9707_v15 }
 0x3f0   :  { %v1060_v14 = vadd.f32 %v1055_v61, %v1042_v4  ;;  %v1062_v16 = vadd.f32 %v1055_v61, %v1044_v5  ;;  %v1064_v17 = vadd.f32 %v1055_v61, %v1046_v7  ;;  %v1066_v18 = vadd.f32 %v1055_v61, %v1048_v8 }
 0x3f1   :  { %v1068_v0 = vadd.f32 %v1055_v61, %v1050_v9  ;;  %v1049_v2 = vmul.f32 %v1041_v62, %v9717_v23  ;;  %v1051_v12 = vmul.f32 %v1041_v62, %v9728_v31  ;;  %v1061_v19 = vadd.f32 %v1059_v63, %v1043_v10 }
 0x3f2   :  { %v1070_v20 = vmax.f32 %v1060_v14, 0.0  ;;  %v10046_v21 = vmax.f32 %v1062_v16, 0.0  ;;  %v1074_v28 = vmax.f32 %v1064_v17, 0.0  ;;  %v1076_v22 = vmax.f32 %v1066_v18, 0.0 }
 0x3f3   :  { %v1078_v1 = vmax.f32 %v1068_v0, 0.0  ;;  %v1063_v25 = vadd.f32 %v1059_v63, %v1045_v11  ;;  %v1065_v6 = vadd.f32 %v1059_v63, %v1047_v13  ;;  %v1067_v26 = vadd.f32 %v1059_v63, %v1049_v2 }
 0x3f4   :  { %1082 = vst [vmem:[#allocation2 + $0x60] sm:$0xff] %v10046_v21  ;;  %1084 = vst [vmem:[#allocation2 + $0xc0] sm:$0x1] %v1074_v28  ;;  %v1093_v15 = vrot.slane %v1074_v28, 3  ;;  %v1094_v27 = vrot.slane %v1076_v22, 3  ;;  %v1120_v29 = vrot.slane %v1070_v20, 1  ;;  %v1069_v4 = vadd.f32 %v1059_v63, %v1051_v12 }
 0x3f5   :  { %v1121_v23 = vrot.slane %v10046_v21, 1  ;;  %v1099_v30 = vrot.slane %v1078_v1, 3  ;;  %v1126_v31 = vrot.slane %v1074_v28, 1  ;;  %v1143_v32 = vrot.slane %v1074_v28, 4 }
 0x3f6   :  { %v1144_v33 = vrot.slane %v1076_v22, 4  ;;  %v10051_v34 = vsel %vm1092_vm4, %v1093_v15, %v1094_v27  ;;  %v1149_v36 = vrot.slane %v1078_v1, 4  ;;  %v1165_v37 = vrot.slane %v1070_v20, 2 }
 0x3f7   :  { %v10054_v35 = vsel %vm1119_vm5, %v1120_v29, %v1121_v23  ;;  %v10057_v38 = vsel %vm1092_vm4, %v1094_v27, %v1099_v30  ;;  %1113 = vst [vmem:[#allocation2 + $0xd0] sm:$0x1] %v1099_v30  ;;  %v10060_v39 = vsel %vm1119_vm5, %v1121_v23, %v1126_v31  ;;  %1140 = vst [vmem:[#allocation2 + $0xe0] sm:$0x1] %v1126_v31  ;;  %v1166_v41 = vrot.slane %v10046_v21, 2  ;;  %v1323_v29 = vld [vmem:[%s13010_s2 + $0x268] sm:$0xff] }
 0x3f8   :  { %v1145_v40 = vsel %vm1142_vm6, %v1143_v32, %v1144_v33  ;;  %1111 = vst [vmem:[#allocation2 + $0x70] sm:$0xff] %v10057_v38  ;;  %1138 = vst [vmem:[#allocation2 + $0x80] sm:$0xff] %v10060_v39  ;;  %v1150_v43 = vsel %vm1142_vm6, %v1144_v33, %v1149_v36  ;;  %v1171_v54 = vrot.slane %v1074_v28, 2  ;;  %v1188_v56 = vrot.slane %v1074_v28, 5  ;;  %v1325_v23 = vld [vmem:[%s13010_s2 + $0x278] sm:$0xff] }
 0x3f9   :  { %1159 = vst [vmem:[#allocation2 + $0x30] sm:$0xff] %v1145_v40  ;;  %1163 = vst [vmem:[#allocation2 + $0xf0] sm:$0x1] %v1149_v36  ;;  %v1189_v57 = vrot.slane %v1076_v22, 5  ;;  %v1167_v61 = vsel %vm768_vm1, %v1165_v37, %v1166_v41  ;;  %v1194_v62 = vrot.slane %v1078_v1, 5  ;;  %v1071_v5 = vmax.f32 %v1061_v19, 0.0 }
 0x3fa   :  { %1161 = vst [vmem:[#allocation2 + $0x90] sm:$0xff] %v1150_v43  ;;  %v1172_v7 = vsel %vm768_vm1, %v1166_v41, %v1171_v54  ;;  %1181 = vst [vmem:[#allocation2 + $0x40] sm:$0xff] %v1167_v61  ;;  %v1073_v9 = vmax.f32 %v1063_v25, 0.0  ;;  %v1075_v10 = vmax.f32 %v1065_v6, 0.0  ;;  %v1077_v13 = vmax.f32 %v1067_v26, 0.0  ;;  %v1326_v41 = vld [vmem:[%s13010_s2 + $0x280] sm:$0xff] }
 0x3fb   :  { %1185 = vst [vmem:[#allocation2 + $0x100] sm:$0x1] %v1171_v54  ;;  %v1190_v8 = vsel %vm1187_vm7, %v1188_v56, %v1189_v57  ;;  %1183 = vst [vmem:[#allocation2 + $0xa0] sm:$0xff] %v1172_v7  ;;  %v1195_v11 = vsel %vm1187_vm7, %v1189_v57, %v1194_v62  ;;  %v1079_v14 = vmax.f32 %v1069_v4, 0.0  ;;  %v1123_v16 = vrot.slane %v1071_v5, 1  ;;  %1694 = vmatprep.mubr.f32.mxu1 %v1071_v5  ;;  %v1328_v43 = vld [vmem:[%s13010_s2 + $0x290] sm:$0xff] }
 0x3fc   :  { %1204 = vst [vmem:[#allocation2 + $0x50] sm:$0xff] %v1190_v8  ;;  %1208 = vst [vmem:[#allocation2 + $0x110] sm:$0x1] %v1194_v62  ;;  %v1096_v63 = vrot.slane %v1075_v10, 3  ;;  %v1124_v17 = vrot.slane %v1073_v9, 1  ;;  %v1128_v18 = vrot.slane %v1075_v10, 1  ;;  %1695 = vmatmul.mubr.f32.vlgmr.msra.gmra.mrb[4].mxu1 %v1070_v20  ;;  %v6872_v37 = vpack.c.bf16 %v1325_v23, %v1323_v29 }
 0x3fd   :  { %1206 = vst [vmem:[#allocation2 + $0xb0] sm:$0xff] %v1195_v11  ;;  %1083 = vst [vmem:[#allocation2 + $0x68] sm:$0xff] %v1073_v9  ;;  %v1146_v0 = vrot.slane %v1075_v10, 4  ;;  %v1097_v2 = vrot.slane %v1077_v13, 3  ;;  %v1101_v12 = vrot.slane %v1079_v14, 3  ;;  %v1147_v19 = vrot.slane %v1077_v13, 4  ;;  %6863 = vmatpush1.bf16.msra.mxu1 %v6862_v58  ;;  %1700 = vmatprep.mubr.f32.mxu1 %v1073_v9 }
 0x3fe   :  { %1085 = vst [vmem:[#allocation2 + $0xc8] sm:$0x1] %v1075_v10  ;;  %v1151_v28 = vrot.slane %v1079_v14, 4  ;;  %v10075_v22 = vsel %vm1119_vm5, %v1123_v16, %v1124_v17  ;;  %v10078_v1 = vsel %vm1119_vm5, %v1124_v17, %v1128_v18  ;;  %1141 = vst [vmem:[#allocation2 + $0xe8] sm:$0x1] %v1128_v18  ;;  %v1168_v25 = vrot.slane %v1071_v5, 2  ;;  %6865 = vmatprep.subr.bf16.mxu1 %v6864_v59 }
 0x3ff   :  { %v1169_v6 = vrot.slane %v1073_v9, 2  ;;  %v1098_v20 = vsel %vm1092_vm4, %v1096_v63, %v1097_v2  ;;  %v10085_v26 = vsel %vm1092_vm4, %v1097_v2, %v1101_v12  ;;  %1114 = vst [vmem:[#allocation2 + $0xd8] sm:$0x1] %v1101_v12  ;;  %1139 = vst [vmem:[#allocation2 + $0x88] sm:$0xff] %v10078_v1  ;;  %v10089_v44 = vsel %vm1142_vm6, %v1146_v0, %v1147_v19  ;;  %v1234_v52 = vld [vmem:[#allocation2 + $0xc0] sm:$0x1] }
 0x400   :  { %v10092_v45 = vsel %vm1142_vm6, %v1147_v19, %v1151_v28  ;;  %1164 = vst [vmem:[#allocation2 + $0xf8] sm:$0x1] %v1151_v28  ;;  %1112 = vst [vmem:[#allocation2 + $0x78] sm:$0xff] %v10085_v26  ;;  %v1173_v59 = vrot.slane %v1075_v10, 2  ;;  %v1191_v15 = vrot.slane %v1075_v10, 5  ;;  %v1192_v27 = vrot.slane %v1077_v13, 5  ;;  %1701 = vmatmul.mubr.f32.gmra.mrb[6].mxu1 %v10046_v21 }
 0x401   :  { %1162 = vst [vmem:[#allocation2 + $0x98] sm:$0xff] %v10092_v45  ;;  %v10103_v58 = vsel %vm768_vm1, %v1168_v25, %v1169_v6  ;;  %v1196_v30 = vrot.slane %v1079_v14, 5  ;;  %6867 = vmatpush1.bf16.msra.mxu1 %v6866_v60  ;;  %v6870_v21 = vpack.c.bf16 %v1320_v49, %v1318_v47  ;;  %v1329_v60 = vld [vmem:[%s13010_s2 + $0x298] sm:$0xff]  ;;  %v1331_v54 = vld [vmem:[%s13010_s2 + $0x2a8] sm:$0xff]  ;;  %v6878_v57 = vpack.c.bf16 %v1328_v43, %v1326_v41  ;;  %v1330_v62 = vld [vmem:[%s13010_s2 + $0x2a0] sm:$0xff] }
 0x402   :  { %v1174_v31 = vsel %vm768_vm1, %v1169_v6, %v1173_v59  ;;  %1186 = vst [vmem:[#allocation2 + $0x108] sm:$0x1] %v1173_v59  ;;  %v1193_v32 = vsel %vm1187_vm7, %v1191_v15, %v1192_v27  ;;  %6869 = vmatprep.subr.bf16.mxu1 %v6868_v3  ;;  %v6874_v3 = vpack.c.bf16 %v1324_v51, %v1322_v50  ;;  %v1333_v56 = vld [vmem:[%s13010_s2 + $0x2b8] sm:$0xff]  ;;  %v1332_v4 = vld [vmem:[%s13010_s2 + $0x2b0] sm:$0xff]  ;;  %v1335_v5 = vld [vmem:[%s13010_s2 + $0x2c8] sm:$0xff] }
 0x403   :  { %1184 = vst [vmem:[#allocation2 + $0xa8] sm:$0xff] %v1174_v31  ;;  %v1197_v33 = vsel %vm1187_vm7, %v1192_v27, %v1196_v30  ;;  %1205 = vst [vmem:[#allocation2 + $0x58] sm:$0xff] %v1193_v32  ;;  %v6876_v40 = vpack.c.bf16 %v1329_v60, %v1327_v53  ;;  %v6880_v61 = vpack.c.bf16 %v1333_v56, %v1331_v54  ;;  %v1337_v7 = vld [vmem:[%s13010_s2 + $0x2d8] sm:$0xff]  ;;  %v1334_v10 = vld [vmem:[%s13010_s2 + $0x2c0] sm:$0xff] }
 0x404   :  { %1209 = vst [vmem:[#allocation2 + $0x118] sm:$0x1] %v1196_v30  ;;  %1207 = vst [vmem:[#allocation2 + $0xb8] sm:$0xff] %v1197_v33  ;;  %v6882_v8 = vpack.c.bf16 %v1332_v4, %v1330_v62  ;;  %v6884_v9 = vpack.c.bf16 %v1337_v7, %v1335_v5  ;;  %v1336_v11 = vld [vmem:[%s13010_s2 + $0x2d0] sm:$0xff]  ;;  %v1339_v13 = vld [vmem:[%s13010_s2 + $0x2e8] sm:$0xff] }
 0x405   :  { %v1235_v36 = vld [vmem:[#allocation2 + $0xc8] sm:$0x1]  ;;  %6871 = vmatpush1.bf16.msra.mxu1 %v6870_v21  ;;  %v1341_v14 = vld [vmem:[%s13010_s2 + $0x2f8] sm:$0xff]  ;;  %v6886_v16 = vpack.c.bf16 %v1336_v11, %v1334_v10  ;;  %v1338_v17 = vld [vmem:[%s13010_s2 + $0x2e0] sm:$0xff] }
 0x406   :  { %1706 = vmatprep.mubr.f32.mxu1 %v1235_v36  ;;  %6873 = vmatprep.subr.bf16.mxu1 %v6872_v37  ;;  %v6888_v63 = vpack.c.bf16 %v1341_v14, %v1339_v13  ;;  %v1340_v18 = vld [vmem:[%s13010_s2 + $0x2f0] sm:$0xff]  ;;  %v1343_v0 = vld [vmem:[%s13010_s2 + $0x308] sm:$0xff]  ;;  %v1345_v2 = vld [vmem:[%s13010_s2 + $0x318] sm:$0xff] }
 0x407   :  { %1707 = vmatmul.mubr.f32.gmra.mrb[8].mxu1 %v1234_v52  ;;  %v6890_v12 = vpack.c.bf16 %v1340_v18, %v1338_v17  ;;  %v6892_v19 = vpack.c.bf16 %v1345_v2, %v1343_v0  ;;  %v1342_v28 = vld [vmem:[%s13010_s2 + $0x300] sm:$0xff]  ;;  %v1344_v25 = vld [vmem:[%s13010_s2 + $0x310] sm:$0xff]  ;;  %v1347_v6 = vld [vmem:[%s13010_s2 + $0x328] sm:$0xff] }
 0x408   :  { %1777 = vmatprep.mubr.f32.mxu1 %v1098_v20  ;;  %v1349_v20 = vld [vmem:[%s13010_s2 + $0x338] sm:$0xff]  ;;  %v6894_v47 = vpack.c.bf16 %v1344_v25, %v1342_v28  ;;  %v1346_v59 = vld [vmem:[%s13010_s2 + $0x320] sm:$0xff]  ;;  %v1348_v15 = vld [vmem:[%s13010_s2 + $0x330] sm:$0xff] }
 0x409   :  { %6875 = vmatpush1.bf16.msra.mxu1 %v6874_v3  ;;  %v6896_v49 = vpack.c.bf16 %v1349_v20, %v1347_v6  ;;  %v1351_v27 = vld [vmem:[%s13010_s2 + $0x348] sm:$0xff]  ;;  %v1353_v29 = vld [vmem:[%s13010_s2 + $0x358] sm:$0xff]  ;;  %v6898_v23 = vpack.c.bf16 %v1348_v15, %v1346_v59  ;;  %v1350_v31 = vld [vmem:[%s13010_s2 + $0x340] sm:$0xff] }
 0x40a   :  { %6877 = vmatprep.subr.bf16.mxu1 %v6876_v40  ;;  %v6900_v30 = vpack.c.bf16 %v1353_v29, %v1351_v27  ;;  %v1352_v32 = vld [vmem:[%s13010_s2 + $0x350] sm:$0xff]  ;;  %v1355_v21 = vld [vmem:[%s13010_s2 + $0x368] sm:$0xff]  ;;  %v1357_v33 = vld [vmem:[%s13010_s2 + $0x378] sm:$0xff] }
 0x40b   :  { %v6902_v36 = vpack.c.bf16 %v1352_v32, %v1350_v31  ;;  %v6904_v37 = vpack.c.bf16 %v1357_v33, %v1355_v21  ;;  %v1354_v50 = vld [vmem:[%s13010_s2 + $0x360] sm:$0xff]  ;;  %v1356_v51 = vld [vmem:[%s13010_s2 + $0x370] sm:$0xff]  ;;  %v1359_v52 = vld [vmem:[%s13010_s2 + $0x388] sm:$0xff] }
 0x40c   :  { %v1361_v53 = vld [vmem:[%s13010_s2 + $0x398] sm:$0xff]  ;;  %v6906_v60 = vpack.c.bf16 %v1356_v51, %v1354_v50  ;;  %v1358_v40 = vld [vmem:[%s13010_s2 + $0x380] sm:$0xff]  ;;  %v1360_v41 = vld [vmem:[%s13010_s2 + $0x390] sm:$0xff] }
 0x40d   :  { %6879 = vmatpush1.bf16.msra.mxu1 %v6878_v57  ;;  %v6908_v3 = vpack.c.bf16 %v1361_v53, %v1359_v52  ;;  %v1363_v43 = vld [vmem:[%s13010_s2 + $0x3a8] sm:$0xff]  ;;  %v1365_v54 = vld [vmem:[%s13010_s2 + $0x3b8] sm:$0xff]  ;;  %v6910_v56 = vpack.c.bf16 %v1360_v41, %v1358_v40  ;;  %v1364_v62 = vld [vmem:[%s13010_s2 + $0x3b0] sm:$0xff] }
 0x40e   :  { %6881 = vmatprep.subr.bf16.mxu1 %v6880_v61  ;;  %v6912_v57 = vpack.c.bf16 %v1365_v54, %v1363_v43  ;;  %v1362_v61 = vld [vmem:[%s13010_s2 + $0x3a0] sm:$0xff]  ;;  %v1367_v4 = vld [vmem:[%s13010_s2 + $0x3c8] sm:$0xff]  ;;  %v1369_v5 = vld [vmem:[%s13010_s2 + $0x3d8] sm:$0xff] }
 0x40f   :  { %v6914_v7 = vpack.c.bf16 %v1364_v62, %v1362_v61  ;;  %v1368_v10 = vld [vmem:[%s13010_s2 + $0x3d0] sm:$0xff]  ;;  %v1371_v11 = vld [vmem:[%s13010_s2 + $0x3e8] sm:$0xff]  ;;  %v1373_v13 = vld [vmem:[%s13010_s2 + $0x3f8] sm:$0xff] }
 0x410   :  { %v1372_v17 = vld [vmem:[%s13010_s2 + $0x3f0] sm:$0xff]  ;;  %v1375_v18 = vld [vmem:[%s13010_s2 + $0x408] sm:$0xff]  ;;  %v1377_v0 = vld [vmem:[%s13010_s2 + $0x418] sm:$0xff] }
 0x411   :  { %6883 = vmatpush1.bf16.msra.mxu1 %v6882_v8  ;;  %v6916_v8 = vpack.c.bf16 %v1369_v5, %v1367_v4  ;;  %v1376_v28 = vld [vmem:[%s13010_s2 + $0x410] sm:$0xff]  ;;  %v1379_v25 = vld [vmem:[%s13010_s2 + $0x428] sm:$0xff]  ;;  %v1381_v6 = vld [vmem:[%s13010_s2 + $0x438] sm:$0xff] }
 0x412   :  { %6885 = vmatprep.subr.bf16.mxu1 %v6884_v9  ;;  %v1366_v9 = vld [vmem:[%s13010_s2 + $0x3c0] sm:$0xff]  ;;  %v1380_v59 = vld [vmem:[%s13010_s2 + $0x430] sm:$0xff]  ;;  %v1383_v15 = vld [vmem:[%s13010_s2 + $0x448] sm:$0xff] }
 0x413   :  { %v6918_v14 = vpack.c.bf16 %v1368_v10, %v1366_v9  ;;  %v1385_v27 = vld [vmem:[%s13010_s2 + $0x458] sm:$0xff]  ;;  %v1384_v31 = vld [vmem:[%s13010_s2 + $0x450] sm:$0xff]  ;;  %v1387_v32 = vld [vmem:[%s13010_s2 + $0x468] sm:$0xff] }
 0x414   :  { %v1236_v50 = vld [vmem:[#allocation2 + $0xd0] sm:$0x1]  ;;  %v1391_v51 = vld [vmem:[%s13010_s2 + $0x488] sm:$0xff]  ;;  %v1397_v41 = vld [vmem:[%s13010_s2 + $0x4b8] sm:$0xff] }
 0x415   :  { %6887 = vmatpush1.bf16.msra.mxu1 %v6886_v16  ;;  %v6920_v16 = vpack.c.bf16 %v1373_v13, %v1371_v11  ;;  %v1395_v40 = vld [vmem:[%s13010_s2 + $0x4a8] sm:$0xff]  ;;  %v1394_v54 = vld [vmem:[%s13010_s2 + $0x4a0] sm:$0xff]  ;;  %v1401_v61 = vld [vmem:[%s13010_s2 + $0x4d8] sm:$0xff] }
 0x416   :  { %6889 = vmatprep.subr.bf16.mxu1 %v6888_v63  ;;  %v1370_v63 = vld [vmem:[%s13010_s2 + $0x3e0] sm:$0xff]  ;;  %v6944_v43 = vpack.c.bf16 %v1397_v41, %v1395_v40  ;;  %v1405_v9 = vld [vmem:[%s13010_s2 + $0x4f8] sm:$0xff]  ;;  %v1428_v40 = vld [vmem:[%s13010_s2 + $0x5b0] sm:$0xff] }
 0x417   :  { %v6922_v2 = vpack.c.bf16 %v1372_v17, %v1370_v63  ;;  %v1398_v5 = vld [vmem:[%s13010_s2 + $0x4c0] sm:$0xff]  ;;  %v1409_v63 = vld [vmem:[%s13010_s2 + $0x518] sm:$0xff]  ;;  %v1431_v41 = vld [vmem:[%s13010_s2 + $0x5c8] sm:$0xff] }
 0x418   :  { %v1402_v13 = vld [vmem:[%s13010_s2 + $0x4e0] sm:$0xff] }
 0x419   :  { %6891 = vmatpush1.bf16.msra.mxu1 %v6890_v12  ;;  %v6924_v12 = vpack.c.bf16 %v1377_v0, %v1375_v18  ;;  %v1406_v0 = vld [vmem:[%s13010_s2 + $0x500] sm:$0xff] }
 0x41a   :  { %6893 = vmatprep.subr.bf16.mxu1 %v6892_v19  ;;  %v1374_v19 = vld [vmem:[%s13010_s2 + $0x400] sm:$0xff] }
 0x41b   :  { %v6926_v20 = vpack.c.bf16 %v1376_v28, %v1374_v19  ;;  %v1413_v19 = vld [vmem:[%s13010_s2 + $0x538] sm:$0xff] }
 0x41d   :  { %6895 = vmatpush1.bf16.msra.mxu1 %v6894_v47  ;;  %v6928_v47 = vpack.c.bf16 %v1381_v6, %v1379_v25  ;;  %v1410_v6 = vld [vmem:[%s13010_s2 + $0x520] sm:$0xff] }
 0x41e   :  { %6897 = vmatprep.subr.bf16.mxu1 %v6896_v49  ;;  %v1378_v49 = vld [vmem:[%s13010_s2 + $0x420] sm:$0xff] }
 0x41f   :  { %v6930_v29 = vpack.c.bf16 %v1380_v59, %v1378_v49  ;;  %v1417_v49 = vld [vmem:[%s13010_s2 + $0x558] sm:$0xff] }
 0x421   :  { %6899 = vmatpush1.bf16.msra.mxu1 %v6898_v23  ;;  %v6932_v23 = vpack.c.bf16 %v1385_v27, %v1383_v15  ;;  %v1414_v27 = vld [vmem:[%s13010_s2 + $0x540] sm:$0xff] }
 0x422   :  { %6901 = vmatprep.subr.bf16.mxu1 %v6900_v30  ;;  %v1382_v30 = vld [vmem:[%s13010_s2 + $0x440] sm:$0xff] }
 0x423   :  { %v6934_v21 = vpack.c.bf16 %v1384_v31, %v1382_v30  ;;  %v1421_v30 = vld [vmem:[%s13010_s2 + $0x578] sm:$0xff] }
 0x425   :  { %6903 = vmatpush1.bf16.msra.mxu1 %v6902_v36  ;;  %v1386_v36 = vld [vmem:[%s13010_s2 + $0x460] sm:$0xff] }
 0x426   :  { %6905 = vmatprep.subr.bf16.mxu1 %v6904_v37  ;;  %v1388_v37 = vld [vmem:[%s13010_s2 + $0x470] sm:$0xff] }
 0x427   :  { %v6938_v52 = vpack.c.bf16 %v1388_v37, %v1386_v36 }
 0x429   :  { %6907 = vmatpush1.bf16.msra.mxu1 %v6906_v60  ;;  %v1390_v60 = vld [vmem:[%s13010_s2 + $0x480] sm:$0xff] }
 0x42a   :  { %6909 = vmatprep.subr.bf16.mxu1 %v6908_v3  ;;  %v1392_v3 = vld [vmem:[%s13010_s2 + $0x490] sm:$0xff] }
 0x42d   :  { %6911 = vmatpush1.bf16.msra.mxu1 %v6910_v56  ;;  %v1396_v56 = vld [vmem:[%s13010_s2 + $0x4b0] sm:$0xff] }
 0x42e   :  { %6913 = vmatprep.subr.bf16.mxu1 %v6912_v57  ;;  %v1399_v57 = vld [vmem:[%s13010_s2 + $0x4c8] sm:$0xff]  ;;  %v6946_v62 = vpack.c.bf16 %v1396_v56, %v1394_v54  ;;  %v1430_v56 = vld [vmem:[%s13010_s2 + $0x5c0] sm:$0xff] }
 0x42f   :  { %v6948_v4 = vpack.c.bf16 %v1401_v61, %v1399_v57  ;;  %v1432_v57 = vld [vmem:[%s13010_s2 + $0x5d0] sm:$0xff]  ;;  %v1435_v61 = vld [vmem:[%s13010_s2 + $0x5e8] sm:$0xff] }
 0x431   :  { %6915 = vmatpush1.bf16.msra.mxu1 %v6914_v7  ;;  %v1400_v7 = vld [vmem:[%s13010_s2 + $0x4d0] sm:$0xff] }
 0x432   :  { %6917 = vmatprep.subr.bf16.mxu1 %v6916_v8  ;;  %v1403_v8 = vld [vmem:[%s13010_s2 + $0x4e8] sm:$0xff]  ;;  %v6950_v10 = vpack.c.bf16 %v1400_v7, %v1398_v5  ;;  %v1434_v7 = vld [vmem:[%s13010_s2 + $0x5e0] sm:$0xff] }
 0x433   :  { %v6952_v11 = vpack.c.bf16 %v1405_v9, %v1403_v8  ;;  %v1436_v8 = vld [vmem:[%s13010_s2 + $0x5f0] sm:$0xff]  ;;  %v1439_v9 = vld [vmem:[%s13010_s2 + $0x608] sm:$0xff] }
 0x435   :  { %6919 = vmatpush1.bf16.msra.mxu1 %v6918_v14  ;;  %v1404_v14 = vld [vmem:[%s13010_s2 + $0x4f0] sm:$0xff] }
 0x436   :  { %6921 = vmatprep.subr.bf16.mxu1 %v6920_v16  ;;  %v1407_v16 = vld [vmem:[%s13010_s2 + $0x508] sm:$0xff]  ;;  %v6954_v17 = vpack.c.bf16 %v1404_v14, %v1402_v13  ;;  %v1438_v14 = vld [vmem:[%s13010_s2 + $0x600] sm:$0xff] }
 0x437   :  { %v6956_v18 = vpack.c.bf16 %v1409_v63, %v1407_v16  ;;  %v1440_v16 = vld [vmem:[%s13010_s2 + $0x610] sm:$0xff]  ;;  %v1443_v63 = vld [vmem:[%s13010_s2 + $0x628] sm:$0xff] }
 0x439   :  { %6923 = vmatpush1.bf16.msra.mxu1 %v6922_v2  ;;  %v1408_v2 = vld [vmem:[%s13010_s2 + $0x510] sm:$0xff] }
 0x43a   :  { %6925 = vmatprep.subr.bf16.mxu1 %v6924_v12  ;;  %v1411_v12 = vld [vmem:[%s13010_s2 + $0x528] sm:$0xff]  ;;  %v6958_v28 = vpack.c.bf16 %v1408_v2, %v1406_v0  ;;  %v1442_v2 = vld [vmem:[%s13010_s2 + $0x620] sm:$0xff] }
 0x43b   :  { %v6960_v25 = vpack.c.bf16 %v1413_v19, %v1411_v12  ;;  %v1444_v12 = vld [vmem:[%s13010_s2 + $0x630] sm:$0xff]  ;;  %v1447_v19 = vld [vmem:[%s13010_s2 + $0x648] sm:$0xff] }
 0x43c   :  { %1778 = vmatmul.mubr.f32.vlgmr.msra.gmra.mrb[4].mxu1 %v10051_v34  ;;  %v1389_v34 = vld [vmem:[%s13010_s2 + $0x478] sm:$0xff] }
 0x43d   :  { %1783 = vmatprep.mubr.f32.mxu1 %v10085_v26  ;;  %6927 = vmatpush1.bf16.msra.mxu1 %v6926_v20  ;;  %v1237_v26 = vld [vmem:[#allocation2 + $0xd8] sm:$0x1]  ;;  %v6936_v33 = vpack.c.bf16 %v1389_v34, %v1387_v32  ;;  %v1412_v20 = vld [vmem:[%s13010_s2 + $0x530] sm:$0xff]  ;;  %v1418_v34 = vld [vmem:[%s13010_s2 + $0x560] sm:$0xff] }
 0x43e   :  { %6929 = vmatprep.subr.bf16.mxu1 %v6928_v47  ;;  %v1415_v47 = vld [vmem:[%s13010_s2 + $0x548] sm:$0xff]  ;;  %v6962_v59 = vpack.c.bf16 %v1412_v20, %v1410_v6  ;;  %v1446_v20 = vld [vmem:[%s13010_s2 + $0x640] sm:$0xff] }
 0x43f   :  { %v6964_v15 = vpack.c.bf16 %v1417_v49, %v1415_v47  ;;  %v1448_v47 = vld [vmem:[%s13010_s2 + $0x650] sm:$0xff]  ;;  %v1451_v49 = vld [vmem:[%s13010_s2 + $0x668] sm:$0xff] }
 0x440   :  { %1784 = vmatmul.mubr.f32.gmra.mrb[6].mxu1 %v10057_v38  ;;  %v1393_v38 = vld [vmem:[%s13010_s2 + $0x498] sm:$0xff] }
 0x441   :  { %1789 = vmatprep.mubr.f32.mxu1 %v1237_v26  ;;  %6931 = vmatpush1.bf16.msra.mxu1 %v6930_v29  ;;  %v6940_v53 = vpack.c.bf16 %v1393_v38, %v1391_v51  ;;  %v1416_v29 = vld [vmem:[%s13010_s2 + $0x550] sm:$0xff]  ;;  %v1427_v38 = vld [vmem:[%s13010_s2 + $0x5a8] sm:$0xff] }
 0x442   :  { %6933 = vmatprep.subr.bf16.mxu1 %v6932_v23  ;;  %v1419_v23 = vld [vmem:[%s13010_s2 + $0x568] sm:$0xff]  ;;  %v6966_v31 = vpack.c.bf16 %v1416_v29, %v1414_v27  ;;  %v1420_v26 = vld [vmem:[%s13010_s2 + $0x570] sm:$0xff]  ;;  %v1450_v27 = vld [vmem:[%s13010_s2 + $0x660] sm:$0xff] }
 0x443   :  { %v6968_v32 = vpack.c.bf16 %v1421_v30, %v1419_v23  ;;  %v6970_v36 = vpack.c.bf16 %v1420_v26, %v1418_v34  ;;  %v1424_v51 = vld [vmem:[%s13010_s2 + $0x590] sm:$0xff]  ;;  %v1238_v23 = vld [vmem:[#allocation2 + $0xe0] sm:$0x1]  ;;  %v1455_v30 = vld [vmem:[%s13010_s2 + $0x688] sm:$0xff] }
 0x444   :  { %1790 = vmatmul.mubr.f32.gmra.mrb[8].mxu1 %v1236_v50  ;;  %v1422_v50 = vld [vmem:[%s13010_s2 + $0x580] sm:$0xff]  ;;  %v1452_v29 = vld [vmem:[%s13010_s2 + $0x670] sm:$0xff] }
 0x445   :  { %6935 = vmatpush1.bf16.msra.mxu1 %v6934_v21  ;;  %1860 = vmatprep.mubr.f32.mxu1 %v10075_v22  ;;  %v6942_v22 = vpack.c.bf16 %v1392_v3, %v1390_v60  ;;  %v1423_v21 = vld [vmem:[%s13010_s2 + $0x588] sm:$0xff]  ;;  %v1426_v3 = vld [vmem:[%s13010_s2 + $0x5a0] sm:$0xff]  ;;  %v1456_v26 = vld [vmem:[%s13010_s2 + $0x690] sm:$0xff] }
 0x446   :  { %6937 = vmatprep.subr.bf16.mxu1 %v6936_v33  ;;  %v1425_v33 = vld [vmem:[%s13010_s2 + $0x598] sm:$0xff]  ;;  %v1454_v34 = vld [vmem:[%s13010_s2 + $0x680] sm:$0xff] }
 0x447   :  { %v6972_v37 = vpack.c.bf16 %v1425_v33, %v1423_v21  ;;  %v1459_v21 = vld [vmem:[%s13010_s2 + $0x6a8] sm:$0xff]  ;;  %v1461_v33 = vld [vmem:[%s13010_s2 + $0x6b8] sm:$0xff] }
 0x449   :  { %6939 = vmatpush1.bf16.msra.mxu1 %v6938_v52  ;;  %v1429_v52 = vld [vmem:[%s13010_s2 + $0x5b8] sm:$0xff] }
 0x44a   :  { %6941 = vmatprep.subr.bf16.mxu1 %v6940_v53  ;;  %v6974_v53 = vpack.c.bf16 %v1424_v51, %v1422_v50  ;;  %v6976_v60 = vpack.c.bf16 %v1429_v52, %v1427_v38  ;;  %v1460_v50 = vld [vmem:[%s13010_s2 + $0x6b0] sm:$0xff]  ;;  %v1463_v51 = vld [vmem:[%s13010_s2 + $0x6c8] sm:$0xff]  ;;  %v1465_v38 = vld [vmem:[%s13010_s2 + $0x6d8] sm:$0xff] }
 0x44d   :  { %6943 = vmatpush1.bf16.msra.mxu1 %v6942_v22  ;;  %v1433_v22 = vld [vmem:[%s13010_s2 + $0x5d8] sm:$0xff] }
 0x44e   :  { %6945 = vmatprep.subr.bf16.mxu1 %v6944_v43  ;;  %v6978_v43 = vpack.c.bf16 %v1428_v40, %v1426_v3  ;;  %v6980_v54 = vpack.c.bf16 %v1433_v22, %v1431_v41  ;;  %v1464_v3 = vld [vmem:[%s13010_s2 + $0x6d0] sm:$0xff]  ;;  %v1467_v40 = vld [vmem:[%s13010_s2 + $0x6e8] sm:$0xff]  ;;  %v1469_v41 = vld [vmem:[%s13010_s2 + $0x6f8] sm:$0xff] }
 0x451   :  { %6947 = vmatpush1.bf16.msra.mxu1 %v6946_v62  ;;  %v1437_v62 = vld [vmem:[%s13010_s2 + $0x5f8] sm:$0xff] }
 0x452   :  { %6949 = vmatprep.subr.bf16.mxu1 %v6948_v4  ;;  %v6982_v4 = vpack.c.bf16 %v1432_v57, %v1430_v56  ;;  %v6984_v5 = vpack.c.bf16 %v1437_v62, %v1435_v61  ;;  %v1468_v56 = vld [vmem:[%s13010_s2 + $0x6f0] sm:$0xff]  ;;  %v1471_v57 = vld [vmem:[%s13010_s2 + $0x708] sm:$0xff]  ;;  %v1473_v61 = vld [vmem:[%s13010_s2 + $0x718] sm:$0xff] }
 0x455   :  { %6951 = vmatpush1.bf16.msra.mxu1 %v6950_v10  ;;  %v1441_v10 = vld [vmem:[%s13010_s2 + $0x618] sm:$0xff] }
 0x456   :  { %6953 = vmatprep.subr.bf16.mxu1 %v6952_v11  ;;  %v6986_v11 = vpack.c.bf16 %v1436_v8, %v1434_v7  ;;  %v6988_v13 = vpack.c.bf16 %v1441_v10, %v1439_v9  ;;  %v1472_v7 = vld [vmem:[%s13010_s2 + $0x710] sm:$0xff]  ;;  %v1475_v8 = vld [vmem:[%s13010_s2 + $0x728] sm:$0xff]  ;;  %v1477_v9 = vld [vmem:[%s13010_s2 + $0x738] sm:$0xff] }
 0x459   :  { %6955 = vmatpush1.bf16.msra.mxu1 %v6954_v17  ;;  %v1445_v17 = vld [vmem:[%s13010_s2 + $0x638] sm:$0xff] }
 0x45a   :  { %6957 = vmatprep.subr.bf16.mxu1 %v6956_v18  ;;  %v6990_v18 = vpack.c.bf16 %v1440_v16, %v1438_v14  ;;  %v6992_v0 = vpack.c.bf16 %v1445_v17, %v1443_v63  ;;  %v1476_v14 = vld [vmem:[%s13010_s2 + $0x730] sm:$0xff]  ;;  %v1479_v16 = vld [vmem:[%s13010_s2 + $0x748] sm:$0xff]  ;;  %v1481_v63 = vld [vmem:[%s13010_s2 + $0x758] sm:$0xff] }
 0x45d   :  { %6959 = vmatpush1.bf16.msra.mxu1 %v6958_v28  ;;  %v1449_v28 = vld [vmem:[%s13010_s2 + $0x658] sm:$0xff] }
 0x45e   :  { %6961 = vmatprep.subr.bf16.mxu1 %v6960_v25  ;;  %v6994_v25 = vpack.c.bf16 %v1444_v12, %v1442_v2  ;;  %v6996_v6 = vpack.c.bf16 %v1449_v28, %v1447_v19  ;;  %v1480_v2 = vld [vmem:[%s13010_s2 + $0x750] sm:$0xff]  ;;  %v1483_v12 = vld [vmem:[%s13010_s2 + $0x768] sm:$0xff]  ;;  %v1485_v19 = vld [vmem:[%s13010_s2 + $0x778] sm:$0xff] }
 0x461   :  { %6963 = vmatpush1.bf16.msra.mxu1 %v6962_v59  ;;  %v6998_v59 = vpack.c.bf16 %v1448_v47, %v1446_v20  ;;  %v1484_v20 = vld [vmem:[%s13010_s2 + $0x770] sm:$0xff]  ;;  %v1487_v47 = vld [vmem:[%s13010_s2 + $0x788] sm:$0xff] }
 0x462   :  { %6965 = vmatprep.subr.bf16.mxu1 %v6964_v15 }
 0x465   :  { %6967 = vmatpush1.bf16.msra.mxu1 %v6966_v31  ;;  %v7002_v31 = vpack.c.bf16 %v1452_v29, %v1450_v27  ;;  %v1491_v27 = vld [vmem:[%s13010_s2 + $0x7a8] sm:$0xff]  ;;  %v1493_v29 = vld [vmem:[%s13010_s2 + $0x7b8] sm:$0xff] }
 0x466   :  { %6969 = vmatprep.subr.bf16.mxu1 %v6968_v32 }
 0x469   :  { %6971 = vmatpush1.bf16.msra.mxu1 %v6970_v36  ;;  %v7008_v36 = vpack.c.bf16 %v1461_v33, %v1459_v21  ;;  %v1494_v33 = vld [vmem:[%s13010_s2 + $0x7c0] sm:$0xff] }
 0x46a   :  { %6973 = vmatprep.subr.bf16.mxu1 %v6972_v37  ;;  %v1458_v37 = vld [vmem:[%s13010_s2 + $0x6a0] sm:$0xff] }
 0x46b   :  { %v7010_v52 = vpack.c.bf16 %v1460_v50, %v1458_v37  ;;  %v1501_v37 = vld [vmem:[%s13010_s2 + $0x7f8] sm:$0xff] }
 0x46d   :  { %6975 = vmatpush1.bf16.msra.mxu1 %v6974_v53  ;;  %v7012_v53 = vpack.c.bf16 %v1465_v38, %v1463_v51  ;;  %v1498_v38 = vld [vmem:[%s13010_s2 + $0x7e0] sm:$0xff] }
 0x46e   :  { %6977 = vmatprep.subr.bf16.mxu1 %v6976_v60  ;;  %v1462_v60 = vld [vmem:[%s13010_s2 + $0x6c0] sm:$0xff] }
 0x46f   :  { %v7014_v22 = vpack.c.bf16 %v1464_v3, %v1462_v60  ;;  %v1505_v60 = vld [vmem:[%s13010_s2 + $0x818] sm:$0xff] }
 0x471   :  { %6979 = vmatpush1.bf16.msra.mxu1 %v6978_v43  ;;  %v7016_v43 = vpack.c.bf16 %v1469_v41, %v1467_v40  ;;  %v1502_v41 = vld [vmem:[%s13010_s2 + $0x800] sm:$0xff] }
 0x472   :  { %6981 = vmatprep.subr.bf16.mxu1 %v6980_v54  ;;  %v1466_v54 = vld [vmem:[%s13010_s2 + $0x6e0] sm:$0xff] }
 0x473   :  { %v7018_v62 = vpack.c.bf16 %v1468_v56, %v1466_v54  ;;  %v1509_v54 = vld [vmem:[%s13010_s2 + $0x838] sm:$0xff] }
 0x475   :  { %6983 = vmatpush1.bf16.msra.mxu1 %v6982_v4  ;;  %v7020_v4 = vpack.c.bf16 %v1473_v61, %v1471_v57  ;;  %v1506_v61 = vld [vmem:[%s13010_s2 + $0x820] sm:$0xff] }
 0x476   :  { %6985 = vmatprep.subr.bf16.mxu1 %v6984_v5  ;;  %v1470_v5 = vld [vmem:[%s13010_s2 + $0x700] sm:$0xff] }
 0x477   :  { %v7022_v10 = vpack.c.bf16 %v1472_v7, %v1470_v5  ;;  %v1511_v5 = vld [vmem:[%s13010_s2 + $0x848] sm:$0xff]  ;;  %v1513_v7 = vld [vmem:[%s13010_s2 + $0x858] sm:$0xff] }
 0x479   :  { %6987 = vmatpush1.bf16.msra.mxu1 %v6986_v11  ;;  %v7024_v11 = vpack.c.bf16 %v1477_v9, %v1475_v8  ;;  %v7060_v9 = vpack.c.bf16 %v1513_v7, %v1511_v5 }
 0x47a   :  { %6989 = vmatprep.subr.bf16.mxu1 %v6988_v13  ;;  %v1474_v13 = vld [vmem:[%s13010_s2 + $0x720] sm:$0xff] }
 0x47b   :  { %v7026_v17 = vpack.c.bf16 %v1476_v14, %v1474_v13  ;;  %v1228_v13 = vld [vmem:[#allocation2 + $0x90] sm:$0xff]  ;;  %v1515_v14 = vld [vmem:[%s13010_s2 + $0x868] sm:$0xff] }
 0x47c   :  { %1861 = vmatmul.mubr.f32.vlgmr.msra.gmra.mrb[4].mxu1 %v10054_v35  ;;  %v1453_v35 = vld [vmem:[%s13010_s2 + $0x678] sm:$0xff] }
 0x47d   :  { %1866 = vmatprep.mubr.f32.mxu1 %v10078_v1  ;;  %6991 = vmatpush1.bf16.msra.mxu1 %v6990_v18  ;;  %v1239_v1 = vld [vmem:[#allocation2 + $0xe8] sm:$0x1]  ;;  %v7000_v15 = vpack.c.bf16 %v1453_v35, %v1451_v49  ;;  %v7028_v18 = vpack.c.bf16 %v1481_v63, %v1479_v16  ;;  %v1489_v49 = vld [vmem:[%s13010_s2 + $0x798] sm:$0xff] }
 0x47e   :  { %6993 = vmatprep.subr.bf16.mxu1 %v6992_v0  ;;  %v1478_v0 = vld [vmem:[%s13010_s2 + $0x740] sm:$0xff]  ;;  %v1241_v16 = vld [vmem:[#allocation2 + $0xf8] sm:$0x1] }
 0x47f   :  { %v7030_v28 = vpack.c.bf16 %v1480_v2, %v1478_v0  ;;  %v1516_v0 = vld [vmem:[%s13010_s2 + $0x870] sm:$0xff] }
 0x480   :  { %1867 = vmatmul.mubr.f32.gmra.mrb[6].mxu1 %v10060_v39  ;;  %v1457_v39 = vld [vmem:[%s13010_s2 + $0x698] sm:$0xff]  ;;  %v1240_v2 = vld [vmem:[#allocation2 + $0xf0] sm:$0x1] }
 0x481   :  { %1872 = vmatprep.mubr.f32.mxu1 %v1239_v1  ;;  %6995 = vmatpush1.bf16.msra.mxu1 %v6994_v25  ;;  %v7004_v32 = vpack.c.bf16 %v1457_v39, %v1455_v30  ;;  %v7032_v25 = vpack.c.bf16 %v1485_v19, %v1483_v12  ;;  %v7036_v1 = vpack.c.bf16 %v1489_v49, %v1487_v47  ;;  %v1490_v39 = vld [vmem:[%s13010_s2 + $0x7a0] sm:$0xff]  ;;  %v1519_v12 = vld [vmem:[%s13010_s2 + $0x888] sm:$0xff]  ;;  %v1521_v19 = vld [vmem:[%s13010_s2 + $0x898] sm:$0xff] }
 0x482   :  { %6997 = vmatprep.subr.bf16.mxu1 %v6996_v6  ;;  %v1482_v6 = vld [vmem:[%s13010_s2 + $0x760] sm:$0xff]  ;;  %v7040_v30 = vpack.c.bf16 %v1493_v29, %v1491_v27  ;;  %v2174_v49 = vld [vmem:[%s13014_s6 + $0x108] sm:$0xff]  ;;  %v1525_v27 = vld [vmem:[%s13010_s2 + $0x8b8] sm:$0xff] }
 0x483   :  { %v7034_v35 = vpack.c.bf16 %v1484_v20, %v1482_v6  ;;  %v2173_v6 = vld [vmem:[%s13014_s6 + $0x100] sm:$0xff] }
 0x484   :  { %1873 = vmatmul.mubr.f32.gmra.mrb[8].mxu1 %v1238_v23 }
 0x485   :  { %6999 = vmatpush1.bf16.msra.mxu1 %v6998_v59  ;;  %1943 = vmatprep.mubr.f32.mxu1 %v10089_v44  ;;  %v7006_v44 = vpack.c.bf16 %v1456_v26, %v1454_v34  ;;  %v1486_v59 = vld [vmem:[%s13010_s2 + $0x780] sm:$0xff]  ;;  %v1497_v34 = vld [vmem:[%s13010_s2 + $0x7d8] sm:$0xff] }
 0x486   :  { %7001 = vmatprep.subr.bf16.mxu1 %v7000_v15  ;;  %v1488_v15 = vld [vmem:[%s13010_s2 + $0x790] sm:$0xff] }
 0x487   :  { %v7038_v23 = vpack.c.bf16 %v1488_v15, %v1486_v59  ;;  %v1520_v59 = vld [vmem:[%s13010_s2 + $0x890] sm:$0xff]  ;;  %v7182_v15 = vpack.c.bf16 %v2174_v49, %v2173_v6  ;;  %v1559_v49 = vld [vmem:[%s13010_s2 + $0x9c8] sm:$0xff] }
 0x489   :  { %7003 = vmatpush1.bf16.msra.mxu1 %v7002_v31  ;;  %v1492_v31 = vld [vmem:[%s13010_s2 + $0x7b0] sm:$0xff] }
 0x48a   :  { %7005 = vmatprep.subr.bf16.mxu1 %v7004_v32  ;;  %v1495_v32 = vld [vmem:[%s13010_s2 + $0x7c8] sm:$0xff]  ;;  %v7042_v26 = vpack.c.bf16 %v1492_v31, %v1490_v39  ;;  %v1524_v39 = vld [vmem:[%s13010_s2 + $0x8b0] sm:$0xff] }
 0x48b   :  { %v7044_v21 = vpack.c.bf16 %v1497_v34, %v1495_v32  ;;  %v1527_v31 = vld [vmem:[%s13010_s2 + $0x8c8] sm:$0xff]  ;;  %v1529_v32 = vld [vmem:[%s13010_s2 + $0x8d8] sm:$0xff] }
 0x48d   :  { %7007 = vmatpush1.bf16.msra.mxu1 %v7006_v44  ;;  %v1496_v44 = vld [vmem:[%s13010_s2 + $0x7d0] sm:$0xff] }
 0x48e   :  { %7009 = vmatprep.subr.bf16.mxu1 %v7008_v36  ;;  %v1499_v36 = vld [vmem:[%s13010_s2 + $0x7e8] sm:$0xff]  ;;  %v7046_v50 = vpack.c.bf16 %v1496_v44, %v1494_v33  ;;  %v1528_v33 = vld [vmem:[%s13010_s2 + $0x8d0] sm:$0xff] }
 0x48f   :  { %v7048_v51 = vpack.c.bf16 %v1501_v37, %v1499_v36  ;;  %v1531_v44 = vld [vmem:[%s13010_s2 + $0x8e8] sm:$0xff]  ;;  %v1533_v36 = vld [vmem:[%s13010_s2 + $0x8f8] sm:$0xff] }
 0x491   :  { %7011 = vmatpush1.bf16.msra.mxu1 %v7010_v52  ;;  %v1500_v52 = vld [vmem:[%s13010_s2 + $0x7f0] sm:$0xff] }
 0x492   :  { %7013 = vmatprep.subr.bf16.mxu1 %v7012_v53  ;;  %v1503_v53 = vld [vmem:[%s13010_s2 + $0x808] sm:$0xff]  ;;  %v7050_v3 = vpack.c.bf16 %v1500_v52, %v1498_v38  ;;  %v1532_v38 = vld [vmem:[%s13010_s2 + $0x8f0] sm:$0xff] }
 0x493   :  { %v7052_v40 = vpack.c.bf16 %v1505_v60, %v1503_v53  ;;  %v1535_v52 = vld [vmem:[%s13010_s2 + $0x908] sm:$0xff]  ;;  %v1537_v53 = vld [vmem:[%s13010_s2 + $0x918] sm:$0xff] }
 0x495   :  { %7015 = vmatpush1.bf16.msra.mxu1 %v7014_v22  ;;  %v1504_v22 = vld [vmem:[%s13010_s2 + $0x810] sm:$0xff] }
 0x496   :  { %7017 = vmatprep.subr.bf16.mxu1 %v7016_v43  ;;  %v1507_v43 = vld [vmem:[%s13010_s2 + $0x828] sm:$0xff]  ;;  %v7054_v56 = vpack.c.bf16 %v1504_v22, %v1502_v41  ;;  %v1536_v41 = vld [vmem:[%s13010_s2 + $0x910] sm:$0xff] }
 0x497   :  { %v7056_v57 = vpack.c.bf16 %v1509_v54, %v1507_v43  ;;  %v1539_v22 = vld [vmem:[%s13010_s2 + $0x928] sm:$0xff]  ;;  %v1541_v43 = vld [vmem:[%s13010_s2 + $0x938] sm:$0xff] }
 0x499   :  { %7019 = vmatpush1.bf16.msra.mxu1 %v7018_v62  ;;  %v1508_v62 = vld [vmem:[%s13010_s2 + $0x830] sm:$0xff] }
 0x49a   :  { %7021 = vmatprep.subr.bf16.mxu1 %v7020_v4  ;;  %v1216_v4 = vld [vmem:[#allocation2 + $0x30] sm:$0xff]  ;;  %v7058_v8 = vpack.c.bf16 %v1508_v62, %v1506_v61  ;;  %v1543_v62 = vld [vmem:[%s13010_s2 + $0x948] sm:$0xff] }
 0x49b   :  { %v1540_v61 = vld [vmem:[%s13010_s2 + $0x930] sm:$0xff] }
 0x49d   :  { %7023 = vmatpush1.bf16.msra.mxu1 %v7022_v10  ;;  %v1510_v10 = vld [vmem:[%s13010_s2 + $0x840] sm:$0xff] }
 0x49e   :  { %7025 = vmatprep.subr.bf16.mxu1 %v7024_v11  ;;  %v1512_v11 = vld [vmem:[%s13010_s2 + $0x850] sm:$0xff] }
 0x49f   :  { %v7062_v63 = vpack.c.bf16 %v1512_v11, %v1510_v10  ;;  %v1547_v10 = vld [vmem:[%s13010_s2 + $0x968] sm:$0xff]  ;;  %v1549_v11 = vld [vmem:[%s13010_s2 + $0x978] sm:$0xff] }
 0x4a1   :  { %7027 = vmatpush1.bf16.msra.mxu1 %v7026_v17 }
 0x4a2   :  { %7029 = vmatprep.subr.bf16.mxu1 %v7028_v18  ;;  %v1514_v18 = vld [vmem:[%s13010_s2 + $0x860] sm:$0xff] }
 0x4a3   :  { %v7066_v20 = vpack.c.bf16 %v1516_v0, %v1514_v18 }
 0x4a5   :  { %7031 = vmatpush1.bf16.msra.mxu1 %v7030_v28  ;;  %v2189_v28 = vld [vmem:[%s13014_s6 + $0x180] sm:$0xff] }
 0x4a6   :  { %7033 = vmatprep.subr.bf16.mxu1 %v7032_v25  ;;  %v2190_v25 = vld [vmem:[%s13014_s6 + $0x188] sm:$0xff] }
 0x4a7   :  { %v7180_v47 = vpack.c.bf16 %v2190_v25, %v2189_v28  ;;  %v1557_v28 = vld [vmem:[%s13010_s2 + $0x9b8] sm:$0xff] }
 0x4a9   :  { %7035 = vmatpush1.bf16.msra.mxu1 %v7034_v35  ;;  %v7068_v35 = vpack.c.bf16 %v1521_v19, %v1519_v12  ;;  %7181 = vmatprep.subr.bf16.mxu0 %v7180_v47  ;;  %v1552_v12 = vld [vmem:[%s13010_s2 + $0x990] sm:$0xff]  ;;  %v1555_v19 = vld [vmem:[%s13010_s2 + $0x9a8] sm:$0xff] }
 0x4aa   :  { %7037 = vmatprep.subr.bf16.mxu1 %v7036_v1  ;;  %v1518_v1 = vld [vmem:[%s13010_s2 + $0x880] sm:$0xff]  ;;  %7183 = vmatpush3.bf16.msra.mxu0 %v7182_v15  ;;  %v7104_v6 = vpack.c.bf16 %v1557_v28, %v1555_v19  ;;  %v1556_v47 = vld [vmem:[%s13010_s2 + $0x9b0] sm:$0xff]  ;;  %v1591_v28 = vld [vmem:[%s13010_s2 + $0xac8] sm:$0xff] }
 0x4ab   :  { %v7070_v29 = vpack.c.bf16 %v1520_v59, %v1518_v1  ;;  %v1558_v15 = vld [vmem:[%s13010_s2 + $0x9c0] sm:$0xff]  ;;  %v1588_v19 = vld [vmem:[%s13010_s2 + $0xab0] sm:$0xff] }
 0x4ad   :  { %7039 = vmatpush1.bf16.msra.mxu1 %v7038_v23 }
 0x4ae   :  { %7041 = vmatprep.subr.bf16.mxu1 %v7040_v30  ;;  %v1522_v30 = vld [vmem:[%s13010_s2 + $0x8a0] sm:$0xff] }
 0x4af   :  { %v7074_v34 = vpack.c.bf16 %v1524_v39, %v1522_v30  ;;  %v1562_v39 = vld [vmem:[%s13010_s2 + $0x9e0] sm:$0xff] }
 0x4b1   :  { %7043 = vmatpush1.bf16.msra.mxu1 %v7042_v26  ;;  %v7076_v26 = vpack.c.bf16 %v1529_v32, %v1527_v31  ;;  %v1564_v31 = vld [vmem:[%s13010_s2 + $0x9f0] sm:$0xff]  ;;  %v1567_v32 = vld [vmem:[%s13010_s2 + $0xa08] sm:$0xff] }
 0x4b2   :  { %7045 = vmatprep.subr.bf16.mxu1 %v7044_v21  ;;  %v1526_v21 = vld [vmem:[%s13010_s2 + $0x8c0] sm:$0xff] }
 0x4b3   :  { %v7078_v37 = vpack.c.bf16 %v1528_v33, %v1526_v21  ;;  %v1566_v33 = vld [vmem:[%s13010_s2 + $0xa00] sm:$0xff] }
 0x4b5   :  { %7047 = vmatpush1.bf16.msra.mxu1 %v7046_v50  ;;  %v7080_v50 = vpack.c.bf16 %v1533_v36, %v1531_v44  ;;  %v1568_v44 = vld [vmem:[%s13010_s2 + $0xa10] sm:$0xff]  ;;  %v1571_v36 = vld [vmem:[%s13010_s2 + $0xa28] sm:$0xff] }
 0x4b6   :  { %7049 = vmatprep.subr.bf16.mxu1 %v7048_v51  ;;  %v1530_v51 = vld [vmem:[%s13010_s2 + $0x8e0] sm:$0xff] }
 0x4b7   :  { %v7082_v60 = vpack.c.bf16 %v1532_v38, %v1530_v51  ;;  %v1570_v38 = vld [vmem:[%s13010_s2 + $0xa20] sm:$0xff] }
 0x4b9   :  { %7051 = vmatpush1.bf16.msra.mxu1 %v7050_v3  ;;  %v7084_v3 = vpack.c.bf16 %v1537_v53, %v1535_v52  ;;  %v1572_v52 = vld [vmem:[%s13010_s2 + $0xa30] sm:$0xff]  ;;  %v1218_v53 = vld [vmem:[#allocation2 + $0x40] sm:$0xff] }
 0x4ba   :  { %7053 = vmatprep.subr.bf16.mxu1 %v7052_v40  ;;  %v1534_v40 = vld [vmem:[%s13010_s2 + $0x900] sm:$0xff] }
 0x4bb   :  { %v7086_v54 = vpack.c.bf16 %v1536_v41, %v1534_v40  ;;  %v1231_v40 = vld [vmem:[#allocation2 + $0xa8] sm:$0xff]  ;;  %v7122_v41 = vpack.c.bf16 %v1572_v52, %v1570_v38  ;;  %v1606_v52 = vld [vmem:[%s13010_s2 + $0xb40] sm:$0xff] }
 0x4bc   :  { %1944 = vmatmul.mubr.f32.vlgmr.msra.gmra.mrb[4].mxu1 %v1216_v4  ;;  %v1545_v4 = vld [vmem:[%s13010_s2 + $0x958] sm:$0xff] }
 0x4bd   :  { %1949 = vmatprep.mubr.f32.mxu1 %v10092_v45  ;;  %7055 = vmatpush1.bf16.msra.mxu1 %v7054_v56  ;;  %v1517_v45 = vld [vmem:[%s13010_s2 + $0x878] sm:$0xff]  ;;  %v7088_v56 = vpack.c.bf16 %v1541_v43, %v1539_v22  ;;  %v7092_v7 = vpack.c.bf16 %v1545_v4, %v1543_v62  ;;  %v1574_v43 = vld [vmem:[%s13010_s2 + $0xa40] sm:$0xff]  ;;  %v1243_v62 = vld [vmem:[#allocation2 + $0x108] sm:$0x1] }
 0x4be   :  { %7057 = vmatprep.subr.bf16.mxu1 %v7056_v57  ;;  %v7064_v17 = vpack.c.bf16 %v1517_v45, %v1515_v14  ;;  %v1538_v57 = vld [vmem:[%s13010_s2 + $0x920] sm:$0xff]  ;;  %v7096_v14 = vpack.c.bf16 %v1549_v11, %v1547_v10  ;;  %v1583_v10 = vld [vmem:[%s13010_s2 + $0xa88] sm:$0xff]  ;;  %v1585_v11 = vld [vmem:[%s13010_s2 + $0xa98] sm:$0xff] }
 0x4bf   :  { %v7090_v5 = vpack.c.bf16 %v1540_v61, %v1538_v57  ;;  %v1546_v45 = vld [vmem:[%s13010_s2 + $0x960] sm:$0xff]  ;;  %v1579_v57 = vld [vmem:[%s13010_s2 + $0xa68] sm:$0xff]  ;;  %v1581_v61 = vld [vmem:[%s13010_s2 + $0xa78] sm:$0xff] }
 0x4c0   :  { %1950 = vmatmul.mubr.f32.gmra.mrb[6].mxu1 %v1228_v13 }
 0x4c1   :  { %1955 = vmatprep.mubr.f32.mxu1 %v1241_v16  ;;  %7059 = vmatpush1.bf16.msra.mxu1 %v7058_v8  ;;  %v1542_v8 = vld [vmem:[%s13010_s2 + $0x940] sm:$0xff]  ;;  %v1548_v16 = vld [vmem:[%s13010_s2 + $0x970] sm:$0xff] }
 0x4c2   :  { %7061 = vmatprep.subr.bf16.mxu1 %v7060_v9  ;;  %v1544_v9 = vld [vmem:[%s13010_s2 + $0x950] sm:$0xff]  ;;  %v7098_v18 = vpack.c.bf16 %v1548_v16, %v1546_v45  ;;  %v7132_v45 = vpack.c.bf16 %v1585_v11, %v1583_v10  ;;  %v1582_v16 = vld [vmem:[%s13010_s2 + $0xa80] sm:$0xff] }
 0x4c3   :  { %v7094_v13 = vpack.c.bf16 %v1544_v9, %v1542_v8  ;;  %v1580_v8 = vld [vmem:[%s13010_s2 + $0xa70] sm:$0xff]  ;;  %v1242_v9 = vld [vmem:[#allocation2 + $0x100] sm:$0x1] }
 0x4c4   :  { %1956 = vmatmul.mubr.f32.gmra.mrb[8].mxu1 %v1240_v2  ;;  %v1550_v2 = vld [vmem:[%s13010_s2 + $0x980] sm:$0xff]  ;;  %v1620_v11 = vld [vmem:[%s13010_s2 + $0xbb0] sm:$0xff] }
 0x4c5   :  { %7063 = vmatpush1.bf16.msra.mxu1 %v7062_v63  ;;  %2026 = vmatprep.mubr.f32.mxu1 %v10103_v58  ;;  %v1523_v58 = vld [vmem:[%s13010_s2 + $0x8a8] sm:$0xff]  ;;  %v7102_v25 = vpack.c.bf16 %v1552_v12, %v1550_v2  ;;  %v1586_v12 = vld [vmem:[%s13010_s2 + $0xaa0] sm:$0xff] }
 0x4c6   :  { %7065 = vmatprep.subr.bf16.mxu1 %v7064_v17  ;;  %v7072_v23 = vpack.c.bf16 %v1525_v27, %v1523_v58  ;;  %v1551_v63 = vld [vmem:[%s13010_s2 + $0x988] sm:$0xff]  ;;  %v1553_v17 = vld [vmem:[%s13010_s2 + $0x998] sm:$0xff]  ;;  %v1560_v58 = vld [vmem:[%s13010_s2 + $0x9d0] sm:$0xff] }
 0x4c7   :  { %v7100_v0 = vpack.c.bf16 %v1553_v17, %v1551_v63  ;;  %v1563_v27 = vld [vmem:[%s13010_s2 + $0x9e8] sm:$0xff]  ;;  %v1584_v63 = vld [vmem:[%s13010_s2 + $0xa90] sm:$0xff]  ;;  %v1618_v10 = vld [vmem:[%s13010_s2 + $0xba0] sm:$0xff] }
 0x4c8   :  { %v1587_v17 = vld [vmem:[%s13010_s2 + $0xaa8] sm:$0xff] }
 0x4c9   :  { %7067 = vmatpush1.bf16.msra.mxu1 %v7066_v20  ;;  %v1554_v20 = vld [vmem:[%s13010_s2 + $0x9a0] sm:$0xff] }
 0x4ca   :  { %7069 = vmatprep.subr.bf16.mxu1 %v7068_v35  ;;  %v1561_v35 = vld [vmem:[%s13010_s2 + $0x9d8] sm:$0xff]  ;;  %v7106_v1 = vpack.c.bf16 %v1556_v47, %v1554_v20  ;;  %v1590_v47 = vld [vmem:[%s13010_s2 + $0xac0] sm:$0xff] }
 0x4cb   :  { %v7108_v59 = vpack.c.bf16 %v1561_v35, %v1559_v49  ;;  %v1592_v49 = vld [vmem:[%s13010_s2 + $0xad0] sm:$0xff]  ;;  %v1595_v35 = vld [vmem:[%s13010_s2 + $0xae8] sm:$0xff] }
 0x4cd   :  { %7071 = vmatpush1.bf16.msra.mxu1 %v7070_v29  ;;  %v1565_v29 = vld [vmem:[%s13010_s2 + $0x9f8] sm:$0xff] }
 0x4ce   :  { %7073 = vmatprep.subr.bf16.mxu1 %v7072_v23  ;;  %v7110_v23 = vpack.c.bf16 %v1560_v58, %v1558_v15  ;;  %v7112_v30 = vpack.c.bf16 %v1565_v29, %v1563_v27  ;;  %v1594_v58 = vld [vmem:[%s13010_s2 + $0xae0] sm:$0xff]  ;;  %v1596_v27 = vld [vmem:[%s13010_s2 + $0xaf0] sm:$0xff]  ;;  %v1599_v29 = vld [vmem:[%s13010_s2 + $0xb08] sm:$0xff] }
 0x4d1   :  { %7075 = vmatpush1.bf16.msra.mxu1 %v7074_v34  ;;  %v1569_v34 = vld [vmem:[%s13010_s2 + $0xa18] sm:$0xff] }
 0x4d2   :  { %7077 = vmatprep.subr.bf16.mxu1 %v7076_v26  ;;  %v7114_v26 = vpack.c.bf16 %v1564_v31, %v1562_v39  ;;  %v7116_v21 = vpack.c.bf16 %v1569_v34, %v1567_v32  ;;  %v1598_v31 = vld [vmem:[%s13010_s2 + $0xb00] sm:$0xff]  ;;  %v1600_v32 = vld [vmem:[%s13010_s2 + $0xb10] sm:$0xff]  ;;  %v1603_v34 = vld [vmem:[%s13010_s2 + $0xb28] sm:$0xff] }
 0x4d5   :  { %7079 = vmatpush1.bf16.msra.mxu1 %v7078_v37  ;;  %v1573_v37 = vld [vmem:[%s13010_s2 + $0xa38] sm:$0xff] }
 0x4d6   :  { %7081 = vmatprep.subr.bf16.mxu1 %v7080_v50  ;;  %v7118_v50 = vpack.c.bf16 %v1568_v44, %v1566_v33  ;;  %v7120_v51 = vpack.c.bf16 %v1573_v37, %v1571_v36  ;;  %v1602_v44 = vld [vmem:[%s13010_s2 + $0xb20] sm:$0xff]  ;;  %v1604_v36 = vld [vmem:[%s13010_s2 + $0xb30] sm:$0xff]  ;;  %v1607_v37 = vld [vmem:[%s13010_s2 + $0xb48] sm:$0xff] }
 0x4d9   :  { %7083 = vmatpush1.bf16.msra.mxu1 %v7082_v60  ;;  %v1575_v60 = vld [vmem:[%s13010_s2 + $0xa48] sm:$0xff] }
 0x4da   :  { %7085 = vmatprep.subr.bf16.mxu1 %v7084_v3  ;;  %v1577_v3 = vld [vmem:[%s13010_s2 + $0xa58] sm:$0xff] }
 0x4db   :  { %v7124_v22 = vpack.c.bf16 %v1577_v3, %v1575_v60  ;;  %v1611_v60 = vld [vmem:[%s13010_s2 + $0xb68] sm:$0xff]  ;;  %v1613_v3 = vld [vmem:[%s13010_s2 + $0xb78] sm:$0xff] }
 0x4dd   :  { %7087 = vmatpush1.bf16.msra.mxu1 %v7086_v54  ;;  %v1576_v54 = vld [vmem:[%s13010_s2 + $0xa50] sm:$0xff] }
 0x4de   :  { %7089 = vmatprep.subr.bf16.mxu1 %v7088_v56  ;;  %v1230_v56 = vld [vmem:[#allocation2 + $0xa0] sm:$0xff]  ;;  %v7126_v4 = vpack.c.bf16 %v1576_v54, %v1574_v43  ;;  %v1612_v43 = vld [vmem:[%s13010_s2 + $0xb70] sm:$0xff]  ;;  %v1615_v54 = vld [vmem:[%s13010_s2 + $0xb88] sm:$0xff] }
 0x4e1   :  { %7091 = vmatpush1.bf16.msra.mxu1 %v7090_v5  ;;  %v7128_v5 = vpack.c.bf16 %v1581_v61, %v1579_v57 }
 0x4e2   :  { %7093 = vmatprep.subr.bf16.mxu1 %v7092_v7  ;;  %v1578_v7 = vld [vmem:[%s13010_s2 + $0xa60] sm:$0xff] }
 0x4e5   :  { %7095 = vmatpush1.bf16.msra.mxu1 %v7094_v13  ;;  %v1221_v13 = vld [vmem:[#allocation2 + $0x58] sm:$0xff] }
 0x4e6   :  { %7097 = vmatprep.subr.bf16.mxu1 %v7096_v14  ;;  %v7130_v14 = vpack.c.bf16 %v1580_v8, %v1578_v7  ;;  %v1621_v7 = vld [vmem:[%s13010_s2 + $0xbb8] sm:$0xff] }
 0x4e9   :  { %7099 = vmatpush1.bf16.msra.mxu1 %v7098_v18  ;;  %v1589_v18 = vld [vmem:[%s13010_s2 + $0xab8] sm:$0xff] }
 0x4ea   :  { %7101 = vmatprep.subr.bf16.mxu1 %v7100_v0  ;;  %v7134_v0 = vpack.c.bf16 %v1584_v63, %v1582_v16  ;;  %v7136_v2 = vpack.c.bf16 %v1589_v18, %v1587_v17  ;;  %v1622_v63 = vld [vmem:[%s13010_s2 + $0xbc0] sm:$0xff]  ;;  %v1624_v17 = vld [vmem:[%s13010_s2 + $0xbd0] sm:$0xff]  ;;  %v1627_v18 = vld [vmem:[%s13010_s2 + $0xbe8] sm:$0xff] }
 0x4ed   :  { %7103 = vmatpush1.bf16.msra.mxu1 %v7102_v25  ;;  %v1593_v25 = vld [vmem:[%s13010_s2 + $0xad8] sm:$0xff] }
 0x4ee   :  { %7105 = vmatprep.subr.bf16.mxu1 %v7104_v6  ;;  %v7138_v6 = vpack.c.bf16 %v1588_v19, %v1586_v12  ;;  %v7140_v20 = vpack.c.bf16 %v1593_v25, %v1591_v28  ;;  %v1626_v19 = vld [vmem:[%s13010_s2 + $0xbe0] sm:$0xff]  ;;  %v1628_v28 = vld [vmem:[%s13010_s2 + $0xbf0] sm:$0xff] }
 0x4ef   :  { %v7178_v25 = vpack.c.bf16 %v1628_v28, %v1626_v19 }
 0x4f1   :  { %7107 = vmatpush1.bf16.msra.mxu1 %v7106_v1  ;;  %v1597_v1 = vld [vmem:[%s13010_s2 + $0xaf8] sm:$0xff] }
 0x4f2   :  { %7109 = vmatprep.subr.bf16.mxu1 %v7108_v59  ;;  %v7142_v59 = vpack.c.bf16 %v1592_v49, %v1590_v47  ;;  %v7144_v15 = vpack.c.bf16 %v1597_v1, %v1595_v35  ;;  %v1232_v47 = vld [vmem:[#allocation2 + $0xb0] sm:$0xff]  ;;  %v1245_v49 = vld [vmem:[#allocation2 + $0x118] sm:$0x1] }
 0x4f3   :  { %v1244_v35 = vld [vmem:[#allocation2 + $0x110] sm:$0x1] }
 0x4f4   :  { %v2191_v1 = vld [vmem:[%s13014_s6 + $0x190] sm:$0xff] }
 0x4f5   :  { %7111 = vmatpush1.bf16.msra.mxu1 %v7110_v23  ;;  %v1601_v23 = vld [vmem:[%s13010_s2 + $0xb18] sm:$0xff] }
 0x4f6   :  { %7113 = vmatprep.subr.bf16.mxu1 %v7112_v30  ;;  %v7146_v30 = vpack.c.bf16 %v1596_v27, %v1594_v58  ;;  %v7148_v39 = vpack.c.bf16 %v1601_v23, %v1599_v29  ;;  %v2176_v27 = vld [vmem:[%s13014_s6 + $0x118] sm:$0xff]  ;;  %v2193_v23 = vld [vmem:[%s13014_s6 + $0x1a0] sm:$0xff] }
 0x4f9   :  { %7115 = vmatpush1.bf16.msra.mxu1 %v7114_v26  ;;  %v1605_v26 = vld [vmem:[%s13010_s2 + $0xb38] sm:$0xff] }
 0x4fa   :  { %7117 = vmatprep.subr.bf16.mxu1 %v7116_v21  ;;  %v7150_v21 = vpack.c.bf16 %v1600_v32, %v1598_v31  ;;  %v7152_v33 = vpack.c.bf16 %v1605_v26, %v1603_v34  ;;  %v2178_v32 = vld [vmem:[%s13014_s6 + $0x128] sm:$0xff]  ;;  %v2195_v26 = vld [vmem:[%s13014_s6 + $0x1b0] sm:$0xff] }
 0x4fc   :  { %2027 = vmatmul.mubr.f32.vlgmr.msra.gmra.mrb[4].mxu1 %v1218_v53  ;;  %v1608_v53 = vld [vmem:[%s13010_s2 + $0xb50] sm:$0xff] }
 0x4fd   :  { %2032 = vmatprep.mubr.f32.mxu1 %v1231_v40  ;;  %7119 = vmatpush1.bf16.msra.mxu1 %v7118_v50  ;;  %v1609_v50 = vld [vmem:[%s13010_s2 + $0xb58] sm:$0xff]  ;;  %v7158_v40 = vpack.c.bf16 %v1608_v53, %v1606_v52  ;;  %v2181_v52 = vld [vmem:[%s13014_s6 + $0x140] sm:$0xff]  ;;  %v2182_v53 = vld [vmem:[%s13014_s6 + $0x148] sm:$0xff] }
 0x4fe   :  { %7121 = vmatprep.subr.bf16.mxu1 %v7120_v51  ;;  %v7154_v51 = vpack.c.bf16 %v1604_v36, %v1602_v44  ;;  %v7156_v38 = vpack.c.bf16 %v1609_v50, %v1607_v37  ;;  %v2179_v44 = vld [vmem:[%s13014_s6 + $0x130] sm:$0xff]  ;;  %v2180_v36 = vld [vmem:[%s13014_s6 + $0x138] sm:$0xff]  ;;  %v2197_v50 = vld [vmem:[%s13014_s6 + $0x1c0] sm:$0xff] }
 0x4ff   :  { %v7194_v37 = vpack.c.bf16 %v2180_v36, %v2179_v44 }
 0x500   :  { %2033 = vmatmul.mubr.f32.gmra.mrb[6].mxu1 %v1230_v56  ;;  %v1617_v56 = vld [vmem:[%s13010_s2 + $0xb98] sm:$0xff] }
 0x501   :  { %2038 = vmatprep.mubr.f32.mxu1 %v1243_v62  ;;  %7123 = vmatpush1.bf16.msra.mxu1 %v7122_v41  ;;  %v7160_v41 = vpack.c.bf16 %v1613_v3, %v1611_v60  ;;  %v7164_v61 = vpack.c.bf16 %v1617_v56, %v1615_v54  ;;  %v1614_v62 = vld [vmem:[%s13010_s2 + $0xb80] sm:$0xff]  ;;  %v7198_v60 = vpack.c.bf16 %v2182_v53, %v2181_v52  ;;  %v2199_v3 = vld [vmem:[%s13014_s6 + $0x1d0] sm:$0xff]  ;;  %v2202_v56 = vld [vmem:[%s13014_s6 + $0x1e8] sm:$0xff] }
 0x502   :  { %7125 = vmatprep.subr.bf16.mxu1 %v7124_v22  ;;  %v1610_v22 = vld [vmem:[%s13010_s2 + $0xb60] sm:$0xff] }
 0x503   :  { %v7162_v57 = vpack.c.bf16 %v1612_v43, %v1610_v22  ;;  %v2184_v43 = vld [vmem:[%s13014_s6 + $0x158] sm:$0xff]  ;;  %v2201_v54 = vld [vmem:[%s13014_s6 + $0x1e0] sm:$0xff] }
 0x504   :  { %2039 = vmatmul.mubr.f32.gmra.mrb[8].mxu1 %v1242_v9 }
 0x505   :  { %7127 = vmatpush1.bf16.msra.mxu1 %v7126_v4  ;;  %2109 = vmatprep.mubr.f32.mxu1 %v1221_v13  ;;  %v1616_v4 = vld [vmem:[%s13010_s2 + $0xb90] sm:$0xff]  ;;  %v1623_v13 = vld [vmem:[%s13010_s2 + $0xbc8] sm:$0xff] }
 0x506   :  { %7129 = vmatprep.subr.bf16.mxu1 %v7128_v5  ;;  %v1619_v5 = vld [vmem:[%s13010_s2 + $0xba8] sm:$0xff]  ;;  %v7166_v8 = vpack.c.bf16 %v1616_v4, %v1614_v62  ;;  %v2185_v62 = vld [vmem:[%s13014_s6 + $0x160] sm:$0xff] }
 0x507   :  { %v7168_v9 = vpack.c.bf16 %v1621_v7, %v1619_v5  ;;  %v2186_v4 = vld [vmem:[%s13014_s6 + $0x168] sm:$0xff]  ;;  %v2203_v5 = vld [vmem:[%s13014_s6 + $0x1f0] sm:$0xff]  ;;  %v2204_v7 = vld [vmem:[%s13014_s6 + $0x1f8] sm:$0xff] }
 0x509   :  { %7131 = vmatpush1.bf16.msra.mxu1 %v7130_v14  ;;  %v1625_v14 = vld [vmem:[%s13010_s2 + $0xbd8] sm:$0xff] }
 0x50a   :  { %7133 = vmatprep.subr.bf16.mxu1 %v7132_v45  ;;  %v7170_v45 = vpack.c.bf16 %v1620_v11, %v1618_v10  ;;  %v7172_v16 = vpack.c.bf16 %v1625_v14, %v1623_v13  ;;  %v2187_v10 = vld [vmem:[%s13014_s6 + $0x170] sm:$0xff]  ;;  %v2188_v11 = vld [vmem:[%s13014_s6 + $0x178] sm:$0xff] }
 0x50b   :  { %v7210_v13 = vpack.c.bf16 %v2188_v11, %v2187_v10  ;;  %v2304_v10 = vld [vmem:[%s13015_s7 + $0x68] sm:$0xff]  ;;  %v2306_v11 = vld [vmem:[%s13015_s7 + $0x78] sm:$0xff] }
 0x50d   :  { %7135 = vmatpush1.bf16.msra.mxu1 %v7134_v0  ;;  %v1629_v0 = vld [vmem:[%s13010_s2 + $0xbf8] sm:$0xff] }
 0x50e   :  { %7137 = vmatprep.subr.bf16.mxu1 %v7136_v2  ;;  %v7174_v2 = vpack.c.bf16 %v1624_v17, %v1622_v63  ;;  %v7176_v12 = vpack.c.bf16 %v1629_v0, %v1627_v18 }
 0x511   :  { %7139 = vmatpush1.bf16.msra.mxu1 %v7138_v6  ;;  %v1220_v6 = vld [vmem:[#allocation2 + $0x50] sm:$0xff] }
 0x512   :  { %7141 = vmatprep.subr.bf16.mxu1 %v7140_v20  ;;  %v1233_v20 = vld [vmem:[#allocation2 + $0xb8] sm:$0xff] }
 0x515   :  { %7143 = vmatpush1.bf16.msra.mxu1 %v7142_v59  ;;  %v2192_v59 = vld [vmem:[%s13014_s6 + $0x198] sm:$0xff] }
 0x516   :  { %7145 = vmatprep.subr.bf16.mxu1 %v7144_v15  ;;  %v2175_v15 = vld [vmem:[%s13014_s6 + $0x110] sm:$0xff]  ;;  %v7184_v58 = vpack.c.bf16 %v2192_v59, %v2191_v1 }
 0x517   :  { %v7186_v29 = vpack.c.bf16 %v2176_v27, %v2175_v15 }
 0x518   :  { %7185 = vmatprep.subr.bf16.mxu0 %v7184_v58 }
 0x519   :  { %7147 = vmatpush1.bf16.msra.mxu1 %v7146_v30  ;;  %7187 = vmatpush3.bf16.msra.mxu0 %v7186_v29  ;;  %v2194_v30 = vld [vmem:[%s13014_s6 + $0x1a8] sm:$0xff] }
 0x51a   :  { %7149 = vmatprep.subr.bf16.mxu1 %v7148_v39  ;;  %v2177_v39 = vld [vmem:[%s13014_s6 + $0x120] sm:$0xff]  ;;  %v7188_v31 = vpack.c.bf16 %v2194_v30, %v2193_v23 }
 0x51b   :  { %v7190_v34 = vpack.c.bf16 %v2178_v32, %v2177_v39 }
 0x51c   :  { %7189 = vmatprep.subr.bf16.mxu0 %v7188_v31 }
 0x51d   :  { %7151 = vmatpush1.bf16.msra.mxu1 %v7150_v21  ;;  %7191 = vmatpush3.bf16.msra.mxu0 %v7190_v34  ;;  %v2196_v21 = vld [vmem:[%s13014_s6 + $0x1b8] sm:$0xff] }
 0x51e   :  { %7153 = vmatprep.subr.bf16.mxu1 %v7152_v33  ;;  %v7192_v33 = vpack.c.bf16 %v2196_v21, %v2195_v26 }
 0x520   :  { %7193 = vmatprep.subr.bf16.mxu0 %v7192_v33 }
 0x521   :  { %7155 = vmatpush1.bf16.msra.mxu1 %v7154_v51  ;;  %7195 = vmatpush3.bf16.msra.mxu0 %v7194_v37  ;;  %v2198_v51 = vld [vmem:[%s13014_s6 + $0x1c8] sm:$0xff] }
 0x522   :  { %7157 = vmatprep.subr.bf16.mxu1 %v7156_v38  ;;  %v7196_v38 = vpack.c.bf16 %v2198_v51, %v2197_v50 }
 0x524   :  { %7197 = vmatprep.subr.bf16.mxu0 %v7196_v38 }
 0x525   :  { %7159 = vmatpush1.bf16.msra.mxu1 %v7158_v40  ;;  %7199 = vmatpush3.bf16.msra.mxu0 %v7198_v60  ;;  %v2200_v40 = vld [vmem:[%s13014_s6 + $0x1d8] sm:$0xff] }
 0x526   :  { %7161 = vmatprep.subr.bf16.mxu1 %v7160_v41  ;;  %v2183_v41 = vld [vmem:[%s13014_s6 + $0x150] sm:$0xff]  ;;  %v7200_v22 = vpack.c.bf16 %v2200_v40, %v2199_v3 }
 0x528   :  { %7201 = vmatprep.subr.bf16.mxu0 %v7200_v22 }
 0x529   :  { %7163 = vmatpush1.bf16.msra.mxu1 %v7162_v57  ;;  %v7202_v57 = vpack.c.bf16 %v2184_v43, %v2183_v41 }
 0x52a   :  { %7165 = vmatprep.subr.bf16.mxu1 %v7164_v61  ;;  %v7204_v61 = vpack.c.bf16 %v2202_v56, %v2201_v54 }
 0x52b   :  { %7203 = vmatpush3.bf16.msra.mxu0 %v7202_v57 }
 0x52c   :  { %7205 = vmatprep.subr.bf16.mxu0 %v7204_v61 }
 0x52d   :  { %7167 = vmatpush1.bf16.msra.mxu1 %v7166_v8  ;;  %v7206_v8 = vpack.c.bf16 %v2186_v4, %v2185_v62  ;;  %v2300_v62 = vld [vmem:[%s13015_s7 + $0x48] sm:$0xff]  ;;  %v2302_v4 = vld [vmem:[%s13015_s7 + $0x58] sm:$0xff] }
 0x52e   :  { %7169 = vmatprep.subr.bf16.mxu1 %v7168_v9  ;;  %v7208_v9 = vpack.c.bf16 %v2204_v7, %v2203_v5  ;;  %v7212_v5 = vpack.c.bf16 %v2302_v4, %v2300_v62  ;;  %v2299_v7 = vld [vmem:[%s13015_s7 + $0x40] sm:$0xff]  ;;  %v2542_v62 = vld [vmem:[%s13011_s3 + $0x98] sm:$0xff] }
 0x52f   :  { %7207 = vmatpush3.bf16.msra.mxu0 %v7206_v8  ;;  %v2301_v8 = vld [vmem:[%s13015_s7 + $0x50] sm:$0xff] }
 0x530   :  { %7209 = vmatprep.subr.bf16.mxu0 %v7208_v9  ;;  %v7214_v9 = vpack.c.bf16 %v2301_v8, %v2299_v7  ;;  %v2539_v7 = vld [vmem:[%s13011_s3 + $0x80] sm:$0xff]  ;;  %v2541_v8 = vld [vmem:[%s13011_s3 + $0x90] sm:$0xff] }
 0x531   :  { %7171 = vmatpush1.bf16.msra.mxu1 %v7170_v45 }
 0x532   :  { %7173 = vmatprep.subr.bf16.mxu1 %v7172_v16 }
 0x533   :  { %7211 = vmatpush3.bf16.msra.mxu0 %v7210_v13  ;;  %v2303_v13 = vld [vmem:[%s13015_s7 + $0x60] sm:$0xff] }
 0x534   :  { %7213 = vmatprep.subr.bf16.mxu0 %v7212_v5 }
 0x535   :  { %7175 = vmatpush1.bf16.msra.mxu1 %v7174_v2 }
 0x536   :  { %7177 = vmatprep.subr.bf16.mxu1 %v7176_v12 }
 0x539   :  { %7179 = vmatpush1.bf16.msra.mxu1 %v7178_v25 }
 0x53c   :  { %2110 = vmatmul.mubr.f32.vlgmr.msra.gmra.mrb[4].mxu1 %v1220_v6 }
 0x53d   :  { %2115 = vmatprep.mubr.f32.mxu1 %v1233_v20 }
 0x540   :  { %2116 = vmatmul.mubr.f32.gmra.mrb[6].mxu1 %v1232_v47 }
 0x541   :  { %2121 = vmatprep.mubr.f32.mxu1 %v1245_v49 }
 0x544   :  { %2122 = vmatmul.mubr.f32.gmra.mrb[8].mxu1 %v1244_v35 }
 0x60f   :  { %v11145_v14 = vpop.f32.mrb[4].mxu1 }
 0x610   :  { %v11147_v45 = vpop.f32.mrb[5].mxu1  ;;  %v2147_v63 = vmul.f32 %v11145_v14, %v11145_v14 }
 0x611   :  { %v2148_v2 = vmul.f32 %v11147_v45, %v11147_v45 }
 0x613   :  { %v11149_v16 = vpop.f32.mrb[6].mxu1 }
 0x614   :  { %v2128_v17 = vadd.f32 %v11149_v16, %v11145_v14  ;;  %v2149_v18 = vmul.f32 %v11149_v16, %v11149_v16  ;;  %v11157_v0 = vpop.f32.mrb[7].mxu1 }
 0x615   :  { %v2138_v12 = vadd.f32 %v11157_v0, %v11147_v45  ;;  %v2150_v19 = vmul.f32 %v11157_v0, %v11157_v0 }
 0x616   :  { %v2153_v28 = vadd.f32 %v2149_v18, %v2147_v63  ;;  %v7216_v63 = vpack.c.bf16 %v2306_v11, %v2304_v10  ;;  %v2546_v10 = vld [vmem:[%s13011_s3 + $0xb8] sm:$0xff]  ;;  %v7238_v11 = vpack.c.bf16 %v2541_v8, %v2539_v7  ;;  %v2575_v8 = vld [vmem:[%s13011_s3 + $0x1a0] sm:$0xff] }
 0x617   :  { %v2162_v25 = vadd.f32 %v2150_v19, %v2148_v2  ;;  %v11165_v6 = vpop.f32.mrb[8].mxu1  ;;  %v2524_v2 = vld [vmem:[%s13011_s3 + $0x8] sm:$0xff] }
 0x618   :  { %v2130_v20 = vsel %vm2129_vm8, %v11165_v6, 0.0  ;;  %v2151_v47 = vmul.f32 %v11165_v6, %v11165_v6  ;;  %v11170_v49 = vpop.f32.mrb[9].mxu1 }
 0x619   :  { %v2131_v35 = vadd.f32 %v2130_v20, %v2128_v17  ;;  %v2139_v1 = vsel %vm2129_vm8, %v11170_v49, 0.0  ;;  %v2152_v59 = vmul.f32 %v11170_v49, %v11170_v49  ;;  %v2305_v17 = vld [vmem:[%s13015_s7 + $0x70] sm:$0xff] }
 0x61a   :  { %v2154_v15 = vsel %vm2129_vm8, %v2151_v47, 0.0  ;;  %v2140_v58 = vadd.f32 %v2139_v1, %v2138_v12  ;;  %v7218_v18 = vpack.c.bf16 %v2305_v17, %v2303_v13  ;;  %v2526_v12 = vld [vmem:[%s13011_s3 + $0x18] sm:$0xff]  ;;  %v2545_v17 = vld [vmem:[%s13011_s3 + $0xb0] sm:$0xff] }
 0x61b   :  { %v2132_v27 = vrot.slane %v2131_v35, 4  ;;  %v2155_v29 = vadd.f32 %v2154_v15, %v2153_v28  ;;  %v2163_v23 = vsel %vm2129_vm8, %v2152_v59, 0.0  ;;  %v7220_v19 = vpack.c.bf16 %v2526_v12, %v2524_v2  ;;  %v2550_v2 = vld [vmem:[%s13011_s3 + $0xd8] sm:$0xff] }
 0x61c   :  { %v2141_v30 = vrot.slane %v2140_v58, 4  ;;  %v2164_v39 = vadd.f32 %v2163_v23, %v2162_v25  ;;  %v2281_v23 = vld [vmem:[%s13016_s8 + $0x9] sm:$0x1] }
 0x61d   :  { %v2133_v31 = vadd.f32 %v2132_v27, %v2131_v35  ;;  %v2156_v32 = vrot.slane %v2155_v29, 4 }
 0x61e   :  { %v2142_v34 = vadd.f32 %v2141_v30, %v2140_v58  ;;  %v2165_v26 = vrot.slane %v2164_v39, 4  ;;  %v2280_v58 = vld [vmem:[%s13016_s8 + $0x8] sm:$0x1] }
 0x61f   :  { %v2134_v21 = vrot.slane %v2133_v31, 2  ;;  %v2157_v33 = vadd.f32 %v2156_v32, %v2155_v29 }
 0x620   :  { %v2143_v44 = vrot.slane %v2142_v34, 2  ;;  %v2166_v36 = vadd.f32 %v2165_v26, %v2164_v39  ;;  %v2523_v39 = vld [vmem:[%s13011_s3] sm:$0xff]  ;;  %v2530_v26 = vld [vmem:[%s13011_s3 + $0x38] sm:$0xff] }
 0x621   :  { %v2135_v37 = vadd.f32 %v2134_v21, %v2133_v31  ;;  %v2158_v50 = vrot.slane %v2157_v33, 2  ;;  %v2525_v31 = vld [vmem:[%s13011_s3 + $0x10] sm:$0xff] }
 0x622   :  { %v2144_v51 = vadd.f32 %v2143_v44, %v2142_v34  ;;  %v2167_v38 = vrot.slane %v2166_v36, 2  ;;  %v2528_v34 = vld [vmem:[%s13011_s3 + $0x28] sm:$0xff]  ;;  %v7222_v44 = vpack.c.bf16 %v2525_v31, %v2523_v39  ;;  %v2557_v39 = vld [vmem:[%s13011_s3 + $0x110] sm:$0xff] }
 0x623   :  { %v2136_v52 = vrot.slane %v2135_v37, 1  ;;  %v2159_v53 = vadd.f32 %v2158_v50, %v2157_v33  ;;  %v2529_v50 = vld [vmem:[%s13011_s3 + $0x30] sm:$0xff]  ;;  %v2560_v31 = vld [vmem:[%s13011_s3 + $0x128] sm:$0xff] }
 0x624   :  { %v2145_v60 = vrot.slane %v2144_v51, 1  ;;  %v2168_v3 = vadd.f32 %v2167_v38, %v2166_v36  ;;  %v7224_v36 = vpack.c.bf16 %v2530_v26, %v2528_v34  ;;  %v2532_v38 = vld [vmem:[%s13011_s3 + $0x48] sm:$0xff] }
 0x625   :  { %v2160_v40 = vrot.slane %v2159_v53, 1  ;;  %v2137_v22 = vadd.f32 %v2136_v52, %v2135_v37  ;;  %v2527_v37 = vld [vmem:[%s13011_s3 + $0x20] sm:$0xff]  ;;  %v2534_v52 = vld [vmem:[%s13011_s3 + $0x58] sm:$0xff] }
 0x626   :  { %v2169_v41 = vrot.slane %v2168_v3, 1  ;;  %v2146_v54 = vadd.f32 %v2145_v60, %v2144_v51  ;;  %v7228_v60 = vpack.c.bf16 %v2534_v52, %v2532_v38  ;;  %v2565_v38 = vld [vmem:[%s13011_s3 + $0x150] sm:$0xff]  ;;  %v2568_v52 = vld [vmem:[%s13011_s3 + $0x168] sm:$0xff] }
 0x627   :  { %v2161_v43 = vadd.f32 %v2160_v40, %v2159_v53  ;;  %v7226_v53 = vpack.c.bf16 %v2529_v50, %v2527_v37  ;;  %v2533_v40 = vld [vmem:[%s13011_s3 + $0x50] sm:$0xff] }
 0x628   :  { %v2170_v56 = vadd.f32 %v2169_v41, %v2168_v3  ;;  %v2531_v3 = vld [vmem:[%s13011_s3 + $0x40] sm:$0xff]  ;;  %v2536_v41 = vld [vmem:[%s13011_s3 + $0x68] sm:$0xff] }
 0x629   :  { %v2171_v57 = vsel %vm822_vm2, %v2137_v22, %v2161_v43  ;;  %v2538_v22 = vld [vmem:[%s13011_s3 + $0x78] sm:$0xff]  ;;  %v7230_v43 = vpack.c.bf16 %v2533_v40, %v2531_v3  ;;  %v2567_v40 = vld [vmem:[%s13011_s3 + $0x160] sm:$0xff] }
 0x62a   :  { %v2172_v61 = vsel %vm822_vm2, %v2146_v54, %v2170_v56  ;;  %v7232_v54 = vpack.c.bf16 %v2538_v22, %v2536_v41  ;;  %v2535_v56 = vld [vmem:[%s13011_s3 + $0x60] sm:$0xff]  ;;  %v2569_v41 = vld [vmem:[%s13011_s3 + $0x170] sm:$0xff] }
 0x62b   :  { %2269 = vmatprep.mubr.f32.mxu0 %v2172_v61  ;;  %v2540_v61 = vld [vmem:[%s13011_s3 + $0x88] sm:$0xff]  ;;  %v7266_v22 = vpack.c.bf16 %v2569_v41, %v2567_v40 }
 0x62c   :  { %2270 = vmatmul.mubr.f32.vlgmr.msra.gmra.mrb[10].mxu0 %v2171_v57  ;;  %v2537_v57 = vld [vmem:[%s13011_s3 + $0x70] sm:$0xff]  ;;  %v7236_v5 = vpack.c.bf16 %v2542_v62, %v2540_v61 }
 0x62d   :  { %2374 = vmatprep.mubr.f32.mxu0 %v8624_v24  ;;  %7215 = vmatpush1.bf16.msra.mxu0 %v7214_v9  ;;  %v7234_v4 = vpack.c.bf16 %v2537_v57, %v2535_v56  ;;  %v2544_v9 = vld [vmem:[%s13011_s3 + $0xa8] sm:$0xff]  ;;  %v2571_v57 = vld [vmem:[%s13011_s3 + $0x180] sm:$0xff]  ;;  %v2573_v61 = vld [vmem:[%s13011_s3 + $0x190] sm:$0xff] }
 0x62e   :  { %7217 = vmatprep.subr.bf16.mxu0 %v7216_v63  ;;  %v7240_v13 = vpack.c.bf16 %v2546_v10, %v2544_v9  ;;  %v2543_v63 = vld [vmem:[%s13011_s3 + $0xa0] sm:$0xff]  ;;  %v7270_v62 = vpack.c.bf16 %v2573_v61, %v2571_v57  ;;  %v2577_v9 = vld [vmem:[%s13011_s3 + $0x1b0] sm:$0xff] }
 0x62f   :  { %v7242_v12 = vpack.c.bf16 %v2545_v17, %v2543_v63  ;;  %v7274_v10 = vpack.c.bf16 %v2577_v9, %v2575_v8  ;;  %v2579_v17 = vld [vmem:[%s13011_s3 + $0x1c0] sm:$0xff] }
 0x631   :  { %7219 = vmatpush1.bf16.msra.mxu0 %v7218_v18  ;;  %v2548_v18 = vld [vmem:[%s13011_s3 + $0xc8] sm:$0xff] }
 0x632   :  { %7221 = vmatprep.subr.bf16.mxu0 %v7220_v19  ;;  %v7244_v19 = vpack.c.bf16 %v2550_v2, %v2548_v18  ;;  %v2581_v18 = vld [vmem:[%s13011_s3 + $0x1d0] sm:$0xff] }
 0x633   :  { %v7278_v2 = vpack.c.bf16 %v2581_v18, %v2579_v17 }
 0x6ff   :  { %v6130_v28 = vpop.f32.mrb[10].mxu0 }
 0x700   :  { %v6131_v25 = vpop.f32.mrb[11].mxu0 }
 0x701   :  { %v6132_v20 = vadd.f32 %v6131_v25, %v6130_v28  ;;  %v2547_v28 = vld [vmem:[%s13011_s3 + $0xc0] sm:$0xff]  ;;  %v2549_v25 = vld [vmem:[%s13011_s3 + $0xd0] sm:$0xff] }
 0x703   :  { %v2275_v47 = vmul.f32 %v6132_v20, %v6132_v20 }
 0x705   :  { %v2277_v35 = vrot.slane %v2275_v47, 7  ;;  %v2554_v47 = vld [vmem:[%s13011_s3 + $0xf8] sm:$0xff] }
 0x707   :  { %v2279_v1 = vsub.f32 %v6132_v20, %v2277_v35  ;;  %v7246_v35 = vpack.c.bf16 %v2549_v25, %v2547_v28  ;;  %v2583_v25 = vld [vmem:[%s13011_s3 + $0x1e0] sm:$0xff] }
 0x709   :  { %v2282_v59 = vadd.f32 1e-05, %v2279_v1 }
 0x70b   :  { %8491 = vrsqrt.f32 %v2282_v59  ;;  %v2551_v59 = vld [vmem:[%s13011_s3 + $0xe0] sm:$0xff] }
 0x715   :  { %v8492_v15 = vpop.eup %8491 }
 0x716   :  { %v2285_v27 = vrot.slane %v8492_v15, 1  ;;  %v2553_v15 = vld [vmem:[%s13011_s3 + $0xf0] sm:$0xff] }
 0x718   :  { %v2287_v29 = vmul.f32 %v2285_v27, %v2280_v58  ;;  %v2556_v58 = vld [vmem:[%s13011_s3 + $0x108] sm:$0xff]  ;;  %v2558_v27 = vld [vmem:[%s13011_s3 + $0x118] sm:$0xff] }
 0x71a   :  { %v2288_v30 = vmul.f32 %v6132_v20, %v2287_v29  ;;  %v2293_v21 = vrot.slane %v2287_v29, %v9782_v42  ;;  %v2552_v20 = vld [vmem:[%s13011_s3 + $0xe8] sm:$0xff]  ;;  %v7250_v29 = vpack.c.bf16 %v2553_v15, %v2551_v59 }
 0x71b   :  { %v7248_v1 = vpack.c.bf16 %v2554_v47, %v2552_v20  ;;  %v2585_v20 = vld [vmem:[%s13011_s3 + $0x1f0] sm:$0xff] }
 0x71c   :  { %v2289_v32 = vsub.f32 %v2281_v23, %v2288_v30  ;;  %v7252_v23 = vpack.c.bf16 %v2558_v27, %v2556_v58  ;;  %v2555_v30 = vld [vmem:[%s13011_s3 + $0x100] sm:$0xff]  ;;  %v7282_v47 = vpack.c.bf16 %v2585_v20, %v2583_v25 }
 0x71d   :  { %v7254_v34 = vpack.c.bf16 %v2557_v39, %v2555_v30  ;;  %v2589_v30 = vld [vmem:[%s13011_s3 + $0x210] sm:$0xff] }
 0x71e   :  { %v2297_v33 = vrot.slane %v2289_v32, %v9782_v42  ;;  %v2562_v32 = vld [vmem:[%s13011_s3 + $0x138] sm:$0xff] }
 0x71f   :  { %v7256_v26 = vpack.c.bf16 %v2562_v32, %v2560_v31 }
 0x720   :  { %v2298_v51 = vsel %vm822_vm2, %v2293_v21, %v2297_v33  ;;  %v2559_v21 = vld [vmem:[%s13011_s3 + $0x120] sm:$0xff]  ;;  %v2561_v33 = vld [vmem:[%s13011_s3 + $0x130] sm:$0xff] }
 0x721   :  { %6059 = vmatmul.mubr.msk.f32.vlgmr.msra.gmra.mrb[12].mxu0 %vm959_vm3, %v2298_v51  ;;  %v7258_v37 = vpack.c.bf16 %v2561_v33, %v2559_v21  ;;  %v2563_v51 = vld [vmem:[%s13011_s3 + $0x140] sm:$0xff]  ;;  %v2594_v21 = vld [vmem:[%s13011_s3 + $0x238] sm:$0xff] }
 0x722   :  { %7223 = vmatpush1.bf16.msra.mxu0 %v7222_v44  ;;  %v2564_v44 = vld [vmem:[%s13011_s3 + $0x148] sm:$0xff]  ;;  %v11434_v33 = vld [vmem:[%s13011_s3 + $0x220] sm:$0xff] }
 0x723   :  { %7225 = vmatprep.subr.bf16.mxu0 %v7224_v36  ;;  %v2566_v36 = vld [vmem:[%s13011_s3 + $0x158] sm:$0xff] }
 0x724   :  { %v7260_v50 = vpack.c.bf16 %v2566_v36, %v2564_v44  ;;  %v11443_v36 = vld [vmem:[%s13011_s3 + $0x230] sm:$0xff] }
 0x725   :  { %v7290_v41 = vpack.c.bf16 %v11443_v36, %v11434_v33  ;;  %v2601_v33 = vld [vmem:[%s13011_s3 + $0x270] sm:$0xff] }
 0x726   :  { %7227 = vmatpush1.bf16.msra.mxu0 %v7226_v53  ;;  %v2570_v53 = vld [vmem:[%s13011_s3 + $0x178] sm:$0xff] }
 0x727   :  { %7229 = vmatprep.subr.bf16.mxu0 %v7228_v60  ;;  %v7262_v60 = vpack.c.bf16 %v2565_v38, %v2563_v51  ;;  %v7264_v3 = vpack.c.bf16 %v2570_v53, %v2568_v52 }
 0x72a   :  { %7231 = vmatpush1.bf16.msra.mxu0 %v7230_v43  ;;  %v2572_v43 = vld [vmem:[%s13011_s3 + $0x188] sm:$0xff] }
 0x72b   :  { %7233 = vmatprep.subr.bf16.mxu0 %v7232_v54  ;;  %v2574_v54 = vld [vmem:[%s13011_s3 + $0x198] sm:$0xff] }
 0x72c   :  { %v7268_v56 = vpack.c.bf16 %v2574_v54, %v2572_v43 }
 0x72e   :  { %7235 = vmatpush1.bf16.msra.mxu0 %v7234_v4  ;;  %v2576_v4 = vld [vmem:[%s13011_s3 + $0x1a8] sm:$0xff] }
 0x72f   :  { %7237 = vmatprep.subr.bf16.mxu0 %v7236_v5  ;;  %v2578_v5 = vld [vmem:[%s13011_s3 + $0x1b8] sm:$0xff] }
 0x730   :  { %v7272_v7 = vpack.c.bf16 %v2578_v5, %v2576_v4 }
 0x732   :  { %7239 = vmatpush1.bf16.msra.mxu0 %v7238_v11  ;;  %v2580_v11 = vld [vmem:[%s13011_s3 + $0x1c8] sm:$0xff] }
 0x733   :  { %7241 = vmatprep.subr.bf16.mxu0 %v7240_v13  ;;  %v2582_v13 = vld [vmem:[%s13011_s3 + $0x1d8] sm:$0xff] }
 0x734   :  { %v7276_v63 = vpack.c.bf16 %v2582_v13, %v2580_v11 }
 0x736   :  { %7243 = vmatpush1.bf16.msra.mxu0 %v7242_v12  ;;  %v2584_v12 = vld [vmem:[%s13011_s3 + $0x1e8] sm:$0xff] }
 0x737   :  { %7245 = vmatprep.subr.bf16.mxu0 %v7244_v19  ;;  %v2586_v19 = vld [vmem:[%s13011_s3 + $0x1f8] sm:$0xff] }
 0x738   :  { %v7280_v28 = vpack.c.bf16 %v2586_v19, %v2584_v12 }
 0x73a   :  { %7247 = vmatpush1.bf16.msra.mxu0 %v7246_v35  ;;  %v2588_v35 = vld [vmem:[%s13011_s3 + $0x208] sm:$0xff] }
 0x73b   :  { %7249 = vmatprep.subr.bf16.mxu0 %v7248_v1  ;;  %v2590_v1 = vld [vmem:[%s13011_s3 + $0x218] sm:$0xff] }
 0x73c   :  { %v7284_v59 = vpack.c.bf16 %v2590_v1, %v2588_v35  ;;  %v2595_v35 = vld [vmem:[%s13011_s3 + $0x240] sm:$0xff]  ;;  %v2597_v1 = vld [vmem:[%s13011_s3 + $0x250] sm:$0xff] }
 0x73e   :  { %7251 = vmatpush1.bf16.msra.mxu0 %v7250_v29 }
 0x73f   :  { %7253 = vmatprep.subr.bf16.mxu0 %v7252_v23  ;;  %v2587_v23 = vld [vmem:[%s13011_s3 + $0x200] sm:$0xff] }
 0x740   :  { %v7286_v51 = vpack.c.bf16 %v2589_v30, %v2587_v23  ;;  %v2602_v23 = vld [vmem:[%s13011_s3 + $0x278] sm:$0xff] }
 0x742   :  { %7255 = vmatpush1.bf16.msra.mxu0 %v7254_v34 }
 0x743   :  { %7257 = vmatprep.subr.bf16.mxu0 %v7256_v26  ;;  %v2592_v26 = vld [vmem:[%s13011_s3 + $0x228] sm:$0xff] }
 0x746   :  { %7259 = vmatpush1.bf16.msra.mxu0 %v7258_v37  ;;  %v11448_v37 = vld [vmem:[%s13011_s3 + $0x248] sm:$0xff] }
 0x747   :  { %7261 = vmatprep.subr.bf16.mxu0 %v7260_v50 }
 0x74a   :  { %7263 = vmatpush1.bf16.msra.mxu0 %v7262_v60  ;;  %v7288_v60 = vpack.c.bf16 %v2594_v21, %v2592_v26 }
 0x74b   :  { %7265 = vmatprep.subr.bf16.mxu0 %v7264_v3 }
 0x74e   :  { %7267 = vmatpush1.bf16.msra.mxu0 %v7266_v22 }
 0x74f   :  { %7269 = vmatprep.subr.bf16.mxu0 %v7268_v56 }
 0x752   :  { %7271 = vmatpush1.bf16.msra.mxu0 %v7270_v62 }
 0x753   :  { %7273 = vmatprep.subr.bf16.mxu0 %v7272_v7 }
 0x756   :  { %7275 = vmatpush1.bf16.msra.mxu0 %v7274_v10 }
 0x757   :  { %7277 = vmatprep.subr.bf16.mxu0 %v7276_v63 }
 0x75a   :  { %7279 = vmatpush1.bf16.msra.mxu0 %v7278_v2 }
 0x75b   :  { %7281 = vmatprep.subr.bf16.mxu0 %v7280_v28 }
 0x75e   :  { %7283 = vmatpush1.bf16.msra.mxu0 %v7282_v47 }
 0x75f   :  { %7285 = vmatprep.subr.bf16.mxu0 %v7284_v59 }
 0x7f4   :  { %v2376_v15 = vpop.f32.mrb[12].mxu0 }
 0x7f5   :  { %v2384_v58 = vrot.slane %v2376_v15, %v9782_v42  ;;  %v2378_v27 = vpop.f32.mrb[13].mxu0  ;;  %v2398_v34 = vrot.slane %v2376_v15, %v9997_v48 }
 0x7f6   :  { %v2388_v29 = vrot.slane %v2378_v27, %v9782_v42  ;;  %v2402_v44 = vrot.slane %v2378_v27, %v9997_v48 }
 0x7f7   :  { %v2389_v39 = vmul.f32 %v2384_v58, %v11145_v14  ;;  %v2391_v31 = vmul.f32 %v2384_v58, %v11149_v16  ;;  %v2393_v32 = vmul.f32 %v2384_v58, %v11165_v6 }
 0x7f8   :  { %v2390_v14 = vmul.f32 %v2388_v29, %v11147_v45  ;;  %v2392_v16 = vmul.f32 %v2388_v29, %v11157_v0  ;;  %v2394_v6 = vmul.f32 %v2388_v29, %v11170_v49  ;;  %v11453_v45 = vld [vmem:[%s13011_s3 + $0x258] sm:$0xff]  ;;  %v2600_v29 = vld [vmem:[%s13011_s3 + $0x268] sm:$0xff] }
 0x7f9   :  { %v2403_v0 = vadd.f32 %v2398_v34, %v2389_v39  ;;  %v2405_v50 = vadd.f32 %v2398_v34, %v2391_v31  ;;  %v2407_v49 = vadd.f32 %v2398_v34, %v2393_v32  ;;  %v7292_v22 = vpack.c.bf16 %v11453_v45, %v11448_v37  ;;  %v2604_v37 = vld [vmem:[%s13011_s3 + $0x288] sm:$0xff]  ;;  %v2606_v45 = vld [vmem:[%s13011_s3 + $0x298] sm:$0xff] }
 0x7fa   :  { %v2404_v38 = vadd.f32 %v2402_v44, %v2390_v14  ;;  %v2406_v52 = vadd.f32 %v2402_v44, %v2392_v16  ;;  %v11455_v53 = vadd.f32 %v2402_v44, %v2394_v6  ;;  %v7294_v14 = vpack.c.bf16 %v2597_v1, %v2595_v35 }
 0x7fb   :  { %v2409_v3 = vmax.f32 %v2403_v0, 0.0  ;;  %v2411_v40 = vmax.f32 %v2405_v50, 0.0  ;;  %v2413_v43 = vmax.f32 %v2407_v49, 0.0  ;;  %v7296_v44 = vpack.c.bf16 %v2602_v23, %v2600_v29  ;;  %v2599_v0 = vld [vmem:[%s13011_s3 + $0x260] sm:$0xff] }
 0x7fc   :  { %v11461_v54 = vmax.f32 %v2404_v38, 0.0  ;;  %v11463_v56 = vmax.f32 %v2406_v52, 0.0  ;;  %v2414_v57 = vmax.f32 %v11455_v53, 0.0  ;;  %v7300_v38 = vpack.c.bf16 %v2606_v45, %v2604_v37  ;;  %v2603_v52 = vld [vmem:[%s13011_s3 + $0x280] sm:$0xff]  ;;  %v2605_v53 = vld [vmem:[%s13011_s3 + $0x290] sm:$0xff]  ;;  %v2640_v45 = vld [vmem:[%s13011_s3 + $0x3a8] sm:$0xff] }
 0x7fd   :  { %2415 = vst [vmem:[#allocation2] sm:$0xff] %v2409_v3  ;;  %2417 = vst [vmem:[#allocation2 + $0x60] sm:$0xf] %v2411_v40  ;;  %v2423_v61 = vrot.slane %v2409_v3, 1  ;;  %v2424_v62 = vrot.slane %v2411_v40, 1  ;;  %v2437_v4 = vrot.slane %v2409_v3, 2 }
 0x7fe   :  { %v2438_v5 = vrot.slane %v2411_v40, 2  ;;  %v2451_v7 = vrot.slane %v2409_v3, 3  ;;  %v2452_v8 = vrot.slane %v2411_v40, 3  ;;  %v2465_v9 = vrot.slane %v2409_v3, 4  ;;  %2416 = vst [vmem:[#allocation2 + $0x8] sm:$0xff] %v11461_v54  ;;  %2971 = vmatprep.mubr.f32.mxu0 %v11461_v54  ;;  %v2637_v37 = vld [vmem:[%s13011_s3 + $0x390] sm:$0xff] }
 0x7ff   :  { %v2466_v10 = vrot.slane %v2411_v40, 4  ;;  %2418 = vst [vmem:[#allocation2 + $0x68] sm:$0xf] %v11463_v56  ;;  %v11470_v11 = vsel %vm1119_vm5, %v2423_v61, %v2424_v62  ;;  %2435 = vst [vmem:[#allocation2 + $0x70] sm:$0xf] %v2424_v62  ;;  %v2481_v63 = vrot.slane %v2409_v3, 5  ;;  %2972 = vmatmul.mubr.f32.vlgmr.msra.gmra.mrb[14].mxu0 %v2409_v3 }
 0x800   :  { %v11473_v13 = vsel %vm768_vm1, %v2437_v4, %v2438_v5  ;;  %2449 = vst [vmem:[#allocation2 + $0x80] sm:$0xf] %v2438_v5  ;;  %v2482_v17 = vrot.slane %v2411_v40, 5  ;;  %2433 = vst [vmem:[#allocation2 + $0x10] sm:$0xff] %v11470_v11  ;;  %v11478_v18 = vsel %vm1092_vm4, %v2451_v7, %v2452_v8  ;;  %v2487_v12 = vrot.slane %v2413_v43, 5  ;;  %7287 = vmatpush1.bf16.msra.mxu0 %v7286_v51  ;;  %v2610_v3 = vld [vmem:[%s13011_s3 + $0x2b8] sm:$0xff] }
 0x801   :  { %2447 = vst [vmem:[#allocation2 + $0x20] sm:$0xff] %v11473_v13  ;;  %2463 = vst [vmem:[#allocation2 + $0x90] sm:$0xf] %v2452_v8  ;;  %v2467_v2 = vsel %vm1142_vm6, %v2465_v9, %v2466_v10  ;;  %v2426_v19 = vrot.slane %v11461_v54, 1  ;;  %v2427_v25 = vrot.slane %v11463_v56, 1  ;;  %v2440_v20 = vrot.slane %v11461_v54, 2  ;;  %7289 = vmatprep.subr.bf16.mxu0 %v7288_v60 }
 0x802   :  { %2477 = vst [vmem:[#allocation2 + $0xa0] sm:$0xf] %v2466_v10  ;;  %2461 = vst [vmem:[#allocation2 + $0x30] sm:$0xff] %v11478_v18  ;;  %v2483_v28 = vsel %vm1187_vm7, %v2481_v63, %v2482_v17  ;;  %v2441_v47 = vrot.slane %v11463_v56, 2  ;;  %v2488_v59 = vsel %vm1187_vm7, %v2482_v17, %v2487_v12  ;;  %v2454_v15 = vrot.slane %v11461_v54, 3  ;;  %v2608_v60 = vld [vmem:[%s13011_s3 + $0x2a8] sm:$0xff] }
 0x803   :  { %2475 = vst [vmem:[#allocation2 + $0x40] sm:$0xff] %v2467_v2  ;;  %2495 = vst [vmem:[#allocation2 + $0x50] sm:$0xff] %v2483_v28  ;;  %v2455_v58 = vrot.slane %v11463_v56, 3  ;;  %v2468_v27 = vrot.slane %v11461_v54, 4  ;;  %v2428_v30 = vsel %vm1119_vm5, %v2426_v19, %v2427_v25  ;;  %v2469_v31 = vrot.slane %v11463_v56, 4  ;;  %v2609_v43 = vld [vmem:[%s13011_s3 + $0x2b0] sm:$0xff] }
 0x804   :  { %2497 = vst [vmem:[#allocation2 + $0xb0] sm:$0xf] %v2488_v59  ;;  %2436 = vst [vmem:[#allocation2 + $0x78] sm:$0xf] %v2427_v25  ;;  %v11505_v39 = vsel %vm768_vm1, %v2440_v20, %v2441_v47  ;;  %v2484_v32 = vrot.slane %v11461_v54, 5  ;;  %v2485_v26 = vrot.slane %v11463_v56, 5  ;;  %7291 = vmatpush1.bf16.msra.mxu0 %v7290_v41  ;;  %v7298_v51 = vpack.c.bf16 %v2601_v33, %v2599_v0 }
 0x805   :  { %2450 = vst [vmem:[#allocation2 + $0x88] sm:$0xf] %v2441_v47  ;;  %2434 = vst [vmem:[#allocation2 + $0x18] sm:$0xff] %v2428_v30  ;;  %v11511_v34 = vsel %vm1092_vm4, %v2454_v15, %v2455_v58  ;;  %v2489_v21 = vrot.slane %v2414_v57, 5  ;;  %v11519_v16 = vsel %vm1142_vm6, %v2468_v27, %v2469_v31  ;;  %7293 = vmatprep.subr.bf16.mxu0 %v7292_v22  ;;  %v2511_v49 = vld [vmem:[#allocation2 + $0x60] sm:$0xf] }
 0x806   :  { %2448 = vst [vmem:[#allocation2 + $0x28] sm:$0xff] %v11505_v39  ;;  %2464 = vst [vmem:[#allocation2 + $0x98] sm:$0xf] %v2455_v58  ;;  %v2512_v6 = vld [vmem:[#allocation2 + $0x68] sm:$0xf]  ;;  %v2486_v36 = vsel %vm1187_vm7, %v2484_v32, %v2485_v26  ;;  %v7302_v40 = vpack.c.bf16 %v2605_v53, %v2603_v52  ;;  %v7304_v41 = vpack.c.bf16 %v2610_v3, %v2608_v60  ;;  %v2607_v22 = vld [vmem:[%s13011_s3 + $0x2a0] sm:$0xff] }
 0x807   :  { %2462 = vst [vmem:[#allocation2 + $0x38] sm:$0xff] %v11511_v34  ;;  %2478 = vst [vmem:[#allocation2 + $0xa8] sm:$0xf] %v2469_v31  ;;  %v2490_v50 = vsel %vm1187_vm7, %v2485_v26, %v2489_v21  ;;  %2977 = vmatprep.mubr.f32.mxu0 %v2512_v6  ;;  %v2612_v54 = vld [vmem:[%s13011_s3 + $0x2c8] sm:$0xff]  ;;  %v2614_v56 = vld [vmem:[%s13011_s3 + $0x2d8] sm:$0xff]  ;;  %v7306_v57 = vpack.c.bf16 %v2609_v43, %v2607_v22 }
 0x808   :  { %2476 = vst [vmem:[#allocation2 + $0x48] sm:$0xff] %v11519_v16  ;;  %2496 = vst [vmem:[#allocation2 + $0x58] sm:$0xff] %v2486_v36  ;;  %2978 = vmatmul.mubr.f32.gmra.mrb[16].mxu0 %v2511_v49  ;;  %v7308_v61 = vpack.c.bf16 %v2614_v56, %v2612_v54  ;;  %v2611_v62 = vld [vmem:[%s13011_s3 + $0x2c0] sm:$0xff]  ;;  %v2613_v4 = vld [vmem:[%s13011_s3 + $0x2d0] sm:$0xff] }
 0x809   :  { %2498 = vst [vmem:[#allocation2 + $0xb8] sm:$0xf] %v2490_v50  ;;  %3048 = vmatprep.mubr.f32.mxu0 %v2428_v30  ;;  %7295 = vmatpush1.bf16.msra.mxu0 %v7294_v14  ;;  %v2616_v5 = vld [vmem:[%s13011_s3 + $0x2e8] sm:$0xff]  ;;  %v2618_v7 = vld [vmem:[%s13011_s3 + $0x2f8] sm:$0xff]  ;;  %v7310_v8 = vpack.c.bf16 %v2613_v4, %v2611_v62  ;;  %v2615_v10 = vld [vmem:[%s13011_s3 + $0x2e0] sm:$0xff] }
 0x80a   :  { %7297 = vmatprep.subr.bf16.mxu0 %v7296_v44  ;;  %v7312_v9 = vpack.c.bf16 %v2618_v7, %v2616_v5  ;;  %v2617_v63 = vld [vmem:[%s13011_s3 + $0x2f0] sm:$0xff]  ;;  %v2620_v17 = vld [vmem:[%s13011_s3 + $0x308] sm:$0xff]  ;;  %v2622_v2 = vld [vmem:[%s13011_s3 + $0x318] sm:$0xff] }
 0x80b   :  { %v7314_v12 = vpack.c.bf16 %v2617_v63, %v2615_v10  ;;  %v7316_v19 = vpack.c.bf16 %v2622_v2, %v2620_v17  ;;  %v2619_v28 = vld [vmem:[%s13011_s3 + $0x300] sm:$0xff]  ;;  %v2621_v25 = vld [vmem:[%s13011_s3 + $0x310] sm:$0xff]  ;;  %v2624_v20 = vld [vmem:[%s13011_s3 + $0x328] sm:$0xff] }
 0x80c   :  { %v2626_v47 = vld [vmem:[%s13011_s3 + $0x338] sm:$0xff]  ;;  %v7318_v35 = vpack.c.bf16 %v2621_v25, %v2619_v28  ;;  %v2623_v59 = vld [vmem:[%s13011_s3 + $0x320] sm:$0xff]  ;;  %v2625_v15 = vld [vmem:[%s13011_s3 + $0x330] sm:$0xff] }
 0x80d   :  { %7299 = vmatpush1.bf16.msra.mxu0 %v7298_v51  ;;  %v7320_v1 = vpack.c.bf16 %v2626_v47, %v2624_v20  ;;  %v2628_v58 = vld [vmem:[%s13011_s3 + $0x348] sm:$0xff]  ;;  %v2630_v27 = vld [vmem:[%s13011_s3 + $0x358] sm:$0xff]  ;;  %v7322_v29 = vpack.c.bf16 %v2625_v15, %v2623_v59  ;;  %v2627_v30 = vld [vmem:[%s13011_s3 + $0x340] sm:$0xff] }
 0x80e   :  { %7301 = vmatprep.subr.bf16.mxu0 %v7300_v38  ;;  %v7324_v23 = vpack.c.bf16 %v2630_v27, %v2628_v58  ;;  %v2629_v31 = vld [vmem:[%s13011_s3 + $0x350] sm:$0xff]  ;;  %v2632_v32 = vld [vmem:[%s13011_s3 + $0x368] sm:$0xff]  ;;  %v2634_v26 = vld [vmem:[%s13011_s3 + $0x378] sm:$0xff] }
 0x80f   :  { %v7326_v21 = vpack.c.bf16 %v2629_v31, %v2627_v30  ;;  %v7328_v14 = vpack.c.bf16 %v2634_v26, %v2632_v32  ;;  %v2631_v6 = vld [vmem:[%s13011_s3 + $0x360] sm:$0xff]  ;;  %v2633_v44 = vld [vmem:[%s13011_s3 + $0x370] sm:$0xff]  ;;  %v2636_v0 = vld [vmem:[%s13011_s3 + $0x388] sm:$0xff] }
 0x810   :  { %v2638_v33 = vld [vmem:[%s13011_s3 + $0x398] sm:$0xff]  ;;  %v7330_v36 = vpack.c.bf16 %v2633_v44, %v2631_v6  ;;  %v2635_v49 = vld [vmem:[%s13011_s3 + $0x380] sm:$0xff]  ;;  %v2641_v60 = vld [vmem:[%s13011_s3 + $0x3b0] sm:$0xff] }
 0x811   :  { %7303 = vmatpush1.bf16.msra.mxu0 %v7302_v40  ;;  %v7332_v50 = vpack.c.bf16 %v2638_v33, %v2636_v0  ;;  %v2642_v51 = vld [vmem:[%s13011_s3 + $0x3b8] sm:$0xff]  ;;  %v7334_v38 = vpack.c.bf16 %v2637_v37, %v2635_v49  ;;  %v2639_v53 = vld [vmem:[%s13011_s3 + $0x3a0] sm:$0xff]  ;;  %v2644_v3 = vld [vmem:[%s13011_s3 + $0x3c8] sm:$0xff] }
 0x812   :  { %7305 = vmatprep.subr.bf16.mxu0 %v7304_v41  ;;  %v7336_v52 = vpack.c.bf16 %v2642_v51, %v2640_v45  ;;  %v2646_v40 = vld [vmem:[%s13011_s3 + $0x3d8] sm:$0xff]  ;;  %v7338_v41 = vpack.c.bf16 %v2641_v60, %v2639_v53  ;;  %v2643_v43 = vld [vmem:[%s13011_s3 + $0x3c0] sm:$0xff]  ;;  %v2645_v54 = vld [vmem:[%s13011_s3 + $0x3d0] sm:$0xff] }
 0x813   :  { %v7340_v22 = vpack.c.bf16 %v2646_v40, %v2644_v3  ;;  %v2648_v56 = vld [vmem:[%s13011_s3 + $0x3e8] sm:$0xff]  ;;  %v2647_v4 = vld [vmem:[%s13011_s3 + $0x3e0] sm:$0xff]  ;;  %v2649_v5 = vld [vmem:[%s13011_s3 + $0x3f0] sm:$0xff] }
 0x814   :  { %v2652_v7 = vld [vmem:[%s13011_s3 + $0x408] sm:$0xff]  ;;  %v2651_v63 = vld [vmem:[%s13011_s3 + $0x400] sm:$0xff]  ;;  %v2653_v17 = vld [vmem:[%s13011_s3 + $0x410] sm:$0xff] }
 0x815   :  { %7307 = vmatpush1.bf16.msra.mxu0 %v7306_v57  ;;  %v2650_v57 = vld [vmem:[%s13011_s3 + $0x3f8] sm:$0xff]  ;;  %v2656_v2 = vld [vmem:[%s13011_s3 + $0x428] sm:$0xff]  ;;  %v2655_v25 = vld [vmem:[%s13011_s3 + $0x420] sm:$0xff] }
 0x816   :  { %7309 = vmatprep.subr.bf16.mxu0 %v7308_v61  ;;  %v7342_v61 = vpack.c.bf16 %v2645_v54, %v2643_v43  ;;  %v7344_v62 = vpack.c.bf16 %v2650_v57, %v2648_v56  ;;  %v2657_v20 = vld [vmem:[%s13011_s3 + $0x430] sm:$0xff]  ;;  %v2660_v47 = vld [vmem:[%s13011_s3 + $0x448] sm:$0xff]  ;;  %v2659_v58 = vld [vmem:[%s13011_s3 + $0x440] sm:$0xff] }
 0x817   :  { %v7354_v59 = vpack.c.bf16 %v2657_v20, %v2655_v25  ;;  %v2661_v27 = vld [vmem:[%s13011_s3 + $0x450] sm:$0xff]  ;;  %v2663_v32 = vld [vmem:[%s13011_s3 + $0x460] sm:$0xff]  ;;  %v2672_v33 = vld [vmem:[%s13011_s3 + $0x4a8] sm:$0xff] }
 0x818   :  { %v7358_v30 = vpack.c.bf16 %v2661_v27, %v2659_v58  ;;  %v2665_v26 = vld [vmem:[%s13011_s3 + $0x470] sm:$0xff]  ;;  %v2667_v44 = vld [vmem:[%s13011_s3 + $0x480] sm:$0xff]  ;;  %v2676_v51 = vld [vmem:[%s13011_s3 + $0x4c8] sm:$0xff] }
 0x819   :  { %7311 = vmatpush1.bf16.msra.mxu0 %v7310_v8  ;;  %v2654_v8 = vld [vmem:[%s13011_s3 + $0x418] sm:$0xff]  ;;  %v2669_v0 = vld [vmem:[%s13011_s3 + $0x490] sm:$0xff]  ;;  %v2671_v37 = vld [vmem:[%s13011_s3 + $0x4a0] sm:$0xff] }
 0x81a   :  { %7313 = vmatprep.subr.bf16.mxu0 %v7312_v9  ;;  %v7346_v9 = vpack.c.bf16 %v2649_v5, %v2647_v4  ;;  %v7348_v10 = vpack.c.bf16 %v2654_v8, %v2652_v7  ;;  %v2673_v45 = vld [vmem:[%s13011_s3 + $0x4b0] sm:$0xff]  ;;  %v2675_v60 = vld [vmem:[%s13011_s3 + $0x4c0] sm:$0xff]  ;;  %v2680_v40 = vld [vmem:[%s13011_s3 + $0x4e8] sm:$0xff] }
 0x81b   :  { %v2677_v3 = vld [vmem:[%s13011_s3 + $0x4d0] sm:$0xff]  ;;  %v2679_v54 = vld [vmem:[%s13011_s3 + $0x4e0] sm:$0xff]  ;;  %v2684_v57 = vld [vmem:[%s13011_s3 + $0x508] sm:$0xff] }
 0x81c   :  { %v2681_v56 = vld [vmem:[%s13011_s3 + $0x4f0] sm:$0xff]  ;;  %v2683_v5 = vld [vmem:[%s13011_s3 + $0x500] sm:$0xff]  ;;  %v2688_v8 = vld [vmem:[%s13011_s3 + $0x528] sm:$0xff] }
 0x81d   :  { %7315 = vmatpush1.bf16.msra.mxu0 %v7314_v12  ;;  %v2658_v12 = vld [vmem:[%s13011_s3 + $0x438] sm:$0xff]  ;;  %v2685_v7 = vld [vmem:[%s13011_s3 + $0x510] sm:$0xff]  ;;  %v2691_v20 = vld [vmem:[%s13011_s3 + $0x540] sm:$0xff] }
 0x81e   :  { %7317 = vmatprep.subr.bf16.mxu0 %v7316_v19  ;;  %v7350_v19 = vpack.c.bf16 %v2653_v17, %v2651_v63  ;;  %v7352_v28 = vpack.c.bf16 %v2658_v12, %v2656_v2  ;;  %v2687_v17 = vld [vmem:[%s13011_s3 + $0x520] sm:$0xff]  ;;  %v2689_v2 = vld [vmem:[%s13011_s3 + $0x530] sm:$0xff]  ;;  %v2692_v12 = vld [vmem:[%s13011_s3 + $0x548] sm:$0xff] }
 0x81f   :  { %v2695_v58 = vld [vmem:[%s13011_s3 + $0x560] sm:$0xff]  ;;  %v2697_v27 = vld [vmem:[%s13011_s3 + $0x570] sm:$0xff] }
 0x821   :  { %7319 = vmatpush1.bf16.msra.mxu0 %v7318_v35  ;;  %v2662_v35 = vld [vmem:[%s13011_s3 + $0x458] sm:$0xff] }
 0x822   :  { %7321 = vmatprep.subr.bf16.mxu0 %v7320_v1  ;;  %v2514_v1 = vld [vmem:[#allocation2 + $0x78] sm:$0xf]  ;;  %v7356_v15 = vpack.c.bf16 %v2662_v35, %v2660_v47  ;;  %v2693_v47 = vld [vmem:[%s13011_s3 + $0x550] sm:$0xff]  ;;  %v2696_v35 = vld [vmem:[%s13011_s3 + $0x568] sm:$0xff] }
 0x825   :  { %7323 = vmatpush1.bf16.msra.mxu0 %v7322_v29  ;;  %v2513_v29 = vld [vmem:[#allocation2 + $0x70] sm:$0xf] }
 0x826   :  { %7325 = vmatprep.subr.bf16.mxu0 %v7324_v23  ;;  %v2664_v23 = vld [vmem:[%s13011_s3 + $0x468] sm:$0xff] }
 0x829   :  { %7327 = vmatpush1.bf16.msra.mxu0 %v7326_v21  ;;  %v2668_v21 = vld [vmem:[%s13011_s3 + $0x488] sm:$0xff] }
 0x82a   :  { %7329 = vmatprep.subr.bf16.mxu0 %v7328_v14  ;;  %v2670_v14 = vld [vmem:[%s13011_s3 + $0x498] sm:$0xff] }
 0x82b   :  { %v7364_v6 = vpack.c.bf16 %v2670_v14, %v2668_v21  ;;  %v2706_v21 = vld [vmem:[%s13011_s3 + $0x5b8] sm:$0xff] }
 0x82d   :  { %7331 = vmatpush1.bf16.msra.mxu0 %v7330_v36  ;;  %v2674_v36 = vld [vmem:[%s13011_s3 + $0x4b8] sm:$0xff] }
 0x82e   :  { %7333 = vmatprep.subr.bf16.mxu0 %v7332_v50  ;;  %v7366_v50 = vpack.c.bf16 %v2669_v0, %v2667_v44  ;;  %v7368_v49 = vpack.c.bf16 %v2674_v36, %v2672_v33  ;;  %v2705_v44 = vld [vmem:[%s13011_s3 + $0x5b0] sm:$0xff]  ;;  %v2708_v0 = vld [vmem:[%s13011_s3 + $0x5c8] sm:$0xff]  ;;  %v2710_v33 = vld [vmem:[%s13011_s3 + $0x5d8] sm:$0xff] }
 0x831   :  { %7335 = vmatpush1.bf16.msra.mxu0 %v7334_v38  ;;  %v2678_v38 = vld [vmem:[%s13011_s3 + $0x4d8] sm:$0xff] }
 0x832   :  { %7337 = vmatprep.subr.bf16.mxu0 %v7336_v52  ;;  %v7370_v52 = vpack.c.bf16 %v2673_v45, %v2671_v37  ;;  %v7372_v53 = vpack.c.bf16 %v2678_v38, %v2676_v51  ;;  %v2709_v37 = vld [vmem:[%s13011_s3 + $0x5d0] sm:$0xff]  ;;  %v2712_v45 = vld [vmem:[%s13011_s3 + $0x5e8] sm:$0xff]  ;;  %v2714_v51 = vld [vmem:[%s13011_s3 + $0x5f8] sm:$0xff] }
 0x835   :  { %7339 = vmatpush1.bf16.msra.mxu0 %v7338_v41  ;;  %v2682_v41 = vld [vmem:[%s13011_s3 + $0x4f8] sm:$0xff] }
 0x836   :  { %7341 = vmatprep.subr.bf16.mxu0 %v7340_v22  ;;  %v7374_v22 = vpack.c.bf16 %v2677_v3, %v2675_v60  ;;  %v7376_v43 = vpack.c.bf16 %v2682_v41, %v2680_v40  ;;  %v2713_v60 = vld [vmem:[%s13011_s3 + $0x5f0] sm:$0xff]  ;;  %v2716_v3 = vld [vmem:[%s13011_s3 + $0x608] sm:$0xff]  ;;  %v2718_v40 = vld [vmem:[%s13011_s3 + $0x618] sm:$0xff] }
 0x839   :  { %7343 = vmatpush1.bf16.msra.mxu0 %v7342_v61  ;;  %v2686_v61 = vld [vmem:[%s13011_s3 + $0x518] sm:$0xff] }
 0x83a   :  { %7345 = vmatprep.subr.bf16.mxu0 %v7344_v62  ;;  %v7378_v62 = vpack.c.bf16 %v2681_v56, %v2679_v54  ;;  %v7380_v4 = vpack.c.bf16 %v2686_v61, %v2684_v57  ;;  %v2717_v54 = vld [vmem:[%s13011_s3 + $0x610] sm:$0xff]  ;;  %v2720_v56 = vld [vmem:[%s13011_s3 + $0x628] sm:$0xff]  ;;  %v2722_v57 = vld [vmem:[%s13011_s3 + $0x638] sm:$0xff] }
 0x83d   :  { %7347 = vmatpush1.bf16.msra.mxu0 %v7346_v9  ;;  %v2690_v9 = vld [vmem:[%s13011_s3 + $0x538] sm:$0xff] }
 0x83e   :  { %7349 = vmatprep.subr.bf16.mxu0 %v7348_v10  ;;  %v7382_v10 = vpack.c.bf16 %v2685_v7, %v2683_v5  ;;  %v7384_v63 = vpack.c.bf16 %v2690_v9, %v2688_v8  ;;  %v2721_v5 = vld [vmem:[%s13011_s3 + $0x630] sm:$0xff]  ;;  %v2724_v7 = vld [vmem:[%s13011_s3 + $0x648] sm:$0xff]  ;;  %v2726_v8 = vld [vmem:[%s13011_s3 + $0x658] sm:$0xff] }
 0x83f   :  { %v2516_v9 = vld [vmem:[#allocation2 + $0x88] sm:$0xf] }
 0x840   :  { %3049 = vmatmul.mubr.f32.vlgmr.msra.gmra.mrb[14].mxu0 %v11470_v11  ;;  %v2666_v11 = vld [vmem:[%s13011_s3 + $0x478] sm:$0xff] }
 0x841   :  { %3054 = vmatprep.mubr.f32.mxu0 %v2514_v1  ;;  %7351 = vmatpush1.bf16.msra.mxu0 %v7350_v19  ;;  %v7360_v31 = vpack.c.bf16 %v2666_v11, %v2664_v23  ;;  %v2694_v19 = vld [vmem:[%s13011_s3 + $0x558] sm:$0xff]  ;;  %v7394_v11 = vpack.c.bf16 %v2697_v27, %v2695_v58  ;;  %v2733_v58 = vld [vmem:[%s13011_s3 + $0x690] sm:$0xff]  ;;  %v2736_v27 = vld [vmem:[%s13011_s3 + $0x6a8] sm:$0xff] }
 0x842   :  { %7353 = vmatprep.subr.bf16.mxu0 %v7352_v28  ;;  %v7386_v28 = vpack.c.bf16 %v2689_v2, %v2687_v17  ;;  %v7388_v25 = vpack.c.bf16 %v2694_v19, %v2692_v12  ;;  %v2698_v1 = vld [vmem:[%s13011_s3 + $0x578] sm:$0xff]  ;;  %v2723_v17 = vld [vmem:[%s13011_s3 + $0x640] sm:$0xff]  ;;  %v2725_v2 = vld [vmem:[%s13011_s3 + $0x650] sm:$0xff] }
 0x843   :  { %v2702_v23 = vld [vmem:[%s13011_s3 + $0x598] sm:$0xff]  ;;  %v2515_v12 = vld [vmem:[#allocation2 + $0x80] sm:$0xf]  ;;  %v2728_v19 = vld [vmem:[%s13011_s3 + $0x668] sm:$0xff] }
 0x844   :  { %3055 = vmatmul.mubr.f32.gmra.mrb[16].mxu0 %v2513_v29  ;;  %v2700_v29 = vld [vmem:[%s13011_s3 + $0x588] sm:$0xff] }
 0x845   :  { %7355 = vmatpush1.bf16.msra.mxu0 %v7354_v59  ;;  %3125 = vmatprep.mubr.f32.mxu0 %v11505_v39  ;;  %v7362_v39 = vpack.c.bf16 %v2665_v26, %v2663_v32  ;;  %v7390_v59 = vpack.c.bf16 %v2693_v47, %v2691_v20  ;;  %v2701_v32 = vld [vmem:[%s13011_s3 + $0x590] sm:$0xff]  ;;  %v2704_v26 = vld [vmem:[%s13011_s3 + $0x5a8] sm:$0xff]  ;;  %v2727_v20 = vld [vmem:[%s13011_s3 + $0x660] sm:$0xff] }
 0x846   :  { %7357 = vmatprep.subr.bf16.mxu0 %v7356_v15  ;;  %v7392_v15 = vpack.c.bf16 %v2698_v1, %v2696_v35  ;;  %v2729_v47 = vld [vmem:[%s13011_s3 + $0x670] sm:$0xff]  ;;  %v2732_v35 = vld [vmem:[%s13011_s3 + $0x688] sm:$0xff]  ;;  %v2734_v1 = vld [vmem:[%s13011_s3 + $0x698] sm:$0xff] }
 0x849   :  { %7359 = vmatpush1.bf16.msra.mxu0 %v7358_v30  ;;  %v7396_v30 = vpack.c.bf16 %v2702_v23, %v2700_v29  ;;  %v2738_v29 = vld [vmem:[%s13011_s3 + $0x6b8] sm:$0xff] }
 0x84a   :  { %7361 = vmatprep.subr.bf16.mxu0 %v7360_v31  ;;  %v2699_v31 = vld [vmem:[%s13011_s3 + $0x580] sm:$0xff] }
 0x84b   :  { %v7398_v14 = vpack.c.bf16 %v2701_v32, %v2699_v31  ;;  %v2737_v31 = vld [vmem:[%s13011_s3 + $0x6b0] sm:$0xff]  ;;  %v2740_v32 = vld [vmem:[%s13011_s3 + $0x6c8] sm:$0xff] }
 0x84d   :  { %7363 = vmatpush1.bf16.msra.mxu0 %v7362_v39  ;;  %v7400_v39 = vpack.c.bf16 %v2706_v21, %v2704_v26  ;;  %v2742_v26 = vld [vmem:[%s13011_s3 + $0x6d8] sm:$0xff] }
 0x84e   :  { %7365 = vmatprep.subr.bf16.mxu0 %v7364_v6  ;;  %v2703_v6 = vld [vmem:[%s13011_s3 + $0x5a0] sm:$0xff] }
 0x84f   :  { %v7402_v36 = vpack.c.bf16 %v2705_v44, %v2703_v6  ;;  %v2741_v6 = vld [vmem:[%s13011_s3 + $0x6d0] sm:$0xff]  ;;  %v2744_v44 = vld [vmem:[%s13011_s3 + $0x6e8] sm:$0xff] }
 0x851   :  { %7367 = vmatpush1.bf16.msra.mxu0 %v7366_v50  ;;  %v7404_v50 = vpack.c.bf16 %v2710_v33, %v2708_v0  ;;  %v2746_v0 = vld [vmem:[%s13011_s3 + $0x6f8] sm:$0xff] }
 0x852   :  { %7369 = vmatprep.subr.bf16.mxu0 %v7368_v49  ;;  %v2707_v49 = vld [vmem:[%s13011_s3 + $0x5c0] sm:$0xff] }
 0x853   :  { %v7406_v38 = vpack.c.bf16 %v2709_v37, %v2707_v49  ;;  %v2745_v49 = vld [vmem:[%s13011_s3 + $0x6f0] sm:$0xff]  ;;  %v2748_v37 = vld [vmem:[%s13011_s3 + $0x708] sm:$0xff] }
 0x855   :  { %7371 = vmatpush1.bf16.msra.mxu0 %v7370_v52  ;;  %v7408_v52 = vpack.c.bf16 %v2714_v51, %v2712_v45  ;;  %v2750_v45 = vld [vmem:[%s13011_s3 + $0x718] sm:$0xff] }
 0x856   :  { %7373 = vmatprep.subr.bf16.mxu0 %v7372_v53  ;;  %v2711_v53 = vld [vmem:[%s13011_s3 + $0x5e0] sm:$0xff] }
 0x857   :  { %v7410_v41 = vpack.c.bf16 %v2713_v60, %v2711_v53  ;;  %v2749_v53 = vld [vmem:[%s13011_s3 + $0x710] sm:$0xff]  ;;  %v2752_v60 = vld [vmem:[%s13011_s3 + $0x728] sm:$0xff] }
 0x859   :  { %7375 = vmatpush1.bf16.msra.mxu0 %v7374_v22  ;;  %v7412_v22 = vpack.c.bf16 %v2718_v40, %v2716_v3  ;;  %v2754_v3 = vld [vmem:[%s13011_s3 + $0x738] sm:$0xff] }
 0x85a   :  { %7377 = vmatprep.subr.bf16.mxu0 %v7376_v43  ;;  %v2715_v43 = vld [vmem:[%s13011_s3 + $0x600] sm:$0xff] }
 0x85b   :  { %v7414_v61 = vpack.c.bf16 %v2717_v54, %v2715_v43  ;;  %v2753_v43 = vld [vmem:[%s13011_s3 + $0x730] sm:$0xff]  ;;  %v2756_v54 = vld [vmem:[%s13011_s3 + $0x748] sm:$0xff] }
 0x85d   :  { %7379 = vmatpush1.bf16.msra.mxu0 %v7378_v62  ;;  %v7416_v62 = vpack.c.bf16 %v2722_v57, %v2720_v56  ;;  %v2758_v56 = vld [vmem:[%s13011_s3 + $0x758] sm:$0xff] }
 0x85e   :  { %7381 = vmatprep.subr.bf16.mxu0 %v7380_v4  ;;  %v2719_v4 = vld [vmem:[%s13011_s3 + $0x620] sm:$0xff] }
 0x861   :  { %7383 = vmatpush1.bf16.msra.mxu0 %v7382_v10  ;;  %v7418_v10 = vpack.c.bf16 %v2721_v5, %v2719_v4  ;;  %v2757_v4 = vld [vmem:[%s13011_s3 + $0x750] sm:$0xff]  ;;  %v2760_v5 = vld [vmem:[%s13011_s3 + $0x768] sm:$0xff] }
 0x862   :  { %7385 = vmatprep.subr.bf16.mxu0 %v7384_v63  ;;  %v7420_v63 = vpack.c.bf16 %v2726_v8, %v2724_v7  ;;  %v2762_v7 = vld [vmem:[%s13011_s3 + $0x778] sm:$0xff] }
 0x865   :  { %7387 = vmatpush1.bf16.msra.mxu0 %v7386_v28  ;;  %v7422_v28 = vpack.c.bf16 %v2725_v2, %v2723_v17  ;;  %v2764_v17 = vld [vmem:[%s13011_s3 + $0x788] sm:$0xff]  ;;  %v2766_v2 = vld [vmem:[%s13011_s3 + $0x798] sm:$0xff] }
 0x866   :  { %7389 = vmatprep.subr.bf16.mxu0 %v7388_v25 }
 0x869   :  { %7391 = vmatpush1.bf16.msra.mxu0 %v7390_v59  ;;  %v7428_v59 = vpack.c.bf16 %v2734_v1, %v2732_v35  ;;  %v2767_v1 = vld [vmem:[%s13011_s3 + $0x7a0] sm:$0xff] }
 0x86a   :  { %7393 = vmatprep.subr.bf16.mxu0 %v7392_v15  ;;  %v2731_v15 = vld [vmem:[%s13011_s3 + $0x680] sm:$0xff] }
 0x86b   :  { %v7430_v23 = vpack.c.bf16 %v2733_v58, %v2731_v15  ;;  %v2774_v15 = vld [vmem:[%s13011_s3 + $0x7d8] sm:$0xff] }
 0x86d   :  { %7395 = vmatpush1.bf16.msra.mxu0 %v7394_v11  ;;  %v7432_v11 = vpack.c.bf16 %v2738_v29, %v2736_v27  ;;  %v2771_v29 = vld [vmem:[%s13011_s3 + $0x7c0] sm:$0xff] }
 0x86e   :  { %7397 = vmatprep.subr.bf16.mxu0 %v7396_v30  ;;  %v2735_v30 = vld [vmem:[%s13011_s3 + $0x6a0] sm:$0xff] }
 0x86f   :  { %v7434_v21 = vpack.c.bf16 %v2737_v31, %v2735_v30  ;;  %v2778_v30 = vld [vmem:[%s13011_s3 + $0x7f8] sm:$0xff] }
 0x871   :  { %7399 = vmatpush1.bf16.msra.mxu0 %v7398_v14  ;;  %v7436_v14 = vpack.c.bf16 %v2742_v26, %v2740_v32  ;;  %v2775_v26 = vld [vmem:[%s13011_s3 + $0x7e0] sm:$0xff] }
 0x872   :  { %7401 = vmatprep.subr.bf16.mxu0 %v7400_v39  ;;  %v2739_v39 = vld [vmem:[%s13011_s3 + $0x6c0] sm:$0xff] }
 0x873   :  { %v7438_v33 = vpack.c.bf16 %v2741_v6, %v2739_v39  ;;  %v2782_v39 = vld [vmem:[%s13011_s3 + $0x818] sm:$0xff] }
 0x875   :  { %7403 = vmatpush1.bf16.msra.mxu0 %v7402_v36  ;;  %v7440_v36 = vpack.c.bf16 %v2746_v0, %v2744_v44  ;;  %v2779_v0 = vld [vmem:[%s13011_s3 + $0x800] sm:$0xff] }
 0x876   :  { %7405 = vmatprep.subr.bf16.mxu0 %v7404_v50  ;;  %v2743_v50 = vld [vmem:[%s13011_s3 + $0x6e0] sm:$0xff] }
 0x877   :  { %v7442_v51 = vpack.c.bf16 %v2745_v49, %v2743_v50  ;;  %v2786_v50 = vld [vmem:[%s13011_s3 + $0x838] sm:$0xff] }
 0x879   :  { %7407 = vmatpush1.bf16.msra.mxu0 %v7406_v38  ;;  %v7444_v38 = vpack.c.bf16 %v2750_v45, %v2748_v37  ;;  %v2783_v45 = vld [vmem:[%s13011_s3 + $0x820] sm:$0xff] }
 0x87a   :  { %7409 = vmatprep.subr.bf16.mxu0 %v7408_v52  ;;  %v2747_v52 = vld [vmem:[%s13011_s3 + $0x700] sm:$0xff] }
 0x87b   :  { %v7446_v40 = vpack.c.bf16 %v2749_v53, %v2747_v52  ;;  %v2790_v52 = vld [vmem:[%s13011_s3 + $0x858] sm:$0xff] }
 0x87c   :  { %v2518_v53 = vld [vmem:[#allocation2 + $0x98] sm:$0xf] }
 0x87d   :  { %7411 = vmatpush1.bf16.msra.mxu0 %v7410_v41  ;;  %v7448_v41 = vpack.c.bf16 %v2754_v3, %v2752_v60 }
 0x87e   :  { %7413 = vmatprep.subr.bf16.mxu0 %v7412_v22  ;;  %v2751_v22 = vld [vmem:[%s13011_s3 + $0x720] sm:$0xff] }
 0x87f   :  { %v7450_v57 = vpack.c.bf16 %v2753_v43, %v2751_v22  ;;  %v2517_v22 = vld [vmem:[#allocation2 + $0x90] sm:$0xf]  ;;  %v2792_v43 = vld [vmem:[%s13011_s3 + $0x868] sm:$0xff] }
 0x880   :  { %3126 = vmatmul.mubr.f32.vlgmr.msra.gmra.mrb[14].mxu0 %v11473_v13  ;;  %v2730_v13 = vld [vmem:[%s13011_s3 + $0x678] sm:$0xff] }
 0x881   :  { %3131 = vmatprep.mubr.f32.mxu0 %v2516_v9  ;;  %7415 = vmatpush1.bf16.msra.mxu0 %v7414_v61  ;;  %v7424_v25 = vpack.c.bf16 %v2730_v13, %v2728_v19  ;;  %v7452_v61 = vpack.c.bf16 %v2758_v56, %v2756_v54  ;;  %v7456_v9 = vpack.c.bf16 %v2762_v7, %v2760_v5  ;;  %v2763_v13 = vld [vmem:[%s13011_s3 + $0x780] sm:$0xff]  ;;  %v3408_v5 = vld [vmem:[%s13014_s6 + $0x208] sm:$0xff]  ;;  %v3425_v7 = vld [vmem:[%s13014_s6 + $0x290] sm:$0xff] }
 0x882   :  { %7417 = vmatprep.subr.bf16.mxu0 %v7416_v62  ;;  %v2755_v62 = vld [vmem:[%s13011_s3 + $0x740] sm:$0xff]  ;;  %v7460_v19 = vpack.c.bf16 %v2766_v2, %v2764_v17  ;;  %v3409_v17 = vld [vmem:[%s13014_s6 + $0x210] sm:$0xff]  ;;  %v3410_v2 = vld [vmem:[%s13014_s6 + $0x218] sm:$0xff] }
 0x883   :  { %v7454_v8 = vpack.c.bf16 %v2757_v4, %v2755_v62  ;;  %v2791_v54 = vld [vmem:[%s13011_s3 + $0x860] sm:$0xff] }
 0x884   :  { %3132 = vmatmul.mubr.f32.gmra.mrb[16].mxu0 %v2515_v12  ;;  %v3423_v56 = vld [vmem:[%s13014_s6 + $0x280] sm:$0xff] }
 0x885   :  { %7419 = vmatpush1.bf16.msra.mxu0 %v7418_v10  ;;  %3202 = vmatprep.mubr.f32.mxu0 %v11511_v34  ;;  %v7426_v34 = vpack.c.bf16 %v2729_v47, %v2727_v20  ;;  %v2759_v10 = vld [vmem:[%s13011_s3 + $0x760] sm:$0xff]  ;;  %v2770_v20 = vld [vmem:[%s13011_s3 + $0x7b8] sm:$0xff] }
 0x886   :  { %7421 = vmatprep.subr.bf16.mxu0 %v7420_v63  ;;  %v2761_v63 = vld [vmem:[%s13011_s3 + $0x770] sm:$0xff] }
 0x887   :  { %v7458_v12 = vpack.c.bf16 %v2761_v63, %v2759_v10 }
 0x889   :  { %7423 = vmatpush1.bf16.msra.mxu0 %v7422_v28  ;;  %v2765_v28 = vld [vmem:[%s13011_s3 + $0x790] sm:$0xff] }
 0x88a   :  { %7425 = vmatprep.subr.bf16.mxu0 %v7424_v25  ;;  %v2768_v25 = vld [vmem:[%s13011_s3 + $0x7a8] sm:$0xff]  ;;  %v7462_v47 = vpack.c.bf16 %v2765_v28, %v2763_v13  ;;  %v7610_v13 = vpack.c.bf16 %v3410_v2, %v3409_v17 }
 0x88b   :  { %v7464_v35 = vpack.c.bf16 %v2770_v20, %v2768_v25  ;;  %v2795_v20 = vld [vmem:[%s13011_s3 + $0x880] sm:$0xff] }
 0x88d   :  { %7427 = vmatpush1.bf16.msra.mxu0 %v7426_v34  ;;  %v2769_v34 = vld [vmem:[%s13011_s3 + $0x7b0] sm:$0xff] }
 0x88e   :  { %7429 = vmatprep.subr.bf16.mxu0 %v7428_v59  ;;  %v2772_v59 = vld [vmem:[%s13011_s3 + $0x7c8] sm:$0xff]  ;;  %v7466_v58 = vpack.c.bf16 %v2769_v34, %v2767_v1  ;;  %v2802_v1 = vld [vmem:[%s13011_s3 + $0x8b8] sm:$0xff] }
 0x88f   :  { %v7468_v27 = vpack.c.bf16 %v2774_v15, %v2772_v59  ;;  %v2799_v15 = vld [vmem:[%s13011_s3 + $0x8a0] sm:$0xff] }
 0x891   :  { %7431 = vmatpush1.bf16.msra.mxu0 %v7430_v23  ;;  %v2773_v23 = vld [vmem:[%s13011_s3 + $0x7d0] sm:$0xff] }
 0x892   :  { %7433 = vmatprep.subr.bf16.mxu0 %v7432_v11  ;;  %v2776_v11 = vld [vmem:[%s13011_s3 + $0x7e8] sm:$0xff]  ;;  %v7470_v31 = vpack.c.bf16 %v2773_v23, %v2771_v29  ;;  %v2806_v29 = vld [vmem:[%s13011_s3 + $0x8d8] sm:$0xff] }
 0x893   :  { %v7472_v32 = vpack.c.bf16 %v2778_v30, %v2776_v11  ;;  %v2803_v30 = vld [vmem:[%s13011_s3 + $0x8c0] sm:$0xff] }
 0x895   :  { %7435 = vmatpush1.bf16.msra.mxu0 %v7434_v21  ;;  %v2777_v21 = vld [vmem:[%s13011_s3 + $0x7f0] sm:$0xff] }
 0x896   :  { %7437 = vmatprep.subr.bf16.mxu0 %v7436_v14  ;;  %v2780_v14 = vld [vmem:[%s13011_s3 + $0x808] sm:$0xff]  ;;  %v7474_v6 = vpack.c.bf16 %v2777_v21, %v2775_v26  ;;  %v2810_v26 = vld [vmem:[%s13011_s3 + $0x8f8] sm:$0xff] }
 0x897   :  { %v7476_v44 = vpack.c.bf16 %v2782_v39, %v2780_v14  ;;  %v2807_v39 = vld [vmem:[%s13011_s3 + $0x8e0] sm:$0xff] }
 0x899   :  { %7439 = vmatpush1.bf16.msra.mxu0 %v7438_v33  ;;  %v2781_v33 = vld [vmem:[%s13011_s3 + $0x810] sm:$0xff] }
 0x89a   :  { %7441 = vmatprep.subr.bf16.mxu0 %v7440_v36  ;;  %v2784_v36 = vld [vmem:[%s13011_s3 + $0x828] sm:$0xff]  ;;  %v7478_v49 = vpack.c.bf16 %v2781_v33, %v2779_v0  ;;  %v2814_v0 = vld [vmem:[%s13011_s3 + $0x918] sm:$0xff] }
 0x89b   :  { %v7480_v37 = vpack.c.bf16 %v2786_v50, %v2784_v36  ;;  %v2811_v50 = vld [vmem:[%s13011_s3 + $0x900] sm:$0xff] }
 0x89d   :  { %7443 = vmatpush1.bf16.msra.mxu0 %v7442_v51  ;;  %v2785_v51 = vld [vmem:[%s13011_s3 + $0x830] sm:$0xff] }
 0x89e   :  { %7445 = vmatprep.subr.bf16.mxu0 %v7444_v38  ;;  %v2788_v38 = vld [vmem:[%s13011_s3 + $0x848] sm:$0xff]  ;;  %v7482_v60 = vpack.c.bf16 %v2785_v51, %v2783_v45  ;;  %v2818_v45 = vld [vmem:[%s13011_s3 + $0x938] sm:$0xff] }
 0x89f   :  { %v7484_v3 = vpack.c.bf16 %v2790_v52, %v2788_v38  ;;  %v2815_v52 = vld [vmem:[%s13011_s3 + $0x920] sm:$0xff] }
 0x8a1   :  { %7447 = vmatpush1.bf16.msra.mxu0 %v7446_v40  ;;  %v2787_v40 = vld [vmem:[%s13011_s3 + $0x840] sm:$0xff] }
 0x8a2   :  { %7449 = vmatprep.subr.bf16.mxu0 %v7448_v41  ;;  %v2789_v41 = vld [vmem:[%s13011_s3 + $0x850] sm:$0xff] }
 0x8a3   :  { %v7486_v62 = vpack.c.bf16 %v2789_v41, %v2787_v40 }
 0x8a5   :  { %7451 = vmatpush1.bf16.msra.mxu0 %v7450_v57  ;;  %v3424_v57 = vld [vmem:[%s13014_s6 + $0x288] sm:$0xff] }
 0x8a6   :  { %7453 = vmatprep.subr.bf16.mxu0 %v7452_v61  ;;  %v3407_v61 = vld [vmem:[%s13014_s6 + $0x200] sm:$0xff]  ;;  %v7604_v4 = vpack.c.bf16 %v3424_v57, %v3423_v56 }
 0x8a7   :  { %v7606_v10 = vpack.c.bf16 %v3408_v5, %v3407_v61  ;;  %v2823_v61 = vld [vmem:[%s13011_s3 + $0x960] sm:$0xff]  ;;  %v2830_v5 = vld [vmem:[%s13011_s3 + $0x998] sm:$0xff] }
 0x8a8   :  { %7605 = vmatprep.subr.bf16.mxu1 %v7604_v4  ;;  %v2828_v4 = vld [vmem:[%s13011_s3 + $0x988] sm:$0xff] }
 0x8a9   :  { %7455 = vmatpush1.bf16.msra.mxu0 %v7454_v8  ;;  %v3426_v8 = vld [vmem:[%s13014_s6 + $0x298] sm:$0xff]  ;;  %7607 = vmatpush3.bf16.msra.mxu1 %v7606_v10  ;;  %v2832_v10 = vld [vmem:[%s13011_s3 + $0x9a8] sm:$0xff] }
 0x8aa   :  { %7457 = vmatprep.subr.bf16.mxu0 %v7456_v9  ;;  %v7608_v63 = vpack.c.bf16 %v3426_v8, %v3425_v7  ;;  %v7524_v8 = vpack.c.bf16 %v2830_v5, %v2828_v4  ;;  %v2866_v4 = vld [vmem:[%s13011_s3 + $0xab8] sm:$0xff] }
 0x8ac   :  { %7609 = vmatprep.subr.bf16.mxu1 %v7608_v63  ;;  %v2834_v63 = vld [vmem:[%s13011_s3 + $0x9b8] sm:$0xff] }
 0x8ad   :  { %7459 = vmatpush1.bf16.msra.mxu0 %v7458_v12  ;;  %v2796_v12 = vld [vmem:[%s13011_s3 + $0x888] sm:$0xff]  ;;  %7611 = vmatpush3.bf16.msra.mxu1 %v7610_v13  ;;  %v7528_v2 = vpack.c.bf16 %v2834_v63, %v2832_v10  ;;  %v2870_v10 = vld [vmem:[%s13011_s3 + $0xad8] sm:$0xff] }
 0x8ae   :  { %7461 = vmatprep.subr.bf16.mxu0 %v7460_v19  ;;  %v2798_v19 = vld [vmem:[%s13011_s3 + $0x898] sm:$0xff]  ;;  %v2836_v13 = vld [vmem:[%s13011_s3 + $0x9c8] sm:$0xff] }
 0x8af   :  { %v7492_v25 = vpack.c.bf16 %v2798_v19, %v2796_v12  ;;  %v2831_v12 = vld [vmem:[%s13011_s3 + $0x9a0] sm:$0xff]  ;;  %v2833_v19 = vld [vmem:[%s13011_s3 + $0x9b0] sm:$0xff] }
 0x8b1   :  { %7463 = vmatpush1.bf16.msra.mxu0 %v7462_v47  ;;  %v2797_v47 = vld [vmem:[%s13011_s3 + $0x890] sm:$0xff] }
 0x8b2   :  { %7465 = vmatprep.subr.bf16.mxu0 %v7464_v35  ;;  %v2800_v35 = vld [vmem:[%s13011_s3 + $0x8a8] sm:$0xff]  ;;  %v7494_v34 = vpack.c.bf16 %v2797_v47, %v2795_v20  ;;  %v2835_v47 = vld [vmem:[%s13011_s3 + $0x9c0] sm:$0xff] }
 0x8b3   :  { %v7496_v59 = vpack.c.bf16 %v2802_v1, %v2800_v35  ;;  %v2837_v35 = vld [vmem:[%s13011_s3 + $0x9d0] sm:$0xff]  ;;  %v2840_v1 = vld [vmem:[%s13011_s3 + $0x9e8] sm:$0xff] }
 0x8b5   :  { %7467 = vmatpush1.bf16.msra.mxu0 %v7466_v58  ;;  %v2801_v58 = vld [vmem:[%s13011_s3 + $0x8b0] sm:$0xff] }
 0x8b6   :  { %7469 = vmatprep.subr.bf16.mxu0 %v7468_v27  ;;  %v2804_v27 = vld [vmem:[%s13011_s3 + $0x8c8] sm:$0xff]  ;;  %v7498_v23 = vpack.c.bf16 %v2801_v58, %v2799_v15  ;;  %v2839_v58 = vld [vmem:[%s13011_s3 + $0x9e0] sm:$0xff] }
 0x8b7   :  { %v7500_v11 = vpack.c.bf16 %v2806_v29, %v2804_v27  ;;  %v2841_v27 = vld [vmem:[%s13011_s3 + $0x9f0] sm:$0xff]  ;;  %v2844_v29 = vld [vmem:[%s13011_s3 + $0xa08] sm:$0xff] }
 0x8b9   :  { %7471 = vmatpush1.bf16.msra.mxu0 %v7470_v31  ;;  %v2805_v31 = vld [vmem:[%s13011_s3 + $0x8d0] sm:$0xff] }
 0x8ba   :  { %7473 = vmatprep.subr.bf16.mxu0 %v7472_v32  ;;  %v2808_v32 = vld [vmem:[%s13011_s3 + $0x8e8] sm:$0xff]  ;;  %v7502_v21 = vpack.c.bf16 %v2805_v31, %v2803_v30  ;;  %v2843_v31 = vld [vmem:[%s13011_s3 + $0xa00] sm:$0xff] }
 0x8bb   :  { %v7504_v14 = vpack.c.bf16 %v2810_v26, %v2808_v32  ;;  %v2845_v32 = vld [vmem:[%s13011_s3 + $0xa10] sm:$0xff]  ;;  %v2848_v26 = vld [vmem:[%s13011_s3 + $0xa28] sm:$0xff] }
 0x8bd   :  { %7475 = vmatpush1.bf16.msra.mxu0 %v7474_v6  ;;  %v2809_v6 = vld [vmem:[%s13011_s3 + $0x8f0] sm:$0xff] }
 0x8be   :  { %7477 = vmatprep.subr.bf16.mxu0 %v7476_v44  ;;  %v2812_v44 = vld [vmem:[%s13011_s3 + $0x908] sm:$0xff]  ;;  %v7506_v33 = vpack.c.bf16 %v2809_v6, %v2807_v39  ;;  %v2847_v6 = vld [vmem:[%s13011_s3 + $0xa20] sm:$0xff] }
 0x8bf   :  { %v7508_v36 = vpack.c.bf16 %v2814_v0, %v2812_v44  ;;  %v2849_v44 = vld [vmem:[%s13011_s3 + $0xa30] sm:$0xff]  ;;  %v2507_v0 = vld [vmem:[#allocation2 + $0x40] sm:$0xff] }
 0x8c0   :  { %3203 = vmatmul.mubr.f32.vlgmr.msra.gmra.mrb[14].mxu0 %v11478_v18  ;;  %v2794_v18 = vld [vmem:[%s13011_s3 + $0x878] sm:$0xff] }
 0x8c1   :  { %3208 = vmatprep.mubr.f32.mxu0 %v2518_v53  ;;  %7479 = vmatpush1.bf16.msra.mxu0 %v7478_v49  ;;  %v7488_v9 = vpack.c.bf16 %v2794_v18, %v2792_v43  ;;  %v2813_v49 = vld [vmem:[%s13011_s3 + $0x910] sm:$0xff]  ;;  %v2824_v18 = vld [vmem:[%s13011_s3 + $0x968] sm:$0xff] }
 0x8c2   :  { %7481 = vmatprep.subr.bf16.mxu0 %v7480_v37  ;;  %v2816_v37 = vld [vmem:[%s13011_s3 + $0x928] sm:$0xff]  ;;  %v7510_v51 = vpack.c.bf16 %v2813_v49, %v2811_v50  ;;  %v2817_v53 = vld [vmem:[%s13011_s3 + $0x930] sm:$0xff]  ;;  %v7546_v49 = vpack.c.bf16 %v2849_v44, %v2847_v6 }
 0x8c3   :  { %v7512_v38 = vpack.c.bf16 %v2818_v45, %v2816_v37  ;;  %v7514_v40 = vpack.c.bf16 %v2817_v53, %v2815_v52  ;;  %v2821_v43 = vld [vmem:[%s13011_s3 + $0x950] sm:$0xff]  ;;  %v2520_v50 = vld [vmem:[#allocation2 + $0xa8] sm:$0xf]  ;;  %v2851_v45 = vld [vmem:[%s13011_s3 + $0xa40] sm:$0xff] }
 0x8c4   :  { %3209 = vmatmul.mubr.f32.gmra.mrb[16].mxu0 %v2517_v22  ;;  %v2819_v22 = vld [vmem:[%s13011_s3 + $0x940] sm:$0xff]  ;;  %v2856_v52 = vld [vmem:[%s13011_s3 + $0xa68] sm:$0xff]  ;;  %v2858_v53 = vld [vmem:[%s13011_s3 + $0xa78] sm:$0xff] }
 0x8c5   :  { %7483 = vmatpush1.bf16.msra.mxu0 %v7482_v60  ;;  %3279 = vmatprep.mubr.f32.mxu0 %v11519_v16  ;;  %v2793_v16 = vld [vmem:[%s13011_s3 + $0x870] sm:$0xff]  ;;  %v2820_v60 = vld [vmem:[%s13011_s3 + $0x948] sm:$0xff]  ;;  %v7518_v56 = vpack.c.bf16 %v2821_v43, %v2819_v22 }
 0x8c6   :  { %7485 = vmatprep.subr.bf16.mxu0 %v7484_v3  ;;  %v7490_v28 = vpack.c.bf16 %v2793_v16, %v2791_v54  ;;  %v2822_v3 = vld [vmem:[%s13011_s3 + $0x958] sm:$0xff]  ;;  %v2829_v16 = vld [vmem:[%s13011_s3 + $0x990] sm:$0xff]  ;;  %v2860_v43 = vld [vmem:[%s13011_s3 + $0xa88] sm:$0xff] }
 0x8c7   :  { %v7516_v41 = vpack.c.bf16 %v2822_v3, %v2820_v60  ;;  %v2826_v54 = vld [vmem:[%s13011_s3 + $0x978] sm:$0xff]  ;;  %v2857_v22 = vld [vmem:[%s13011_s3 + $0xa70] sm:$0xff]  ;;  %v2888_v44 = vld [vmem:[%s13011_s3 + $0xb68] sm:$0xff] }
 0x8c8   :  { %v7520_v57 = vpack.c.bf16 %v2826_v54, %v2824_v18  ;;  %v2510_v60 = vld [vmem:[#allocation2 + $0x58] sm:$0xff]  ;;  %v2885_v6 = vld [vmem:[%s13011_s3 + $0xb50] sm:$0xff] }
 0x8c9   :  { %7487 = vmatpush1.bf16.msra.mxu0 %v7486_v62  ;;  %v2825_v62 = vld [vmem:[%s13011_s3 + $0x970] sm:$0xff]  ;;  %v2862_v18 = vld [vmem:[%s13011_s3 + $0xa98] sm:$0xff] }
 0x8ca   :  { %7489 = vmatprep.subr.bf16.mxu0 %v7488_v9  ;;  %v7522_v7 = vpack.c.bf16 %v2825_v62, %v2823_v61  ;;  %v2827_v9 = vld [vmem:[%s13011_s3 + $0x980] sm:$0xff]  ;;  %v2861_v61 = vld [vmem:[%s13011_s3 + $0xa90] sm:$0xff]  ;;  %v2864_v62 = vld [vmem:[%s13011_s3 + $0xaa8] sm:$0xff] }
 0x8cb   :  { %v7526_v17 = vpack.c.bf16 %v2829_v16, %v2827_v9  ;;  %v2865_v9 = vld [vmem:[%s13011_s3 + $0xab0] sm:$0xff]  ;;  %v2868_v16 = vld [vmem:[%s13011_s3 + $0xac8] sm:$0xff] }
 0x8cd   :  { %7491 = vmatpush1.bf16.msra.mxu0 %v7490_v28  ;;  %v2838_v28 = vld [vmem:[%s13011_s3 + $0x9d8] sm:$0xff] }
 0x8ce   :  { %7493 = vmatprep.subr.bf16.mxu0 %v7492_v25  ;;  %v7530_v25 = vpack.c.bf16 %v2833_v19, %v2831_v12  ;;  %v7532_v20 = vpack.c.bf16 %v2838_v28, %v2836_v13  ;;  %v2869_v12 = vld [vmem:[%s13011_s3 + $0xad0] sm:$0xff]  ;;  %v2872_v19 = vld [vmem:[%s13011_s3 + $0xae8] sm:$0xff]  ;;  %v2874_v13 = vld [vmem:[%s13011_s3 + $0xaf8] sm:$0xff] }
 0x8d1   :  { %7495 = vmatpush1.bf16.msra.mxu0 %v7494_v34  ;;  %v2842_v34 = vld [vmem:[%s13011_s3 + $0x9f8] sm:$0xff] }
 0x8d2   :  { %7497 = vmatprep.subr.bf16.mxu0 %v7496_v59  ;;  %v7534_v59 = vpack.c.bf16 %v2837_v35, %v2835_v47  ;;  %v7536_v15 = vpack.c.bf16 %v2842_v34, %v2840_v1  ;;  %v2873_v47 = vld [vmem:[%s13011_s3 + $0xaf0] sm:$0xff]  ;;  %v2876_v35 = vld [vmem:[%s13011_s3 + $0xb08] sm:$0xff]  ;;  %v2878_v1 = vld [vmem:[%s13011_s3 + $0xb18] sm:$0xff] }
 0x8d5   :  { %7499 = vmatpush1.bf16.msra.mxu0 %v7498_v23  ;;  %v2846_v23 = vld [vmem:[%s13011_s3 + $0xa18] sm:$0xff] }
 0x8d6   :  { %7501 = vmatprep.subr.bf16.mxu0 %v7500_v11  ;;  %v7538_v11 = vpack.c.bf16 %v2841_v27, %v2839_v58  ;;  %v7540_v30 = vpack.c.bf16 %v2846_v23, %v2844_v29  ;;  %v2877_v58 = vld [vmem:[%s13011_s3 + $0xb10] sm:$0xff]  ;;  %v2880_v27 = vld [vmem:[%s13011_s3 + $0xb28] sm:$0xff]  ;;  %v2882_v29 = vld [vmem:[%s13011_s3 + $0xb38] sm:$0xff] }
 0x8d9   :  { %7503 = vmatpush1.bf16.msra.mxu0 %v7502_v21  ;;  %v2850_v21 = vld [vmem:[%s13011_s3 + $0xa38] sm:$0xff] }
 0x8da   :  { %7505 = vmatprep.subr.bf16.mxu0 %v7504_v14  ;;  %v7542_v14 = vpack.c.bf16 %v2845_v32, %v2843_v31  ;;  %v7544_v39 = vpack.c.bf16 %v2850_v21, %v2848_v26  ;;  %v2881_v31 = vld [vmem:[%s13011_s3 + $0xb30] sm:$0xff]  ;;  %v2884_v32 = vld [vmem:[%s13011_s3 + $0xb48] sm:$0xff]  ;;  %v2886_v26 = vld [vmem:[%s13011_s3 + $0xb58] sm:$0xff] }
 0x8dd   :  { %7507 = vmatpush1.bf16.msra.mxu0 %v7506_v33  ;;  %v2852_v33 = vld [vmem:[%s13011_s3 + $0xa48] sm:$0xff] }
 0x8de   :  { %7509 = vmatprep.subr.bf16.mxu0 %v7508_v36  ;;  %v2854_v36 = vld [vmem:[%s13011_s3 + $0xa58] sm:$0xff] }
 0x8df   :  { %v7548_v37 = vpack.c.bf16 %v2854_v36, %v2852_v33 }
 0x8e1   :  { %7511 = vmatpush1.bf16.msra.mxu0 %v7510_v51  ;;  %v2853_v51 = vld [vmem:[%s13011_s3 + $0xa50] sm:$0xff] }
 0x8e2   :  { %7513 = vmatprep.subr.bf16.mxu0 %v7512_v38  ;;  %v2519_v38 = vld [vmem:[#allocation2 + $0xa0] sm:$0xf]  ;;  %v7550_v3 = vpack.c.bf16 %v2853_v51, %v2851_v45  ;;  %v2894_v45 = vld [vmem:[%s13011_s3 + $0xb98] sm:$0xff] }
 0x8e5   :  { %7515 = vmatpush1.bf16.msra.mxu0 %v7514_v40  ;;  %v7552_v40 = vpack.c.bf16 %v2858_v53, %v2856_v52  ;;  %v2891_v52 = vld [vmem:[%s13011_s3 + $0xb80] sm:$0xff]  ;;  %v2893_v53 = vld [vmem:[%s13011_s3 + $0xb90] sm:$0xff] }
 0x8e6   :  { %7517 = vmatprep.subr.bf16.mxu0 %v7516_v41  ;;  %v2855_v41 = vld [vmem:[%s13011_s3 + $0xa60] sm:$0xff] }
 0x8e7   :  { %v7554_v54 = vpack.c.bf16 %v2857_v22, %v2855_v41  ;;  %v2895_v22 = vld [vmem:[%s13011_s3 + $0xba0] sm:$0xff] }
 0x8e9   :  { %7519 = vmatpush1.bf16.msra.mxu0 %v7518_v56  ;;  %v7556_v56 = vpack.c.bf16 %v2862_v18, %v2860_v43  ;;  %v2897_v43 = vld [vmem:[%s13011_s3 + $0xbb0] sm:$0xff]  ;;  %v2900_v18 = vld [vmem:[%s13011_s3 + $0xbc8] sm:$0xff] }
 0x8ea   :  { %7521 = vmatprep.subr.bf16.mxu0 %v7520_v57  ;;  %v2859_v57 = vld [vmem:[%s13011_s3 + $0xa80] sm:$0xff] }
 0x8eb   :  { %v7558_v5 = vpack.c.bf16 %v2861_v61, %v2859_v57  ;;  %v2899_v61 = vld [vmem:[%s13011_s3 + $0xbc0] sm:$0xff] }
 0x8ed   :  { %7523 = vmatpush1.bf16.msra.mxu0 %v7522_v7  ;;  %v7560_v7 = vpack.c.bf16 %v2866_v4, %v2864_v62  ;;  %v2901_v62 = vld [vmem:[%s13011_s3 + $0xbd0] sm:$0xff]  ;;  %v2904_v4 = vld [vmem:[%s13011_s3 + $0xbe8] sm:$0xff] }
 0x8ee   :  { %7525 = vmatprep.subr.bf16.mxu0 %v7524_v8  ;;  %v2863_v8 = vld [vmem:[%s13011_s3 + $0xaa0] sm:$0xff] }
 0x8ef   :  { %v7562_v63 = vpack.c.bf16 %v2865_v9, %v2863_v8  ;;  %v2903_v9 = vld [vmem:[%s13011_s3 + $0xbe0] sm:$0xff] }
 0x8f1   :  { %7527 = vmatpush1.bf16.msra.mxu0 %v7526_v17  ;;  %v7564_v17 = vpack.c.bf16 %v2870_v10, %v2868_v16  ;;  %v2905_v16 = vld [vmem:[%s13011_s3 + $0xbf0] sm:$0xff] }
 0x8f2   :  { %7529 = vmatprep.subr.bf16.mxu0 %v7528_v2  ;;  %v2867_v2 = vld [vmem:[%s13011_s3 + $0xac0] sm:$0xff]  ;;  %v7602_v10 = vpack.c.bf16 %v2905_v16, %v2903_v9 }
 0x8f3   :  { %v7566_v28 = vpack.c.bf16 %v2869_v12, %v2867_v2  ;;  %v2521_v2 = vld [vmem:[#allocation2 + $0xb0] sm:$0xf]  ;;  %v3427_v12 = vld [vmem:[%s13014_s6 + $0x2a0] sm:$0xff] }
 0x8f5   :  { %7531 = vmatpush1.bf16.msra.mxu0 %v7530_v25  ;;  %v7568_v25 = vpack.c.bf16 %v2874_v13, %v2872_v19  ;;  %v3428_v19 = vld [vmem:[%s13014_s6 + $0x2a8] sm:$0xff]  ;;  %v3411_v13 = vld [vmem:[%s13014_s6 + $0x220] sm:$0xff] }
 0x8f6   :  { %7533 = vmatprep.subr.bf16.mxu0 %v7532_v20  ;;  %v2871_v20 = vld [vmem:[%s13011_s3 + $0xae0] sm:$0xff] }
 0x8f7   :  { %v7570_v34 = vpack.c.bf16 %v2873_v47, %v2871_v20  ;;  %v3429_v47 = vld [vmem:[%s13014_s6 + $0x2b0] sm:$0xff] }
 0x8f9   :  { %7535 = vmatpush1.bf16.msra.mxu0 %v7534_v59  ;;  %v7572_v59 = vpack.c.bf16 %v2878_v1, %v2876_v35  ;;  %v3430_v35 = vld [vmem:[%s13014_s6 + $0x2b8] sm:$0xff] }
 0x8fa   :  { %7537 = vmatprep.subr.bf16.mxu0 %v7536_v15  ;;  %v2875_v15 = vld [vmem:[%s13011_s3 + $0xb00] sm:$0xff]  ;;  %v7616_v1 = vpack.c.bf16 %v3430_v35, %v3429_v47 }
 0x8fb   :  { %v7574_v23 = vpack.c.bf16 %v2877_v58, %v2875_v15  ;;  %v3431_v58 = vld [vmem:[%s13014_s6 + $0x2c0] sm:$0xff] }
 0x8fd   :  { %7539 = vmatpush1.bf16.msra.mxu0 %v7538_v11  ;;  %v7576_v11 = vpack.c.bf16 %v2882_v29, %v2880_v27  ;;  %v3432_v27 = vld [vmem:[%s13014_s6 + $0x2c8] sm:$0xff] }
 0x8fe   :  { %7541 = vmatprep.subr.bf16.mxu0 %v7540_v30  ;;  %v2879_v30 = vld [vmem:[%s13011_s3 + $0xb20] sm:$0xff]  ;;  %v7620_v29 = vpack.c.bf16 %v3432_v27, %v3431_v58 }
 0x8ff   :  { %v7578_v21 = vpack.c.bf16 %v2881_v31, %v2879_v30  ;;  %v3433_v31 = vld [vmem:[%s13014_s6 + $0x2d0] sm:$0xff] }
 0x900   :  { %3280 = vmatmul.mubr.f32.vlgmr.msra.gmra.mrb[14].mxu0 %v2507_v0  ;;  %v2890_v0 = vld [vmem:[%s13011_s3 + $0xb78] sm:$0xff] }
 0x901   :  { %3285 = vmatprep.mubr.f32.mxu0 %v2520_v50  ;;  %7543 = vmatpush1.bf16.msra.mxu0 %v7542_v14  ;;  %v7580_v14 = vpack.c.bf16 %v2886_v26, %v2884_v32  ;;  %v7584_v36 = vpack.c.bf16 %v2890_v0, %v2888_v44  ;;  %v2887_v50 = vld [vmem:[%s13011_s3 + $0xb60] sm:$0xff]  ;;  %v3434_v32 = vld [vmem:[%s13014_s6 + $0x2d8] sm:$0xff]  ;;  %v3436_v44 = vld [vmem:[%s13014_s6 + $0x2e8] sm:$0xff] }
 0x902   :  { %7545 = vmatprep.subr.bf16.mxu0 %v7544_v39  ;;  %v2883_v39 = vld [vmem:[%s13011_s3 + $0xb40] sm:$0xff]  ;;  %v7624_v26 = vpack.c.bf16 %v3434_v32, %v3433_v31  ;;  %v3534_v32 = vld [vmem:[%s13015_s7 + $0x88] sm:$0xff] }
 0x903   :  { %v7582_v33 = vpack.c.bf16 %v2885_v6, %v2883_v39  ;;  %v3435_v39 = vld [vmem:[%s13014_s6 + $0x2e0] sm:$0xff] }
 0x904   :  { %3286 = vmatmul.mubr.f32.gmra.mrb[16].mxu0 %v2519_v38  ;;  %v3419_v0 = vld [vmem:[%s13014_s6 + $0x260] sm:$0xff] }
 0x905   :  { %7547 = vmatpush1.bf16.msra.mxu0 %v7546_v49  ;;  %3356 = vmatprep.mubr.f32.mxu0 %v2510_v60  ;;  %v2889_v49 = vld [vmem:[%s13011_s3 + $0xb70] sm:$0xff]  ;;  %v2896_v60 = vld [vmem:[%s13011_s3 + $0xba8] sm:$0xff] }
 0x906   :  { %7549 = vmatprep.subr.bf16.mxu0 %v7548_v37  ;;  %v2892_v37 = vld [vmem:[%s13011_s3 + $0xb88] sm:$0xff]  ;;  %v7586_v51 = vpack.c.bf16 %v2889_v49, %v2887_v50  ;;  %v3437_v50 = vld [vmem:[%s13014_s6 + $0x2f0] sm:$0xff]  ;;  %v3438_v49 = vld [vmem:[%s13014_s6 + $0x2f8] sm:$0xff] }
 0x907   :  { %v7588_v38 = vpack.c.bf16 %v2894_v45, %v2892_v37  ;;  %v7632_v45 = vpack.c.bf16 %v3438_v49, %v3437_v50  ;;  %v3539_v50 = vld [vmem:[%s13015_s7 + $0xb0] sm:$0xff] }
 0x909   :  { %7551 = vmatpush1.bf16.msra.mxu0 %v7550_v3  ;;  %v2898_v3 = vld [vmem:[%s13011_s3 + $0xbb8] sm:$0xff] }
 0x90a   :  { %7553 = vmatprep.subr.bf16.mxu0 %v7552_v40  ;;  %v7590_v40 = vpack.c.bf16 %v2893_v53, %v2891_v52  ;;  %v7592_v41 = vpack.c.bf16 %v2898_v3, %v2896_v60 }
 0x90d   :  { %7555 = vmatpush1.bf16.msra.mxu0 %v7554_v54  ;;  %v2902_v54 = vld [vmem:[%s13011_s3 + $0xbd8] sm:$0xff] }
 0x90e   :  { %7557 = vmatprep.subr.bf16.mxu0 %v7556_v56  ;;  %v7594_v56 = vpack.c.bf16 %v2897_v43, %v2895_v22  ;;  %v7596_v57 = vpack.c.bf16 %v2902_v54, %v2900_v18 }
 0x911   :  { %7559 = vmatpush1.bf16.msra.mxu0 %v7558_v5  ;;  %v2906_v5 = vld [vmem:[%s13011_s3 + $0xbf8] sm:$0xff] }
 0x912   :  { %7561 = vmatprep.subr.bf16.mxu0 %v7560_v7  ;;  %v7598_v7 = vpack.c.bf16 %v2901_v62, %v2899_v61  ;;  %v7600_v8 = vpack.c.bf16 %v2906_v5, %v2904_v4 }
 0x915   :  { %7563 = vmatpush1.bf16.msra.mxu0 %v7562_v63  ;;  %v2509_v63 = vld [vmem:[#allocation2 + $0x50] sm:$0xff] }
 0x916   :  { %7565 = vmatprep.subr.bf16.mxu0 %v7564_v17  ;;  %v2522_v17 = vld [vmem:[#allocation2 + $0xb8] sm:$0xf] }
 0x919   :  { %7567 = vmatpush1.bf16.msra.mxu0 %v7566_v28  ;;  %v7612_v28 = vpack.c.bf16 %v3428_v19, %v3427_v12 }
 0x91a   :  { %7569 = vmatprep.subr.bf16.mxu0 %v7568_v25  ;;  %v3412_v25 = vld [vmem:[%s13014_s6 + $0x228] sm:$0xff] }
 0x91b   :  { %v7614_v20 = vpack.c.bf16 %v3412_v25, %v3411_v13  ;;  %7613 = vmatprep.subr.bf16.mxu1 %v7612_v28 }
 0x91d   :  { %7571 = vmatpush1.bf16.msra.mxu0 %v7570_v34  ;;  %7615 = vmatpush3.bf16.msra.mxu1 %v7614_v20  ;;  %v3413_v34 = vld [vmem:[%s13014_s6 + $0x230] sm:$0xff] }
 0x91e   :  { %7573 = vmatprep.subr.bf16.mxu0 %v7572_v59  ;;  %v3414_v59 = vld [vmem:[%s13014_s6 + $0x238] sm:$0xff]  ;;  %7617 = vmatprep.subr.bf16.mxu1 %v7616_v1 }
 0x91f   :  { %v7618_v15 = vpack.c.bf16 %v3414_v59, %v3413_v34 }
 0x921   :  { %7575 = vmatpush1.bf16.msra.mxu0 %v7574_v23  ;;  %7619 = vmatpush3.bf16.msra.mxu1 %v7618_v15  ;;  %v3415_v23 = vld [vmem:[%s13014_s6 + $0x240] sm:$0xff] }
 0x922   :  { %7577 = vmatprep.subr.bf16.mxu0 %v7576_v11  ;;  %v3416_v11 = vld [vmem:[%s13014_s6 + $0x248] sm:$0xff]  ;;  %7621 = vmatprep.subr.bf16.mxu1 %v7620_v29 }
 0x923   :  { %v7622_v30 = vpack.c.bf16 %v3416_v11, %v3415_v23 }
 0x925   :  { %7579 = vmatpush1.bf16.msra.mxu0 %v7578_v21  ;;  %7623 = vmatpush3.bf16.msra.mxu1 %v7622_v30  ;;  %v3417_v21 = vld [vmem:[%s13014_s6 + $0x250] sm:$0xff] }
 0x926   :  { %7581 = vmatprep.subr.bf16.mxu0 %v7580_v14  ;;  %v3418_v14 = vld [vmem:[%s13014_s6 + $0x258] sm:$0xff]  ;;  %7625 = vmatprep.subr.bf16.mxu1 %v7624_v26 }
 0x927   :  { %v7626_v6 = vpack.c.bf16 %v3418_v14, %v3417_v21  ;;  %v3536_v26 = vld [vmem:[%s13015_s7 + $0x98] sm:$0xff]  ;;  %v3533_v14 = vld [vmem:[%s13015_s7 + $0x80] sm:$0xff] }
 0x928   :  { %v7636_v21 = vpack.c.bf16 %v3536_v26, %v3534_v32 }
 0x929   :  { %7583 = vmatpush1.bf16.msra.mxu0 %v7582_v33  ;;  %v3420_v33 = vld [vmem:[%s13014_s6 + $0x268] sm:$0xff]  ;;  %7627 = vmatpush3.bf16.msra.mxu1 %v7626_v6 }
 0x92a   :  { %7585 = vmatprep.subr.bf16.mxu0 %v7584_v36  ;;  %v7628_v36 = vpack.c.bf16 %v3436_v44, %v3435_v39  ;;  %v7630_v37 = vpack.c.bf16 %v3420_v33, %v3419_v0  ;;  %v3535_v39 = vld [vmem:[%s13015_s7 + $0x90] sm:$0xff]  ;;  %v3538_v44 = vld [vmem:[%s13015_s7 + $0xa8] sm:$0xff]  ;;  %v3540_v0 = vld [vmem:[%s13015_s7 + $0xb8] sm:$0xff] }
 0x92b   :  { %v7638_v6 = vpack.c.bf16 %v3535_v39, %v3533_v14  ;;  %v3537_v33 = vld [vmem:[%s13015_s7 + $0xa0] sm:$0xff]  ;;  %v3737_v14 = vld [vmem:[#allocation3 + $0xf0] sm:$0xff]  ;;  %v3740_v39 = vld [vmem:[#allocation3 + $0x108] sm:$0xff] }
 0x92c   :  { %7629 = vmatprep.subr.bf16.mxu1 %v7628_v36  ;;  %v7640_v36 = vpack.c.bf16 %v3540_v0, %v3538_v44  ;;  %v7642_v49 = vpack.c.bf16 %v3539_v50, %v3537_v33  ;;  %v3739_v33 = vld [vmem:[#allocation3 + $0x100] sm:$0xff]  ;;  %v3744_v50 = vld [vmem:[#allocation3 + $0x128] sm:$0xff] }
 0x92d   :  { %7587 = vmatpush1.bf16.msra.mxu0 %v7586_v51  ;;  %v3421_v51 = vld [vmem:[%s13014_s6 + $0x270] sm:$0xff]  ;;  %7631 = vmatpush3.bf16.msra.mxu1 %v7630_v37  ;;  %v3708_v37 = vld [vmem:[#allocation3 + $0x8] sm:$0xff] }
 0x92e   :  { %7589 = vmatprep.subr.bf16.mxu0 %v7588_v38  ;;  %v3422_v38 = vld [vmem:[%s13014_s6 + $0x278] sm:$0xff]  ;;  %7633 = vmatprep.subr.bf16.mxu1 %v7632_v45 }
 0x92f   :  { %v7634_v52 = vpack.c.bf16 %v3422_v38, %v3421_v51  ;;  %v3710_v45 = vld [vmem:[#allocation3 + $0x18] sm:$0xff]  ;;  %v3707_v51 = vld [vmem:[#allocation3] sm:$0xff] }
 0x930   :  { %v7644_v38 = vpack.c.bf16 %v3710_v45, %v3708_v37 }
 0x931   :  { %7591 = vmatpush1.bf16.msra.mxu0 %v7590_v40  ;;  %7635 = vmatpush3.bf16.msra.mxu1 %v7634_v52  ;;  %v3709_v52 = vld [vmem:[#allocation3 + $0x10] sm:$0xff] }
 0x932   :  { %7593 = vmatprep.subr.bf16.mxu0 %v7592_v41  ;;  %7645 = vmatprep.subr.bf16.mxu1 %v7644_v38  ;;  %v3745_v38 = vld [vmem:[#allocation3 + $0x130] sm:$0xff] }
 0x935   :  { %7595 = vmatpush1.bf16.msra.mxu0 %v7594_v56 }
 0x936   :  { %7597 = vmatprep.subr.bf16.mxu0 %v7596_v57 }
 0x939   :  { %7599 = vmatpush1.bf16.msra.mxu0 %v7598_v7 }
 0x93a   :  { %7601 = vmatprep.subr.bf16.mxu0 %v7600_v8 }
 0x93d   :  { %7603 = vmatpush1.bf16.msra.mxu0 %v7602_v10 }
 0x93e   :  { %7637 = vmatprep.subr.bf16.mxu0 %v7636_v21  ;;  %v3735_v21 = vld [vmem:[#allocation3 + $0xe0] sm:$0xff] }
 0x93f   :  { %v7674_v44 = vpack.c.bf16 %v3737_v14, %v3735_v21  ;;  %v3764_v14 = vld [vmem:[#allocation3 + $0x1c8] sm:$0xff] }
 0x940   :  { %3357 = vmatmul.mubr.f32.vlgmr.msra.gmra.mrb[14].mxu0 %v2509_v63 }
 0x941   :  { %3362 = vmatprep.mubr.f32.mxu0 %v2522_v17  ;;  %7639 = vmatpush1.bf16.msra.mxu0 %v7638_v6  ;;  %v3742_v6 = vld [vmem:[#allocation3 + $0x118] sm:$0xff] }
 0x942   :  { %7641 = vmatprep.subr.bf16.mxu0 %v7640_v36  ;;  %v7676_v0 = vpack.c.bf16 %v3742_v6, %v3740_v39  ;;  %v3741_v36 = vld [vmem:[#allocation3 + $0x110] sm:$0xff]  ;;  %v3766_v39 = vld [vmem:[#allocation3 + $0x1d8] sm:$0xff] }
 0x943   :  { %v7678_v37 = vpack.c.bf16 %v3741_v36, %v3739_v33  ;;  %v7700_v6 = vpack.c.bf16 %v3766_v39, %v3764_v14  ;;  %v3768_v36 = vld [vmem:[#allocation3 + $0x1e8] sm:$0xff]  ;;  %v3778_v14 = vld [vmem:[#allocation3 + $0x238] sm:$0xff] }
 0x944   :  { %3363 = vmatmul.mubr.f32.gmra.mrb[16].mxu0 %v2521_v2 }
 0x945   :  { %3608 = vmatprep.mubr.f32.mxu0 %v8624_v24  ;;  %7643 = vmatpush1.bf16.msra.mxu0 %v7642_v49  ;;  %v3746_v49 = vld [vmem:[#allocation3 + $0x138] sm:$0xff] }
 0x946   :  { %v7680_v45 = vpack.c.bf16 %v3746_v49, %v3744_v50  ;;  %v3770_v50 = vld [vmem:[#allocation3 + $0x1f8] sm:$0xff] }
 0x947   :  { %v7704_v49 = vpack.c.bf16 %v3770_v50, %v3768_v36  ;;  %v3775_v50 = vld [vmem:[#allocation3 + $0x220] sm:$0xff] }
 0xa13   :  { %v12548_v53 = vpop.f32.mrb[14].mxu0 }
 0xa14   :  { %v12550_v60 = vpop.f32.mrb[15].mxu0  ;;  %v3385_v43 = vmul.f32 %v12548_v53, %v12548_v53 }
 0xa15   :  { %v3386_v57 = vmul.f32 %v12550_v60, %v12550_v60 }
 0xa17   :  { %v12552_v3 = vpop.f32.mrb[16].mxu0 }
 0xa18   :  { %v3369_v40 = vsel %vm1142_vm6, %v12552_v3, 0.0  ;;  %v3387_v41 = vmul.f32 %v12552_v3, %v12552_v3  ;;  %v12558_v22 = vpop.f32.mrb[17].mxu0 }
 0xa19   :  { %v3370_v18 = vadd.f32 %v3369_v40, %v12548_v53  ;;  %v3377_v54 = vsel %vm1142_vm6, %v12558_v22, 0.0  ;;  %v3388_v56 = vmul.f32 %v12558_v22, %v12558_v22  ;;  %v3712_v40 = vld [vmem:[#allocation3 + $0x28] sm:$0xff] }
 0xa1a   :  { %v3389_v61 = vsel %vm1142_vm6, %v3387_v41, 0.0  ;;  %v3378_v62 = vadd.f32 %v3377_v54, %v12550_v60  ;;  %v3714_v41 = vld [vmem:[#allocation3 + $0x38] sm:$0xff]  ;;  %v3711_v54 = vld [vmem:[#allocation3 + $0x20] sm:$0xff] }
 0xa1b   :  { %v3371_v4 = vrot.slane %v3370_v18, 4  ;;  %v3390_v5 = vadd.f32 %v3389_v61, %v3385_v43  ;;  %v3397_v7 = vsel %vm1142_vm6, %v3388_v56, 0.0  ;;  %v7646_v43 = vpack.c.bf16 %v3709_v52, %v3707_v51  ;;  %v3713_v56 = vld [vmem:[#allocation3 + $0x30] sm:$0xff]  ;;  %v3718_v61 = vld [vmem:[#allocation3 + $0x58] sm:$0xff]  ;;  %v3743_v51 = vld [vmem:[#allocation3 + $0x120] sm:$0xff] }
 0xa1c   :  { %v3379_v8 = vrot.slane %v3378_v62, 4  ;;  %v3398_v9 = vadd.f32 %v3397_v7, %v3386_v57  ;;  %v3716_v57 = vld [vmem:[#allocation3 + $0x48] sm:$0xff]  ;;  %v3717_v7 = vld [vmem:[#allocation3 + $0x50] sm:$0xff] }
 0xa1d   :  { %v3372_v16 = vadd.f32 %v3371_v4, %v3370_v18  ;;  %v3391_v10 = vrot.slane %v3390_v5, 4  ;;  %v7648_v18 = vpack.c.bf16 %v3714_v41, %v3712_v40  ;;  %v7652_v4 = vpack.c.bf16 %v3718_v61, %v3716_v57  ;;  %v3748_v52 = vld [vmem:[#allocation3 + $0x148] sm:$0xff]  ;;  %v3750_v40 = vld [vmem:[#allocation3 + $0x158] sm:$0xff] }
 0xa1e   :  { %v3380_v63 = vadd.f32 %v3379_v8, %v3378_v62  ;;  %v3399_v17 = vrot.slane %v3398_v9, 4  ;;  %v7650_v62 = vpack.c.bf16 %v3713_v56, %v3711_v54  ;;  %v3720_v8 = vld [vmem:[#allocation3 + $0x68] sm:$0xff]  ;;  %v7682_v41 = vpack.c.bf16 %v3745_v38, %v3743_v51  ;;  %v3749_v54 = vld [vmem:[#allocation3 + $0x150] sm:$0xff]  ;;  %v3754_v57 = vld [vmem:[#allocation3 + $0x178] sm:$0xff] }
 0xa1f   :  { %v3373_v2 = vrot.slane %v3372_v16, 2  ;;  %v3392_v12 = vadd.f32 %v3391_v10, %v3390_v5  ;;  %v3715_v5 = vld [vmem:[#allocation3 + $0x40] sm:$0xff]  ;;  %v3752_v56 = vld [vmem:[#allocation3 + $0x168] sm:$0xff] }
 0xa20   :  { %v3381_v19 = vrot.slane %v3380_v63, 2  ;;  %v3400_v13 = vadd.f32 %v3399_v17, %v3398_v9  ;;  %v3722_v9 = vld [vmem:[#allocation3 + $0x78] sm:$0xff]  ;;  %v3721_v17 = vld [vmem:[#allocation3 + $0x70] sm:$0xff]  ;;  %v3772_v38 = vld [vmem:[#allocation3 + $0x208] sm:$0xff] }
 0xa21   :  { %v3374_v28 = vadd.f32 %v3373_v2, %v3372_v16  ;;  %v3393_v25 = vrot.slane %v3392_v12, 2  ;;  %v7654_v16 = vpack.c.bf16 %v3717_v7, %v3715_v5  ;;  %v7656_v10 = vpack.c.bf16 %v3722_v9, %v3720_v8  ;;  %v3724_v2 = vld [vmem:[#allocation3 + $0x88] sm:$0xff]  ;;  %v3753_v5 = vld [vmem:[#allocation3 + $0x170] sm:$0xff] }
 0xa22   :  { %v3382_v20 = vadd.f32 %v3381_v19, %v3380_v63  ;;  %v3401_v47 = vrot.slane %v3400_v13, 2  ;;  %v3719_v63 = vld [vmem:[#allocation3 + $0x60] sm:$0xff] }
 0xa23   :  { %v3375_v35 = vrot.slane %v3374_v28, 1  ;;  %v3394_v1 = vadd.f32 %v3393_v25, %v3392_v12  ;;  %v3726_v12 = vld [vmem:[#allocation3 + $0x98] sm:$0xff]  ;;  %v7658_v19 = vpack.c.bf16 %v3721_v17, %v3719_v63  ;;  %v3725_v25 = vld [vmem:[#allocation3 + $0x90] sm:$0xff] }
 0xa24   :  { %v3383_v34 = vrot.slane %v3382_v20, 1  ;;  %v3402_v59 = vadd.f32 %v3401_v47, %v3400_v13  ;;  %v7660_v13 = vpack.c.bf16 %v3726_v12, %v3724_v2  ;;  %v3730_v47 = vld [vmem:[#allocation3 + $0xb8] sm:$0xff] }
 0xa25   :  { %v3395_v15 = vrot.slane %v3394_v1, 1  ;;  %v3376_v27 = vadd.f32 %v3375_v35, %v3374_v28  ;;  %v3723_v28 = vld [vmem:[#allocation3 + $0x80] sm:$0xff] }
 0xa26   :  { %v3403_v58 = vrot.slane %v3402_v59, 1  ;;  %v3384_v23 = vadd.f32 %v3383_v34, %v3382_v20  ;;  %v3728_v20 = vld [vmem:[#allocation3 + $0xa8] sm:$0xff]  ;;  %v7662_v35 = vpack.c.bf16 %v3725_v25, %v3723_v28  ;;  %v3727_v34 = vld [vmem:[#allocation3 + $0xa0] sm:$0xff]  ;;  %v3515_v25 = vld [vmem:[%s13016_s8 + $0x11] sm:$0x1] }
 0xa27   :  { %v3396_v29 = vadd.f32 %v3395_v15, %v3394_v1  ;;  %v7664_v1 = vpack.c.bf16 %v3730_v47, %v3728_v20  ;;  %v3732_v15 = vld [vmem:[#allocation3 + $0xc8] sm:$0xff] }
 0xa28   :  { %v3404_v11 = vadd.f32 %v3403_v58, %v3402_v59  ;;  %v3729_v59 = vld [vmem:[#allocation3 + $0xb0] sm:$0xff]  ;;  %v3734_v58 = vld [vmem:[#allocation3 + $0xd8] sm:$0xff] }
 0xa29   :  { %v3405_v30 = vsel %vm822_vm2, %v3376_v27, %v3396_v29  ;;  %v7666_v27 = vpack.c.bf16 %v3729_v59, %v3727_v34  ;;  %v7668_v29 = vpack.c.bf16 %v3734_v58, %v3732_v15  ;;  %v3756_v59 = vld [vmem:[#allocation3 + $0x188] sm:$0xff]  ;;  %v3758_v15 = vld [vmem:[#allocation3 + $0x198] sm:$0xff] }
 0xa2a   :  { %v3406_v31 = vsel %vm822_vm2, %v3384_v23, %v3404_v11  ;;  %v3731_v23 = vld [vmem:[#allocation3 + $0xc0] sm:$0xff]  ;;  %v3733_v11 = vld [vmem:[#allocation3 + $0xd0] sm:$0xff]  ;;  %v7692_v58 = vpack.c.bf16 %v3758_v15, %v3756_v59 }
 0xa2b   :  { %3503 = vmatprep.mubr.f32.mxu1 %v3406_v31  ;;  %v3738_v31 = vld [vmem:[#allocation3 + $0xf8] sm:$0xff]  ;;  %v7670_v32 = vpack.c.bf16 %v3733_v11, %v3731_v23  ;;  %v3760_v11 = vld [vmem:[#allocation3 + $0x1a8] sm:$0xff] }
 0xa2c   :  { %3504 = vmatmul.mubr.f32.vlgmr.msra.gmra.mrb[10].mxu1 %v3405_v30  ;;  %v3736_v30 = vld [vmem:[#allocation3 + $0xe8] sm:$0xff] }
 0xa2d   :  { %7647 = vmatpush1.bf16.msra.mxu1 %v7646_v43  ;;  %v7672_v26 = vpack.c.bf16 %v3738_v31, %v3736_v30  ;;  %v7684_v43 = vpack.c.bf16 %v3750_v40, %v3748_v52  ;;  %v3762_v30 = vld [vmem:[#allocation3 + $0x1b8] sm:$0xff] }
 0xa2e   :  { %7649 = vmatprep.subr.bf16.mxu1 %v7648_v18  ;;  %v3747_v18 = vld [vmem:[#allocation3 + $0x140] sm:$0xff]  ;;  %v7696_v31 = vpack.c.bf16 %v3762_v30, %v3760_v11  ;;  %v3774_v52 = vld [vmem:[#allocation3 + $0x218] sm:$0xff]  ;;  %v3773_v30 = vld [vmem:[#allocation3 + $0x210] sm:$0xff] }
 0xa2f   :  { %v7686_v61 = vpack.c.bf16 %v3749_v54, %v3747_v18  ;;  %v7708_v40 = vpack.c.bf16 %v3774_v52, %v3772_v38  ;;  %v3771_v11 = vld [vmem:[#allocation3 + $0x200] sm:$0xff] }
 0xa31   :  { %7651 = vmatpush1.bf16.msra.mxu1 %v7650_v62  ;;  %v7688_v62 = vpack.c.bf16 %v3754_v57, %v3752_v56 }
 0xa32   :  { %7653 = vmatprep.subr.bf16.mxu1 %v7652_v4  ;;  %v3751_v4 = vld [vmem:[#allocation3 + $0x160] sm:$0xff] }
 0xa33   :  { %v7690_v7 = vpack.c.bf16 %v3753_v5, %v3751_v4 }
 0xa35   :  { %7655 = vmatpush1.bf16.msra.mxu1 %v7654_v16 }
 0xa36   :  { %7657 = vmatprep.subr.bf16.mxu1 %v7656_v10 }
 0xa39   :  { %7659 = vmatpush1.bf16.msra.mxu1 %v7658_v19  ;;  %v3514_v19 = vld [vmem:[%s13016_s8 + $0x10] sm:$0x1] }
 0xa3a   :  { %7661 = vmatprep.subr.bf16.mxu1 %v7660_v13 }
 0xa3d   :  { %7663 = vmatpush1.bf16.msra.mxu1 %v7662_v35 }
 0xa3e   :  { %7665 = vmatprep.subr.bf16.mxu1 %v7664_v1 }
 0xa41   :  { %7667 = vmatpush1.bf16.msra.mxu1 %v7666_v27  ;;  %v3755_v27 = vld [vmem:[#allocation3 + $0x180] sm:$0xff] }
 0xa42   :  { %7669 = vmatprep.subr.bf16.mxu1 %v7668_v29  ;;  %v3757_v29 = vld [vmem:[#allocation3 + $0x190] sm:$0xff] }
 0xa43   :  { %v7694_v23 = vpack.c.bf16 %v3757_v29, %v3755_v27 }
 0xa45   :  { %7671 = vmatpush1.bf16.msra.mxu1 %v7670_v32  ;;  %v3759_v32 = vld [vmem:[#allocation3 + $0x1a0] sm:$0xff] }
 0xa46   :  { %7673 = vmatprep.subr.bf16.mxu1 %v7672_v26  ;;  %v3761_v26 = vld [vmem:[#allocation3 + $0x1b0] sm:$0xff] }
 0xa47   :  { %v7698_v21 = vpack.c.bf16 %v3761_v26, %v3759_v32 }
 0xa49   :  { %7675 = vmatpush1.bf16.msra.mxu1 %v7674_v44  ;;  %v3763_v44 = vld [vmem:[#allocation3 + $0x1c0] sm:$0xff] }
 0xa4a   :  { %7677 = vmatprep.subr.bf16.mxu1 %v7676_v0  ;;  %v3765_v0 = vld [vmem:[#allocation3 + $0x1d0] sm:$0xff] }
 0xa4b   :  { %v7702_v33 = vpack.c.bf16 %v3765_v0, %v3763_v44  ;;  %v7710_v0 = vpack.c.bf16 %v3773_v30, %v3771_v11  ;;  %v3808_v11 = vld [vmem:[#allocation3 + $0x328] sm:$0xff]  ;;  %v3810_v30 = vld [vmem:[#allocation3 + $0x338] sm:$0xff] }
 0xa4d   :  { %7679 = vmatpush1.bf16.msra.mxu1 %v7678_v37  ;;  %v3767_v37 = vld [vmem:[#allocation3 + $0x1e0] sm:$0xff] }
 0xa4e   :  { %7681 = vmatprep.subr.bf16.mxu1 %v7680_v45  ;;  %v3769_v45 = vld [vmem:[#allocation3 + $0x1f0] sm:$0xff] }
 0xa4f   :  { %v7706_v51 = vpack.c.bf16 %v3769_v45, %v3767_v37  ;;  %v3780_v45 = vld [vmem:[#allocation3 + $0x248] sm:$0xff] }
 0xa51   :  { %7683 = vmatpush1.bf16.msra.mxu1 %v7682_v41 }
 0xa52   :  { %7685 = vmatprep.subr.bf16.mxu1 %v7684_v43 }
 0xa55   :  { %7687 = vmatpush1.bf16.msra.mxu1 %v7686_v61 }
 0xa56   :  { %7689 = vmatprep.subr.bf16.mxu1 %v7688_v62 }
 0xa59   :  { %7691 = vmatpush1.bf16.msra.mxu1 %v7690_v7 }
 0xa5a   :  { %7693 = vmatprep.subr.bf16.mxu1 %v7692_v58 }
 0xa5d   :  { %7695 = vmatpush1.bf16.msra.mxu1 %v7694_v23 }
 0xa5e   :  { %7697 = vmatprep.subr.bf16.mxu1 %v7696_v31 }
 0xa61   :  { %7699 = vmatpush1.bf16.msra.mxu1 %v7698_v21  ;;  %v3776_v21 = vld [vmem:[#allocation3 + $0x228] sm:$0xff] }
 0xa62   :  { %7701 = vmatprep.subr.bf16.mxu1 %v7700_v6  ;;  %v7712_v36 = vpack.c.bf16 %v3778_v14, %v3776_v21  ;;  %v3809_v21 = vld [vmem:[#allocation3 + $0x330] sm:$0xff]  ;;  %v3812_v14 = vld [vmem:[#allocation3 + $0x348] sm:$0xff] }
 0xa65   :  { %7703 = vmatpush1.bf16.msra.mxu1 %v7702_v33 }
 0xa66   :  { %7705 = vmatprep.subr.bf16.mxu1 %v7704_v49  ;;  %v3777_v49 = vld [vmem:[#allocation3 + $0x230] sm:$0xff] }
 0xa67   :  { %v7714_v52 = vpack.c.bf16 %v3777_v49, %v3775_v50  ;;  %v3818_v50 = vld [vmem:[#allocation3 + $0x378] sm:$0xff] }
 0xa69   :  { %7707 = vmatpush1.bf16.msra.mxu1 %v7706_v51  ;;  %v3782_v51 = vld [vmem:[#allocation3 + $0x258] sm:$0xff] }
 0xa6a   :  { %7709 = vmatprep.subr.bf16.mxu1 %v7708_v40  ;;  %v7716_v40 = vpack.c.bf16 %v3782_v51, %v3780_v45  ;;  %v3815_v45 = vld [vmem:[#allocation3 + $0x360] sm:$0xff]  ;;  %v3817_v51 = vld [vmem:[#allocation3 + $0x370] sm:$0xff] }
 0xaff   :  { %v6165_v8 = vpop.f32.mrb[10].mxu1 }
 0xb00   :  { %v6166_v9 = vpop.f32.mrb[11].mxu1 }
 0xb01   :  { %v6167_v16 = vadd.f32 %v6166_v9, %v6165_v8 }
 0xb03   :  { %v3509_v10 = vmul.f32 %v6167_v16, %v6167_v16 }
 0xb05   :  { %v3511_v63 = vrot.slane %v3509_v10, 7 }
 0xb07   :  { %v3513_v17 = vsub.f32 %v6167_v16, %v3511_v63 }
 0xb09   :  { %v3516_v2 = vadd.f32 1e-05, %v3513_v17 }
 0xb0b   :  { %8493 = vrsqrt.f32 %v3516_v2 }
 0xb15   :  { %v8494_v12 = vpop.eup %8493 }
 0xb16   :  { %v3519_v13 = vrot.slane %v8494_v12, 1 }
 0xb18   :  { %v3521_v28 = vmul.f32 %v3519_v13, %v3514_v19 }
 0xb1a   :  { %v3522_v20 = vmul.f32 %v6167_v16, %v3521_v28  ;;  %v3527_v35 = vrot.slane %v3521_v28, %v9782_v42 }
 0xb1c   :  { %v3523_v47 = vsub.f32 %v3515_v25, %v3522_v20 }
 0xb1e   :  { %v3531_v1 = vrot.slane %v3523_v47, %v9782_v42 }
 0xb20   :  { %v3532_v34 = vsel %vm822_vm2, %v3527_v35, %v3531_v1 }
 0xb21   :  { %6060 = vmatmul.mubr.msk.f32.vlgmr.msra.gmra.mrb[18].mxu0 %vm959_vm3, %v3532_v34 }
 0xbf4   :  { %v3610_v41 = vpop.f32.mrb[18].mxu0 }
 0xbf5   :  { %v3618_v43 = vrot.slane %v3610_v41, %v9782_v42  ;;  %v3612_v18 = vpop.f32.mrb[19].mxu0  ;;  %v3630_v61 = vrot.slane %v3610_v41, %v9997_v48  ;;  %v3779_v41 = vld [vmem:[#allocation3 + $0x240] sm:$0xff] }
 0xbf6   :  { %v3622_v54 = vrot.slane %v3612_v18, %v9782_v42  ;;  %v3634_v5 = vrot.slane %v3612_v18, %v9997_v48  ;;  %v3784_v18 = vld [vmem:[#allocation3 + $0x268] sm:$0xff] }
 0xbf7   :  { %v3623_v56 = vmul.f32 %v3618_v43, %v12548_v53  ;;  %v3625_v57 = vmul.f32 %v3618_v43, %v12552_v3  ;;  %v3781_v43 = vld [vmem:[#allocation3 + $0x250] sm:$0xff] }
 0xbf8   :  { %v3624_v62 = vmul.f32 %v3622_v54, %v12550_v60  ;;  %v3626_v4 = vmul.f32 %v3622_v54, %v12558_v22  ;;  %v3786_v54 = vld [vmem:[#allocation3 + $0x278] sm:$0xff] }
 0xbf9   :  { %v3635_v7 = vadd.f32 %v3630_v61, %v3623_v56  ;;  %v3637_v8 = vadd.f32 %v3630_v61, %v3625_v57  ;;  %v7718_v56 = vpack.c.bf16 %v3781_v43, %v3779_v41  ;;  %v7720_v57 = vpack.c.bf16 %v3786_v54, %v3784_v18  ;;  %v3783_v61 = vld [vmem:[#allocation3 + $0x260] sm:$0xff]  ;;  %v3821_v18 = vld [vmem:[#allocation3 + $0x390] sm:$0xff]  ;;  %v3824_v54 = vld [vmem:[#allocation3 + $0x3a8] sm:$0xff] }
 0xbfa   :  { %v3636_v9 = vadd.f32 %v3634_v5, %v3624_v62  ;;  %v3638_v16 = vadd.f32 %v3634_v5, %v3626_v4  ;;  %v3785_v62 = vld [vmem:[#allocation3 + $0x270] sm:$0xff]  ;;  %v3788_v4 = vld [vmem:[#allocation3 + $0x288] sm:$0xff]  ;;  %v3790_v5 = vld [vmem:[#allocation3 + $0x298] sm:$0xff] }
 0xbfb   :  { %v3639_v10 = vmax.f32 %v3635_v7, 0.0  ;;  %v3641_v63 = vmax.f32 %v3637_v8, 0.0  ;;  %v7722_v7 = vpack.c.bf16 %v3785_v62, %v3783_v61  ;;  %v7724_v8 = vpack.c.bf16 %v3790_v5, %v3788_v4  ;;  %v3819_v43 = vld [vmem:[#allocation3 + $0x380] sm:$0xff]  ;;  %v3825_v4 = vld [vmem:[#allocation3 + $0x3b0] sm:$0xff]  ;;  %v3828_v5 = vld [vmem:[#allocation3 + $0x3c8] sm:$0xff] }
 0xbfc   :  { %v3640_v17 = vmax.f32 %v3636_v9, 0.0  ;;  %v3642_v2 = vmax.f32 %v3638_v16, 0.0  ;;  %v3787_v9 = vld [vmem:[#allocation3 + $0x280] sm:$0xff]  ;;  %v3789_v16 = vld [vmem:[#allocation3 + $0x290] sm:$0xff] }
 0xbfd   :  { %3643 = vst [vmem:[#allocation2] sm:$0x7f] %v3639_v10  ;;  %v3647_v53 = vrot.slane %v3639_v10, 1  ;;  %v3655_v12 = vrot.slane %v3639_v10, 2  ;;  %v3656_v3 = vrot.slane %v3641_v63, 2  ;;  %v3665_v19 = vrot.slane %v3639_v10, 3 }
 0xbfe   :  { %v3666_v13 = vrot.slane %v3641_v63, 3  ;;  %v3675_v28 = vrot.slane %v3639_v10, 4  ;;  %v3676_v60 = vrot.slane %v3641_v63, 4  ;;  %v3685_v25 = vrot.slane %v3639_v10, 5  ;;  %3644 = vst [vmem:[#allocation2 + $0x8] sm:$0x7f] %v3640_v17 }
 0xbff   :  { %3651 = vst [vmem:[#allocation2 + $0x10] sm:$0x7f] %v3647_v53  ;;  %v3657_v22 = vsel %vm768_vm1, %v3655_v12, %v3656_v3  ;;  %v3686_v20 = vrot.slane %v3641_v63, 5  ;;  %v3648_v47 = vrot.slane %v3640_v17, 1  ;;  %v3658_v35 = vrot.slane %v3640_v17, 2  ;;  %v3792_v10 = vld [vmem:[#allocation3 + $0x2a8] sm:$0xff] }
 0xc00   :  { %3663 = vst [vmem:[#allocation2 + $0x20] sm:$0x7f] %v3657_v22  ;;  %v3667_v1 = vsel %vm1092_vm4, %v3665_v19, %v3666_v13  ;;  %v3677_v34 = vsel %vm1142_vm6, %v3675_v28, %v3676_v60  ;;  %v3659_v59 = vrot.slane %v3642_v2, 2  ;;  %v3668_v15 = vrot.slane %v3640_v17, 3  ;;  %v3794_v63 = vld [vmem:[#allocation3 + $0x2b8] sm:$0xff]  ;;  %v3791_v53 = vld [vmem:[#allocation3 + $0x2a0] sm:$0xff] }
 0xc01   :  { %3673 = vst [vmem:[#allocation2 + $0x30] sm:$0x7f] %v3667_v1  ;;  %3683 = vst [vmem:[#allocation2 + $0x40] sm:$0x7f] %v3677_v34  ;;  %v3687_v58 = vsel %vm1187_vm7, %v3685_v25, %v3686_v20  ;;  %v3669_v27 = vrot.slane %v3642_v2, 3  ;;  %v3678_v29 = vrot.slane %v3640_v17, 4 }
 0xc02   :  { %3652 = vst [vmem:[#allocation2 + $0x18] sm:$0x7f] %v3648_v47  ;;  %v3679_v23 = vrot.slane %v3642_v2, 4  ;;  %3693 = vst [vmem:[#allocation2 + $0x50] sm:$0x7f] %v3687_v58  ;;  %v3660_v31 = vsel %vm768_vm1, %v3658_v35, %v3659_v59  ;;  %v3688_v32 = vrot.slane %v3640_v17, 5  ;;  %v7726_v17 = vpack.c.bf16 %v3789_v16, %v3787_v9 }
 0xc03   :  { %v3689_v26 = vrot.slane %v3642_v2, 5  ;;  %3664 = vst [vmem:[#allocation2 + $0x28] sm:$0x7f] %v3660_v31  ;;  %v3670_v39 = vsel %vm1092_vm4, %v3668_v15, %v3669_v27  ;;  %v7728_v2 = vpack.c.bf16 %v3794_v63, %v3792_v10  ;;  %v3793_v12 = vld [vmem:[#allocation3 + $0x2b0] sm:$0xff]  ;;  %v3796_v3 = vld [vmem:[#allocation3 + $0x2c8] sm:$0xff]  ;;  %v3798_v19 = vld [vmem:[#allocation3 + $0x2d8] sm:$0xff] }
 0xc04   :  { %v3680_v6 = vsel %vm1142_vm6, %v3678_v29, %v3679_v23  ;;  %3674 = vst [vmem:[#allocation2 + $0x38] sm:$0x7f] %v3670_v39  ;;  %v3695_v37 = vld [vmem:[#allocation2] sm:$0x7f]  ;;  %v7730_v13 = vpack.c.bf16 %v3793_v12, %v3791_v53  ;;  %v7732_v28 = vpack.c.bf16 %v3798_v19, %v3796_v3  ;;  %v3797_v25 = vld [vmem:[#allocation3 + $0x2d0] sm:$0xff]  ;;  %v3800_v22 = vld [vmem:[#allocation3 + $0x2e8] sm:$0xff] }
 0xc05   :  { %3684 = vst [vmem:[#allocation2 + $0x48] sm:$0x7f] %v3680_v6  ;;  %v3690_v44 = vsel %vm1187_vm7, %v3688_v32, %v3689_v26  ;;  %v3696_v33 = vld [vmem:[#allocation2 + $0x8] sm:$0x7f]  ;;  %v3795_v60 = vld [vmem:[#allocation3 + $0x2c0] sm:$0xff]  ;;  %v3802_v20 = vld [vmem:[#allocation3 + $0x2f8] sm:$0xff]  ;;  %v7744_v32 = vpack.c.bf16 %v3810_v30, %v3808_v11 }
 0xc06   :  { %3694 = vst [vmem:[#allocation2 + $0x58] sm:$0x7f] %v3690_v44  ;;  %4155 = vmatprep.mubr.f32.mxu1 %v3696_v33  ;;  %v7734_v47 = vpack.c.bf16 %v3797_v25, %v3795_v60  ;;  %v7736_v35 = vpack.c.bf16 %v3802_v20, %v3800_v22  ;;  %v3799_v1 = vld [vmem:[#allocation3 + $0x2e0] sm:$0xff]  ;;  %v3801_v34 = vld [vmem:[#allocation3 + $0x2f0] sm:$0xff]  ;;  %v3804_v59 = vld [vmem:[#allocation3 + $0x308] sm:$0xff] }
 0xc07   :  { %4156 = vmatmul.mubr.f32.vlgmr.msra.gmra.mrb[12].mxu1 %v3695_v37  ;;  %v3806_v15 = vld [vmem:[#allocation3 + $0x318] sm:$0xff]  ;;  %v7738_v58 = vpack.c.bf16 %v3801_v34, %v3799_v1  ;;  %v3803_v29 = vld [vmem:[#allocation3 + $0x300] sm:$0xff]  ;;  %v3805_v23 = vld [vmem:[#allocation3 + $0x310] sm:$0xff] }
 0xc08   :  { %7711 = vmatpush1.bf16.msra.mxu1 %v7710_v0  ;;  %v7740_v27 = vpack.c.bf16 %v3806_v15, %v3804_v59  ;;  %v7742_v31 = vpack.c.bf16 %v3805_v23, %v3803_v29  ;;  %v3807_v26 = vld [vmem:[#allocation3 + $0x320] sm:$0xff]  ;;  %v3814_v39 = vld [vmem:[#allocation3 + $0x358] sm:$0xff]  ;;  %v3813_v33 = vld [vmem:[#allocation3 + $0x350] sm:$0xff] }
 0xc09   :  { %v3698_v38 = vld [vmem:[#allocation2 + $0x18] sm:$0x7f]  ;;  %7713 = vmatprep.subr.bf16.mxu1 %v7712_v36  ;;  %v7746_v6 = vpack.c.bf16 %v3809_v21, %v3807_v26  ;;  %v7748_v44 = vpack.c.bf16 %v3814_v39, %v3812_v14  ;;  %v3811_v0 = vld [vmem:[#allocation3 + $0x340] sm:$0xff]  ;;  %v3816_v36 = vld [vmem:[#allocation3 + $0x368] sm:$0xff] }
 0xc0a   :  { %4226 = vmatprep.mubr.f32.mxu1 %v3698_v38  ;;  %v7750_v49 = vpack.c.bf16 %v3813_v33, %v3811_v0  ;;  %v7752_v37 = vpack.c.bf16 %v3818_v50, %v3816_v36  ;;  %v3820_v38 = vld [vmem:[#allocation3 + $0x388] sm:$0xff]  ;;  %v3823_v62 = vld [vmem:[#allocation3 + $0x3a0] sm:$0xff]  ;;  %v3829_v10 = vld [vmem:[#allocation3 + $0x3d0] sm:$0xff] }
 0xc0b   :  { %v3827_v16 = vld [vmem:[#allocation3 + $0x3c0] sm:$0xff]  ;;  %v3832_v63 = vld [vmem:[#allocation3 + $0x3e8] sm:$0xff]  ;;  %v3833_v3 = vld [vmem:[#allocation3 + $0x3f0] sm:$0xff] }
 0xc0c   :  { %7715 = vmatpush1.bf16.msra.mxu1 %v7714_v52  ;;  %v3822_v52 = vld [vmem:[#allocation3 + $0x398] sm:$0xff]  ;;  %v3831_v12 = vld [vmem:[#allocation3 + $0x3e0] sm:$0xff]  ;;  %v3836_v19 = vld [vmem:[#allocation3 + $0x408] sm:$0xff] }
 0xc0d   :  { %7717 = vmatprep.subr.bf16.mxu1 %v7716_v40  ;;  %v7754_v40 = vpack.c.bf16 %v3817_v51, %v3815_v45  ;;  %v7756_v41 = vpack.c.bf16 %v3822_v52, %v3820_v38  ;;  %v3835_v25 = vld [vmem:[#allocation3 + $0x400] sm:$0xff]  ;;  %v3837_v22 = vld [vmem:[#allocation3 + $0x410] sm:$0xff]  ;;  %v3840_v20 = vld [vmem:[#allocation3 + $0x428] sm:$0xff] }
 0xc0e   :  { %v3839_v34 = vld [vmem:[#allocation3 + $0x420] sm:$0xff]  ;;  %v3841_v59 = vld [vmem:[#allocation3 + $0x430] sm:$0xff]  ;;  %v3700_v29 = vld [vmem:[#allocation2 + $0x28] sm:$0x7f] }
 0xc0f   :  { %v3697_v15 = vld [vmem:[#allocation2 + $0x10] sm:$0x7f]  ;;  %v7778_v23 = vpack.c.bf16 %v3841_v59, %v3839_v34  ;;  %v3843_v30 = vld [vmem:[#allocation3 + $0x440] sm:$0xff]  ;;  %v3850_v26 = vld [vmem:[#allocation3 + $0x478] sm:$0xff] }
 0xc10   :  { %7719 = vmatpush1.bf16.msra.mxu1 %v7718_v56  ;;  %v3826_v56 = vld [vmem:[#allocation3 + $0x3b8] sm:$0xff]  ;;  %v3847_v39 = vld [vmem:[#allocation3 + $0x460] sm:$0xff] }
 0xc11   :  { %7721 = vmatprep.subr.bf16.mxu1 %v7720_v57  ;;  %v7758_v57 = vpack.c.bf16 %v3821_v18, %v3819_v43  ;;  %v7760_v61 = vpack.c.bf16 %v3826_v56, %v3824_v54  ;;  %v3854_v0 = vld [vmem:[#allocation3 + $0x498] sm:$0xff]  ;;  %v3851_v50 = vld [vmem:[#allocation3 + $0x480] sm:$0xff] }
 0xc12   :  { %v3858_v45 = vld [vmem:[#allocation3 + $0x4b8] sm:$0xff]  ;;  %v3855_v52 = vld [vmem:[#allocation3 + $0x4a0] sm:$0xff] }
 0xc13   :  { %v3862_v43 = vld [vmem:[#allocation3 + $0x4d8] sm:$0xff]  ;;  %v3859_v56 = vld [vmem:[#allocation3 + $0x4c0] sm:$0xff] }
 0xc14   :  { %7723 = vmatpush1.bf16.msra.mxu1 %v7722_v7  ;;  %v3830_v7 = vld [vmem:[#allocation3 + $0x3d8] sm:$0xff] }
 0xc15   :  { %7725 = vmatprep.subr.bf16.mxu1 %v7724_v8  ;;  %v7762_v8 = vpack.c.bf16 %v3825_v4, %v3823_v62  ;;  %v7764_v9 = vpack.c.bf16 %v3830_v7, %v3828_v5  ;;  %v3866_v62 = vld [vmem:[#allocation3 + $0x4f8] sm:$0xff]  ;;  %v3863_v7 = vld [vmem:[#allocation3 + $0x4e0] sm:$0xff] }
 0xc16   :  { %v3882_v34 = vld [vmem:[#allocation3 + $0x578] sm:$0xff] }
 0xc18   :  { %7727 = vmatpush1.bf16.msra.mxu1 %v7726_v17  ;;  %v3834_v17 = vld [vmem:[#allocation3 + $0x3f8] sm:$0xff] }
 0xc19   :  { %7729 = vmatprep.subr.bf16.mxu1 %v7728_v2  ;;  %v7766_v2 = vpack.c.bf16 %v3829_v10, %v3827_v16  ;;  %v7768_v53 = vpack.c.bf16 %v3834_v17, %v3832_v63  ;;  %v3870_v16 = vld [vmem:[#allocation3 + $0x518] sm:$0xff]  ;;  %v3867_v17 = vld [vmem:[#allocation3 + $0x500] sm:$0xff] }
 0xc1c   :  { %7731 = vmatpush1.bf16.msra.mxu1 %v7730_v13  ;;  %v3838_v13 = vld [vmem:[#allocation3 + $0x418] sm:$0xff] }
 0xc1d   :  { %7733 = vmatprep.subr.bf16.mxu1 %v7732_v28  ;;  %v7770_v28 = vpack.c.bf16 %v3833_v3, %v3831_v12  ;;  %v7772_v60 = vpack.c.bf16 %v3838_v13, %v3836_v19  ;;  %v3874_v12 = vld [vmem:[#allocation3 + $0x538] sm:$0xff]  ;;  %v3871_v13 = vld [vmem:[#allocation3 + $0x520] sm:$0xff] }
 0xc20   :  { %7735 = vmatpush1.bf16.msra.mxu1 %v7734_v47  ;;  %v3842_v47 = vld [vmem:[#allocation3 + $0x438] sm:$0xff] }
 0xc21   :  { %7737 = vmatprep.subr.bf16.mxu1 %v7736_v35  ;;  %v7774_v35 = vpack.c.bf16 %v3837_v22, %v3835_v25  ;;  %v7776_v1 = vpack.c.bf16 %v3842_v47, %v3840_v20  ;;  %v3878_v25 = vld [vmem:[#allocation3 + $0x558] sm:$0xff]  ;;  %v3875_v47 = vld [vmem:[#allocation3 + $0x540] sm:$0xff] }
 0xc24   :  { %7739 = vmatpush1.bf16.msra.mxu1 %v7738_v58  ;;  %v3844_v58 = vld [vmem:[#allocation3 + $0x448] sm:$0xff] }
 0xc25   :  { %7741 = vmatprep.subr.bf16.mxu1 %v7740_v27  ;;  %v3846_v27 = vld [vmem:[#allocation3 + $0x458] sm:$0xff] }
 0xc26   :  { %v7780_v11 = vpack.c.bf16 %v3846_v27, %v3844_v58  ;;  %v3879_v58 = vld [vmem:[#allocation3 + $0x560] sm:$0xff]  ;;  %v3881_v27 = vld [vmem:[#allocation3 + $0x570] sm:$0xff] }
 0xc28   :  { %7743 = vmatpush1.bf16.msra.mxu1 %v7742_v31  ;;  %v3845_v31 = vld [vmem:[#allocation3 + $0x450] sm:$0xff] }
 0xc29   :  { %7745 = vmatprep.subr.bf16.mxu1 %v7744_v32  ;;  %v3848_v32 = vld [vmem:[#allocation3 + $0x468] sm:$0xff]  ;;  %v7782_v21 = vpack.c.bf16 %v3845_v31, %v3843_v30  ;;  %v3883_v31 = vld [vmem:[#allocation3 + $0x580] sm:$0xff] }
 0xc2a   :  { %v7784_v14 = vpack.c.bf16 %v3850_v26, %v3848_v32  ;;  %v3885_v32 = vld [vmem:[#allocation3 + $0x590] sm:$0xff]  ;;  %v3888_v26 = vld [vmem:[#allocation3 + $0x5a8] sm:$0xff] }
 0xc2c   :  { %7747 = vmatpush1.bf16.msra.mxu1 %v7746_v6  ;;  %v3849_v6 = vld [vmem:[#allocation3 + $0x470] sm:$0xff] }
 0xc2d   :  { %7749 = vmatprep.subr.bf16.mxu1 %v7748_v44  ;;  %v3852_v44 = vld [vmem:[#allocation3 + $0x488] sm:$0xff]  ;;  %v7786_v33 = vpack.c.bf16 %v3849_v6, %v3847_v39  ;;  %v3887_v6 = vld [vmem:[#allocation3 + $0x5a0] sm:$0xff] }
 0xc2e   :  { %v7788_v36 = vpack.c.bf16 %v3854_v0, %v3852_v44  ;;  %v3889_v44 = vld [vmem:[#allocation3 + $0x5b0] sm:$0xff]  ;;  %v3892_v0 = vld [vmem:[#allocation3 + $0x5c8] sm:$0xff] }
 0xc30   :  { %7751 = vmatpush1.bf16.msra.mxu1 %v7750_v49  ;;  %v3853_v49 = vld [vmem:[#allocation3 + $0x490] sm:$0xff] }
 0xc31   :  { %7753 = vmatprep.subr.bf16.mxu1 %v7752_v37  ;;  %v3856_v37 = vld [vmem:[#allocation3 + $0x4a8] sm:$0xff]  ;;  %v7790_v51 = vpack.c.bf16 %v3853_v49, %v3851_v50  ;;  %v3891_v49 = vld [vmem:[#allocation3 + $0x5c0] sm:$0xff] }
 0xc32   :  { %v7792_v38 = vpack.c.bf16 %v3858_v45, %v3856_v37  ;;  %v3893_v37 = vld [vmem:[#allocation3 + $0x5d0] sm:$0xff]  ;;  %v3896_v45 = vld [vmem:[#allocation3 + $0x5e8] sm:$0xff] }
 0xc34   :  { %7755 = vmatpush1.bf16.msra.mxu1 %v7754_v40  ;;  %v3857_v40 = vld [vmem:[#allocation3 + $0x4b0] sm:$0xff] }
 0xc35   :  { %7757 = vmatprep.subr.bf16.mxu1 %v7756_v41  ;;  %v3860_v41 = vld [vmem:[#allocation3 + $0x4c8] sm:$0xff]  ;;  %v7794_v18 = vpack.c.bf16 %v3857_v40, %v3855_v52  ;;  %v3895_v40 = vld [vmem:[#allocation3 + $0x5e0] sm:$0xff] }
 0xc36   :  { %v7796_v54 = vpack.c.bf16 %v3862_v43, %v3860_v41  ;;  %v3897_v41 = vld [vmem:[#allocation3 + $0x5f0] sm:$0xff]  ;;  %v3900_v43 = vld [vmem:[#allocation3 + $0x608] sm:$0xff] }
 0xc38   :  { %7759 = vmatpush1.bf16.msra.mxu1 %v7758_v57  ;;  %v3861_v57 = vld [vmem:[#allocation3 + $0x4d0] sm:$0xff] }
 0xc39   :  { %7761 = vmatprep.subr.bf16.mxu1 %v7760_v61  ;;  %v3864_v61 = vld [vmem:[#allocation3 + $0x4e8] sm:$0xff]  ;;  %v7798_v4 = vpack.c.bf16 %v3861_v57, %v3859_v56  ;;  %v3899_v57 = vld [vmem:[#allocation3 + $0x600] sm:$0xff] }
 0xc3a   :  { %v7800_v5 = vpack.c.bf16 %v3866_v62, %v3864_v61  ;;  %v3901_v61 = vld [vmem:[#allocation3 + $0x610] sm:$0xff]  ;;  %v3904_v62 = vld [vmem:[#allocation3 + $0x628] sm:$0xff] }
 0xc3c   :  { %7763 = vmatpush1.bf16.msra.mxu1 %v7762_v8  ;;  %v3865_v8 = vld [vmem:[#allocation3 + $0x4f0] sm:$0xff] }
 0xc3d   :  { %7765 = vmatprep.subr.bf16.mxu1 %v7764_v9  ;;  %v3868_v9 = vld [vmem:[#allocation3 + $0x508] sm:$0xff]  ;;  %v7802_v10 = vpack.c.bf16 %v3865_v8, %v3863_v7  ;;  %v3903_v8 = vld [vmem:[#allocation3 + $0x620] sm:$0xff] }
 0xc3e   :  { %v7804_v63 = vpack.c.bf16 %v3870_v16, %v3868_v9  ;;  %v3905_v9 = vld [vmem:[#allocation3 + $0x630] sm:$0xff]  ;;  %v3699_v16 = vld [vmem:[#allocation2 + $0x20] sm:$0x7f] }
 0xc40   :  { %7767 = vmatpush1.bf16.msra.mxu1 %v7766_v2  ;;  %v3869_v2 = vld [vmem:[#allocation3 + $0x510] sm:$0xff] }
 0xc41   :  { %7769 = vmatprep.subr.bf16.mxu1 %v7768_v53  ;;  %v3872_v53 = vld [vmem:[#allocation3 + $0x528] sm:$0xff]  ;;  %v7806_v3 = vpack.c.bf16 %v3869_v2, %v3867_v17  ;;  %v3702_v17 = vld [vmem:[#allocation2 + $0x38] sm:$0x7f]  ;;  %v7842_v2 = vpack.c.bf16 %v3905_v9, %v3903_v8 }
 0xc42   :  { %v7808_v19 = vpack.c.bf16 %v3874_v12, %v3872_v53  ;;  %v3907_v12 = vld [vmem:[#allocation3 + $0x640] sm:$0xff]  ;;  %v3946_v8 = vld [vmem:[#allocation3 + $0x778] sm:$0xff] }
 0xc44   :  { %7771 = vmatpush1.bf16.msra.mxu1 %v7770_v28  ;;  %v3873_v28 = vld [vmem:[#allocation3 + $0x530] sm:$0xff] }
 0xc45   :  { %7773 = vmatprep.subr.bf16.mxu1 %v7772_v60  ;;  %v3876_v60 = vld [vmem:[#allocation3 + $0x548] sm:$0xff]  ;;  %v7810_v22 = vpack.c.bf16 %v3873_v28, %v3871_v13  ;;  %v3914_v13 = vld [vmem:[#allocation3 + $0x678] sm:$0xff] }
 0xc46   :  { %v7812_v20 = vpack.c.bf16 %v3878_v25, %v3876_v60  ;;  %v3911_v25 = vld [vmem:[#allocation3 + $0x660] sm:$0xff] }
 0xc47   :  { %4227 = vmatmul.mubr.f32.vlgmr.msra.gmra.mrb[12].mxu1 %v3697_v15 }
 0xc48   :  { %7775 = vmatpush1.bf16.msra.mxu1 %v7774_v35  ;;  %4297 = vmatprep.mubr.f32.mxu1 %v3700_v29  ;;  %v3877_v35 = vld [vmem:[#allocation3 + $0x550] sm:$0xff]  ;;  %v3884_v29 = vld [vmem:[#allocation3 + $0x588] sm:$0xff] }
 0xc49   :  { %7777 = vmatprep.subr.bf16.mxu1 %v7776_v1  ;;  %v3880_v1 = vld [vmem:[#allocation3 + $0x568] sm:$0xff]  ;;  %v7814_v59 = vpack.c.bf16 %v3877_v35, %v3875_v47  ;;  %v3918_v47 = vld [vmem:[#allocation3 + $0x698] sm:$0xff] }
 0xc4a   :  { %v7816_v15 = vpack.c.bf16 %v3882_v34, %v3880_v1  ;;  %v3915_v34 = vld [vmem:[#allocation3 + $0x680] sm:$0xff] }
 0xc4c   :  { %7779 = vmatpush1.bf16.msra.mxu1 %v7778_v23  ;;  %v3886_v23 = vld [vmem:[#allocation3 + $0x598] sm:$0xff] }
 0xc4d   :  { %7781 = vmatprep.subr.bf16.mxu1 %v7780_v11  ;;  %v7818_v11 = vpack.c.bf16 %v3881_v27, %v3879_v58  ;;  %v7820_v30 = vpack.c.bf16 %v3886_v23, %v3884_v29  ;;  %v3922_v58 = vld [vmem:[#allocation3 + $0x6b8] sm:$0xff]  ;;  %v3919_v23 = vld [vmem:[#allocation3 + $0x6a0] sm:$0xff] }
 0xc50   :  { %7783 = vmatpush1.bf16.msra.mxu1 %v7782_v21  ;;  %v3890_v21 = vld [vmem:[#allocation3 + $0x5b8] sm:$0xff] }
 0xc51   :  { %7785 = vmatprep.subr.bf16.mxu1 %v7784_v14  ;;  %v7822_v14 = vpack.c.bf16 %v3885_v32, %v3883_v31  ;;  %v7824_v39 = vpack.c.bf16 %v3890_v21, %v3888_v26  ;;  %v3926_v31 = vld [vmem:[#allocation3 + $0x6d8] sm:$0xff]  ;;  %v3923_v21 = vld [vmem:[#allocation3 + $0x6c0] sm:$0xff] }
 0xc54   :  { %7787 = vmatpush1.bf16.msra.mxu1 %v7786_v33  ;;  %v3894_v33 = vld [vmem:[#allocation3 + $0x5d8] sm:$0xff] }
 0xc55   :  { %7789 = vmatprep.subr.bf16.mxu1 %v7788_v36  ;;  %v7826_v36 = vpack.c.bf16 %v3889_v44, %v3887_v6  ;;  %v7828_v50 = vpack.c.bf16 %v3894_v33, %v3892_v0  ;;  %v3930_v6 = vld [vmem:[#allocation3 + $0x6f8] sm:$0xff]  ;;  %v3927_v33 = vld [vmem:[#allocation3 + $0x6e0] sm:$0xff] }
 0xc58   :  { %7791 = vmatpush1.bf16.msra.mxu1 %v7790_v51  ;;  %v3898_v51 = vld [vmem:[#allocation3 + $0x5f8] sm:$0xff] }
 0xc59   :  { %7793 = vmatprep.subr.bf16.mxu1 %v7792_v38  ;;  %v7830_v38 = vpack.c.bf16 %v3893_v37, %v3891_v49  ;;  %v7832_v52 = vpack.c.bf16 %v3898_v51, %v3896_v45  ;;  %v3934_v49 = vld [vmem:[#allocation3 + $0x718] sm:$0xff]  ;;  %v3931_v51 = vld [vmem:[#allocation3 + $0x700] sm:$0xff] }
 0xc5c   :  { %7795 = vmatpush1.bf16.msra.mxu1 %v7794_v18  ;;  %v3902_v18 = vld [vmem:[#allocation3 + $0x618] sm:$0xff] }
 0xc5d   :  { %7797 = vmatprep.subr.bf16.mxu1 %v7796_v54  ;;  %v7834_v54 = vpack.c.bf16 %v3897_v41, %v3895_v40  ;;  %v7836_v56 = vpack.c.bf16 %v3902_v18, %v3900_v43  ;;  %v3938_v40 = vld [vmem:[#allocation3 + $0x738] sm:$0xff]  ;;  %v3935_v18 = vld [vmem:[#allocation3 + $0x720] sm:$0xff] }
 0xc60   :  { %7799 = vmatpush1.bf16.msra.mxu1 %v7798_v4  ;;  %v3906_v4 = vld [vmem:[#allocation3 + $0x638] sm:$0xff] }
 0xc61   :  { %7801 = vmatprep.subr.bf16.mxu1 %v7800_v5  ;;  %v7838_v5 = vpack.c.bf16 %v3901_v61, %v3899_v57  ;;  %v7840_v7 = vpack.c.bf16 %v3906_v4, %v3904_v62  ;;  %v3942_v57 = vld [vmem:[#allocation3 + $0x758] sm:$0xff]  ;;  %v3939_v4 = vld [vmem:[#allocation3 + $0x740] sm:$0xff] }
 0xc64   :  { %7803 = vmatpush1.bf16.msra.mxu1 %v7802_v10  ;;  %v3908_v10 = vld [vmem:[#allocation3 + $0x648] sm:$0xff] }
 0xc65   :  { %7805 = vmatprep.subr.bf16.mxu1 %v7804_v63  ;;  %v3910_v63 = vld [vmem:[#allocation3 + $0x658] sm:$0xff] }
 0xc66   :  { %v7844_v53 = vpack.c.bf16 %v3910_v63, %v3908_v10  ;;  %v3943_v10 = vld [vmem:[#allocation3 + $0x760] sm:$0xff]  ;;  %v3945_v63 = vld [vmem:[#allocation3 + $0x770] sm:$0xff] }
 0xc68   :  { %7807 = vmatpush1.bf16.msra.mxu1 %v7806_v3  ;;  %v3909_v3 = vld [vmem:[#allocation3 + $0x650] sm:$0xff] }
 0xc69   :  { %7809 = vmatprep.subr.bf16.mxu1 %v7808_v19  ;;  %v3912_v19 = vld [vmem:[#allocation3 + $0x668] sm:$0xff]  ;;  %v7846_v28 = vpack.c.bf16 %v3909_v3, %v3907_v12  ;;  %v3947_v3 = vld [vmem:[#allocation3 + $0x780] sm:$0xff] }
 0xc6a   :  { %v7848_v60 = vpack.c.bf16 %v3914_v13, %v3912_v19  ;;  %v3949_v19 = vld [vmem:[#allocation3 + $0x790] sm:$0xff]  ;;  %v3952_v13 = vld [vmem:[#allocation3 + $0x7a8] sm:$0xff] }
 0xc6c   :  { %7811 = vmatpush1.bf16.msra.mxu1 %v7810_v22  ;;  %v3913_v22 = vld [vmem:[#allocation3 + $0x670] sm:$0xff] }
 0xc6d   :  { %7813 = vmatprep.subr.bf16.mxu1 %v7812_v20  ;;  %v3916_v20 = vld [vmem:[#allocation3 + $0x688] sm:$0xff]  ;;  %v7850_v35 = vpack.c.bf16 %v3913_v22, %v3911_v25  ;;  %v3951_v22 = vld [vmem:[#allocation3 + $0x7a0] sm:$0xff] }
 0xc6e   :  { %v7852_v1 = vpack.c.bf16 %v3918_v47, %v3916_v20  ;;  %v3953_v20 = vld [vmem:[#allocation3 + $0x7b0] sm:$0xff]  ;;  %v3956_v47 = vld [vmem:[#allocation3 + $0x7c8] sm:$0xff] }
 0xc70   :  { %7815 = vmatpush1.bf16.msra.mxu1 %v7814_v59  ;;  %v3917_v59 = vld [vmem:[#allocation3 + $0x690] sm:$0xff] }
 0xc71   :  { %7817 = vmatprep.subr.bf16.mxu1 %v7816_v15  ;;  %v3920_v15 = vld [vmem:[#allocation3 + $0x6a8] sm:$0xff]  ;;  %v7854_v27 = vpack.c.bf16 %v3917_v59, %v3915_v34  ;;  %v3955_v59 = vld [vmem:[#allocation3 + $0x7c0] sm:$0xff] }
 0xc72   :  { %v7856_v29 = vpack.c.bf16 %v3922_v58, %v3920_v15  ;;  %v3957_v15 = vld [vmem:[#allocation3 + $0x7d0] sm:$0xff]  ;;  %v3960_v58 = vld [vmem:[#allocation3 + $0x7e8] sm:$0xff] }
 0xc74   :  { %7819 = vmatpush1.bf16.msra.mxu1 %v7818_v11  ;;  %v3921_v11 = vld [vmem:[#allocation3 + $0x6b0] sm:$0xff] }
 0xc75   :  { %7821 = vmatprep.subr.bf16.mxu1 %v7820_v30  ;;  %v3924_v30 = vld [vmem:[#allocation3 + $0x6c8] sm:$0xff]  ;;  %v7858_v32 = vpack.c.bf16 %v3921_v11, %v3919_v23  ;;  %v3959_v11 = vld [vmem:[#allocation3 + $0x7e0] sm:$0xff] }
 0xc76   :  { %v7860_v26 = vpack.c.bf16 %v3926_v31, %v3924_v30  ;;  %v3961_v30 = vld [vmem:[#allocation3 + $0x7f0] sm:$0xff]  ;;  %v3964_v31 = vld [vmem:[#allocation3 + $0x808] sm:$0xff] }
 0xc78   :  { %7823 = vmatpush1.bf16.msra.mxu1 %v7822_v14  ;;  %v3925_v14 = vld [vmem:[#allocation3 + $0x6d0] sm:$0xff] }
 0xc79   :  { %7825 = vmatprep.subr.bf16.mxu1 %v7824_v39  ;;  %v3928_v39 = vld [vmem:[#allocation3 + $0x6e8] sm:$0xff]  ;;  %v7862_v44 = vpack.c.bf16 %v3925_v14, %v3923_v21  ;;  %v3963_v14 = vld [vmem:[#allocation3 + $0x800] sm:$0xff] }
 0xc7a   :  { %v7864_v0 = vpack.c.bf16 %v3930_v6, %v3928_v39  ;;  %v3965_v39 = vld [vmem:[#allocation3 + $0x810] sm:$0xff]  ;;  %v3968_v6 = vld [vmem:[#allocation3 + $0x828] sm:$0xff] }
 0xc7c   :  { %7827 = vmatpush1.bf16.msra.mxu1 %v7826_v36  ;;  %v3929_v36 = vld [vmem:[#allocation3 + $0x6f0] sm:$0xff] }
 0xc7d   :  { %7829 = vmatprep.subr.bf16.mxu1 %v7828_v50  ;;  %v3932_v50 = vld [vmem:[#allocation3 + $0x708] sm:$0xff]  ;;  %v7866_v37 = vpack.c.bf16 %v3929_v36, %v3927_v33  ;;  %v3701_v33 = vld [vmem:[#allocation2 + $0x30] sm:$0x7f] }
 0xc7e   :  { %v7868_v45 = vpack.c.bf16 %v3934_v49, %v3932_v50  ;;  %v3967_v50 = vld [vmem:[#allocation3 + $0x820] sm:$0xff]  ;;  %v3969_v49 = vld [vmem:[#allocation3 + $0x830] sm:$0xff] }
 0xc80   :  { %7831 = vmatpush1.bf16.msra.mxu1 %v7830_v38  ;;  %v3933_v38 = vld [vmem:[#allocation3 + $0x710] sm:$0xff] }
 0xc81   :  { %7833 = vmatprep.subr.bf16.mxu1 %v7832_v52  ;;  %v3936_v52 = vld [vmem:[#allocation3 + $0x728] sm:$0xff]  ;;  %v7870_v41 = vpack.c.bf16 %v3933_v38, %v3931_v51  ;;  %v3974_v51 = vld [vmem:[#allocation3 + $0x858] sm:$0xff]  ;;  %v3971_v38 = vld [vmem:[#allocation3 + $0x840] sm:$0xff] }
 0xc82   :  { %v7872_v43 = vpack.c.bf16 %v3938_v40, %v3936_v52  ;;  %v3973_v52 = vld [vmem:[#allocation3 + $0x850] sm:$0xff]  ;;  %v4565_v40 = vld [vmem:[%s13014_s6 + $0x380] sm:$0xff] }
 0xc84   :  { %7835 = vmatpush1.bf16.msra.mxu1 %v7834_v54  ;;  %v3937_v54 = vld [vmem:[#allocation3 + $0x730] sm:$0xff] }
 0xc85   :  { %7837 = vmatprep.subr.bf16.mxu1 %v7836_v56  ;;  %v3940_v56 = vld [vmem:[#allocation3 + $0x748] sm:$0xff]  ;;  %v7874_v61 = vpack.c.bf16 %v3937_v54, %v3935_v18  ;;  %v7906_v18 = vpack.c.bf16 %v3969_v49, %v3967_v50  ;;  %v3993_v50 = vld [vmem:[#allocation3 + $0x8f0] sm:$0xff] }
 0xc86   :  { %v7876_v62 = vpack.c.bf16 %v3942_v57, %v3940_v56  ;;  %v4550_v56 = vld [vmem:[%s13014_s6 + $0x308] sm:$0xff]  ;;  %v4567_v57 = vld [vmem:[%s13014_s6 + $0x390] sm:$0xff] }
 0xc87   :  { %4298 = vmatmul.mubr.f32.vlgmr.msra.gmra.mrb[12].mxu1 %v3699_v16  ;;  %v3996_v49 = vld [vmem:[#allocation3 + $0x908] sm:$0xff] }
 0xc88   :  { %7839 = vmatpush1.bf16.msra.mxu1 %v7838_v5  ;;  %4368 = vmatprep.mubr.f32.mxu1 %v3702_v17  ;;  %v3941_v5 = vld [vmem:[#allocation3 + $0x750] sm:$0xff]  ;;  %v3948_v17 = vld [vmem:[#allocation3 + $0x788] sm:$0xff] }
 0xc89   :  { %7841 = vmatprep.subr.bf16.mxu1 %v7840_v7  ;;  %v3944_v7 = vld [vmem:[#allocation3 + $0x768] sm:$0xff]  ;;  %v7878_v9 = vpack.c.bf16 %v3941_v5, %v3939_v4 }
 0xc8a   :  { %v7880_v16 = vpack.c.bf16 %v3946_v8, %v3944_v7  ;;  %v4551_v7 = vld [vmem:[%s13014_s6 + $0x310] sm:$0xff]  ;;  %v4552_v8 = vld [vmem:[%s13014_s6 + $0x318] sm:$0xff] }
 0xc8c   :  { %7843 = vmatpush1.bf16.msra.mxu1 %v7842_v2  ;;  %v3950_v2 = vld [vmem:[#allocation3 + $0x798] sm:$0xff] }
 0xc8d   :  { %7845 = vmatprep.subr.bf16.mxu1 %v7844_v53  ;;  %v7882_v53 = vpack.c.bf16 %v3945_v63, %v3943_v10  ;;  %v7884_v12 = vpack.c.bf16 %v3950_v2, %v3948_v17  ;;  %v3978_v10 = vld [vmem:[#allocation3 + $0x878] sm:$0xff]  ;;  %v4570_v63 = vld [vmem:[%s13014_s6 + $0x3a8] sm:$0xff]  ;;  %v8034_v17 = vpack.c.bf16 %v4552_v8, %v4551_v7  ;;  %v7910_v2 = vpack.c.bf16 %v3973_v52, %v3971_v38  ;;  %v3995_v38 = vld [vmem:[#allocation3 + $0x900] sm:$0xff] }
 0xc8e   :  { %v3997_v52 = vld [vmem:[#allocation3 + $0x910] sm:$0xff]  ;;  %v4008_v8 = vld [vmem:[#allocation3 + $0x968] sm:$0xff] }
 0xc8f   :  { %v4005_v7 = vld [vmem:[#allocation3 + $0x950] sm:$0xff] }
 0xc90   :  { %7847 = vmatpush1.bf16.msra.mxu1 %v7846_v28  ;;  %v3954_v28 = vld [vmem:[#allocation3 + $0x7b8] sm:$0xff] }
 0xc91   :  { %7849 = vmatprep.subr.bf16.mxu1 %v7848_v60  ;;  %v7886_v60 = vpack.c.bf16 %v3949_v19, %v3947_v3  ;;  %v7888_v25 = vpack.c.bf16 %v3954_v28, %v3952_v13  ;;  %v4553_v3 = vld [vmem:[%s13014_s6 + $0x320] sm:$0xff]  ;;  %v4554_v19 = vld [vmem:[%s13014_s6 + $0x328] sm:$0xff]  ;;  %v3977_v28 = vld [vmem:[#allocation3 + $0x870] sm:$0xff] }
 0xc94   :  { %7851 = vmatpush1.bf16.msra.mxu1 %v7850_v35  ;;  %v3958_v35 = vld [vmem:[#allocation3 + $0x7d8] sm:$0xff] }
 0xc95   :  { %7853 = vmatprep.subr.bf16.mxu1 %v7852_v1  ;;  %v7890_v1 = vpack.c.bf16 %v3953_v20, %v3951_v22  ;;  %v7892_v34 = vpack.c.bf16 %v3958_v35, %v3956_v47  ;;  %v3980_v22 = vld [vmem:[#allocation3 + $0x888] sm:$0xff]  ;;  %v3982_v20 = vld [vmem:[#allocation3 + $0x898] sm:$0xff]  ;;  %v8038_v47 = vpack.c.bf16 %v4554_v19, %v4553_v3  ;;  %v4011_v19 = vld [vmem:[#allocation3 + $0x980] sm:$0xff] }
 0xc98   :  { %7855 = vmatpush1.bf16.msra.mxu1 %v7854_v27  ;;  %v3962_v27 = vld [vmem:[#allocation3 + $0x7f8] sm:$0xff] }
 0xc99   :  { %7857 = vmatprep.subr.bf16.mxu1 %v7856_v29  ;;  %v7894_v29 = vpack.c.bf16 %v3957_v15, %v3955_v59  ;;  %v7896_v23 = vpack.c.bf16 %v3962_v27, %v3960_v58  ;;  %v3979_v59 = vld [vmem:[#allocation3 + $0x880] sm:$0xff]  ;;  %v3981_v15 = vld [vmem:[#allocation3 + $0x890] sm:$0xff]  ;;  %v3984_v58 = vld [vmem:[#allocation3 + $0x8a8] sm:$0xff] }
 0xc9a   :  { %v3986_v27 = vld [vmem:[#allocation3 + $0x8b8] sm:$0xff] }
 0xc9c   :  { %7859 = vmatpush1.bf16.msra.mxu1 %v7858_v32  ;;  %v3966_v32 = vld [vmem:[#allocation3 + $0x818] sm:$0xff] }
 0xc9d   :  { %7861 = vmatprep.subr.bf16.mxu1 %v7860_v26  ;;  %v7898_v26 = vpack.c.bf16 %v3961_v30, %v3959_v11  ;;  %v7900_v21 = vpack.c.bf16 %v3966_v32, %v3964_v31  ;;  %v3983_v11 = vld [vmem:[#allocation3 + $0x8a0] sm:$0xff]  ;;  %v3985_v30 = vld [vmem:[#allocation3 + $0x8b0] sm:$0xff]  ;;  %v3988_v31 = vld [vmem:[#allocation3 + $0x8c8] sm:$0xff] }
 0xc9e   :  { %v3990_v32 = vld [vmem:[#allocation3 + $0x8d8] sm:$0xff] }
 0xca0   :  { %7863 = vmatpush1.bf16.msra.mxu1 %v7862_v44  ;;  %v3970_v44 = vld [vmem:[#allocation3 + $0x838] sm:$0xff] }
 0xca1   :  { %7865 = vmatprep.subr.bf16.mxu1 %v7864_v0  ;;  %v7902_v0 = vpack.c.bf16 %v3965_v39, %v3963_v14  ;;  %v7904_v36 = vpack.c.bf16 %v3970_v44, %v3968_v6  ;;  %v3987_v14 = vld [vmem:[#allocation3 + $0x8c0] sm:$0xff]  ;;  %v3989_v39 = vld [vmem:[#allocation3 + $0x8d0] sm:$0xff]  ;;  %v3992_v6 = vld [vmem:[#allocation3 + $0x8e8] sm:$0xff] }
 0xca2   :  { %v3994_v44 = vld [vmem:[#allocation3 + $0x8f8] sm:$0xff] }
 0xca4   :  { %7867 = vmatpush1.bf16.msra.mxu1 %v7866_v37  ;;  %v3704_v37 = vld [vmem:[#allocation2 + $0x48] sm:$0x7f] }
 0xca5   :  { %7869 = vmatprep.subr.bf16.mxu1 %v7868_v45  ;;  %v3972_v45 = vld [vmem:[#allocation3 + $0x848] sm:$0xff] }
 0xca8   :  { %7871 = vmatpush1.bf16.msra.mxu1 %v7870_v41  ;;  %v4566_v41 = vld [vmem:[%s13014_s6 + $0x388] sm:$0xff] }
 0xca9   :  { %7873 = vmatprep.subr.bf16.mxu1 %v7872_v43  ;;  %v4549_v43 = vld [vmem:[%s13014_s6 + $0x300] sm:$0xff]  ;;  %v8028_v54 = vpack.c.bf16 %v4566_v41, %v4565_v40  ;;  %v4000_v40 = vld [vmem:[#allocation3 + $0x928] sm:$0xff]  ;;  %v4002_v41 = vld [vmem:[#allocation3 + $0x938] sm:$0xff] }
 0xcaa   :  { %v8030_v4 = vpack.c.bf16 %v4550_v56, %v4549_v43  ;;  %v7934_v43 = vpack.c.bf16 %v3997_v52, %v3995_v38  ;;  %v4001_v56 = vld [vmem:[#allocation3 + $0x930] sm:$0xff]  ;;  %v3706_v38 = vld [vmem:[#allocation2 + $0x58] sm:$0x7f] }
 0xcab   :  { %8029 = vmatprep.subr.bf16.mxu0 %v8028_v54  ;;  %v3999_v54 = vld [vmem:[#allocation3 + $0x920] sm:$0xff] }
 0xcac   :  { %7875 = vmatpush1.bf16.msra.mxu1 %v7874_v61  ;;  %v4568_v61 = vld [vmem:[%s13014_s6 + $0x398] sm:$0xff]  ;;  %8031 = vmatpush3.bf16.msra.mxu0 %v8030_v4 }
 0xcad   :  { %7877 = vmatprep.subr.bf16.mxu1 %v7876_v62  ;;  %v7908_v62 = vpack.c.bf16 %v3974_v51, %v3972_v45  ;;  %v8032_v5 = vpack.c.bf16 %v4568_v61, %v4567_v57  ;;  %v4004_v57 = vld [vmem:[#allocation3 + $0x948] sm:$0xff]  ;;  %v4006_v61 = vld [vmem:[#allocation3 + $0x958] sm:$0xff] }
 0xcae   :  { %v7940_v4 = vpack.c.bf16 %v4006_v61, %v4004_v57  ;;  %v4039_v61 = vld [vmem:[#allocation3 + $0xa60] sm:$0xff] }
 0xcaf   :  { %8033 = vmatprep.subr.bf16.mxu0 %v8032_v5  ;;  %v4003_v5 = vld [vmem:[#allocation3 + $0x940] sm:$0xff] }
 0xcb0   :  { %7879 = vmatpush1.bf16.msra.mxu1 %v7878_v9  ;;  %v4569_v9 = vld [vmem:[%s13014_s6 + $0x3a0] sm:$0xff]  ;;  %8035 = vmatpush3.bf16.msra.mxu0 %v8034_v17  ;;  %v4009_v17 = vld [vmem:[#allocation3 + $0x970] sm:$0xff] }
 0xcb1   :  { %7881 = vmatprep.subr.bf16.mxu1 %v7880_v16  ;;  %v3976_v16 = vld [vmem:[#allocation3 + $0x868] sm:$0xff] }
 0xcb2   :  { %v7912_v13 = vpack.c.bf16 %v3978_v10, %v3976_v16  ;;  %v7942_v16 = vpack.c.bf16 %v4005_v7, %v4003_v5  ;;  %v4046_v5 = vld [vmem:[#allocation3 + $0xa98] sm:$0xff] }
 0xcb4   :  { %7883 = vmatpush1.bf16.msra.mxu1 %v7882_v53  ;;  %v3975_v53 = vld [vmem:[#allocation3 + $0x860] sm:$0xff] }
 0xcb5   :  { %7885 = vmatprep.subr.bf16.mxu1 %v7884_v12  ;;  %v8036_v12 = vpack.c.bf16 %v4570_v63, %v4569_v9  ;;  %v7914_v35 = vpack.c.bf16 %v3977_v28, %v3975_v53  ;;  %v4010_v9 = vld [vmem:[#allocation3 + $0x978] sm:$0xff]  ;;  %v4007_v63 = vld [vmem:[#allocation3 + $0x960] sm:$0xff]  ;;  %v4016_v28 = vld [vmem:[#allocation3 + $0x9a8] sm:$0xff] }
 0xcb6   :  { %v7944_v10 = vpack.c.bf16 %v4010_v9, %v4008_v8  ;;  %v4014_v53 = vld [vmem:[#allocation3 + $0x998] sm:$0xff]  ;;  %v4043_v9 = vld [vmem:[#allocation3 + $0xa80] sm:$0xff] }
 0xcb7   :  { %8037 = vmatprep.subr.bf16.mxu0 %v8036_v12  ;;  %v7946_v12 = vpack.c.bf16 %v4009_v17, %v4007_v63  ;;  %v4050_v63 = vld [vmem:[#allocation3 + $0xab8] sm:$0xff] }
 0xcb8   :  { %7887 = vmatpush1.bf16.msra.mxu1 %v7886_v60  ;;  %v4571_v60 = vld [vmem:[%s13014_s6 + $0x3b0] sm:$0xff]  ;;  %8039 = vmatpush3.bf16.msra.mxu0 %v8038_v47 }
 0xcb9   :  { %7889 = vmatprep.subr.bf16.mxu1 %v7888_v25  ;;  %v4572_v25 = vld [vmem:[%s13014_s6 + $0x3b8] sm:$0xff]  ;;  %v4017_v47 = vld [vmem:[#allocation3 + $0x9b0] sm:$0xff] }
 0xcbc   :  { %7891 = vmatpush1.bf16.msra.mxu1 %v7890_v1  ;;  %v8040_v1 = vpack.c.bf16 %v4572_v25, %v4571_v60  ;;  %v4018_v60 = vld [vmem:[#allocation3 + $0x9b8] sm:$0xff] }
 0xcbd   :  { %7893 = vmatprep.subr.bf16.mxu1 %v7892_v34  ;;  %v7916_v34 = vpack.c.bf16 %v3982_v20, %v3980_v22  ;;  %v7952_v22 = vpack.c.bf16 %v4018_v60, %v4016_v28  ;;  %v4015_v20 = vld [vmem:[#allocation3 + $0x9a0] sm:$0xff] }
 0xcbe   :  { %8041 = vmatprep.subr.bf16.mxu0 %v8040_v1  ;;  %v4022_v1 = vld [vmem:[#allocation3 + $0x9d8] sm:$0xff]  ;;  %v4051_v60 = vld [vmem:[#allocation3 + $0xac0] sm:$0xff] }
 0xcc0   :  { %7895 = vmatpush1.bf16.msra.mxu1 %v7894_v29  ;;  %v7918_v29 = vpack.c.bf16 %v3981_v15, %v3979_v59  ;;  %v4019_v15 = vld [vmem:[#allocation3 + $0x9c0] sm:$0xff] }
 0xcc1   :  { %7897 = vmatprep.subr.bf16.mxu1 %v7896_v23  ;;  %v7920_v23 = vpack.c.bf16 %v3986_v27, %v3984_v58  ;;  %v4021_v58 = vld [vmem:[#allocation3 + $0x9d0] sm:$0xff]  ;;  %v4024_v27 = vld [vmem:[#allocation3 + $0x9e8] sm:$0xff] }
 0xcc4   :  { %7899 = vmatpush1.bf16.msra.mxu1 %v7898_v26  ;;  %v7922_v26 = vpack.c.bf16 %v3985_v30, %v3983_v11  ;;  %v4023_v30 = vld [vmem:[#allocation3 + $0x9e0] sm:$0xff] }
 0xcc5   :  { %7901 = vmatprep.subr.bf16.mxu1 %v7900_v21  ;;  %v7924_v21 = vpack.c.bf16 %v3990_v32, %v3988_v31  ;;  %v4025_v31 = vld [vmem:[#allocation3 + $0x9f0] sm:$0xff]  ;;  %v4028_v32 = vld [vmem:[#allocation3 + $0xa08] sm:$0xff] }
 0xcc7   :  { %4369 = vmatmul.mubr.f32.vlgmr.msra.gmra.mrb[12].mxu1 %v3701_v33  ;;  %v7928_v33 = vpack.c.bf16 %v3994_v44, %v3992_v6  ;;  %v4029_v6 = vld [vmem:[#allocation3 + $0xa10] sm:$0xff]  ;;  %v4032_v44 = vld [vmem:[#allocation3 + $0xa28] sm:$0xff] }
 0xcc8   :  { %7903 = vmatpush1.bf16.msra.mxu1 %v7902_v0  ;;  %4439 = vmatprep.mubr.f32.mxu1 %v3704_v37  ;;  %v7926_v0 = vpack.c.bf16 %v3989_v39, %v3987_v14  ;;  %v3998_v37 = vld [vmem:[#allocation3 + $0x918] sm:$0xff]  ;;  %v4027_v39 = vld [vmem:[#allocation3 + $0xa00] sm:$0xff] }
 0xcc9   :  { %7905 = vmatprep.subr.bf16.mxu1 %v7904_v36  ;;  %v3991_v36 = vld [vmem:[#allocation3 + $0x8e0] sm:$0xff]  ;;  %v7932_v51 = vpack.c.bf16 %v3998_v37, %v3996_v49  ;;  %v4033_v49 = vld [vmem:[#allocation3 + $0xa30] sm:$0xff] }
 0xcca   :  { %v7930_v45 = vpack.c.bf16 %v3993_v50, %v3991_v36  ;;  %v4031_v50 = vld [vmem:[#allocation3 + $0xa20] sm:$0xff] }
 0xccb   :  { %v3703_v37 = vld [vmem:[#allocation2 + $0x40] sm:$0x7f]  ;;  %v7970_v52 = vpack.c.bf16 %v4033_v49, %v4031_v50  ;;  %v4074_v50 = vld [vmem:[#allocation3 + $0xb78] sm:$0xff] }
 0xccc   :  { %7907 = vmatpush1.bf16.msra.mxu1 %v7906_v18  ;;  %v7936_v18 = vpack.c.bf16 %v4002_v41, %v4000_v40  ;;  %v4035_v41 = vld [vmem:[#allocation3 + $0xa40] sm:$0xff] }
 0xccd   :  { %7909 = vmatprep.subr.bf16.mxu1 %v7908_v62  ;;  %v7938_v62 = vpack.c.bf16 %v4001_v56, %v3999_v54  ;;  %v4042_v54 = vld [vmem:[#allocation3 + $0xa78] sm:$0xff] }
 0xcd0   :  { %7911 = vmatpush1.bf16.msra.mxu1 %v7910_v2  ;;  %v4012_v2 = vld [vmem:[#allocation3 + $0x988] sm:$0xff] }
 0xcd1   :  { %7913 = vmatprep.subr.bf16.mxu1 %v7912_v13  ;;  %v7948_v3 = vpack.c.bf16 %v4014_v53, %v4012_v2  ;;  %v4013_v13 = vld [vmem:[#allocation3 + $0x990] sm:$0xff]  ;;  %v4047_v53 = vld [vmem:[#allocation3 + $0xaa0] sm:$0xff] }
 0xcd2   :  { %v7950_v25 = vpack.c.bf16 %v4013_v13, %v4011_v19  ;;  %v4054_v19 = vld [vmem:[#allocation3 + $0xad8] sm:$0xff] }
 0xcd4   :  { %7915 = vmatpush1.bf16.msra.mxu1 %v7914_v35  ;;  %v4020_v35 = vld [vmem:[#allocation3 + $0x9c8] sm:$0xff] }
 0xcd5   :  { %7917 = vmatprep.subr.bf16.mxu1 %v7916_v34  ;;  %v7954_v34 = vpack.c.bf16 %v4017_v47, %v4015_v20  ;;  %v7956_v59 = vpack.c.bf16 %v4022_v1, %v4020_v35  ;;  %v4058_v20 = vld [vmem:[#allocation3 + $0xaf8] sm:$0xff]  ;;  %v4055_v1 = vld [vmem:[#allocation3 + $0xae0] sm:$0xff] }
 0xcd8   :  { %7919 = vmatpush1.bf16.msra.mxu1 %v7918_v29  ;;  %v4026_v29 = vld [vmem:[#allocation3 + $0x9f8] sm:$0xff] }
 0xcd9   :  { %7921 = vmatprep.subr.bf16.mxu1 %v7920_v23  ;;  %v7958_v23 = vpack.c.bf16 %v4021_v58, %v4019_v15  ;;  %v7960_v11 = vpack.c.bf16 %v4026_v29, %v4024_v27  ;;  %v4062_v15 = vld [vmem:[#allocation3 + $0xb18] sm:$0xff]  ;;  %v4059_v29 = vld [vmem:[#allocation3 + $0xb00] sm:$0xff] }
 0xcdc   :  { %7923 = vmatpush1.bf16.msra.mxu1 %v7922_v26  ;;  %v4030_v26 = vld [vmem:[#allocation3 + $0xa18] sm:$0xff] }
 0xcdd   :  { %7925 = vmatprep.subr.bf16.mxu1 %v7924_v21  ;;  %v7962_v21 = vpack.c.bf16 %v4025_v31, %v4023_v30  ;;  %v7964_v14 = vpack.c.bf16 %v4030_v26, %v4028_v32  ;;  %v4066_v30 = vld [vmem:[#allocation3 + $0xb38] sm:$0xff]  ;;  %v4063_v26 = vld [vmem:[#allocation3 + $0xb20] sm:$0xff] }
 0xce0   :  { %7927 = vmatpush1.bf16.msra.mxu1 %v7926_v0  ;;  %v4034_v0 = vld [vmem:[#allocation3 + $0xa38] sm:$0xff] }
 0xce1   :  { %7929 = vmatprep.subr.bf16.mxu1 %v7928_v33  ;;  %v7966_v33 = vpack.c.bf16 %v4029_v6, %v4027_v39  ;;  %v7968_v36 = vpack.c.bf16 %v4034_v0, %v4032_v44  ;;  %v4070_v39 = vld [vmem:[#allocation3 + $0xb58] sm:$0xff]  ;;  %v4067_v0 = vld [vmem:[#allocation3 + $0xb40] sm:$0xff] }
 0xce4   :  { %7931 = vmatpush1.bf16.msra.mxu1 %v7930_v45  ;;  %v4036_v45 = vld [vmem:[#allocation3 + $0xa48] sm:$0xff] }
 0xce5   :  { %7933 = vmatprep.subr.bf16.mxu1 %v7932_v51  ;;  %v4038_v51 = vld [vmem:[#allocation3 + $0xa58] sm:$0xff] }
 0xce6   :  { %v7972_v40 = vpack.c.bf16 %v4038_v51, %v4036_v45  ;;  %v4071_v45 = vld [vmem:[#allocation3 + $0xb60] sm:$0xff]  ;;  %v4073_v51 = vld [vmem:[#allocation3 + $0xb70] sm:$0xff] }
 0xce8   :  { %7935 = vmatpush1.bf16.msra.mxu1 %v7934_v43  ;;  %v4037_v43 = vld [vmem:[#allocation3 + $0xa50] sm:$0xff] }
 0xce9   :  { %7937 = vmatprep.subr.bf16.mxu1 %v7936_v18  ;;  %v4040_v18 = vld [vmem:[#allocation3 + $0xa68] sm:$0xff]  ;;  %v7974_v56 = vpack.c.bf16 %v4037_v43, %v4035_v41  ;;  %v4075_v43 = vld [vmem:[#allocation3 + $0xb80] sm:$0xff] }
 0xcea   :  { %v7976_v57 = vpack.c.bf16 %v4042_v54, %v4040_v18  ;;  %v4077_v18 = vld [vmem:[#allocation3 + $0xb90] sm:$0xff]  ;;  %v4080_v54 = vld [vmem:[#allocation3 + $0xba8] sm:$0xff] }
 0xcec   :  { %7939 = vmatpush1.bf16.msra.mxu1 %v7938_v62  ;;  %v4041_v62 = vld [vmem:[#allocation3 + $0xa70] sm:$0xff] }
 0xced   :  { %7941 = vmatprep.subr.bf16.mxu1 %v7940_v4  ;;  %v4044_v4 = vld [vmem:[#allocation3 + $0xa88] sm:$0xff]  ;;  %v7978_v7 = vpack.c.bf16 %v4041_v62, %v4039_v61  ;;  %v4079_v62 = vld [vmem:[#allocation3 + $0xba0] sm:$0xff] }
 0xcee   :  { %v7980_v8 = vpack.c.bf16 %v4046_v5, %v4044_v4  ;;  %v4081_v4 = vld [vmem:[#allocation3 + $0xbb0] sm:$0xff]  ;;  %v4084_v5 = vld [vmem:[#allocation3 + $0xbc8] sm:$0xff] }
 0xcf0   :  { %7943 = vmatpush1.bf16.msra.mxu1 %v7942_v16  ;;  %v4045_v16 = vld [vmem:[#allocation3 + $0xa90] sm:$0xff] }
 0xcf1   :  { %7945 = vmatprep.subr.bf16.mxu1 %v7944_v10  ;;  %v4048_v10 = vld [vmem:[#allocation3 + $0xaa8] sm:$0xff]  ;;  %v7982_v17 = vpack.c.bf16 %v4045_v16, %v4043_v9  ;;  %v4083_v16 = vld [vmem:[#allocation3 + $0xbc0] sm:$0xff] }
 0xcf2   :  { %v7984_v2 = vpack.c.bf16 %v4050_v63, %v4048_v10  ;;  %v4085_v10 = vld [vmem:[#allocation3 + $0xbd0] sm:$0xff]  ;;  %v4088_v63 = vld [vmem:[#allocation3 + $0xbe8] sm:$0xff] }
 0xcf4   :  { %7947 = vmatpush1.bf16.msra.mxu1 %v7946_v12  ;;  %v4049_v12 = vld [vmem:[#allocation3 + $0xab0] sm:$0xff] }
 0xcf5   :  { %7949 = vmatprep.subr.bf16.mxu1 %v7948_v3  ;;  %v4052_v3 = vld [vmem:[#allocation3 + $0xac8] sm:$0xff]  ;;  %v7986_v13 = vpack.c.bf16 %v4049_v12, %v4047_v53  ;;  %v4087_v12 = vld [vmem:[#allocation3 + $0xbe0] sm:$0xff] }
 0xcf6   :  { %v7988_v28 = vpack.c.bf16 %v4054_v19, %v4052_v3  ;;  %v4089_v3 = vld [vmem:[#allocation3 + $0xbf0] sm:$0xff] }
 0xcf7   :  { %v8026_v19 = vpack.c.bf16 %v4089_v3, %v4087_v12 }
 0xcf8   :  { %7951 = vmatpush1.bf16.msra.mxu1 %v7950_v25  ;;  %v4053_v25 = vld [vmem:[#allocation3 + $0xad0] sm:$0xff] }
 0xcf9   :  { %7953 = vmatprep.subr.bf16.mxu1 %v7952_v22  ;;  %v4056_v22 = vld [vmem:[#allocation3 + $0xae8] sm:$0xff]  ;;  %v7990_v47 = vpack.c.bf16 %v4053_v25, %v4051_v60  ;;  %v4556_v60 = vld [vmem:[%s13014_s6 + $0x338] sm:$0xff] }
 0xcfa   :  { %v7992_v35 = vpack.c.bf16 %v4058_v20, %v4056_v22  ;;  %v4573_v22 = vld [vmem:[%s13014_s6 + $0x3c0] sm:$0xff]  ;;  %v4574_v20 = vld [vmem:[%s13014_s6 + $0x3c8] sm:$0xff] }
 0xcfc   :  { %7955 = vmatpush1.bf16.msra.mxu1 %v7954_v34  ;;  %v4057_v34 = vld [vmem:[#allocation3 + $0xaf0] sm:$0xff] }
 0xcfd   :  { %7957 = vmatprep.subr.bf16.mxu1 %v7956_v59  ;;  %v4060_v59 = vld [vmem:[#allocation3 + $0xb08] sm:$0xff]  ;;  %v7994_v58 = vpack.c.bf16 %v4057_v34, %v4055_v1 }
 0xcfe   :  { %v7996_v27 = vpack.c.bf16 %v4062_v15, %v4060_v59  ;;  %v4558_v1 = vld [vmem:[%s13014_s6 + $0x348] sm:$0xff]  ;;  %v4575_v59 = vld [vmem:[%s13014_s6 + $0x3d0] sm:$0xff]  ;;  %v4576_v15 = vld [vmem:[%s13014_s6 + $0x3d8] sm:$0xff] }
 0xd00   :  { %7959 = vmatpush1.bf16.msra.mxu1 %v7958_v23  ;;  %v4061_v23 = vld [vmem:[#allocation3 + $0xb10] sm:$0xff] }
 0xd01   :  { %7961 = vmatprep.subr.bf16.mxu1 %v7960_v11  ;;  %v4064_v11 = vld [vmem:[#allocation3 + $0xb28] sm:$0xff]  ;;  %v7998_v31 = vpack.c.bf16 %v4061_v23, %v4059_v29  ;;  %v4560_v29 = vld [vmem:[%s13014_s6 + $0x358] sm:$0xff]  ;;  %v4577_v23 = vld [vmem:[%s13014_s6 + $0x3e0] sm:$0xff] }
 0xd02   :  { %v8000_v32 = vpack.c.bf16 %v4066_v30, %v4064_v11  ;;  %v4578_v30 = vld [vmem:[%s13014_s6 + $0x3e8] sm:$0xff] }
 0xd04   :  { %7963 = vmatpush1.bf16.msra.mxu1 %v7962_v21  ;;  %v4065_v21 = vld [vmem:[#allocation3 + $0xb30] sm:$0xff] }
 0xd05   :  { %7965 = vmatprep.subr.bf16.mxu1 %v7964_v14  ;;  %v4068_v14 = vld [vmem:[#allocation3 + $0xb48] sm:$0xff]  ;;  %v8002_v6 = vpack.c.bf16 %v4065_v21, %v4063_v26  ;;  %v8052_v26 = vpack.c.bf16 %v4578_v30, %v4577_v23  ;;  %v4579_v21 = vld [vmem:[%s13014_s6 + $0x3f0] sm:$0xff]  ;;  %v4841_v23 = vld [vmem:[#allocation6 + $0x80] sm:$0xff] }
 0xd06   :  { %v8004_v44 = vpack.c.bf16 %v4070_v39, %v4068_v14  ;;  %v4580_v14 = vld [vmem:[%s13014_s6 + $0x3f8] sm:$0xff] }
 0xd07   :  { %4440 = vmatmul.mubr.f32.vlgmr.msra.gmra.mrb[12].mxu1 %v3703_v37 }
 0xd08   :  { %7967 = vmatpush1.bf16.msra.mxu1 %v7966_v33  ;;  %4510 = vmatprep.mubr.f32.mxu1 %v3706_v38  ;;  %v4069_v33 = vld [vmem:[#allocation3 + $0xb50] sm:$0xff]  ;;  %v4076_v38 = vld [vmem:[#allocation3 + $0xb88] sm:$0xff] }
 0xd09   :  { %7969 = vmatprep.subr.bf16.mxu1 %v7968_v36  ;;  %v4072_v36 = vld [vmem:[#allocation3 + $0xb68] sm:$0xff]  ;;  %v8006_v49 = vpack.c.bf16 %v4069_v33, %v4067_v0  ;;  %v4564_v0 = vld [vmem:[%s13014_s6 + $0x378] sm:$0xff] }
 0xd0a   :  { %v8008_v37 = vpack.c.bf16 %v4074_v50, %v4072_v36 }
 0xd0c   :  { %7971 = vmatpush1.bf16.msra.mxu1 %v7970_v52  ;;  %v4078_v52 = vld [vmem:[#allocation3 + $0xb98] sm:$0xff] }
 0xd0d   :  { %7973 = vmatprep.subr.bf16.mxu1 %v7972_v40  ;;  %v8010_v40 = vpack.c.bf16 %v4073_v51, %v4071_v45  ;;  %v8012_v41 = vpack.c.bf16 %v4078_v52, %v4076_v38 }
 0xd10   :  { %7975 = vmatpush1.bf16.msra.mxu1 %v7974_v56  ;;  %v4082_v56 = vld [vmem:[#allocation3 + $0xbb8] sm:$0xff] }
 0xd11   :  { %7977 = vmatprep.subr.bf16.mxu1 %v7976_v57  ;;  %v8014_v57 = vpack.c.bf16 %v4077_v18, %v4075_v43  ;;  %v8016_v61 = vpack.c.bf16 %v4082_v56, %v4080_v54 }
 0xd14   :  { %7979 = vmatpush1.bf16.msra.mxu1 %v7978_v7  ;;  %v4086_v7 = vld [vmem:[#allocation3 + $0xbd8] sm:$0xff] }
 0xd15   :  { %7981 = vmatprep.subr.bf16.mxu1 %v7980_v8  ;;  %v8018_v8 = vpack.c.bf16 %v4081_v4, %v4079_v62  ;;  %v8020_v9 = vpack.c.bf16 %v4086_v7, %v4084_v5 }
 0xd18   :  { %7983 = vmatpush1.bf16.msra.mxu1 %v7982_v17  ;;  %v4090_v17 = vld [vmem:[#allocation3 + $0xbf8] sm:$0xff] }
 0xd19   :  { %7985 = vmatprep.subr.bf16.mxu1 %v7984_v2  ;;  %v8022_v2 = vpack.c.bf16 %v4085_v10, %v4083_v16  ;;  %v8024_v53 = vpack.c.bf16 %v4090_v17, %v4088_v63 }
 0xd1c   :  { %7987 = vmatpush1.bf16.msra.mxu1 %v7986_v13  ;;  %v3705_v13 = vld [vmem:[#allocation2 + $0x50] sm:$0x7f] }
 0xd1d   :  { %7989 = vmatprep.subr.bf16.mxu1 %v7988_v28  ;;  %v4555_v28 = vld [vmem:[%s13014_s6 + $0x330] sm:$0xff] }
 0xd1e   :  { %v8042_v25 = vpack.c.bf16 %v4556_v60, %v4555_v28 }
 0xd20   :  { %7991 = vmatpush1.bf16.msra.mxu1 %v7990_v47  ;;  %8043 = vmatpush3.bf16.msra.mxu0 %v8042_v25  ;;  %v8044_v47 = vpack.c.bf16 %v4574_v20, %v4573_v22  ;;  %v4676_v25 = vld [vmem:[%s13015_s7 + $0xc8] sm:$0xff]  ;;  %v4678_v22 = vld [vmem:[%s13015_s7 + $0xd8] sm:$0xff] }
 0xd21   :  { %7993 = vmatprep.subr.bf16.mxu1 %v7992_v35  ;;  %v4557_v35 = vld [vmem:[%s13014_s6 + $0x340] sm:$0xff]  ;;  %v8060_v20 = vpack.c.bf16 %v4678_v22, %v4676_v25 }
 0xd22   :  { %v8046_v34 = vpack.c.bf16 %v4558_v1, %v4557_v35  ;;  %8045 = vmatprep.subr.bf16.mxu0 %v8044_v47  ;;  %v4675_v47 = vld [vmem:[%s13015_s7 + $0xc0] sm:$0xff]  ;;  %v4677_v35 = vld [vmem:[%s13015_s7 + $0xd0] sm:$0xff] }
 0xd23   :  { %v8062_v1 = vpack.c.bf16 %v4677_v35, %v4675_v47  ;;  %v4845_v22 = vld [vmem:[#allocation6 + $0xa0] sm:$0xff] }
 0xd24   :  { %7995 = vmatpush1.bf16.msra.mxu1 %v7994_v58  ;;  %8047 = vmatpush3.bf16.msra.mxu0 %v8046_v34  ;;  %v8048_v58 = vpack.c.bf16 %v4576_v15, %v4575_v59  ;;  %v4680_v34 = vld [vmem:[%s13015_s7 + $0xe8] sm:$0xff]  ;;  %v4682_v59 = vld [vmem:[%s13015_s7 + $0xf8] sm:$0xff]  ;;  %v4679_v15 = vld [vmem:[%s13015_s7 + $0xe0] sm:$0xff] }
 0xd25   :  { %7997 = vmatprep.subr.bf16.mxu1 %v7996_v27  ;;  %v4559_v27 = vld [vmem:[%s13014_s6 + $0x350] sm:$0xff] }
 0xd26   :  { %v8050_v11 = vpack.c.bf16 %v4560_v29, %v4559_v27  ;;  %8049 = vmatprep.subr.bf16.mxu0 %v8048_v58  ;;  %v8064_v58 = vpack.c.bf16 %v4682_v59, %v4680_v34  ;;  %v4681_v27 = vld [vmem:[%s13015_s7 + $0xf0] sm:$0xff]  ;;  %v4830_v34 = vld [vmem:[#allocation6 + $0x28] sm:$0xff] }
 0xd27   :  { %v8066_v29 = vpack.c.bf16 %v4681_v27, %v4679_v15  ;;  %v4847_v59 = vld [vmem:[#allocation6 + $0xb0] sm:$0xff]  ;;  %v4848_v15 = vld [vmem:[#allocation6 + $0xb8] sm:$0xff] }
 0xd28   :  { %7999 = vmatpush1.bf16.msra.mxu1 %v7998_v31  ;;  %v4561_v31 = vld [vmem:[%s13014_s6 + $0x360] sm:$0xff]  ;;  %8051 = vmatpush3.bf16.msra.mxu0 %v8050_v11  ;;  %v4842_v11 = vld [vmem:[#allocation6 + $0x88] sm:$0xff]  ;;  %v8080_v27 = vpack.c.bf16 %v4848_v15, %v4847_v59 }
 0xd29   :  { %8001 = vmatprep.subr.bf16.mxu1 %v8000_v32  ;;  %v4562_v32 = vld [vmem:[%s13014_s6 + $0x368] sm:$0xff]  ;;  %8053 = vmatprep.subr.bf16.mxu0 %v8052_v26  ;;  %v8068_v30 = vpack.c.bf16 %v4842_v11, %v4841_v23  ;;  %v4832_v23 = vld [vmem:[#allocation6 + $0x38] sm:$0xff]  ;;  %v4873_v15 = vld [vmem:[#allocation6 + $0x180] sm:$0xff] }
 0xd2a   :  { %v8054_v39 = vpack.c.bf16 %v4562_v32, %v4561_v31  ;;  %v5001_v31 = vld [vmem:[#allocation6 + $0x580] sm:$0xff]  ;;  %v5002_v32 = vld [vmem:[#allocation6 + $0x588] sm:$0xff] }
 0xd2b   :  { %v8228_v26 = vpack.c.bf16 %v5002_v32, %v5001_v31  ;;  %v5008_v31 = vld [vmem:[#allocation6 + $0x5b8] sm:$0xff] }
 0xd2c   :  { %8003 = vmatpush1.bf16.msra.mxu1 %v8002_v6  ;;  %v8056_v6 = vpack.c.bf16 %v4580_v14, %v4579_v21  ;;  %8055 = vmatpush3.bf16.msra.mxu0 %v8054_v39  ;;  %v4985_v21 = vld [vmem:[#allocation6 + $0x500] sm:$0xff]  ;;  %v4986_v14 = vld [vmem:[#allocation6 + $0x508] sm:$0xff] }
 0xd2d   :  { %8005 = vmatprep.subr.bf16.mxu1 %v8004_v44  ;;  %v4563_v44 = vld [vmem:[%s13014_s6 + $0x370] sm:$0xff]  ;;  %v8230_v39 = vpack.c.bf16 %v4986_v14, %v4985_v21  ;;  %v4850_v21 = vld [vmem:[#allocation6 + $0xc8] sm:$0xff] }
 0xd2e   :  { %v8058_v33 = vpack.c.bf16 %v4564_v0, %v4563_v44  ;;  %8057 = vmatprep.subr.bf16.mxu0 %v8056_v6  ;;  %v5003_v6 = vld [vmem:[#allocation6 + $0x590] sm:$0xff]  ;;  %v5004_v44 = vld [vmem:[#allocation6 + $0x598] sm:$0xff] }
 0xd2f   :  { %v8232_v0 = vpack.c.bf16 %v5004_v44, %v5003_v6  ;;  %v4991_v14 = vld [vmem:[#allocation6 + $0x530] sm:$0xff]  ;;  %v4992_v6 = vld [vmem:[#allocation6 + $0x538] sm:$0xff]  ;;  %v4833_v44 = vld [vmem:[#allocation6 + $0x40] sm:$0xff] }
 0xd30   :  { %8007 = vmatpush1.bf16.msra.mxu1 %v8006_v49  ;;  %8059 = vmatpush3.bf16.msra.mxu0 %v8058_v33  ;;  %v4987_v33 = vld [vmem:[#allocation6 + $0x510] sm:$0xff] }
 0xd31   :  { %8009 = vmatprep.subr.bf16.mxu1 %v8008_v37  ;;  %8061 = vmatprep.subr.bf16.mxu0 %v8060_v20  ;;  %v4846_v20 = vld [vmem:[#allocation6 + $0xa8] sm:$0xff] }
 0xd32   :  { %v8076_v35 = vpack.c.bf16 %v4846_v20, %v4845_v22  ;;  %v4839_v20 = vld [vmem:[#allocation6 + $0x70] sm:$0xff] }
 0xd34   :  { %8011 = vmatpush1.bf16.msra.mxu1 %v8010_v40 }
 0xd35   :  { %8013 = vmatprep.subr.bf16.mxu1 %v8012_v41 }
 0xd38   :  { %8015 = vmatpush1.bf16.msra.mxu1 %v8014_v57 }
 0xd39   :  { %8017 = vmatprep.subr.bf16.mxu1 %v8016_v61 }
 0xd3c   :  { %8019 = vmatpush1.bf16.msra.mxu1 %v8018_v8 }
 0xd3d   :  { %8021 = vmatprep.subr.bf16.mxu1 %v8020_v9 }
 0xd40   :  { %8023 = vmatpush1.bf16.msra.mxu1 %v8022_v2 }
 0xd41   :  { %8025 = vmatprep.subr.bf16.mxu1 %v8024_v53 }
 0xd44   :  { %8027 = vmatpush1.bf16.msra.mxu1 %v8026_v19 }
 0xd45   :  { %8229 = vmatprep.subr.bf16.mxu1 %v8228_v26  ;;  %v4849_v26 = vld [vmem:[#allocation6 + $0xc0] sm:$0xff] }
 0xd47   :  { %4511 = vmatmul.mubr.f32.vlgmr.msra.gmra.mrb[12].mxu1 %v3705_v13 }
 0xd48   :  { %8231 = vmatpush3.bf16.msra.mxu1 %v8230_v39  ;;  %v8084_v39 = vpack.c.bf16 %v4850_v21, %v4849_v26 }
 0xd49   :  { %8233 = vmatprep.subr.bf16.mxu1 %v8232_v0  ;;  %v4834_v0 = vld [vmem:[#allocation6 + $0x48] sm:$0xff] }
 0xe1a   :  { %v12723_v36 = vpop.f32.mrb[12].mxu1 }
 0xe1b   :  { %v4517_v50 = vsel %vm1119_vm5, %v12723_v36, 0.0  ;;  %v4531_v49 = vmul.f32 %v12723_v36, %v12723_v36  ;;  %v12729_v37 = vpop.f32.mrb[13].mxu1 }
 0xe1c   :  { %v4518_v45 = vrot.slane %v4517_v50, 4  ;;  %v4524_v51 = vsel %vm1119_vm5, %v12729_v37, 0.0  ;;  %v4532_v38 = vmul.f32 %v12729_v37, %v12729_v37 }
 0xe1d   :  { %v4533_v52 = vsel %vm1119_vm5, %v4531_v49, 0.0  ;;  %v4525_v40 = vrot.slane %v4524_v51, 4 }
 0xe1e   :  { %v4519_v41 = vadd.f32 %v4518_v45, %v4517_v50  ;;  %v4534_v43 = vrot.slane %v4533_v52, 4  ;;  %v4540_v18 = vsel %vm1119_vm5, %v4532_v38, 0.0  ;;  %v4988_v50 = vld [vmem:[#allocation6 + $0x518] sm:$0xff]  ;;  %v5005_v45 = vld [vmem:[#allocation6 + $0x5a0] sm:$0xff] }
 0xe1f   :  { %v4526_v54 = vadd.f32 %v4525_v40, %v4524_v51  ;;  %v4541_v56 = vrot.slane %v4540_v18, 4  ;;  %v8234_v49 = vpack.c.bf16 %v4988_v50, %v4987_v33  ;;  %v5006_v51 = vld [vmem:[#allocation6 + $0x5a8] sm:$0xff]  ;;  %v8242_v33 = vpack.c.bf16 %v4992_v6, %v4991_v14 }
 0xe20   :  { %v4520_v57 = vrot.slane %v4519_v41, 2  ;;  %v4535_v61 = vadd.f32 %v4534_v43, %v4533_v52  ;;  %v8236_v38 = vpack.c.bf16 %v5006_v51, %v5005_v45  ;;  %v4989_v52 = vld [vmem:[#allocation6 + $0x520] sm:$0xff]  ;;  %v4990_v40 = vld [vmem:[#allocation6 + $0x528] sm:$0xff]  ;;  %v8086_v50 = vpack.c.bf16 %v4834_v0, %v4833_v44 }
 0xe21   :  { %v4527_v62 = vrot.slane %v4526_v54, 2  ;;  %v4542_v4 = vadd.f32 %v4541_v56, %v4540_v18  ;;  %8235 = vmatpush3.bf16.msra.mxu1 %v8234_v49  ;;  %v5009_v49 = vld [vmem:[#allocation6 + $0x5c0] sm:$0xff]  ;;  %v5010_v45 = vld [vmem:[#allocation6 + $0x5c8] sm:$0xff] }
 0xe22   :  { %v4521_v5 = vadd.f32 %v4520_v57, %v4519_v41  ;;  %v4536_v7 = vrot.slane %v4535_v61, 2  ;;  %v8238_v41 = vpack.c.bf16 %v4990_v40, %v4989_v52  ;;  %8237 = vmatprep.subr.bf16.mxu1 %v8236_v38  ;;  %v8244_v51 = vpack.c.bf16 %v5010_v45, %v5009_v49  ;;  %v4851_v38 = vld [vmem:[#allocation6 + $0xd0] sm:$0xff]  ;;  %v4852_v52 = vld [vmem:[#allocation6 + $0xd8] sm:$0xff]  ;;  %v4993_v40 = vld [vmem:[#allocation6 + $0x540] sm:$0xff] }
 0xe23   :  { %v4528_v8 = vadd.f32 %v4527_v62, %v4526_v54  ;;  %v4543_v9 = vrot.slane %v4542_v4, 2 }
 0xe24   :  { %v4537_v16 = vadd.f32 %v4536_v7, %v4535_v61  ;;  %v4522_v17 = vrot.slane %v4521_v5, 1 }
 0xe25   :  { %v4529_v10 = vrot.slane %v4528_v8, 1  ;;  %v4544_v63 = vadd.f32 %v4543_v9, %v4542_v4  ;;  %8239 = vmatpush3.bf16.msra.mxu1 %v8238_v41  ;;  %v4657_v9 = vld [vmem:[%s13016_s8 + $0x19] sm:$0x1]  ;;  %v8088_v41 = vpack.c.bf16 %v4852_v52, %v4851_v38 }
 0xe26   :  { %v4538_v2 = vrot.slane %v4537_v16, 1  ;;  %v4523_v13 = vadd.f32 %v4522_v17, %v4521_v5  ;;  %v4656_v5 = vld [vmem:[%s13016_s8 + $0x18] sm:$0x1] }
 0xe27   :  { %v4545_v53 = vrot.slane %v4544_v63, 1  ;;  %v4530_v3 = vadd.f32 %v4529_v10, %v4528_v8  ;;  %v4825_v10 = vld [vmem:[#allocation6] sm:$0xff] }
 0xe28   :  { %v4539_v12 = vadd.f32 %v4538_v2, %v4537_v16  ;;  %v4843_v2 = vld [vmem:[#allocation6 + $0x90] sm:$0xff] }
 0xe29   :  { %v4546_v19 = vadd.f32 %v4545_v53, %v4544_v63  ;;  %v4826_v63 = vld [vmem:[#allocation6 + $0x8] sm:$0xff]  ;;  %v4844_v53 = vld [vmem:[#allocation6 + $0x98] sm:$0xff] }
 0xe2a   :  { %v4547_v60 = vsel %vm822_vm2, %v4523_v13, %v4539_v12  ;;  %v8072_v13 = vpack.c.bf16 %v4844_v53, %v4843_v2  ;;  %v5013_v53 = vld [vmem:[#allocation6 + $0x5e0] sm:$0xff] }
 0xe2b   :  { %v4548_v28 = vsel %vm822_vm2, %v4530_v3, %v4546_v19  ;;  %v8070_v19 = vpack.c.bf16 %v4826_v63, %v4825_v10  ;;  %v4837_v10 = vld [vmem:[#allocation6 + $0x60] sm:$0xff]  ;;  %v4838_v63 = vld [vmem:[#allocation6 + $0x68] sm:$0xff] }
 0xe2c   :  { %4645 = vmatprep.mubr.f32.mxu0 %v4548_v28  ;;  %v4827_v28 = vld [vmem:[#allocation6 + $0x10] sm:$0xff]  ;;  %v8094_v2 = vpack.c.bf16 %v4838_v63, %v4837_v10 }
 0xe2d   :  { %4646 = vmatmul.mubr.f32.vlgmr.msra.gmra.mrb[20].mxu0 %v4547_v60  ;;  %v4828_v60 = vld [vmem:[#allocation6 + $0x18] sm:$0xff] }
 0xe2e   :  { %4750 = vmatprep.mubr.f32.mxu0 %v8624_v24  ;;  %8063 = vmatpush1.bf16.msra.mxu0 %v8062_v1  ;;  %v8074_v47 = vpack.c.bf16 %v4828_v60, %v4827_v28  ;;  %v4829_v1 = vld [vmem:[#allocation6 + $0x20] sm:$0xff]  ;;  %v4998_v60 = vld [vmem:[#allocation6 + $0x568] sm:$0xff] }
 0xe2f   :  { %8065 = vmatprep.subr.bf16.mxu0 %v8064_v58  ;;  %v8078_v58 = vpack.c.bf16 %v4830_v34, %v4829_v1  ;;  %v4997_v28 = vld [vmem:[#allocation6 + $0x560] sm:$0xff]  ;;  %v5016_v34 = vld [vmem:[#allocation6 + $0x5f8] sm:$0xff] }
 0xe30   :  { %v8254_v22 = vpack.c.bf16 %v4998_v60, %v4997_v28 }
 0xe32   :  { %8067 = vmatpush1.bf16.msra.mxu0 %v8066_v29  ;;  %v4831_v29 = vld [vmem:[#allocation6 + $0x30] sm:$0xff] }
 0xe33   :  { %8069 = vmatprep.subr.bf16.mxu0 %v8068_v30  ;;  %v8082_v11 = vpack.c.bf16 %v4832_v23, %v4831_v29  ;;  %v5007_v30 = vld [vmem:[#allocation6 + $0x5b0] sm:$0xff]  ;;  %v5000_v23 = vld [vmem:[#allocation6 + $0x578] sm:$0xff] }
 0xe34   :  { %v8240_v32 = vpack.c.bf16 %v5008_v31, %v5007_v30 }
 0xe36   :  { %8241 = vmatprep.subr.bf16.mxu1 %v8240_v32 }
 0xe37   :  { %8243 = vmatpush3.bf16.msra.mxu1 %v8242_v33 }
 0xe38   :  { %8245 = vmatprep.subr.bf16.mxu1 %v8244_v51 }
 0xf00   :  { %v6200_v43 = vpop.f32.mrb[20].mxu0 }
 0xf01   :  { %v6201_v18 = vpop.f32.mrb[21].mxu0 }
 0xf02   :  { %v6202_v54 = vadd.f32 %v6201_v18, %v6200_v43  ;;  %v4994_v43 = vld [vmem:[#allocation6 + $0x548] sm:$0xff]  ;;  %v4835_v18 = vld [vmem:[#allocation6 + $0x50] sm:$0xff] }
 0xf04   :  { %v4651_v56 = vmul.f32 %v6202_v54, %v6202_v54 }
 0xf06   :  { %v4653_v57 = vrot.slane %v4651_v56, 7  ;;  %v8246_v56 = vpack.c.bf16 %v4994_v43, %v4993_v40 }
 0xf08   :  { %v4655_v61 = vsub.f32 %v6202_v54, %v4653_v57  ;;  %8247 = vmatpush3.bf16.msra.mxu1 %v8246_v56  ;;  %v4875_v56 = vld [vmem:[#allocation6 + $0x190] sm:$0xff] }
 0xf0a   :  { %v4658_v62 = vadd.f32 1e-05, %v4655_v61  ;;  %v5011_v61 = vld [vmem:[#allocation6 + $0x5d0] sm:$0xff] }
 0xf0c   :  { %8495 = vrsqrt.f32 %v4658_v62  ;;  %v5012_v62 = vld [vmem:[#allocation6 + $0x5d8] sm:$0xff] }
 0xf16   :  { %v8496_v4 = vpop.eup %8495 }
 0xf17   :  { %v4661_v7 = vrot.slane %v8496_v4, 1  ;;  %v8248_v4 = vpack.c.bf16 %v5012_v62, %v5011_v61 }
 0xf19   :  { %v4663_v8 = vmul.f32 %v4661_v7, %v4656_v5  ;;  %v4853_v5 = vld [vmem:[#allocation6 + $0xe0] sm:$0xff]  ;;  %v4854_v7 = vld [vmem:[#allocation6 + $0xe8] sm:$0xff]  ;;  %8249 = vmatprep.subr.bf16.mxu1 %v8248_v4 }
 0xf1b   :  { %v4664_v16 = vmul.f32 %v6202_v54, %v4663_v8  ;;  %v4669_v12 = vrot.slane %v4663_v8, %v9782_v42  ;;  %v4836_v54 = vld [vmem:[#allocation6 + $0x58] sm:$0xff]  ;;  %v4995_v8 = vld [vmem:[#allocation6 + $0x550] sm:$0xff] }
 0xf1c   :  { %v8090_v57 = vpack.c.bf16 %v4836_v54, %v4835_v18  ;;  %v4857_v18 = vld [vmem:[#allocation6 + $0x100] sm:$0xff]  ;;  %v4858_v54 = vld [vmem:[#allocation6 + $0x108] sm:$0xff] }
 0xf1d   :  { %v4665_v17 = vsub.f32 %v4657_v9, %v4664_v16  ;;  %v8092_v9 = vpack.c.bf16 %v4854_v7, %v4853_v5  ;;  %v4996_v16 = vld [vmem:[#allocation6 + $0x558] sm:$0xff]  ;;  %v8102_v61 = vpack.c.bf16 %v4858_v54, %v4857_v18  ;;  %v4859_v5 = vld [vmem:[#allocation6 + $0x110] sm:$0xff] }
 0xf1e   :  { %v4860_v7 = vld [vmem:[#allocation6 + $0x118] sm:$0xff]  ;;  %v4891_v18 = vld [vmem:[#allocation6 + $0x210] sm:$0xff] }
 0xf1f   :  { %v4673_v3 = vrot.slane %v4665_v17, %v9782_v42  ;;  %v8250_v17 = vpack.c.bf16 %v4996_v16, %v4995_v8  ;;  %v4878_v16 = vld [vmem:[#allocation6 + $0x1a8] sm:$0xff]  ;;  %v4892_v54 = vld [vmem:[#allocation6 + $0x218] sm:$0xff] }
 0xf21   :  { %v4674_v25 = vsel %vm822_vm2, %v4669_v12, %v4673_v3  ;;  %v5014_v12 = vld [vmem:[#allocation6 + $0x5e8] sm:$0xff]  ;;  %v4855_v3 = vld [vmem:[#allocation6 + $0xf0] sm:$0xff]  ;;  %8251 = vmatpush3.bf16.msra.mxu1 %v8250_v17  ;;  %v8106_v17 = vpack.c.bf16 %v4860_v7, %v4859_v5  ;;  %v4893_v7 = vld [vmem:[#allocation6 + $0x220] sm:$0xff] }
 0xf22   :  { %6061 = vmatmul.mubr.msk.f32.vlgmr.msra.gmra.mrb[22].mxu0 %vm959_vm3, %v4674_v25 }
 0xf23   :  { %8071 = vmatpush3.bf16.msra.mxu0 %v8070_v19  ;;  %v8252_v19 = vpack.c.bf16 %v5014_v12, %v5013_v53  ;;  %v4861_v12 = vld [vmem:[#allocation6 + $0x120] sm:$0xff] }
 0xf24   :  { %8073 = vmatprep.subr.bf16.mxu0 %v8072_v13  ;;  %v4856_v13 = vld [vmem:[#allocation6 + $0xf8] sm:$0xff] }
 0xf25   :  { %v8096_v25 = vpack.c.bf16 %v4856_v13, %v4855_v3  ;;  %8253 = vmatprep.subr.bf16.mxu1 %v8252_v19  ;;  %v4862_v3 = vld [vmem:[#allocation6 + $0x128] sm:$0xff]  ;;  %v4879_v19 = vld [vmem:[#allocation6 + $0x1b0] sm:$0xff]  ;;  %v4880_v13 = vld [vmem:[#allocation6 + $0x1b8] sm:$0xff] }
 0xf26   :  { %8255 = vmatpush3.bf16.msra.mxu1 %v8254_v22  ;;  %v8110_v28 = vpack.c.bf16 %v4862_v3, %v4861_v12  ;;  %v8112_v60 = vpack.c.bf16 %v4880_v13, %v4879_v19  ;;  %v4864_v22 = vld [vmem:[#allocation6 + $0x138] sm:$0xff]  ;;  %v4914_v12 = vld [vmem:[#allocation6 + $0x2c8] sm:$0xff]  ;;  %v4897_v13 = vld [vmem:[#allocation6 + $0x240] sm:$0xff] }
 0xf27   :  { %8075 = vmatpush3.bf16.msra.mxu0 %v8074_v47  ;;  %v4840_v47 = vld [vmem:[#allocation6 + $0x78] sm:$0xff] }
 0xf28   :  { %8077 = vmatprep.subr.bf16.mxu0 %v8076_v35  ;;  %v5015_v35 = vld [vmem:[#allocation6 + $0x5f0] sm:$0xff]  ;;  %v8098_v1 = vpack.c.bf16 %v4840_v47, %v4839_v20  ;;  %v4881_v20 = vld [vmem:[#allocation6 + $0x1c0] sm:$0xff]  ;;  %v4882_v47 = vld [vmem:[#allocation6 + $0x1c8] sm:$0xff] }
 0xf29   :  { %v8256_v59 = vpack.c.bf16 %v5016_v34, %v5015_v35  ;;  %v4865_v34 = vld [vmem:[#allocation6 + $0x140] sm:$0xff] }
 0xf2b   :  { %8079 = vmatpush3.bf16.msra.mxu0 %v8078_v58  ;;  %v4874_v58 = vld [vmem:[#allocation6 + $0x188] sm:$0xff]  ;;  %8257 = vmatprep.subr.bf16.mxu1 %v8256_v59 }
 0xf2c   :  { %8081 = vmatprep.subr.bf16.mxu0 %v8080_v27  ;;  %v4999_v27 = vld [vmem:[#allocation6 + $0x570] sm:$0xff]  ;;  %v8100_v29 = vpack.c.bf16 %v4874_v58, %v4873_v15  ;;  %v4866_v59 = vld [vmem:[#allocation6 + $0x148] sm:$0xff]  ;;  %v4884_v58 = vld [vmem:[#allocation6 + $0x1d8] sm:$0xff] }
 0xf2d   :  { %v4883_v15 = vld [vmem:[#allocation6 + $0x1d0] sm:$0xff] }
 0xf2f   :  { %8083 = vmatpush3.bf16.msra.mxu0 %v8082_v11  ;;  %v8258_v11 = vpack.c.bf16 %v5000_v23, %v4999_v27  ;;  %v8118_v27 = vpack.c.bf16 %v4866_v59, %v4865_v34  ;;  %v4867_v23 = vld [vmem:[#allocation6 + $0x150] sm:$0xff]  ;;  %v4918_v34 = vld [vmem:[#allocation6 + $0x2e8] sm:$0xff] }
 0xf30   :  { %8085 = vmatprep.subr.bf16.mxu0 %v8084_v39 }
 0xf31   :  { %8259 = vmatpush3.bf16.msra.mxu1 %v8258_v11  ;;  %v4868_v11 = vld [vmem:[#allocation6 + $0x158] sm:$0xff] }
 0xf33   :  { %8087 = vmatpush3.bf16.msra.mxu0 %v8086_v50 }
 0xf34   :  { %8089 = vmatprep.subr.bf16.mxu0 %v8088_v41 }
 0xf37   :  { %8091 = vmatpush3.bf16.msra.mxu0 %v8090_v57  ;;  %v4876_v57 = vld [vmem:[#allocation6 + $0x198] sm:$0xff] }
 0xf38   :  { %8093 = vmatprep.subr.bf16.mxu0 %v8092_v9  ;;  %v8104_v4 = vpack.c.bf16 %v4876_v57, %v4875_v56  ;;  %v4877_v9 = vld [vmem:[#allocation6 + $0x1a0] sm:$0xff] }
 0xf39   :  { %v8108_v53 = vpack.c.bf16 %v4878_v16, %v4877_v9  ;;  %v4909_v57 = vld [vmem:[#allocation6 + $0x2a0] sm:$0xff]  ;;  %v4911_v9 = vld [vmem:[#allocation6 + $0x2b0] sm:$0xff]  ;;  %v4912_v16 = vld [vmem:[#allocation6 + $0x2b8] sm:$0xff] }
 0xf3b   :  { %8095 = vmatpush3.bf16.msra.mxu0 %v8094_v2 }
 0xf3c   :  { %8097 = vmatprep.subr.bf16.mxu0 %v8096_v25  ;;  %v4863_v25 = vld [vmem:[#allocation6 + $0x130] sm:$0xff] }
 0xf3d   :  { %v8114_v35 = vpack.c.bf16 %v4864_v22, %v4863_v25  ;;  %v4916_v25 = vld [vmem:[#allocation6 + $0x2d8] sm:$0xff] }
 0xf3f   :  { %8099 = vmatpush3.bf16.msra.mxu0 %v8098_v1  ;;  %v8116_v1 = vpack.c.bf16 %v4882_v47, %v4881_v20  ;;  %v4899_v47 = vld [vmem:[#allocation6 + $0x250] sm:$0xff] }
 0xf40   :  { %8101 = vmatprep.subr.bf16.mxu0 %v8100_v29  ;;  %v8120_v29 = vpack.c.bf16 %v4884_v58, %v4883_v15  ;;  %v4901_v58 = vld [vmem:[#allocation6 + $0x260] sm:$0xff] }
 0xff5   :  { %v4752_v30 = vpop.f32.mrb[22].mxu0 }
 0xff6   :  { %v4760_v31 = vrot.slane %v4752_v30, %v9782_v42  ;;  %v4754_v32 = vpop.f32.mrb[23].mxu0  ;;  %v4770_v14 = vrot.slane %v4752_v30, %v9997_v48  ;;  %v4885_v30 = vld [vmem:[#allocation6 + $0x1e0] sm:$0xff] }
 0xff7   :  { %v4764_v26 = vrot.slane %v4754_v32, %v9782_v42  ;;  %v4774_v6 = vrot.slane %v4754_v32, %v9997_v48  ;;  %v8122_v32 = vpack.c.bf16 %v4868_v11, %v4867_v23  ;;  %v4920_v23 = vld [vmem:[#allocation6 + $0x2f8] sm:$0xff] }
 0xff8   :  { %v4765_v21 = vmul.f32 %v4760_v31, %v12723_v36  ;;  %v4886_v31 = vld [vmem:[#allocation6 + $0x1e8] sm:$0xff] }
 0xff9   :  { %v4766_v39 = vmul.f32 %v4764_v26, %v12729_v37  ;;  %v8124_v26 = vpack.c.bf16 %v4886_v31, %v4885_v30  ;;  %v4903_v31 = vld [vmem:[#allocation6 + $0x270] sm:$0xff] }
 0xffa   :  { %v4775_v44 = vadd.f32 %v4770_v14, %v4765_v21  ;;  %v4869_v21 = vld [vmem:[#allocation6 + $0x160] sm:$0xff]  ;;  %v4870_v14 = vld [vmem:[#allocation6 + $0x168] sm:$0xff] }
 0xffb   :  { %v4776_v0 = vadd.f32 %v4774_v6, %v4766_v39  ;;  %v4887_v39 = vld [vmem:[#allocation6 + $0x1f0] sm:$0xff]  ;;  %v4888_v6 = vld [vmem:[#allocation6 + $0x1f8] sm:$0xff] }
 0xffc   :  { %v4777_v33 = vmax.f32 %v4775_v44, 0.0  ;;  %v8126_v44 = vpack.c.bf16 %v4870_v14, %v4869_v21  ;;  %v4938_v21 = vld [vmem:[#allocation6 + $0x388] sm:$0xff] }
 0xffd   :  { %v4778_v50 = vmax.f32 %v4776_v0, 0.0  ;;  %v8128_v0 = vpack.c.bf16 %v4888_v6, %v4887_v39  ;;  %v4921_v6 = vld [vmem:[#allocation6 + $0x300] sm:$0xff] }
 0xffe   :  { %4779 = vst [vmem:[#allocation2] sm:$0x3] %v4777_v33  ;;  %v4783_v49 = vrot.slane %v4777_v33, 1  ;;  %v4789_v45 = vrot.slane %v4777_v33, 2  ;;  %v4795_v51 = vrot.slane %v4777_v33, 3  ;;  %v4801_v38 = vrot.slane %v4777_v33, 4 }
 0xfff   :  { %v4807_v52 = vrot.slane %v4777_v33, 5  ;;  %4780 = vst [vmem:[#allocation2 + $0x8] sm:$0x3] %v4778_v50  ;;  %v4784_v40 = vrot.slane %v4778_v50, 1  ;;  %v4790_v41 = vrot.slane %v4778_v50, 2  ;;  %v4796_v36 = vrot.slane %v4778_v50, 3 }
0x1000   :  { %4787 = vst [vmem:[#allocation2 + $0x10] sm:$0x3] %v4783_v49  ;;  %4793 = vst [vmem:[#allocation2 + $0x20] sm:$0x3] %v4789_v45  ;;  %v4802_v37 = vrot.slane %v4778_v50, 4  ;;  %v4808_v43 = vrot.slane %v4778_v50, 5 }
0x1001   :  { %4799 = vst [vmem:[#allocation2 + $0x30] sm:$0x3] %v4795_v51  ;;  %4805 = vst [vmem:[#allocation2 + $0x40] sm:$0x3] %v4801_v38  ;;  %v4871_v33 = vld [vmem:[#allocation6 + $0x170] sm:$0xff]  ;;  %v4872_v50 = vld [vmem:[#allocation6 + $0x178] sm:$0xff] }
0x1002   :  { %4811 = vst [vmem:[#allocation2 + $0x50] sm:$0x3] %v4807_v52  ;;  %4788 = vst [vmem:[#allocation2 + $0x18] sm:$0x3] %v4784_v40  ;;  %v4905_v49 = vld [vmem:[#allocation6 + $0x280] sm:$0xff]  ;;  %v4906_v45 = vld [vmem:[#allocation6 + $0x288] sm:$0xff]  ;;  %v8130_v51 = vpack.c.bf16 %v4872_v50, %v4871_v33 }
0x1003   :  { %4794 = vst [vmem:[#allocation2 + $0x28] sm:$0x3] %v4790_v41  ;;  %4800 = vst [vmem:[#allocation2 + $0x38] sm:$0x3] %v4796_v36  ;;  %v8132_v38 = vpack.c.bf16 %v4906_v45, %v4905_v49  ;;  %v4889_v52 = vld [vmem:[#allocation6 + $0x200] sm:$0xff]  ;;  %v4890_v40 = vld [vmem:[#allocation6 + $0x208] sm:$0xff] }
0x1004   :  { %4806 = vst [vmem:[#allocation2 + $0x48] sm:$0x3] %v4802_v37  ;;  %4812 = vst [vmem:[#allocation2 + $0x58] sm:$0x3] %v4808_v43  ;;  %v4907_v41 = vld [vmem:[#allocation6 + $0x290] sm:$0xff]  ;;  %v4908_v36 = vld [vmem:[#allocation6 + $0x298] sm:$0xff]  ;;  %v8134_v37 = vpack.c.bf16 %v4890_v40, %v4889_v52 }
0x1005   :  { %v4813_v8 = vld [vmem:[#allocation2] sm:$0x3]  ;;  %v8136_v43 = vpack.c.bf16 %v4908_v36, %v4907_v41  ;;  %v4940_v33 = vld [vmem:[#allocation6 + $0x398] sm:$0xff]  ;;  %v4923_v45 = vld [vmem:[#allocation6 + $0x310] sm:$0xff] }
0x1006   :  { %v4814_v62 = vld [vmem:[#allocation2 + $0x8] sm:$0x3]  ;;  %v4941_v52 = vld [vmem:[#allocation6 + $0x3a0] sm:$0xff] }
0x1007   :  { %5081 = vmatprep.mubr.f32.mxu0 %v4814_v62  ;;  %v4815_v56 = vld [vmem:[#allocation2 + $0x10] sm:$0x3]  ;;  %v4942_v40 = vld [vmem:[#allocation6 + $0x3a8] sm:$0xff] }
0x1008   :  { %5082 = vmatmul.mubr.f32.vlgmr.msra.gmra.mrb[24].mxu0 %v4813_v8  ;;  %v4894_v8 = vld [vmem:[#allocation6 + $0x228] sm:$0xff] }
0x1009   :  { %v4816_v10 = vld [vmem:[#allocation2 + $0x18] sm:$0x3]  ;;  %8103 = vmatpush3.bf16.msra.mxu0 %v8102_v61  ;;  %v4823_v2 = vld [vmem:[#allocation2 + $0x50] sm:$0x3]  ;;  %v4910_v61 = vld [vmem:[#allocation6 + $0x2a8] sm:$0xff] }
0x100a   :  { %5151 = vmatprep.mubr.f32.mxu0 %v4816_v10  ;;  %8105 = vmatprep.subr.bf16.mxu0 %v8104_v4  ;;  %v4818_v62 = vld [vmem:[#allocation2 + $0x28] sm:$0x3]  ;;  %v8138_v4 = vpack.c.bf16 %v4892_v54, %v4891_v18  ;;  %v8140_v5 = vpack.c.bf16 %v4910_v61, %v4909_v57  ;;  %v8142_v10 = vpack.c.bf16 %v4894_v8, %v4893_v7  ;;  %v4820_v41 = vld [vmem:[#allocation2 + $0x38] sm:$0x3]  ;;  %v4943_v54 = vld [vmem:[#allocation6 + $0x3b0] sm:$0xff] }
0x100b   :  { %v4824_v63 = vld [vmem:[#allocation2 + $0x58] sm:$0x3]  ;;  %v4926_v18 = vld [vmem:[#allocation6 + $0x328] sm:$0xff] }
0x100c   :  { %5431 = vmatprep.mubr.f32.mxu1 %v4824_v63  ;;  %v8144_v63 = vpack.c.bf16 %v4912_v16, %v4911_v9  ;;  %v4946_v7 = vld [vmem:[#allocation6 + $0x3c8] sm:$0xff]  ;;  %v4929_v16 = vld [vmem:[#allocation6 + $0x340] sm:$0xff] }
0x100d   :  { %5432 = vmatmul.mubr.f32.vlgmr.msra.gmra.mrb[14].mxu1 %v4823_v2  ;;  %8107 = vmatpush3.bf16.msra.mxu0 %v8106_v17  ;;  %v4895_v17 = vld [vmem:[#allocation6 + $0x230] sm:$0xff]  ;;  %v4896_v2 = vld [vmem:[#allocation6 + $0x238] sm:$0xff] }
0x100e   :  { %8109 = vmatprep.subr.bf16.mxu0 %v8108_v53  ;;  %v4913_v53 = vld [vmem:[#allocation6 + $0x2c0] sm:$0xff]  ;;  %v8146_v3 = vpack.c.bf16 %v4896_v2, %v4895_v17  ;;  %v4948_v17 = vld [vmem:[#allocation6 + $0x3d8] sm:$0xff]  ;;  %6513 = vmatprep.mubr.msk.f32.mxu1 %vm8626_vm9, %v8624_v24 }
0x100f   :  { %v8148_v19 = vpack.c.bf16 %v4914_v12, %v4913_v53  ;;  %v4931_v12 = vld [vmem:[#allocation6 + $0x350] sm:$0xff] }
0x1011   :  { %8111 = vmatpush3.bf16.msra.mxu0 %v8110_v28  ;;  %v4898_v28 = vld [vmem:[#allocation6 + $0x248] sm:$0xff] }
0x1012   :  { %8113 = vmatprep.subr.bf16.mxu0 %v8112_v60  ;;  %v4915_v60 = vld [vmem:[#allocation6 + $0x2d0] sm:$0xff]  ;;  %v8150_v22 = vpack.c.bf16 %v4898_v28, %v4897_v13  ;;  %v4950_v13 = vld [vmem:[#allocation6 + $0x3e8] sm:$0xff] }
0x1013   :  { %v8152_v20 = vpack.c.bf16 %v4916_v25, %v4915_v60  ;;  %v4933_v25 = vld [vmem:[#allocation6 + $0x360] sm:$0xff] }
0x1015   :  { %8115 = vmatpush3.bf16.msra.mxu0 %v8114_v35  ;;  %v4900_v35 = vld [vmem:[#allocation6 + $0x258] sm:$0xff] }
0x1016   :  { %8117 = vmatprep.subr.bf16.mxu0 %v8116_v1  ;;  %v4917_v1 = vld [vmem:[#allocation6 + $0x2e0] sm:$0xff]  ;;  %v8154_v59 = vpack.c.bf16 %v4900_v35, %v4899_v47  ;;  %v4952_v47 = vld [vmem:[#allocation6 + $0x3f8] sm:$0xff] }
0x1017   :  { %v8156_v15 = vpack.c.bf16 %v4918_v34, %v4917_v1  ;;  %v4935_v34 = vld [vmem:[#allocation6 + $0x370] sm:$0xff] }
0x1019   :  { %8119 = vmatpush3.bf16.msra.mxu0 %v8118_v27  ;;  %v4902_v27 = vld [vmem:[#allocation6 + $0x268] sm:$0xff] }
0x101a   :  { %8121 = vmatprep.subr.bf16.mxu0 %v8120_v29  ;;  %v4919_v29 = vld [vmem:[#allocation6 + $0x2f0] sm:$0xff]  ;;  %v8158_v11 = vpack.c.bf16 %v4902_v27, %v4901_v58  ;;  %v4970_v58 = vld [vmem:[#allocation6 + $0x488] sm:$0xff] }
0x101b   :  { %v8160_v30 = vpack.c.bf16 %v4920_v23, %v4919_v29  ;;  %v4953_v23 = vld [vmem:[#allocation6 + $0x400] sm:$0xff] }
0x101d   :  { %8123 = vmatpush3.bf16.msra.mxu0 %v8122_v32  ;;  %v4904_v32 = vld [vmem:[#allocation6 + $0x278] sm:$0xff] }
0x101e   :  { %8125 = vmatprep.subr.bf16.mxu0 %v8124_v26  ;;  %v4937_v26 = vld [vmem:[#allocation6 + $0x380] sm:$0xff]  ;;  %v8162_v14 = vpack.c.bf16 %v4904_v32, %v4903_v31  ;;  %v4972_v31 = vld [vmem:[#allocation6 + $0x498] sm:$0xff] }
0x101f   :  { %v8164_v39 = vpack.c.bf16 %v4938_v21, %v4937_v26  ;;  %v4955_v21 = vld [vmem:[#allocation6 + $0x410] sm:$0xff] }
0x1021   :  { %8127 = vmatpush3.bf16.msra.mxu0 %v8126_v44  ;;  %v4922_v44 = vld [vmem:[#allocation6 + $0x308] sm:$0xff] }
0x1022   :  { %8129 = vmatprep.subr.bf16.mxu0 %v8128_v0  ;;  %v4939_v0 = vld [vmem:[#allocation6 + $0x390] sm:$0xff]  ;;  %v8166_v50 = vpack.c.bf16 %v4922_v44, %v4921_v6  ;;  %v4973_v6 = vld [vmem:[#allocation6 + $0x4a0] sm:$0xff]  ;;  %v4974_v44 = vld [vmem:[#allocation6 + $0x4a8] sm:$0xff] }
0x1023   :  { %v8168_v49 = vpack.c.bf16 %v4940_v33, %v4939_v0  ;;  %v4822_v0 = vld [vmem:[#allocation2 + $0x48] sm:$0x3] }
0x1025   :  { %8131 = vmatpush3.bf16.msra.mxu0 %v8130_v51  ;;  %v4924_v51 = vld [vmem:[#allocation6 + $0x318] sm:$0xff] }
0x1026   :  { %8133 = vmatprep.subr.bf16.mxu0 %v8132_v38  ;;  %v4817_v38 = vld [vmem:[#allocation2 + $0x20] sm:$0x3]  ;;  %v8170_v36 = vpack.c.bf16 %v4924_v51, %v4923_v45  ;;  %v4958_v45 = vld [vmem:[#allocation6 + $0x428] sm:$0xff]  ;;  %v4975_v51 = vld [vmem:[#allocation6 + $0x4b0] sm:$0xff] }
0x1028   :  { %5152 = vmatmul.mubr.f32.vlgmr.msra.gmra.mrb[26].mxu0 %v4815_v56  ;;  %v4944_v56 = vld [vmem:[#allocation6 + $0x3b8] sm:$0xff] }
0x1029   :  { %8135 = vmatpush3.bf16.msra.mxu0 %v8134_v37  ;;  %5221 = vmatprep.mubr.f32.mxu0 %v4818_v62  ;;  %v8172_v37 = vpack.c.bf16 %v4942_v40, %v4941_v52  ;;  %v8176_v61 = vpack.c.bf16 %v4944_v56, %v4943_v54  ;;  %v4927_v62 = vld [vmem:[#allocation6 + $0x330] sm:$0xff]  ;;  %v4961_v56 = vld [vmem:[#allocation6 + $0x440] sm:$0xff] }
0x102a   :  { %8137 = vmatprep.subr.bf16.mxu0 %v8136_v43  ;;  %v4925_v43 = vld [vmem:[#allocation6 + $0x320] sm:$0xff] }
0x102b   :  { %v8174_v57 = vpack.c.bf16 %v4926_v18, %v4925_v43  ;;  %v4978_v43 = vld [vmem:[#allocation6 + $0x4c8] sm:$0xff] }
0x102d   :  { %8139 = vmatpush3.bf16.msra.mxu0 %v8138_v4  ;;  %v4928_v4 = vld [vmem:[#allocation6 + $0x338] sm:$0xff] }
0x102e   :  { %8141 = vmatprep.subr.bf16.mxu0 %v8140_v5  ;;  %v4945_v5 = vld [vmem:[#allocation6 + $0x3c0] sm:$0xff]  ;;  %v8178_v8 = vpack.c.bf16 %v4928_v4, %v4927_v62  ;;  %v4980_v62 = vld [vmem:[#allocation6 + $0x4d8] sm:$0xff] }
0x102f   :  { %v8180_v9 = vpack.c.bf16 %v4946_v7, %v4945_v5  ;;  %v4963_v7 = vld [vmem:[#allocation6 + $0x450] sm:$0xff] }
0x1031   :  { %8143 = vmatpush3.bf16.msra.mxu0 %v8142_v10  ;;  %v4930_v10 = vld [vmem:[#allocation6 + $0x348] sm:$0xff] }
0x1032   :  { %8145 = vmatprep.subr.bf16.mxu0 %v8144_v63  ;;  %v4947_v63 = vld [vmem:[#allocation6 + $0x3d0] sm:$0xff]  ;;  %v8182_v2 = vpack.c.bf16 %v4930_v10, %v4929_v16  ;;  %v4982_v16 = vld [vmem:[#allocation6 + $0x4e8] sm:$0xff] }
0x1033   :  { %v8184_v53 = vpack.c.bf16 %v4948_v17, %v4947_v63  ;;  %v4965_v17 = vld [vmem:[#allocation6 + $0x460] sm:$0xff] }
0x1035   :  { %8147 = vmatpush3.bf16.msra.mxu0 %v8146_v3  ;;  %v4932_v3 = vld [vmem:[#allocation6 + $0x358] sm:$0xff] }
0x1036   :  { %8149 = vmatprep.subr.bf16.mxu0 %v8148_v19  ;;  %v4949_v19 = vld [vmem:[#allocation6 + $0x3e0] sm:$0xff]  ;;  %v8186_v28 = vpack.c.bf16 %v4932_v3, %v4931_v12  ;;  %v4984_v12 = vld [vmem:[#allocation6 + $0x4f8] sm:$0xff] }
0x1037   :  { %v8188_v60 = vpack.c.bf16 %v4950_v13, %v4949_v19  ;;  %v4967_v13 = vld [vmem:[#allocation6 + $0x470] sm:$0xff] }
0x1039   :  { %8151 = vmatpush3.bf16.msra.mxu0 %v8150_v22  ;;  %v4934_v22 = vld [vmem:[#allocation6 + $0x368] sm:$0xff] }
0x103a   :  { %8153 = vmatprep.subr.bf16.mxu0 %v8152_v20  ;;  %v4951_v20 = vld [vmem:[#allocation6 + $0x3f0] sm:$0xff]  ;;  %v8190_v35 = vpack.c.bf16 %v4934_v22, %v4933_v25  ;;  %v4821_v25 = vld [vmem:[#allocation2 + $0x40] sm:$0x3] }
0x103b   :  { %v8192_v1 = vpack.c.bf16 %v4952_v47, %v4951_v20  ;;  %v5454_v22 = vld [vmem:[%s13014_s6 + $0x400] sm:$0xff]  ;;  %v5455_v20 = vld [vmem:[%s13014_s6 + $0x408] sm:$0xff]  ;;  %v5456_v47 = vld [vmem:[%s13014_s6 + $0x410] sm:$0xff] }
0x103d   :  { %8155 = vmatpush3.bf16.msra.mxu0 %v8154_v59  ;;  %v4936_v59 = vld [vmem:[#allocation6 + $0x378] sm:$0xff] }
0x103e   :  { %8157 = vmatprep.subr.bf16.mxu0 %v8156_v15  ;;  %v4969_v15 = vld [vmem:[#allocation6 + $0x480] sm:$0xff]  ;;  %v8194_v27 = vpack.c.bf16 %v4936_v59, %v4935_v34  ;;  %v5457_v34 = vld [vmem:[%s13014_s6 + $0x418] sm:$0xff] }
0x103f   :  { %v8196_v29 = vpack.c.bf16 %v4970_v58, %v4969_v15  ;;  %v8264_v59 = vpack.c.bf16 %v5457_v34, %v5456_v47 }
0x1041   :  { %8159 = vmatpush3.bf16.msra.mxu0 %v8158_v11  ;;  %v4954_v11 = vld [vmem:[#allocation6 + $0x408] sm:$0xff] }
0x1042   :  { %8161 = vmatprep.subr.bf16.mxu0 %v8160_v30  ;;  %v4971_v30 = vld [vmem:[#allocation6 + $0x490] sm:$0xff]  ;;  %v8198_v32 = vpack.c.bf16 %v4954_v11, %v4953_v23  ;;  %v5459_v23 = vld [vmem:[%s13014_s6 + $0x428] sm:$0xff] }
0x1043   :  { %v8200_v26 = vpack.c.bf16 %v4972_v31, %v4971_v30 }
0x1045   :  { %8163 = vmatpush3.bf16.msra.mxu0 %v8162_v14  ;;  %v4956_v14 = vld [vmem:[#allocation6 + $0x418] sm:$0xff] }
0x1046   :  { %8165 = vmatprep.subr.bf16.mxu0 %v8164_v39  ;;  %v4819_v39 = vld [vmem:[#allocation2 + $0x30] sm:$0x3]  ;;  %v8202_v33 = vpack.c.bf16 %v4956_v14, %v4955_v21  ;;  %v5461_v21 = vld [vmem:[%s13014_s6 + $0x438] sm:$0xff] }
0x1048   :  { %5222 = vmatmul.mubr.f32.vlgmr.msra.gmra.mrb[28].mxu0 %v4817_v38  ;;  %v4976_v38 = vld [vmem:[#allocation6 + $0x4b8] sm:$0xff] }
0x1049   :  { %8167 = vmatpush3.bf16.msra.mxu0 %v8166_v50  ;;  %5291 = vmatprep.mubr.f32.mxu0 %v4820_v41  ;;  %v8204_v50 = vpack.c.bf16 %v4974_v44, %v4973_v6  ;;  %v8208_v40 = vpack.c.bf16 %v4976_v38, %v4975_v51  ;;  %v4959_v41 = vld [vmem:[#allocation6 + $0x430] sm:$0xff]  ;;  %v5463_v6 = vld [vmem:[%s13014_s6 + $0x448] sm:$0xff] }
0x104a   :  { %8169 = vmatprep.subr.bf16.mxu0 %v8168_v49  ;;  %v4957_v49 = vld [vmem:[#allocation6 + $0x420] sm:$0xff]  ;;  %v5468_v38 = vld [vmem:[%s13014_s6 + $0x470] sm:$0xff] }
0x104b   :  { %v8206_v52 = vpack.c.bf16 %v4958_v45, %v4957_v49  ;;  %v5466_v49 = vld [vmem:[%s13014_s6 + $0x460] sm:$0xff]  ;;  %v5467_v45 = vld [vmem:[%s13014_s6 + $0x468] sm:$0xff] }
0x104c   :  { %v8279_v51 = vpack.c.bf16 %v5467_v45, %v5466_v49  ;;  %v5782_v49 = vld [vmem:[#allocation8 + $0x130] sm:$0xff]  ;;  %v5785_v45 = vld [vmem:[#allocation8 + $0x148] sm:$0xff] }
0x104d   :  { %8171 = vmatpush3.bf16.msra.mxu0 %v8170_v36  ;;  %v4960_v36 = vld [vmem:[#allocation6 + $0x438] sm:$0xff] }
0x104e   :  { %8173 = vmatprep.subr.bf16.mxu0 %v8172_v37  ;;  %v4977_v37 = vld [vmem:[#allocation6 + $0x4c0] sm:$0xff]  ;;  %v8210_v18 = vpack.c.bf16 %v4960_v36, %v4959_v41 }
0x104f   :  { %v8212_v54 = vpack.c.bf16 %v4978_v43, %v4977_v37 }
0x1051   :  { %8175 = vmatpush3.bf16.msra.mxu0 %v8174_v57  ;;  %v4962_v57 = vld [vmem:[#allocation6 + $0x448] sm:$0xff] }
0x1052   :  { %8177 = vmatprep.subr.bf16.mxu0 %v8176_v61  ;;  %v4979_v61 = vld [vmem:[#allocation6 + $0x4d0] sm:$0xff]  ;;  %v8214_v4 = vpack.c.bf16 %v4962_v57, %v4961_v56 }
0x1053   :  { %v8216_v5 = vpack.c.bf16 %v4980_v62, %v4979_v61 }
0x1055   :  { %8179 = vmatpush3.bf16.msra.mxu0 %v8178_v8  ;;  %v4964_v8 = vld [vmem:[#allocation6 + $0x458] sm:$0xff] }
0x1056   :  { %8181 = vmatprep.subr.bf16.mxu0 %v8180_v9  ;;  %v4981_v9 = vld [vmem:[#allocation6 + $0x4e0] sm:$0xff]  ;;  %v8218_v10 = vpack.c.bf16 %v4964_v8, %v4963_v7 }
0x1057   :  { %v8220_v63 = vpack.c.bf16 %v4982_v16, %v4981_v9 }
0x1059   :  { %8183 = vmatpush3.bf16.msra.mxu0 %v8182_v2  ;;  %v4966_v2 = vld [vmem:[#allocation6 + $0x468] sm:$0xff] }
0x105a   :  { %8185 = vmatprep.subr.bf16.mxu0 %v8184_v53  ;;  %v4983_v53 = vld [vmem:[#allocation6 + $0x4f0] sm:$0xff]  ;;  %v8222_v3 = vpack.c.bf16 %v4966_v2, %v4965_v17 }
0x105b   :  { %v8224_v19 = vpack.c.bf16 %v4984_v12, %v4983_v53 }
0x105d   :  { %8187 = vmatpush3.bf16.msra.mxu0 %v8186_v28  ;;  %v4968_v28 = vld [vmem:[#allocation6 + $0x478] sm:$0xff] }
0x105e   :  { %8189 = vmatprep.subr.bf16.mxu0 %v8188_v60  ;;  %v8226_v60 = vpack.c.bf16 %v4968_v28, %v4967_v13 }
0x1061   :  { %8191 = vmatpush3.bf16.msra.mxu0 %v8190_v35  ;;  %v8625_v35 = vmov 0.0|0.0  }
0x1062   :  { %8193 = vmatprep.subr.bf16.mxu0 %v8192_v1  ;;  %v8261_v1 = vpack.c.bf16 %v5455_v20, %v5454_v22  ;;  %8284 = vmatprep.subr.bf16.mxu1 %v8625_v35 }
0x1065   :  { %8195 = vmatpush3.bf16.msra.mxu0 %v8194_v27 }
0x1066   :  { %8197 = vmatprep.subr.bf16.mxu0 %v8196_v29  ;;  %v5458_v29 = vld [vmem:[%s13014_s6 + $0x420] sm:$0xff] }
0x1067   :  { %v8267_v30 = vpack.c.bf16 %v5459_v23, %v5458_v29  ;;  %v5567_v29 = vld [vmem:[%s13015_s7 + $0x130] sm:$0xff] }
0x1068   :  { %5292 = vmatmul.mubr.f32.vlgmr.msra.gmra.mrb[30].mxu0 %v4819_v39  ;;  %v5462_v39 = vld [vmem:[%s13014_s6 + $0x440] sm:$0xff] }
0x1069   :  { %8199 = vmatpush3.bf16.msra.mxu0 %v8198_v32  ;;  %5361 = vmatprep.mubr.f32.mxu0 %v4822_v0  ;;  %v8273_v44 = vpack.c.bf16 %v5463_v6, %v5462_v39  ;;  %v5464_v0 = vld [vmem:[%s13014_s6 + $0x450] sm:$0xff] }
0x106a   :  { %8201 = vmatprep.subr.bf16.mxu0 %v8200_v26  ;;  %v5460_v26 = vld [vmem:[%s13014_s6 + $0x430] sm:$0xff] }
0x106b   :  { %v8270_v14 = vpack.c.bf16 %v5461_v21, %v5460_v26  ;;  %v5779_v26 = vld [vmem:[#allocation8 + $0x118] sm:$0xff]  ;;  %v5778_v39 = vld [vmem:[#allocation8 + $0x110] sm:$0xff] }
0x106d   :  { %8203 = vmatpush3.bf16.msra.mxu0 %v8202_v33  ;;  %v5465_v33 = vld [vmem:[%s13014_s6 + $0x458] sm:$0xff] }
0x106e   :  { %8205 = vmatprep.subr.bf16.mxu0 %v8204_v50  ;;  %v8276_v50 = vpack.c.bf16 %v5465_v33, %v5464_v0  ;;  %v5783_v0 = vld [vmem:[#allocation8 + $0x138] sm:$0xff]  ;;  %v5780_v33 = vld [vmem:[#allocation8 + $0x120] sm:$0xff] }
0x1071   :  { %8207 = vmatpush3.bf16.msra.mxu0 %v8206_v52  ;;  %v5469_v52 = vld [vmem:[%s13014_s6 + $0x478] sm:$0xff] }
0x1072   :  { %8209 = vmatprep.subr.bf16.mxu0 %v8208_v40  ;;  %v8282_v40 = vpack.c.bf16 %v5469_v52, %v5468_v38  ;;  %v5784_v38 = vld [vmem:[#allocation8 + $0x140] sm:$0xff] }
0x1075   :  { %8211 = vmatpush3.bf16.msra.mxu0 %v8210_v18 }
0x1076   :  { %8213 = vmatprep.subr.bf16.mxu0 %v8212_v54 }
0x1079   :  { %8215 = vmatpush3.bf16.msra.mxu0 %v8214_v4 }
0x107a   :  { %8217 = vmatprep.subr.bf16.mxu0 %v8216_v5 }
0x107d   :  { %8219 = vmatpush3.bf16.msra.mxu0 %v8218_v10 }
0x107e   :  { %8221 = vmatprep.subr.bf16.mxu0 %v8220_v63 }
0x1081   :  { %8223 = vmatpush3.bf16.msra.mxu0 %v8222_v3 }
0x1082   :  { %8225 = vmatprep.subr.bf16.mxu0 %v8224_v19 }
0x1085   :  { %8227 = vmatpush3.bf16.msra.mxu0 %v8226_v60 }
0x1086   :  { %8260 = vmatprep.subr.bf16.mxu0 %v8625_v35 }
0x1088   :  { %5362 = vmatmul.mubr.f32.vlgmr.msra.gmra.mrb[32].mxu0 %v4821_v25 }
0x1089   :  { %8262 = vmatpush3.bf16.msra.mxu0 %v8261_v1  ;;  %6502 = vmatprep.mubr.msk.f32.mxu0 %vm8626_vm9, %v8624_v24 }
0x108a   :  { %8263 = vmatprep.subr.bf16.mxu0 %v8625_v35 }
0x108d   :  { %8265 = vmatpush3.bf16.msra.mxu0 %v8264_v59  ;;  %v5564_v59 = vld [vmem:[%s13015_s7 + $0x100] sm:$0xff] }
0x108e   :  { %8266 = vmatprep.subr.bf16.mxu0 %v8625_v35 }
0x1091   :  { %8268 = vmatpush3.bf16.msra.mxu0 %v8267_v30  ;;  %v5656_v30 = vld [vmem:[#allocation8 + $0x18] sm:$0xff] }
0x1092   :  { %8269 = vmatprep.subr.bf16.mxu0 %v8625_v35 }
0x1095   :  { %8271 = vmatpush3.bf16.msra.mxu0 %v8270_v14  ;;  %v5776_v14 = vld [vmem:[#allocation8 + $0x100] sm:$0xff] }
0x1096   :  { %8272 = vmatprep.subr.bf16.mxu0 %v8625_v35  ;;  %v8324_v6 = vpack.c.bf16 %v5778_v39, %v5776_v14  ;;  %v5661_v14 = vld [vmem:[#allocation8 + $0x40] sm:$0xff]  ;;  %v5663_v39 = vld [vmem:[#allocation8 + $0x50] sm:$0xff] }
0x1099   :  { %8274 = vmatpush3.bf16.msra.mxu0 %v8273_v44  ;;  %v5781_v44 = vld [vmem:[#allocation8 + $0x128] sm:$0xff] }
0x109a   :  { %8275 = vmatprep.subr.bf16.mxu0 %v8625_v35 }
0x109d   :  { %8277 = vmatpush3.bf16.msra.mxu0 %v8276_v50  ;;  %v8326_v50 = vpack.c.bf16 %v5783_v0, %v5781_v44  ;;  %v5668_v44 = vld [vmem:[#allocation8 + $0x78] sm:$0xff]  ;;  %v8300_v0 = vpack.c.bf16 %v5663_v39, %v5661_v14 }
0x109e   :  { %8278 = vmatprep.subr.bf16.mxu0 %v8625_v35  ;;  %v5926_v14 = vld [vmem:[%s13019_s11 + $0x98] sm:$0xff] }
0x10a1   :  { %8280 = vmatpush3.bf16.msra.mxu0 %v8279_v51  ;;  %v5787_v51 = vld [vmem:[#allocation8 + $0x158] sm:$0xff] }
0x10a2   :  { %8281 = vmatprep.subr.bf16.mxu0 %v8625_v35  ;;  %v8330_v52 = vpack.c.bf16 %v5787_v51, %v5785_v45  ;;  %v5672_v45 = vld [vmem:[#allocation8 + $0x98] sm:$0xff] }
0x10a5   :  { %8283 = vmatpush3.bf16.msra.mxu0 %v8282_v40  ;;  %v5786_v40 = vld [vmem:[#allocation8 + $0x150] sm:$0xff] }
0x10db   :  { %v6235_v15 = vpop.f32.mrb[24].mxu0 }
0x10dc   :  { %v6236_v58 = vpop.f32.mrb[25].mxu0 }
0x10dd   :  { %v6237_v27 = vadd.f32 %v6236_v58, %v6235_v15  ;;  %v5565_v15 = vld [vmem:[%s13015_s7 + $0x110] sm:$0xff] }
0x10de   :  { %v8285_v58 = vpack.c.bf16 %v5565_v15, %v5564_v59  ;;  %v5660_v59 = vld [vmem:[#allocation8 + $0x38] sm:$0xff] }
0x10e0   :  { %v6410_v11 = vpop.f32.mrb[14].mxu1  ;;  %8286 = vmatpush3.bf16.msra.mxu1 %v8285_v58 }
0x10e1   :  { %v6411_v31 = vpop.f32.mrb[15].mxu1  ;;  %8287 = vmatprep.subr.bf16.mxu1 %v8625_v35  ;;  %v8328_v35 = vpack.c.bf16 %v5782_v49, %v5780_v33  ;;  %v5667_v49 = vld [vmem:[#allocation8 + $0x70] sm:$0xff] }
0x10e2   :  { %v6412_v32 = vadd.f32 %v6411_v31, %v6410_v11  ;;  %v5654_v11 = vld [vmem:[#allocation8 + $0x8] sm:$0xff] }
0x10e3   :  { %v8290_v31 = vpack.c.bf16 %v5656_v30, %v5654_v11  ;;  %v5659_v11 = vld [vmem:[#allocation8 + $0x30] sm:$0xff] }
0x10fb   :  { %v6270_v41 = vpop.f32.mrb[26].mxu0 }
0x10fc   :  { %v6271_v36 = vpop.f32.mrb[27].mxu0 }
0x10fd   :  { %v6272_v37 = vadd.f32 %v6271_v36, %v6270_v41  ;;  %v8332_v41 = vpack.c.bf16 %v5786_v40, %v5784_v38  ;;  %v5789_v36 = vld [vmem:[#allocation8 + $0x168] sm:$0xff] }
0x10fe   :  { %v5674_v40 = vld [vmem:[#allocation8 + $0xa8] sm:$0xff] }
0x10ff   :  { %v5154_v43 = vadd.f32 %v6272_v37, %v6237_v27  ;;  %v5566_v27 = vld [vmem:[%s13015_s7 + $0x120] sm:$0xff]  ;;  %v5791_v37 = vld [vmem:[#allocation8 + $0x178] sm:$0xff] }
0x1100   :  { %v8288_v23 = vpack.c.bf16 %v5567_v29, %v5566_v27 }
0x1102   :  { %8289 = vmatpush3.bf16.msra.mxu1 %v8288_v23  ;;  %v5657_v23 = vld [vmem:[#allocation8 + $0x20] sm:$0xff] }
0x1103   :  { %8291 = vmatprep.subr.bf16.mxu1 %v8290_v31  ;;  %v5662_v31 = vld [vmem:[#allocation8 + $0x48] sm:$0xff] }
0x111b   :  { %v6305_v18 = vpop.f32.mrb[28].mxu0 }
0x111c   :  { %v6306_v54 = vpop.f32.mrb[29].mxu0 }
0x111d   :  { %v6307_v56 = vadd.f32 %v6306_v54, %v6305_v18  ;;  %v8334_v18 = vpack.c.bf16 %v5791_v37, %v5789_v36  ;;  %v5790_v54 = vld [vmem:[#allocation8 + $0x170] sm:$0xff] }
0x111f   :  { %v5224_v57 = vadd.f32 %v6307_v56, %v5154_v43  ;;  %v5788_v43 = vld [vmem:[#allocation8 + $0x160] sm:$0xff] }
0x1120   :  { %v8336_v56 = vpack.c.bf16 %v5790_v54, %v5788_v43  ;;  %v5673_v43 = vld [vmem:[#allocation8 + $0xa0] sm:$0xff] }
0x113b   :  { %v6340_v61 = vpop.f32.mrb[30].mxu0 }
0x113c   :  { %v6341_v62 = vpop.f32.mrb[31].mxu0 }
0x113d   :  { %v6342_v4 = vadd.f32 %v6341_v62, %v6340_v61  ;;  %v5795_v61 = vld [vmem:[#allocation8 + $0x198] sm:$0xff]  ;;  %v5792_v62 = vld [vmem:[#allocation8 + $0x180] sm:$0xff] }
0x113f   :  { %v5294_v5 = vadd.f32 %v6342_v4, %v5224_v57  ;;  %v5793_v57 = vld [vmem:[#allocation8 + $0x188] sm:$0xff] }
0x1140   :  { %v8338_v4 = vpack.c.bf16 %v5795_v61, %v5793_v57  ;;  %v5798_v57 = vld [vmem:[#allocation8 + $0x1b0] sm:$0xff] }
0x115b   :  { %v6375_v7 = vpop.f32.mrb[32].mxu0 }
0x115c   :  { %v6376_v8 = vpop.f32.mrb[33].mxu0 }
0x115d   :  { %v6377_v9 = vadd.f32 %v6376_v8, %v6375_v7  ;;  %v5797_v8 = vld [vmem:[#allocation8 + $0x1a8] sm:$0xff] }
0x115f   :  { %v5364_v16 = vadd.f32 %v6377_v9, %v5294_v5  ;;  %v5794_v5 = vld [vmem:[#allocation8 + $0x190] sm:$0xff]  ;;  %v5799_v9 = vld [vmem:[#allocation8 + $0x1b8] sm:$0xff] }
0x1160   :  { %v8340_v7 = vpack.c.bf16 %v5794_v5, %v5792_v62  ;;  %v5678_v62 = vld [vmem:[#allocation8 + $0xc8] sm:$0xff] }
0x1161   :  { %v12842_v10 = vadd.f32 %v6412_v32, %v5364_v16  ;;  %v5777_v32 = vld [vmem:[#allocation8 + $0x108] sm:$0xff]  ;;  %v8342_v16 = vpack.c.bf16 %v5799_v9, %v5797_v8  ;;  %v5679_v8 = vld [vmem:[#allocation8 + $0xd0] sm:$0xff] }
0x1162   :  { %v8322_v21 = vpack.c.bf16 %v5779_v26, %v5777_v32  ;;  %v5664_v32 = vld [vmem:[#allocation8 + $0x58] sm:$0xff]  ;;  %v8296_v26 = vpack.c.bf16 %v5659_v11, %v5657_v23 }
0x1163   :  { %v5438_v63 = vsel %vm5437_vm10, %v12842_v10, 0.0  ;;  %v5445_v17 = vmul.f32 %v12842_v10, %v12842_v10 }
0x1164   :  { %v5439_v2 = vrot.slane %v5438_v63, 4  ;;  %8323 = vmatprep.subr.bf16.mxu0 %v8322_v21  ;;  %v8298_v21 = vpack.c.bf16 %v5664_v32, %v5662_v31  ;;  %v5907_v32 = vld [vmem:[%s13019_s11] sm:$0xff] }
0x1165   :  { %v5446_v53 = vsel %vm5437_vm10, %v5445_v17, 0.0 }
0x1166   :  { %v5440_v12 = vadd.f32 %v5439_v2, %v5438_v63  ;;  %v5447_v3 = vrot.slane %v5446_v53, 4 }
0x1168   :  { %v5441_v19 = vrot.slane %v5440_v12, 2  ;;  %v5448_v13 = vadd.f32 %v5447_v3, %v5446_v53 }
0x116a   :  { %v5442_v28 = vadd.f32 %v5441_v19, %v5440_v12  ;;  %v5449_v60 = vrot.slane %v5448_v13, 2 }
0x116c   :  { %v5443_v25 = vrot.slane %v5442_v28, 1  ;;  %v5450_v22 = vadd.f32 %v5449_v60, %v5448_v13  ;;  %v5545_v13 = vld [vmem:[%s13016_s8 + $0x20] sm:$0x1] }
0x116e   :  { %v5451_v20 = vrot.slane %v5450_v22, 1  ;;  %v5444_v47 = vadd.f32 %v5443_v25, %v5442_v28  ;;  %v5546_v25 = vld [vmem:[%s13016_s8 + $0x21] sm:$0x1] }
0x1170   :  { %v5452_v1 = vadd.f32 %v5451_v20, %v5450_v22  ;;  %v5653_v20 = vld [vmem:[#allocation8] sm:$0xff] }
0x1172   :  { %v5453_v34 = vsel %vm822_vm2, %v5444_v47, %v5452_v1  ;;  %v5655_v47 = vld [vmem:[#allocation8 + $0x10] sm:$0xff] }
0x1173   :  { %6503 = vmatmul.mubr.f32.vlgmr.msra.gmra.mrb[34].mxu0 %v5453_v34  ;;  %v5658_v34 = vld [vmem:[#allocation8 + $0x28] sm:$0xff]  ;;  %v8292_v27 = vpack.c.bf16 %v5655_v47, %v5653_v20  ;;  %v5807_v20 = vld [vmem:[#allocation8 + $0x1f8] sm:$0xff] }
0x1174   :  { %5875 = vmatprep.mubr.f32.mxu0 %v8624_v24  ;;  %8325 = vmatpush1.bf16.msra.mxu0 %v8324_v6  ;;  %v8294_v29 = vpack.c.bf16 %v5660_v59, %v5658_v34  ;;  %v5666_v6 = vld [vmem:[#allocation8 + $0x68] sm:$0xff]  ;;  %v5806_v34 = vld [vmem:[#allocation8 + $0x1f0] sm:$0xff] }
0x1175   :  { %8327 = vmatprep.subr.bf16.mxu0 %v8326_v50  ;;  %v8302_v33 = vpack.c.bf16 %v5668_v44, %v5666_v6  ;;  %v5665_v50 = vld [vmem:[#allocation8 + $0x60] sm:$0xff] }
0x1176   :  { %v8304_v51 = vpack.c.bf16 %v5667_v49, %v5665_v50  ;;  %v5927_v50 = vld [vmem:[%s13019_s11 + $0xa0] sm:$0xff]  ;;  %v5928_v49 = vld [vmem:[%s13019_s11 + $0xa8] sm:$0xff] }
0x1178   :  { %8329 = vmatpush1.bf16.msra.mxu0 %v8328_v35  ;;  %v5670_v35 = vld [vmem:[#allocation8 + $0x88] sm:$0xff] }
0x1179   :  { %8331 = vmatprep.subr.bf16.mxu0 %v8330_v52  ;;  %v8306_v38 = vpack.c.bf16 %v5672_v45, %v5670_v35  ;;  %v5669_v52 = vld [vmem:[#allocation8 + $0x80] sm:$0xff] }
0x117c   :  { %8333 = vmatpush1.bf16.msra.mxu0 %v8332_v41  ;;  %v5676_v41 = vld [vmem:[#allocation8 + $0xb8] sm:$0xff] }
0x117d   :  { %8335 = vmatprep.subr.bf16.mxu0 %v8334_v18  ;;  %v8310_v37 = vpack.c.bf16 %v5676_v41, %v5674_v40  ;;  %v5675_v18 = vld [vmem:[#allocation8 + $0xb0] sm:$0xff]  ;;  %v5930_v40 = vld [vmem:[%s13019_s11 + $0xb8] sm:$0xff] }
0x117e   :  { %v8312_v54 = vpack.c.bf16 %v5675_v18, %v5673_v43  ;;  %v5914_v43 = vld [vmem:[%s13019_s11 + $0x38] sm:$0xff] }
0x1180   :  { %8337 = vmatpush1.bf16.msra.mxu0 %v8336_v56  ;;  %v5796_v56 = vld [vmem:[#allocation8 + $0x1a0] sm:$0xff] }
0x1181   :  { %8339 = vmatprep.subr.bf16.mxu0 %v8338_v4  ;;  %v8344_v61 = vpack.c.bf16 %v5798_v57, %v5796_v56  ;;  %v5680_v4 = vld [vmem:[#allocation8 + $0xd8] sm:$0xff]  ;;  %v5932_v56 = vld [vmem:[%s13019_s11 + $0xc8] sm:$0xff] }
0x1182   :  { %v8314_v5 = vpack.c.bf16 %v5680_v4, %v5678_v62  ;;  %v5916_v62 = vld [vmem:[%s13019_s11 + $0x48] sm:$0xff] }
0x1184   :  { %8341 = vmatpush1.bf16.msra.mxu0 %v8340_v7  ;;  %v5677_v7 = vld [vmem:[#allocation8 + $0xc0] sm:$0xff] }
0x1185   :  { %8343 = vmatprep.subr.bf16.mxu0 %v8342_v16  ;;  %v8316_v9 = vpack.c.bf16 %v5679_v8, %v5677_v7  ;;  %v5801_v16 = vld [vmem:[#allocation8 + $0x1c8] sm:$0xff]  ;;  %v5934_v7 = vld [vmem:[%s13019_s11 + $0xd8] sm:$0xff] }
0x1188   :  { %8345 = vmatpush1.bf16.msra.mxu0 %v8344_v61  ;;  %v5915_v61 = vld [vmem:[%s13019_s11 + $0x40] sm:$0xff] }
0x1189   :  { %v8372_v4 = vpack.c.bf16 %v5916_v62, %v5915_v61 }
0x1246   :  { %v5536_v63 = vpop.f32.mrb[34].mxu0 }
0x1247   :  { %v5540_v17 = vmul.f32 %v5536_v63, %v5536_v63  ;;  %v6504_v2 = vpop.f32.mrb[35].mxu0 }
0x1248   :  { %v5800_v2 = vld [vmem:[#allocation8 + $0x1c0] sm:$0xff] }
0x1249   :  { %v5542_v53 = vrot.slane %v5540_v17, 7 }
0x124b   :  { %v5544_v12 = vsub.f32 %v5536_v63, %v5542_v53  ;;  %v5802_v53 = vld [vmem:[#allocation8 + $0x1d0] sm:$0xff] }
0x124d   :  { %v5547_v3 = vadd.f32 1e-05, %v5544_v12  ;;  %v8348_v12 = vpack.c.bf16 %v5802_v53, %v5800_v2  ;;  %v5936_v2 = vld [vmem:[%s13019_s11 + $0xe8] sm:$0xff] }
0x124f   :  { %8497 = vrsqrt.f32 %v5547_v3  ;;  %v5682_v3 = vld [vmem:[#allocation8 + $0xe8] sm:$0xff] }
0x1259   :  { %v8498_v19 = vpop.eup %8497 }
0x125a   :  { %v5550_v28 = vrot.slane %v8498_v19, 1  ;;  %v5684_v19 = vld [vmem:[#allocation8 + $0xf8] sm:$0xff] }
0x125c   :  { %v5552_v60 = vmul.f32 %v5550_v28, %v5545_v13  ;;  %v8318_v13 = vpack.c.bf16 %v5684_v19, %v5682_v3  ;;  %v5681_v28 = vld [vmem:[#allocation8 + $0xe0] sm:$0xff]  ;;  %v5920_v3 = vld [vmem:[%s13019_s11 + $0x68] sm:$0xff] }
0x125e   :  { %v5553_v22 = vmul.f32 %v5552_v60, %v5536_v63  ;;  %v5558_v15 = vrot.slane %v5552_v60, %v9782_v42  ;;  %v5803_v63 = vld [vmem:[#allocation8 + $0x1d8] sm:$0xff]  ;;  %v5683_v60 = vld [vmem:[#allocation8 + $0xf0] sm:$0xff] }
0x125f   :  { %v8346_v17 = vpack.c.bf16 %v5803_v63, %v5801_v16  ;;  %v5918_v16 = vld [vmem:[%s13019_s11 + $0x58] sm:$0xff] }
0x1260   :  { %v5554_v1 = vsub.f32 %v5546_v25, %v5553_v22  ;;  %v8320_v25 = vpack.c.bf16 %v5683_v60, %v5681_v28  ;;  %v5805_v22 = vld [vmem:[#allocation8 + $0x1e8] sm:$0xff]  ;;  %v5938_v28 = vld [vmem:[%s13019_s11 + $0xf8] sm:$0xff]  ;;  %v5921_v60 = vld [vmem:[%s13019_s11 + $0x70] sm:$0xff] }
0x1261   :  { %8347 = vmatprep.subr.bf16.mxu0 %v8346_v17  ;;  %v8350_v47 = vpack.c.bf16 %v5807_v20, %v5805_v22  ;;  %v5935_v17 = vld [vmem:[%s13019_s11 + $0xe0] sm:$0xff]  ;;  %v5922_v22 = vld [vmem:[%s13019_s11 + $0x78] sm:$0xff] }
0x1262   :  { %v5562_v58 = vrot.slane %v5554_v1, %v9782_v42  ;;  %8349 = vmatpush1.bf16.msra.mxu0 %v8348_v12  ;;  %v5804_v1 = vld [vmem:[#allocation8 + $0x1e0] sm:$0xff]  ;;  %v8378_v53 = vpack.c.bf16 %v5936_v2, %v5935_v17  ;;  %v8384_v20 = vpack.c.bf16 %v5922_v22, %v5921_v60 }
0x1263   :  { %v8352_v59 = vpack.c.bf16 %v5806_v34, %v5804_v1  ;;  %8351 = vmatprep.subr.bf16.mxu0 %v8350_v47  ;;  %v5919_v12 = vld [vmem:[%s13019_s11 + $0x60] sm:$0xff]  ;;  %v8627_v47 = vmov 1966171168  }
0x1264   :  { %v5563_v30 = vsel %vm822_vm2, %v5558_v15, %v5562_v58  ;;  %v5923_v15 = vld [vmem:[%s13019_s11 + $0x80] sm:$0xff]  ;;  %v5924_v58 = vld [vmem:[%s13019_s11 + $0x88] sm:$0xff]  ;;  %v8380_v19 = vpack.c.bf16 %v5920_v3, %v5919_v12  ;;  %v5760_v1 = vunpack.c.l.s4 %v8627_v47 }
0x1265   :  { %6514 = vmatmul.mubr.msk.f32.vlgmr.msra.gmra.mrb[16].mxu1 %vm959_vm3, %v5563_v30 }
0x1266   :  { %8293 = vmatpush1.bf16.msra.mxu1 %v8292_v27  ;;  %5749 = vmatprep.mubr.f32.mxu1 %v8624_v24  ;;  %v5671_v24 = vld [vmem:[#allocation8 + $0x90] sm:$0xff]  ;;  %v8354_v27 = vpack.c.bf16 %v5924_v58, %v5923_v15  ;;  %v5761_v34 = vunpack.c.0.s8 %v5760_v1 }
0x1267   :  { %8295 = vmatprep.subr.bf16.mxu1 %v8294_v29  ;;  %v8308_v36 = vpack.c.bf16 %v5671_v24, %v5669_v52  ;;  %8353 = vmatpush1.bf16.msra.mxu0 %v8352_v59  ;;  %v5912_v52 = vld [vmem:[%s13019_s11 + $0x28] sm:$0xff]  ;;  %v5929_v24 = vld [vmem:[%s13019_s11 + $0xb0] sm:$0xff] }
0x1268   :  { %v5764_v15 = vsub.s32 %v5761_v34, %v9737_v55 }
0x126a   :  { %8297 = vmatpush1.bf16.msra.mxu1 %v8296_v26  ;;  %v5908_v26 = vld [vmem:[%s13019_s11 + $0x8] sm:$0xff] }
0x126b   :  { %8299 = vmatprep.subr.bf16.mxu1 %v8298_v21  ;;  %v5925_v21 = vld [vmem:[%s13019_s11 + $0x90] sm:$0xff] }
0x126c   :  { %v8358_v44 = vpack.c.bf16 %v5926_v14, %v5925_v21 }
0x126e   :  { %8301 = vmatpush1.bf16.msra.mxu1 %v8300_v0  ;;  %v5909_v0 = vld [vmem:[%s13019_s11 + $0x10] sm:$0xff] }
0x126f   :  { %8303 = vmatprep.subr.bf16.mxu1 %v8302_v33  ;;  %v5910_v33 = vld [vmem:[%s13019_s11 + $0x18] sm:$0xff] }
0x1270   :  { %v8360_v45 = vpack.c.bf16 %v5910_v33, %v5909_v0 }
0x1272   :  { %8305 = vmatpush1.bf16.msra.mxu1 %v8304_v51  ;;  %v8362_v51 = vpack.c.bf16 %v5928_v49, %v5927_v50 }
0x1273   :  { %8307 = vmatprep.subr.bf16.mxu1 %v8306_v38  ;;  %v5911_v38 = vld [vmem:[%s13019_s11 + $0x20] sm:$0xff] }
0x1274   :  { %v8364_v41 = vpack.c.bf16 %v5912_v52, %v5911_v38 }
0x1276   :  { %8309 = vmatpush1.bf16.msra.mxu1 %v8308_v36  ;;  %v8366_v36 = vpack.c.bf16 %v5930_v40, %v5929_v24 }
0x1277   :  { %8311 = vmatprep.subr.bf16.mxu1 %v8310_v37  ;;  %v5913_v37 = vld [vmem:[%s13019_s11 + $0x30] sm:$0xff] }
0x1278   :  { %v8368_v18 = vpack.c.bf16 %v5914_v43, %v5913_v37 }
0x127a   :  { %8313 = vmatpush1.bf16.msra.mxu1 %v8312_v54  ;;  %v5931_v54 = vld [vmem:[%s13019_s11 + $0xc0] sm:$0xff] }
0x127b   :  { %8315 = vmatprep.subr.bf16.mxu1 %v8314_v5  ;;  %v8370_v57 = vpack.c.bf16 %v5932_v56, %v5931_v54  ;;  %v5933_v5 = vld [vmem:[%s13019_s11 + $0xd0] sm:$0xff] }
0x127c   :  { %v8374_v8 = vpack.c.bf16 %v5934_v7, %v5933_v5 }
0x127e   :  { %8317 = vmatpush1.bf16.msra.mxu1 %v8316_v9  ;;  %v5917_v9 = vld [vmem:[%s13019_s11 + $0x50] sm:$0xff] }
0x127f   :  { %8319 = vmatprep.subr.bf16.mxu1 %v8318_v13  ;;  %v8376_v63 = vpack.c.bf16 %v5918_v16, %v5917_v9  ;;  %v5937_v13 = vld [vmem:[%s13019_s11 + $0xf0] sm:$0xff]  ;;  %s8628_s11 = smov [#allocation9]  }
0x1280   :  { %s6029_s6 = sshll.u32 %s8628_s11, 4  ;;  %s6030_s6 = int_to_ptr.vmem [resolvable:$true] %s6029_s6 }
0x1281   :  { %s8565_s5 = scalar_lea.vmem %s6030_s6, 32  ;;  %p8570_p11 = scmp.lt.s32.totalorder %s6030_s6, %s6030_s6 }
0x1282   :  { %8321 = vmatpush1.bf16.msra.mxu1 %v8320_v25  ;;  %v8382_v25 = vpack.c.bf16 %v5938_v28, %v5937_v13  ;;  %p8566_p10 = scmp.ne.s32.totalorder %s6030_s6, %s8565_s5  ;;  %p8571_p12 = scmp.lt.s32.totalorder %s8565_s5, %s8565_s5 }
0x1283   :  { %8355 = vmatprep.subr.bf16.mxu1 %v8354_v27 }
0x1284   :  { %p8572_p13 = por %p8571_p12, %p8570_p11 }
0x1286   :  { %p8573_p0 = pnand %p8572_p13, %p8566_p10 }
0x1338   :  { %v5637_v29 = vpop.f32.mrb[16].mxu1 }
0x1339   :  { %v5644_v23 = vrot.slane %v5637_v29, %v9782_v42  ;;  %v6515_v11 = vpop.f32.mrb[17].mxu1  ;;  %v5649_v31 = vrot.slane %v5637_v29, %v9997_v48 }
0x133b   :  { %v5645_v30 = vmul.f32 %v5644_v23, %v12842_v10  ;;  %v8356_v10 = vpack.c.bf16 %v5908_v26, %v5907_v32 }
0x133d   :  { %v5650_v39 = vadd.f32 %v5649_v31, %v5645_v30  ;;  %v5652_v31 = vld [vmem:[%s13018_s10] sm:$0x3] }
0x133f   :  { %v5651_v6 = vmax.f32 %v5650_v39, 0.0 }
0x1341   :  { %v5809_v35 = vrot.slane %v5651_v6, 1  ;;  %5750 = vmatmul.mubr.f32.vlgmr.msra.gmra.mrb[18].mxu1 %v5651_v6 }
0x1342   :  { %8357 = vmatpush3.bf16.msra.mxu1 %v8356_v10 }
0x1343   :  { %5876 = vmatmul.mubr.f32.vlgmr.msra.gmra.mrb[36].mxu0 %v5809_v35  ;;  %8359 = vmatprep.subr.bf16.mxu1 %v8358_v44 }
0x1346   :  { %8361 = vmatpush3.bf16.msra.mxu1 %v8360_v45 }
0x1347   :  { %8363 = vmatprep.subr.bf16.mxu1 %v8362_v51 }
0x134a   :  { %8365 = vmatpush3.bf16.msra.mxu1 %v8364_v41 }
0x134b   :  { %8367 = vmatprep.subr.bf16.mxu1 %v8366_v36 }
0x134e   :  { %8369 = vmatpush3.bf16.msra.mxu1 %v8368_v18 }
0x134f   :  { %8371 = vmatprep.subr.bf16.mxu1 %v8370_v57 }
0x1352   :  { %8373 = vmatpush3.bf16.msra.mxu1 %v8372_v4 }
0x1353   :  { %8375 = vmatprep.subr.bf16.mxu1 %v8374_v8 }
0x1356   :  { %8377 = vmatpush3.bf16.msra.mxu1 %v8376_v63 }
0x1357   :  { %8379 = vmatprep.subr.bf16.mxu1 %v8378_v53 }
0x135a   :  { %8381 = vmatpush3.bf16.msra.mxu1 %v8380_v19 }
0x135b   :  { %8383 = vmatprep.subr.bf16.mxu1 %v8382_v25 }
0x135e   :  { %8385 = vmatpush3.bf16.msra.mxu1 %v8384_v20 }
0x1414   :  { %v5751_v59 = vpop.f32.mrb[18].mxu1 }
0x1415   :  { %v5753_v58 = vpop.f32.mrb[19].mxu1 }
0x1416   :  { %v5758_v27 = vcombine.low %v5751_v59, %v5753_v58  ;;  %v5877_v29 = vpop.f32.mrb[36].mxu0 }
0x1417   :  { %v5879_v23 = vpop.f32.mrb[37].mxu0 }
0x1418   :  { %v5765_v11 = vrot.slane %v5758_v27, %v5764_v15  ;;  %v5884_v30 = vcombine.low %v5877_v29, %v5879_v23 }
0x141a   :  { %v5772_v32 = vrot.slane %v5765_v11, %v5764_v15  ;;  %v5891_v26 = vrot.slane %v5884_v30, %v5764_v15 }
0x141c   :  { %v5774_v21 = vadd.f32 %v5772_v32, %v5652_v31  ;;  %v5898_v14 = vrot.slane %v5891_v26, %v5764_v15 }
0x141e   :  { %v5900_v39 = vadd.f32 %v5898_v14, %v5774_v21 }
0x1420   :  { %v5901_v10 = vmax.f32 %v5900_v39, 0.0 }
0x1422   :  { %v5948_v55 = vrot.slane %v5901_v10, %v9997_v48  ;;  %v5944_v6 = vrot.slane %v5901_v10, %v9782_v42  ;;  %5906 = vst.msk [vmem:[#allocation9] sm:$0x3] %vm5904_vm11, %v5901_v10 }
0x1424   :  { %6015 = vmatprep.mubr.f32.mxu1 %v5948_v55 }
0x1425   :  { %6016 = vmatmul.mubr.f32.vlgmr.msra.gmra.mrb[20].mxu1 %v5944_v6 }
0x1426   :  { %8576 = shalt.err (!%p8573_p0)
}
0x1427   :  { %s8577_s30 = scalar_lea.hbm %s13021_s13, 32 }
0x1428   :  { %p8578_p1 = scmp.ne.s32.totalorder %s13021_s13, %s8577_s30  ;;  %p8581_p2 = scmp.lt.u32.totalorder %s8577_s30, %s13021_s13 }
0x142a   :  { %p8583_p3 = pnand %p8581_p2, %p8578_p1 }
0x142c   :  { %8586 = shalt.err (!%p8583_p3)
}
0x142d   :  { %6032 = dma.vmem_to_hbm [thread:$0]  %s6030_s6, 32, %s13021_s13, [#allocation5]   ;;  %v5939_v42 = vld [vmem:[%s13020_s12] sm:$0x1]  ;;  %vm6021_vm12 = vcmask 57344  }
0x142e   :  { %s8629_s8 = smov [#allocation10]  }
0x142f   :  { %s6039_s1 = sshll.u32 %s8629_s8, 4  ;;  %s6040_s1 = int_to_ptr.vmem [resolvable:$true] %s6039_s1 }
0x1430   :  { %s8587_s19 = scalar_lea.vmem %s6040_s1, 16  ;;  %s8591_s4 = scalar_lea.vmem %s6040_s1, 32 }
0x1431   :  { %p8588_p4 = scmp.ne.s32.totalorder %s6040_s1, %s8587_s19  ;;  %p8592_p5 = scmp.lt.s32.totalorder %s6040_s1, %s6040_s1 }
0x1432   :  { %p8593_p6 = scmp.lt.s32.totalorder %s8591_s4, %s8587_s19 }
0x1434   :  { %p8594_p7 = por %p8593_p6, %p8592_p5 }
0x1436   :  { %p8595_p8 = pnand %p8594_p7, %p8588_p4 }
0x14f8   :  { %v6467_v46 = vpop.f32.mrb[20].mxu1 }
0x14f9   :  { %v6468_v48 = vpop.f32.mrb[21].mxu1 }
0x14fa   :  { %v6469_v44 = vadd.f32 %v6468_v48, %v6467_v46 }
0x14fc   :  { %v6018_v0 = vadd.f32 %v6469_v44, %v5939_v42 }
0x14fe   :  { %6022 = vst.msk [vmem:[#allocation10] sm:$0x1] %vm6021_vm12, %v6018_v0 }
0x14ff   :  { %8598 = shalt.err (!%p8595_p8)
}
0x1500   :  { %s8599_s12 = scalar_lea.hbm %s13022_s14, 16 }
0x1501   :  { %p8600_p9 = scmp.ne.s32.totalorder %s13022_s14, %s8599_s12  ;;  %p8603_p10 = scmp.lt.u32.totalorder %s8599_s12, %s13022_s14 }
0x1503   :  { %p8605_p11 = pnand %p8603_p10, %p8600_p9 }
0x1505   :  { %8608 = shalt.err (!%p8605_p11)
}
0x1506   :  { %6042 = dma.vmem_to_hbm [thread:$0]  %s6040_s1, 16, %s13022_s14, [#allocation11]  }
0x1507   :  { %8613 = dma.done.wait [#allocation5], 32  }
0x1508   :  { %8614 = vsyncadd [#allocation5], 4294967264 }
0x1509   :  { %8615 = dma.done.wait [#allocation11], 16  }
0x150a   :  { %8616 = vsyncadd [#allocation11], 4294967280 }
0x150b   :  { %6049 = vsyncpa [#allocation4], 1 }
0x150c   :  { %6050 = vsyncpa [#allocation7], 1 }
0x150d   :  { %6051 = vsyncpa [#allocation5], 1 }
0x150e   :  { %6052 = vsyncpa [#allocation11], 1 }

</bundles_post_ra>
